<compile_context>
chip_gen: v7x
topology: tpu7x:2x2x1
jax: 0.10.0
libtpu: 0.0.40
codegen_flags: <defaults>
</compile_context>

<pallas_src>
import functools

import jax
import jax.numpy as jnp
from jax import lax
from jax.experimental import pallas as pl
from jax.experimental.pallas import tpu as pltpu

DILATIONS = (12, 24, 36)
BN_EPS = 1e-5
LEAKY_SLOPE = 0.01
_VMEM_LIMIT = 32 * 1024 * 1024   # explicit: v5e's default scoped VMEM is only 16 MiB


# ---------------------------------------------------------------------------
# helpers
# ---------------------------------------------------------------------------
def _round_up(v, m):
    return (v + m - 1) // m * m


def _pick_rows(m, cols, target_bytes=3 << 20):
    """Pixel-row tile (sublane axis): large enough that each grid step DMAs a few MiB
    (perf-review feedback on tile size), a multiple of 8, clamped to the problem."""
    rows = max(8, (target_bytes // max(1, 4 * cols)) // 8 * 8)
    return int(min(rows, _round_up(m, 8)))


def _pad_rows(x2d, tm):
    m = x2d.shape[0]
    mp = _round_up(m, tm)
    if mp != m:
        x2d = jnp.pad(x2d, ((0, mp - m), (0, 0)))
    return x2d, m


def _cparams(*sems):
    return pltpu.CompilerParams(dimension_semantics=sems,
                                vmem_limit_bytes=_VMEM_LIMIT)


# ---------------------------------------------------------------------------
# Pallas kernels
# ---------------------------------------------------------------------------
def _matmul_bias_kernel(x_ref, w_ref, b_ref, o_ref):
    """(tm, K) @ (K, N) + (1, N) on the MXU; used for every 1x1 / im2col'd conv."""
    acc = jnp.dot(x_ref[...], w_ref[...], preferred_element_type=jnp.float32)
    o_ref[...] = (acc + b_ref[...]).astype(o_ref.dtype)


def _stats_kernel(x_ref, o_ref):
    """Per-channel [sum, sum_sq] accumulated in an output-resident (2, C) tile."""
    @pl.when(pl.program_id(0) == 0)
    def _():
        o_ref[...] = jnp.zeros_like(o_ref)
    x = x_ref[...]
    o_ref[...] += jnp.concatenate(
        [jnp.sum(x, axis=0, keepdims=True),
         jnp.sum(x * x, axis=0, keepdims=True)], axis=0)


def _bn_act_kernel(x_ref, s_ref, b_ref, o_ref, *, slope):
    """Fused BatchNorm scale/shift + LeakyReLU over a lane-dense (rows, C) tile."""
    y = x_ref[...] * s_ref[...] + b_ref[...]
    o_ref[...] = jnp.maximum(y, slope * y)


def _attn_kernel(k_ref, v_ref, o_ref, *, scale):
    """Self-attention for one batch element (f_query = f_key -> Q == K).
    sim = softmax(scale * K K^T); out = sim @ V.  Both matmuls on the MXU."""
    # TODO(synk): flash-style tiling over the pooled-pixel axis for very large h*w;
    # at scale=2 the pooled sequence fits VMEM for typical segmentation crops.
    k = k_ref[...]
    s = lax.dot_general(k, k, (((1,), (1,)), ((), ())),
                        preferred_element_type=jnp.float32) * scale
    s = s - jnp.max(s, axis=-1, keepdims=True)
    e = jnp.exp(s)
    p = e / jnp.sum(e, axis=-1, keepdims=True)
    o_ref[...] = jnp.dot(p, v_ref[...],
                         preferred_element_type=jnp.float32).astype(o_ref.dtype)


def _concat_matmul_kernel(f1, f2, f3, f4, f5, w_ref, o_ref, *, c):
    """Fused torch.cat((feat1..feat5), C) + 1x1 conv: 5 MXU matmuls against static
    slices of the weight — the 5*C concatenated tensor is never written to HBM."""
    acc = jnp.zeros(o_ref.shape, jnp.float32)
    for idx, f in enumerate((f1, f2, f3, f4, f5)):
        acc += jnp.dot(f[...], w_ref[idx * c:(idx + 1) * c, :],
                       preferred_element_type=jnp.float32)
    o_ref[...] = acc.astype(o_ref.dtype)


# ---------------------------------------------------------------------------
# pallas_call wrappers (all activations are (pixels, channels) f32 slabs)
# ---------------------------------------------------------------------------
def _matmul_bias(x2d, w, b=None):
    m, k = x2d.shape
    nout = w.shape[1]
    if b is None:
        b = jnp.zeros((nout,), jnp.float32)
    tm = _pick_rows(m, k)
    xp, m0 = _pad_rows(x2d, tm)
    out = pl.pallas_call(
        _matmul_bias_kernel,
        out_shape=jax.ShapeDtypeStruct((xp.shape[0], nout), jnp.float32),
        grid=(xp.shape[0] // tm,),
        in_specs=[pl.BlockSpec((tm, k), lambda i: (i, 0)),
                  pl.BlockSpec((k, nout), lambda i: (0, 0)),
                  pl.BlockSpec((1, nout), lambda i: (0, 0))],
        out_specs=pl.BlockSpec((tm, nout), lambda i: (i, 0)),
        compiler_params=_cparams("parallel"),
    )(xp, w, b.reshape(1, nout))
    return out[:m0]


def _channel_stats(x2d):
    m, c = x2d.shape
    tile = _pick_rows(m, c)
    xp, m0 = _pad_rows(x2d, tile)       # zero rows contribute 0 to both sums
    sums = pl.pallas_call(
        _stats_kernel,
        out_shape=jax.ShapeDtypeStruct((2, c), jnp.float32),
        grid=(xp.shape[0] // tile,),
        in_specs=[pl.BlockSpec((tile, c), lambda i: (i, 0))],
        out_specs=pl.BlockSpec((2, c), lambda i: (0, 0)),
        compiler_params=_cparams("arbitrary"),
    )(xp)
    mean = sums[0] / m0
    var = jnp.maximum(sums[1] / m0 - mean * mean, 0.0)   # biased var, as BN uses
    return mean, var


def _abn(x2d, gamma=None, beta=None):
    """InPlaceABNSync forward: BN (batch stats) + LeakyReLU(0.01), fused elementwise."""
    m, c = x2d.shape
    mean, var = _channel_stats(x2d)
    g = jnp.ones((c,), jnp.float32) if gamma is None else gamma
    bt = jnp.zeros((c,), jnp.float32) if beta is None else beta
    scale = g * lax.rsqrt(var + BN_EPS)
    shift = bt - mean * scale
    tile = _pick_rows(m, c)
    xp, m0 = _pad_rows(x2d, tile)
    y = pl.pallas_call(
        functools.partial(_bn_act_kernel, slope=LEAKY_SLOPE),
        out_shape=jax.ShapeDtypeStruct(xp.shape, jnp.float32),
        grid=(xp.shape[0] // tile,),
        in_specs=[pl.BlockSpec((tile, c), lambda i: (i, 0)),
                  pl.BlockSpec((1, c), lambda i: (0, 0)),
                  pl.BlockSpec((1, c), lambda i: (0, 0))],
        out_specs=pl.BlockSpec((tile, c), lambda i: (i, 0)),
        compiler_params=_cparams("parallel"),
    )(xp, scale.reshape(1, c), shift.reshape(1, c))
    return y[:m0]


def _conv3x3_dilated(xh, w33, b, d):
    """3x3 dilated conv (padding=dilation, stride 1) as im2col + MXU matmul.
    TODO(synk): a production kernel would fold the 9 shifted taps into the matmul's
    index_map instead of materialising the 9x im2col tensor."""
    n, h, w, c = xh.shape
    xpd = jnp.pad(xh, ((0, 0), (d, d), (d, d), (0, 0)))
    taps = [xpd[:, ky * d:ky * d + h, kx * d:kx * d + w, :]
            for ky in range(3) for kx in range(3)]
    patches = jnp.stack(taps, axis=3).reshape(n * h * w, 9 * c)
    return _matmul_bias(patches, w33.reshape(9 * c, -1), b)


def _upsample_bilinear(xh, out_h, out_w):
    """F.upsample(..., mode='bilinear', align_corners=True)  (JAX glue)."""
    n, h, w, c = xh.shape

    def _coords(out_len, in_len):
        if out_len == 1 or in_len == 1:
            pos = jnp.zeros((out_len,), jnp.float32)
        else:
            pos = jnp.arange(out_len, dtype=jnp.float32) * (in_len - 1) / (out_len - 1)
        i0 = jnp.clip(jnp.floor(pos).astype(jnp.int32), 0, in_len - 1)
        i1 = jnp.clip(i0 + 1, 0, in_len - 1)
        return i0, i1, pos - i0.astype(jnp.float32)

    r0, r1, rf = _coords(out_h, h)
    c0, c1, cf = _coords(out_w, w)
    rows = xh[:, r0] + (xh[:, r1] - xh[:, r0]) * rf[None, :, None, None]
    return rows[:, :, c0] + (rows[:, :, c1] - rows[:, :, c0]) * cf[None, None, :, None]


def _self_attention(xh, wk, bk, wv, bv, ww, bw):
    """SelfAttentionBlock2D with scale=2: maxpool -> (f_key+ABN == f_query), f_value,
    softmax attention, W projection, bilinear upsample back to (h, w)."""
    n, h, w, c = xh.shape
    xp = xh.reshape(n, h // 2, 2, w // 2, 2, c).max(axis=(2, 4))   # MaxPool2d(2) glue
    hp, wp = h // 2, w // 2
    s = hp * wp
    x2 = xp.reshape(n * s, c)
    kc, vc = wk.shape[1], wv.shape[1]

    key = _abn(_matmul_bias(x2, wk, bk))      # f_key (== f_query, shared module)
    val = _matmul_bias(x2, wv, bv)            # f_value (no ABN)

    ctx = pl.pallas_call(
        functools.partial(_attn_kernel, scale=float(kc) ** -0.5),
        out_shape=jax.ShapeDtypeStruct((n, s, vc), jnp.float32),
        grid=(n,),
        in_specs=[pl.BlockSpec((None, s, kc), lambda b: (b, 0, 0)),
                  pl.BlockSpec((None, s, vc), lambda b: (b, 0, 0))],
        out_specs=pl.BlockSpec((None, s, vc), lambda b: (b, 0, 0)),
        compiler_params=_cparams("parallel"),
    )(key.reshape(n, s, kc), val.reshape(n, s, vc))

    ctx = _matmul_bias(ctx.reshape(n * s, vc), ww, bw)    # W projection (1x1 conv)
    return _upsample_bilinear(ctx.reshape(n, hp, wp, -1), h, w)


def _concat_conv1x1(feats, w):
    m, c = feats[0].shape
    nout = w.shape[1]
    tm = _pick_rows(m, 5 * c + nout)
    padded, m0 = [], m
    for f in feats:
        fp, m0 = _pad_rows(f, tm)
        padded.append(fp)
    mp = padded[0].shape[0]
    out = pl.pallas_call(
        functools.partial(_concat_matmul_kernel, c=c),
        out_shape=jax.ShapeDtypeStruct((mp, nout), jnp.float32),
        grid=(mp // tm,),
        in_specs=[pl.BlockSpec((tm, c), lambda i: (i, 0)) for _ in range(5)]
                 + [pl.BlockSpec((5 * c, nout), lambda i: (0, 0))],
        out_specs=pl.BlockSpec((tm, nout), lambda i: (i, 0)),
        compiler_params=_cparams("parallel"),
    )(*padded, w)
    return out[:m0]


# ---------------------------------------------------------------------------
# ASP_OC_Module.forward
# ---------------------------------------------------------------------------
@jax.jit
def asp_oc_forward(x, params):
    """x: (n, features, h, w) NCHW float32 -> (n, 2*out_features, h, w)."""
    n, cin, h, w = x.shape
    of = params["w2"].shape[1]
    xh = jnp.transpose(x, (0, 2, 3, 1)).astype(jnp.float32)   # NCHW -> NHWC, once
    x2d = xh.reshape(n * h * w, cin)

    # context branch: 3x3 conv + ABN -> BaseOC (attention, scale=2) -> 1x1 conv + ABN
    c3 = _abn(_conv3x3_dilated(xh, params["w_ctx3"], params["b_ctx3"], d=1))
    ctx = _self_attention(c3.reshape(n, h, w, of),
                          params["wk"], params["bk"], params["wv"], params["bv"],
                          params["ww"], params["bw"])
    feat1 = _abn(_matmul_bias(ctx.reshape(n * h * w, of),
                              params["wob"], params["bob"]))

    # ASPP-style parallel branches (1x1 and dilated 3x3 convs, all bias-free + ABN)
    feat2 = _abn(_matmul_bias(x2d, params["w2"]))
    feat3 = _abn(_conv3x3_dilated(xh, params["w3"], None, DILATIONS[0]))
    feat4 = _abn(_conv3x3_dilated(xh, params["w4"], None, DILATIONS[1]))
    feat5 = _abn(_conv3x3_dilated(xh, params["w5"], None, DILATIONS[2]))

    # fused concat + final 1x1 conv (no HBM concat), then ABN.
    # TODO(synk): Dropout2d(0.1) treated as identity (eval-mode forward).
    fused = _concat_conv1x1((feat1, feat2, feat3, feat4, feat5), params["wf"])
    out2d = _abn(fused)
    return jnp.transpose(out2d.reshape(n, h, w, -1), (0, 3, 1, 2))


# ---------------------------------------------------------------------------
# demo / self-check
# ---------------------------------------------------------------------------
if __name__ == "__main__":
    key = jax.random.PRNGKey(0)
    features, out_features = 32, 64          # module defaults use 256; kept small here
    n, h, w = 2, 16, 16
    kc = out_features // 2
    keys = jax.random.split(key, 16)

    def rnd(k, shape, s=0.05):
        return jax.random.normal(k, shape, dtype=jnp.float32) * s

    # Note: the module zero-inits the attention W conv; random weights are used here so
    # the attention path contributes non-trivially — the kernels are weight-generic.
    params = dict(
        w_ctx3=rnd(keys[0], (3, 3, features, out_features)),
        b_ctx3=rnd(keys[1], (out_features,)),
        wk=rnd(keys[2], (out_features, kc)),        bk=rnd(keys[3], (kc,)),
        wv=rnd(keys[4], (out_features, out_features)), bv=rnd(keys[5], (out_features,)),
        ww=rnd(keys[6], (out_features, out_features)), bw=rnd(keys[7], (out_features,)),
        wob=rnd(keys[8], (out_features, out_features)), bob=rnd(keys[9], (out_features,)),
        w2=rnd(keys[10], (features, out_features)),
        w3=rnd(keys[11], (3, 3, features, out_features)),
        w4=rnd(keys[12], (3, 3, features, out_features)),
        w5=rnd(keys[13], (3, 3, features, out_features)),
        wf=rnd(keys[14], (5 * out_features, 2 * out_features)),
    )
    x = jax.random.normal(keys[15], (n, features, h, w), dtype=jnp.float32)

    out = asp_oc_forward(x, params)
    jax.block_until_ready(out)
    assert out.shape == (n, 2 * out_features, h, w), out.shape
    assert bool(jnp.all(jnp.isfinite(out)))
    print("KERNEL_OK")
</pallas_src>

<mosaic_0001>
module attributes {stable_mosaic.version = 11 : i64} {
  func.func @_matmul_bias_kernel(%arg0: i32, %arg1: memref<512x288xf32, #tpu.memory_space<vmem>>, %arg2: memref<288x64xf32, #tpu.memory_space<vmem>>, %arg3: memref<1x64xf32, #tpu.memory_space<vmem>>, %arg4: memref<512x64xf32, #tpu.memory_space<vmem>>) attributes {dimension_semantics = [#tpu.dimension_semantics<parallel>], iteration_bounds = array<i64: 1>, scalar_prefetch = 0 : i64, scratch_operands = 0 : i64, tpu.core_type = #tpu.core_type<tc>, window_params = [{transform_indices = @transform_0, window_bounds = array<i64: 512, 288>}, {pipeline_mode = #tpu.pipeline_mode<synchronous>, transform_indices = @transform_1, window_bounds = array<i64: 288, 64>}, {pipeline_mode = #tpu.pipeline_mode<synchronous>, transform_indices = @transform_2, window_bounds = array<i64: 1, 64>}, {transform_indices = @transform_3, window_bounds = array<i64: 512, 64>}]} {
    %c0 = arith.constant 0 : index
    %c0_0 = arith.constant 0 : index
    %0 = vector.load %arg1[%c0, %c0_0] : memref<512x288xf32, #tpu.memory_space<vmem>>, vector<512x288xf32>
    %c0_1 = arith.constant 0 : index
    %c0_2 = arith.constant 0 : index
    %1 = vector.load %arg2[%c0_1, %c0_2] : memref<288x64xf32, #tpu.memory_space<vmem>>, vector<288x64xf32>
    %cst = arith.constant dense<0.000000e+00> : vector<512x64xf32>
    %2 = tpu.matmul %0, %1, %cst {dimension_numbers = #tpu.dot_dimension_numbers<[1], [0], [0], [1], [0, 0, 1, 1], [], []>} : vector<512x288xf32>, vector<288x64xf32>, vector<512x64xf32> -> vector<512x64xf32>
    %c0_3 = arith.constant 0 : index
    %c0_4 = arith.constant 0 : index
    %3 = vector.load %arg3[%c0_3, %c0_4] : memref<1x64xf32, #tpu.memory_space<vmem>>, vector<1x64xf32>
    %4 = vector.broadcast %3 : vector<1x64xf32> to vector<512x64xf32>
    %5 = arith.addf %2, %4 : vector<512x64xf32>
    %c0_5 = arith.constant 0 : index
    %c0_6 = arith.constant 0 : index
    %6 = vector.load %arg4[%c0_5, %c0_6] : memref<512x64xf32, #tpu.memory_space<vmem>>, vector<512x64xf32>
    tpu.vector_store %arg4[%c0_5, %c0_6], %5 {strides = array<i32>} : memref<512x64xf32, #tpu.memory_space<vmem>>, vector<512x64xf32>,
    return
  }
  func.func @transform_0(%arg0: i32) -> (i32, i32) {
    %c0_i32 = arith.constant 0 : i32
    %c0_i32_0 = arith.constant 0 : i32
    return %arg0, %c0_i32 : i32, i32
  }
  func.func @transform_1(%arg0: i32) -> (i32, i32) {
    %c0_i32 = arith.constant 0 : i32
    %c0_i32_0 = arith.constant 0 : i32
    %c0_i32_1 = arith.constant 0 : i32
    return %c0_i32, %c0_i32_0 : i32, i32
  }
  func.func @transform_2(%arg0: i32) -> (i32, i32) {
    %c0_i32 = arith.constant 0 : i32
    %c0_i32_0 = arith.constant 0 : i32
    %c0_i32_1 = arith.constant 0 : i32
    return %c0_i32, %c0_i32_0 : i32, i32
  }
  func.func @transform_3(%arg0: i32) -> (i32, i32) {
    %c0_i32 = arith.constant 0 : i32
    %c0_i32_0 = arith.constant 0 : i32
    return %arg0, %c0_i32 : i32, i32
  }
}

module attributes {stable_mosaic.version = 11 : i64} {
  func.func @_stats_kernel(%arg0: i32, %arg1: memref<512x64xf32, #tpu.memory_space<vmem>>, %arg2: memref<2x64xf32, #tpu.memory_space<vmem>>) attributes {dimension_semantics = [#tpu.dimension_semantics<arbitrary>], iteration_bounds = array<i64: 1>, scalar_prefetch = 0 : i64, scratch_operands = 0 : i64, tpu.core_type = #tpu.core_type<tc>, window_params = [{transform_indices = @transform_0, window_bounds = array<i64: 512, 64>}, {pipeline_mode = #tpu.pipeline_mode<synchronous>, transform_indices = @transform_1, window_bounds = array<i64: 2, 64>}]} {
    %c0_i32 = arith.constant 0 : i32
    %0 = arith.cmpi eq, %arg0, %c0_i32 : i32
    %1 = arith.extui %0 : i1 to i32
    %c0_i32_0 = arith.constant 0 : i32
    %2 = arith.cmpi ne, %1, %c0_i32_0 : i32
    scf.if %2 {
      %cst_7 = arith.constant 0.000000e+00 : f32
      %13 = vector.broadcast %cst_7 : f32 to vector<2x64xf32>
      %c0_8 = arith.constant 0 : index
      %c0_9 = arith.constant 0 : index
      %14 = vector.load %arg2[%c0_8, %c0_9] : memref<2x64xf32, #tpu.memory_space<vmem>>, vector<2x64xf32>
      tpu.vector_store %arg2[%c0_8, %c0_9], %13 {strides = array<i32>} : memref<2x64xf32, #tpu.memory_space<vmem>>, vector<2x64xf32>,
    } else {
    }
    %c0 = arith.constant 0 : index
    %c0_1 = arith.constant 0 : index
    %3 = vector.load %arg1[%c0, %c0_1] : memref<512x64xf32, #tpu.memory_space<vmem>>, vector<512x64xf32>
    %c0_2 = arith.constant 0 : index
    %c0_3 = arith.constant 0 : index
    %4 = vector.load %arg2[%c0_2, %c0_3] : memref<2x64xf32, #tpu.memory_space<vmem>>, vector<2x64xf32>
    %cst = arith.constant dense<0.000000e+00> : vector<64xf32>
    %5 = vector.multi_reduction <add>, %3, %cst [0] : vector<512x64xf32> to vector<64xf32>
    %6 = vector.shape_cast %5 : vector<64xf32> to vector<1x64xf32>
    %7 = arith.mulf %3, %3 : vector<512x64xf32>
    %cst_4 = arith.constant dense<0.000000e+00> : vector<64xf32>
    %8 = vector.multi_reduction <add>, %7, %cst_4 [0] : vector<512x64xf32> to vector<64xf32>
    %9 = vector.shape_cast %8 : vector<64xf32> to vector<1x64xf32>
    %10 = tpu.concatenate %6, %9 in 0 : vector<1x64xf32>, vector<1x64xf32> -> vector<2x64xf32>
    %11 = arith.addf %4, %10 : vector<2x64xf32>
    %c0_5 = arith.constant 0 : index
    %c0_6 = arith.constant 0 : index
    %12 = vector.load %arg2[%c0_5, %c0_6] : memref<2x64xf32, #tpu.memory_space<vmem>>, vector<2x64xf32>
    tpu.vector_store %arg2[%c0_5, %c0_6], %11 {strides = array<i32>} : memref<2x64xf32, #tpu.memory_space<vmem>>, vector<2x64xf32>,
    return
  }
  func.func @transform_0(%arg0: i32) -> (i32, i32) {
    %c0_i32 = arith.constant 0 : i32
    %c0_i32_0 = arith.constant 0 : i32
    return %arg0, %c0_i32 : i32, i32
  }
  func.func @transform_1(%arg0: i32) -> (i32, i32) {
    %c0_i32 = arith.constant 0 : i32
    %c0_i32_0 = arith.constant 0 : i32
    %c0_i32_1 = arith.constant 0 : i32
    return %c0_i32, %c0_i32_0 : i32, i32
  }
}

module attributes {stable_mosaic.version = 11 : i64} {
  func.func @_bn_act_kernel(%arg0: i32, %arg1: memref<512x64xf32, #tpu.memory_space<vmem>>, %arg2: memref<1x64xf32, #tpu.memory_space<vmem>>, %arg3: memref<1x64xf32, #tpu.memory_space<vmem>>, %arg4: memref<512x64xf32, #tpu.memory_space<vmem>>) attributes {dimension_semantics = [#tpu.dimension_semantics<parallel>], iteration_bounds = array<i64: 1>, scalar_prefetch = 0 : i64, scratch_operands = 0 : i64, tpu.core_type = #tpu.core_type<tc>, window_params = [{transform_indices = @transform_0, window_bounds = array<i64: 512, 64>}, {pipeline_mode = #tpu.pipeline_mode<synchronous>, transform_indices = @transform_1, window_bounds = array<i64: 1, 64>}, {pipeline_mode = #tpu.pipeline_mode<synchronous>, transform_indices = @transform_2, window_bounds = array<i64: 1, 64>}, {transform_indices = @transform_3, window_bounds = array<i64: 512, 64>}]} {
    %c0 = arith.constant 0 : index
    %c0_0 = arith.constant 0 : index
    %0 = vector.load %arg1[%c0, %c0_0] : memref<512x64xf32, #tpu.memory_space<vmem>>, vector<512x64xf32>
    %c0_1 = arith.constant 0 : index
    %c0_2 = arith.constant 0 : index
    %1 = vector.load %arg2[%c0_1, %c0_2] : memref<1x64xf32, #tpu.memory_space<vmem>>, vector<1x64xf32>
    %2 = vector.broadcast %1 : vector<1x64xf32> to vector<512x64xf32>
    %3 = arith.mulf %0, %2 : vector<512x64xf32>
    %c0_3 = arith.constant 0 : index
    %c0_4 = arith.constant 0 : index
    %4 = vector.load %arg3[%c0_3, %c0_4] : memref<1x64xf32, #tpu.memory_space<vmem>>, vector<1x64xf32>
    %5 = vector.broadcast %4 : vector<1x64xf32> to vector<512x64xf32>
    %6 = arith.addf %3, %5 : vector<512x64xf32>
    %cst = arith.constant 0.00999999977 : f32
    %7 = vector.broadcast %cst : f32 to vector<512x64xf32>
    %8 = arith.mulf %7, %6 : vector<512x64xf32>
    %9 = arith.maximumf %6, %8 : vector<512x64xf32>
    %c0_5 = arith.constant 0 : index
    %c0_6 = arith.constant 0 : index
    %10 = vector.load %arg4[%c0_5, %c0_6] : memref<512x64xf32, #tpu.memory_space<vmem>>, vector<512x64xf32>
    tpu.vector_store %arg4[%c0_5, %c0_6], %9 {strides = array<i32>} : memref<512x64xf32, #tpu.memory_space<vmem>>, vector<512x64xf32>,
    return
  }
  func.func @transform_0(%arg0: i32) -> (i32, i32) {
    %c0_i32 = arith.constant 0 : i32
    %c0_i32_0 = arith.constant 0 : i32
    return %arg0, %c0_i32 : i32, i32
  }
  func.func @transform_1(%arg0: i32) -> (i32, i32) {
    %c0_i32 = arith.constant 0 : i32
    %c0_i32_0 = arith.constant 0 : i32
    %c0_i32_1 = arith.constant 0 : i32
    return %c0_i32, %c0_i32_0 : i32, i32
  }
  func.func @transform_2(%arg0: i32) -> (i32, i32) {
    %c0_i32 = arith.constant 0 : i32
    %c0_i32_0 = arith.constant 0 : i32
    %c0_i32_1 = arith.constant 0 : i32
    return %c0_i32, %c0_i32_0 : i32, i32
  }
  func.func @transform_3(%arg0: i32) -> (i32, i32) {
    %c0_i32 = arith.constant 0 : i32
    %c0_i32_0 = arith.constant 0 : i32
    return %arg0, %c0_i32 : i32, i32
  }
}

module attributes {stable_mosaic.version = 11 : i64} {
  func.func @_stats_kernel(%arg0: i32, %arg1: memref<128x32xf32, #tpu.memory_space<vmem>>, %arg2: memref<2x32xf32, #tpu.memory_space<vmem>>) attributes {dimension_semantics = [#tpu.dimension_semantics<arbitrary>], iteration_bounds = array<i64: 1>, scalar_prefetch = 0 : i64, scratch_operands = 0 : i64, tpu.core_type = #tpu.core_type<tc>, window_params = [{transform_indices = @transform_0, window_bounds = array<i64: 128, 32>}, {pipeline_mode = #tpu.pipeline_mode<synchronous>, transform_indices = @transform_1, window_bounds = array<i64: 2, 32>}]} {
    %c0_i32 = arith.constant 0 : i32
    %0 = arith.cmpi eq, %arg0, %c0_i32 : i32
    %1 = arith.extui %0 : i1 to i32
    %c0_i32_0 = arith.constant 0 : i32
    %2 = arith.cmpi ne, %1, %c0_i32_0 : i32
    scf.if %2 {
      %cst_7 = arith.constant 0.000000e+00 : f32
      %13 = vector.broadcast %cst_7 : f32 to vector<2x32xf32>
      %c0_8 = arith.constant 0 : index
      %c0_9 = arith.constant 0 : index
      %14 = vector.load %arg2[%c0_8, %c0_9] : memref<2x32xf32, #tpu.memory_space<vmem>>, vector<2x32xf32>
      tpu.vector_store %arg2[%c0_8, %c0_9], %13 {strides = array<i32>} : memref<2x32xf32, #tpu.memory_space<vmem>>, vector<2x32xf32>,
    } else {
    }
    %c0 = arith.constant 0 : index
    %c0_1 = arith.constant 0 : index
    %3 = vector.load %arg1[%c0, %c0_1] : memref<128x32xf32, #tpu.memory_space<vmem>>, vector<128x32xf32>
    %c0_2 = arith.constant 0 : index
    %c0_3 = arith.constant 0 : index
    %4 = vector.load %arg2[%c0_2, %c0_3] : memref<2x32xf32, #tpu.memory_space<vmem>>, vector<2x32xf32>
    %cst = arith.constant dense<0.000000e+00> : vector<32xf32>
    %5 = vector.multi_reduction <add>, %3, %cst [0] : vector<128x32xf32> to vector<32xf32>
    %6 = vector.shape_cast %5 : vector<32xf32> to vector<1x32xf32>
    %7 = arith.mulf %3, %3 : vector<128x32xf32>
    %cst_4 = arith.constant dense<0.000000e+00> : vector<32xf32>
    %8 = vector.multi_reduction <add>, %7, %cst_4 [0] : vector<128x32xf32> to vector<32xf32>
    %9 = vector.shape_cast %8 : vector<32xf32> to vector<1x32xf32>
    %10 = tpu.concatenate %6, %9 in 0 : vector<1x32xf32>, vector<1x32xf32> -> vector<2x32xf32>
    %11 = arith.addf %4, %10 : vector<2x32xf32>
    %c0_5 = arith.constant 0 : index
    %c0_6 = arith.constant 0 : index
    %12 = vector.load %arg2[%c0_5, %c0_6] : memref<2x32xf32, #tpu.memory_space<vmem>>, vector<2x32xf32>
    tpu.vector_store %arg2[%c0_5, %c0_6], %11 {strides = array<i32>} : memref<2x32xf32, #tpu.memory_space<vmem>>, vector<2x32xf32>,
    return
  }
  func.func @transform_0(%arg0: i32) -> (i32, i32) {
    %c0_i32 = arith.constant 0 : i32
    %c0_i32_0 = arith.constant 0 : i32
    return %arg0, %c0_i32 : i32, i32
  }
  func.func @transform_1(%arg0: i32) -> (i32, i32) {
    %c0_i32 = arith.constant 0 : i32
    %c0_i32_0 = arith.constant 0 : i32
    %c0_i32_1 = arith.constant 0 : i32
    return %c0_i32, %c0_i32_0 : i32, i32
  }
}

module attributes {stable_mosaic.version = 11 : i64} {
  func.func @_matmul_bias_kernel(%arg0: i32, %arg1: memref<128x64xf32, #tpu.memory_space<vmem>>, %arg2: memref<64x32xf32, #tpu.memory_space<vmem>>, %arg3: memref<1x32xf32, #tpu.memory_space<vmem>>, %arg4: memref<128x32xf32, #tpu.memory_space<vmem>>) attributes {dimension_semantics = [#tpu.dimension_semantics<parallel>], iteration_bounds = array<i64: 1>, scalar_prefetch = 0 : i64, scratch_operands = 0 : i64, tpu.core_type = #tpu.core_type<tc>, window_params = [{transform_indices = @transform_0, window_bounds = array<i64: 128, 64>}, {pipeline_mode = #tpu.pipeline_mode<synchronous>, transform_indices = @transform_1, window_bounds = array<i64: 64, 32>}, {pipeline_mode = #tpu.pipeline_mode<synchronous>, transform_indices = @transform_2, window_bounds = array<i64: 1, 32>}, {transform_indices = @transform_3, window_bounds = array<i64: 128, 32>}]} {
    %c0 = arith.constant 0 : index
    %c0_0 = arith.constant 0 : index
    %0 = vector.load %arg1[%c0, %c0_0] : memref<128x64xf32, #tpu.memory_space<vmem>>, vector<128x64xf32>
    %c0_1 = arith.constant 0 : index
    %c0_2 = arith.constant 0 : index
    %1 = vector.load %arg2[%c0_1, %c0_2] : memref<64x32xf32, #tpu.memory_space<vmem>>, vector<64x32xf32>
    %cst = arith.constant dense<0.000000e+00> : vector<128x32xf32>
    %2 = tpu.matmul %0, %1, %cst {dimension_numbers = #tpu.dot_dimension_numbers<[1], [0], [0], [1], [0, 0, 1, 1], [], []>} : vector<128x64xf32>, vector<64x32xf32>, vector<128x32xf32> -> vector<128x32xf32>
    %c0_3 = arith.constant 0 : index
    %c0_4 = arith.constant 0 : index
    %3 = vector.load %arg3[%c0_3, %c0_4] : memref<1x32xf32, #tpu.memory_space<vmem>>, vector<1x32xf32>
    %4 = vector.broadcast %3 : vector<1x32xf32> to vector<128x32xf32>
    %5 = arith.addf %2, %4 : vector<128x32xf32>
    %c0_5 = arith.constant 0 : index
    %c0_6 = arith.constant 0 : index
    %6 = vector.load %arg4[%c0_5, %c0_6] : memref<128x32xf32, #tpu.memory_space<vmem>>, vector<128x32xf32>
    tpu.vector_store %arg4[%c0_5, %c0_6], %5 {strides = array<i32>} : memref<128x32xf32, #tpu.memory_space<vmem>>, vector<128x32xf32>,
    return
  }
  func.func @transform_0(%arg0: i32) -> (i32, i32) {
    %c0_i32 = arith.constant 0 : i32
    %c0_i32_0 = arith.constant 0 : i32
    return %arg0, %c0_i32 : i32, i32
  }
  func.func @transform_1(%arg0: i32) -> (i32, i32) {
    %c0_i32 = arith.constant 0 : i32
    %c0_i32_0 = arith.constant 0 : i32
    %c0_i32_1 = arith.constant 0 : i32
    return %c0_i32, %c0_i32_0 : i32, i32
  }
  func.func @transform_2(%arg0: i32) -> (i32, i32) {
    %c0_i32 = arith.constant 0 : i32
    %c0_i32_0 = arith.constant 0 : i32
    %c0_i32_1 = arith.constant 0 : i32
    return %c0_i32, %c0_i32_0 : i32, i32
  }
  func.func @transform_3(%arg0: i32) -> (i32, i32) {
    %c0_i32 = arith.constant 0 : i32
    %c0_i32_0 = arith.constant 0 : i32
    return %arg0, %c0_i32 : i32, i32
  }
}

module attributes {stable_mosaic.version = 11 : i64} {
  func.func @_bn_act_kernel(%arg0: i32, %arg1: memref<128x32xf32, #tpu.memory_space<vmem>>, %arg2: memref<1x32xf32, #tpu.memory_space<vmem>>, %arg3: memref<1x32xf32, #tpu.memory_space<vmem>>, %arg4: memref<128x32xf32, #tpu.memory_space<vmem>>) attributes {dimension_semantics = [#tpu.dimension_semantics<parallel>], iteration_bounds = array<i64: 1>, scalar_prefetch = 0 : i64, scratch_operands = 0 : i64, tpu.core_type = #tpu.core_type<tc>, window_params = [{transform_indices = @transform_0, window_bounds = array<i64: 128, 32>}, {pipeline_mode = #tpu.pipeline_mode<synchronous>, transform_indices = @transform_1, window_bounds = array<i64: 1, 32>}, {pipeline_mode = #tpu.pipeline_mode<synchronous>, transform_indices = @transform_2, window_bounds = array<i64: 1, 32>}, {transform_indices = @transform_3, window_bounds = array<i64: 128, 32>}]} {
    %c0 = arith.constant 0 : index
    %c0_0 = arith.constant 0 : index
    %0 = vector.load %arg1[%c0, %c0_0] : memref<128x32xf32, #tpu.memory_space<vmem>>, vector<128x32xf32>
    %c0_1 = arith.constant 0 : index
    %c0_2 = arith.constant 0 : index
    %1 = vector.load %arg2[%c0_1, %c0_2] : memref<1x32xf32, #tpu.memory_space<vmem>>, vector<1x32xf32>
    %2 = vector.broadcast %1 : vector<1x32xf32> to vector<128x32xf32>
    %3 = arith.mulf %0, %2 : vector<128x32xf32>
    %c0_3 = arith.constant 0 : index
    %c0_4 = arith.constant 0 : index
    %4 = vector.load %arg3[%c0_3, %c0_4] : memref<1x32xf32, #tpu.memory_space<vmem>>, vector<1x32xf32>
    %5 = vector.broadcast %4 : vector<1x32xf32> to vector<128x32xf32>
    %6 = arith.addf %3, %5 : vector<128x32xf32>
    %cst = arith.constant 0.00999999977 : f32
    %7 = vector.broadcast %cst : f32 to vector<128x32xf32>
    %8 = arith.mulf %7, %6 : vector<128x32xf32>
    %9 = arith.maximumf %6, %8 : vector<128x32xf32>
    %c0_5 = arith.constant 0 : index
    %c0_6 = arith.constant 0 : index
    %10 = vector.load %arg4[%c0_5, %c0_6] : memref<128x32xf32, #tpu.memory_space<vmem>>, vector<128x32xf32>
    tpu.vector_store %arg4[%c0_5, %c0_6], %9 {strides = array<i32>} : memref<128x32xf32, #tpu.memory_space<vmem>>, vector<128x32xf32>,
    return
  }
  func.func @transform_0(%arg0: i32) -> (i32, i32) {
    %c0_i32 = arith.constant 0 : i32
    %c0_i32_0 = arith.constant 0 : i32
    return %arg0, %c0_i32 : i32, i32
  }
  func.func @transform_1(%arg0: i32) -> (i32, i32) {
    %c0_i32 = arith.constant 0 : i32
    %c0_i32_0 = arith.constant 0 : i32
    %c0_i32_1 = arith.constant 0 : i32
    return %c0_i32, %c0_i32_0 : i32, i32
  }
  func.func @transform_2(%arg0: i32) -> (i32, i32) {
    %c0_i32 = arith.constant 0 : i32
    %c0_i32_0 = arith.constant 0 : i32
    %c0_i32_1 = arith.constant 0 : i32
    return %c0_i32, %c0_i32_0 : i32, i32
  }
  func.func @transform_3(%arg0: i32) -> (i32, i32) {
    %c0_i32 = arith.constant 0 : i32
    %c0_i32_0 = arith.constant 0 : i32
    return %arg0, %c0_i32 : i32, i32
  }
}

module attributes {stable_mosaic.version = 11 : i64} {
  func.func @_matmul_bias_kernel(%arg0: i32, %arg1: memref<128x64xf32, #tpu.memory_space<vmem>>, %arg2: memref<64x64xf32, #tpu.memory_space<vmem>>, %arg3: memref<1x64xf32, #tpu.memory_space<vmem>>, %arg4: memref<128x64xf32, #tpu.memory_space<vmem>>) attributes {dimension_semantics = [#tpu.dimension_semantics<parallel>], iteration_bounds = array<i64: 1>, scalar_prefetch = 0 : i64, scratch_operands = 0 : i64, tpu.core_type = #tpu.core_type<tc>, window_params = [{transform_indices = @transform_0, window_bounds = array<i64: 128, 64>}, {pipeline_mode = #tpu.pipeline_mode<synchronous>, transform_indices = @transform_1, window_bounds = array<i64: 64, 64>}, {pipeline_mode = #tpu.pipeline_mode<synchronous>, transform_indices = @transform_2, window_bounds = array<i64: 1, 64>}, {transform_indices = @transform_3, window_bounds = array<i64: 128, 64>}]} {
    %c0 = arith.constant 0 : index
    %c0_0 = arith.constant 0 : index
    %0 = vector.load %arg1[%c0, %c0_0] : memref<128x64xf32, #tpu.memory_space<vmem>>, vector<128x64xf32>
    %c0_1 = arith.constant 0 : index
    %c0_2 = arith.constant 0 : index
    %1 = vector.load %arg2[%c0_1, %c0_2] : memref<64x64xf32, #tpu.memory_space<vmem>>, vector<64x64xf32>
    %cst = arith.constant dense<0.000000e+00> : vector<128x64xf32>
    %2 = tpu.matmul %0, %1, %cst {dimension_numbers = #tpu.dot_dimension_numbers<[1], [0], [0], [1], [0, 0, 1, 1], [], []>} : vector<128x64xf32>, vector<64x64xf32>, vector<128x64xf32> -> vector<128x64xf32>
    %c0_3 = arith.constant 0 : index
    %c0_4 = arith.constant 0 : index
    %3 = vector.load %arg3[%c0_3, %c0_4] : memref<1x64xf32, #tpu.memory_space<vmem>>, vector<1x64xf32>
    %4 = vector.broadcast %3 : vector<1x64xf32> to vector<128x64xf32>
    %5 = arith.addf %2, %4 : vector<128x64xf32>
    %c0_5 = arith.constant 0 : index
    %c0_6 = arith.constant 0 : index
    %6 = vector.load %arg4[%c0_5, %c0_6] : memref<128x64xf32, #tpu.memory_space<vmem>>, vector<128x64xf32>
    tpu.vector_store %arg4[%c0_5, %c0_6], %5 {strides = array<i32>} : memref<128x64xf32, #tpu.memory_space<vmem>>, vector<128x64xf32>,
    return
  }
  func.func @transform_0(%arg0: i32) -> (i32, i32) {
    %c0_i32 = arith.constant 0 : i32
    %c0_i32_0 = arith.constant 0 : i32
    return %arg0, %c0_i32 : i32, i32
  }
  func.func @transform_1(%arg0: i32) -> (i32, i32) {
    %c0_i32 = arith.constant 0 : i32
    %c0_i32_0 = arith.constant 0 : i32
    %c0_i32_1 = arith.constant 0 : i32
    return %c0_i32, %c0_i32_0 : i32, i32
  }
  func.func @transform_2(%arg0: i32) -> (i32, i32) {
    %c0_i32 = arith.constant 0 : i32
    %c0_i32_0 = arith.constant 0 : i32
    %c0_i32_1 = arith.constant 0 : i32
    return %c0_i32, %c0_i32_0 : i32, i32
  }
  func.func @transform_3(%arg0: i32) -> (i32, i32) {
    %c0_i32 = arith.constant 0 : i32
    %c0_i32_0 = arith.constant 0 : i32
    return %arg0, %c0_i32 : i32, i32
  }
}

module attributes {stable_mosaic.version = 11 : i64} {
  func.func @_attn_kernel(%arg0: i32, %arg1: memref<1x64x32xf32, #tpu.memory_space<vmem>>, %arg2: memref<1x64x64xf32, #tpu.memory_space<vmem>>, %arg3: memref<1x64x64xf32, #tpu.memory_space<vmem>>) attributes {dimension_semantics = [#tpu.dimension_semantics<parallel>], iteration_bounds = array<i64: 2>, scalar_prefetch = 0 : i64, scratch_operands = 0 : i64, tpu.core_type = #tpu.core_type<tc>, window_params = [{transform_indices = @transform_0, window_bounds = array<i64: 1, 64, 32>}, {transform_indices = @transform_1, window_bounds = array<i64: 1, 64, 64>}, {transform_indices = @transform_2, window_bounds = array<i64: 1, 64, 64>}]} {
    %c0 = arith.constant 0 : index
    %c0_0 = arith.constant 0 : index
    %c0_1 = arith.constant 0 : index
    %0 = vector.load %arg1[%c0, %c0_0, %c0_1] : memref<1x64x32xf32, #tpu.memory_space<vmem>>, vector<1x64x32xf32>
    %1 = vector.shape_cast %0 : vector<1x64x32xf32> to vector<64x32xf32>
    %cst = arith.constant dense<0.000000e+00> : vector<64x64xf32>
    %2 = tpu.matmul %1, %1, %cst {dimension_numbers = #tpu.dot_dimension_numbers<[1], [1], [0], [0], [0, 0, 1, 0], [], []>} : vector<64x32xf32>, vector<64x32xf32>, vector<64x64xf32> -> vector<64x64xf32>
    %cst_2 = arith.constant 0.176776692 : f32
    %3 = vector.broadcast %cst_2 : f32 to vector<64x64xf32>
    %4 = arith.mulf %2, %3 : vector<64x64xf32>
    %cst_3 = arith.constant dense<0xFF800000> : vector<64xf32>
    %5 = vector.multi_reduction <maximumf>, %4, %cst_3 [1] : vector<64x64xf32> to vector<64xf32>
    %6 = vector.shape_cast %5 : vector<64xf32> to vector<64x1xf32>
    %7 = vector.broadcast %6 : vector<64x1xf32> to vector<64x64xf32>
    %8 = arith.subf %4, %7 : vector<64x64xf32>
    %9 = math.exp %8 : vector<64x64xf32>
    %cst_4 = arith.constant dense<0.000000e+00> : vector<64xf32>
    %10 = vector.multi_reduction <add>, %9, %cst_4 [1] : vector<64x64xf32> to vector<64xf32>
    %11 = vector.shape_cast %10 : vector<64xf32> to vector<64x1xf32>
    %12 = vector.broadcast %11 : vector<64x1xf32> to vector<64x64xf32>
    %13 = arith.divf %9, %12 : vector<64x64xf32>
    %c0_5 = arith.constant 0 : index
    %c0_6 = arith.constant 0 : index
    %c0_7 = arith.constant 0 : index
    %14 = vector.load %arg2[%c0_5, %c0_6, %c0_7] : memref<1x64x64xf32, #tpu.memory_space<vmem>>, vector<1x64x64xf32>
    %15 = vector.shape_cast %14 : vector<1x64x64xf32> to vector<64x64xf32>
    %cst_8 = arith.constant dense<0.000000e+00> : vector<64x64xf32>
    %16 = tpu.matmul %13, %15, %cst_8 {dimension_numbers = #tpu.dot_dimension_numbers<[1], [0], [0], [1], [0, 0, 1, 1], [], []>} : vector<64x64xf32>, vector<64x64xf32>, vector<64x64xf32> -> vector<64x64xf32>
    %c0_9 = arith.constant 0 : index
    %c0_10 = arith.constant 0 : index
    %c0_11 = arith.constant 0 : index
    %17 = vector.load %arg3[%c0_9, %c0_10, %c0_11] : memref<1x64x64xf32, #tpu.memory_space<vmem>>, vector<1x64x64xf32>
    %18 = vector.shape_cast %17 : vector<1x64x64xf32> to vector<64x64xf32>
    %19 = vector.shape_cast %16 : vector<64x64xf32> to vector<1x64x64xf32>
    tpu.vector_store %arg3[%c0_9, %c0_10, %c0_11], %19 {strides = array<i32>} : memref<1x64x64xf32, #tpu.memory_space<vmem>>, vector<1x64x64xf32>,
    return
  }
  func.func @transform_0(%arg0: i32) -> (i32, i32, i32) {
    %c0_i32 = arith.constant 0 : i32
    %c0_i32_0 = arith.constant 0 : i32
    %c0_i32_1 = arith.constant 0 : i32
    return %arg0, %c0_i32, %c0_i32_0 : i32, i32, i32
  }
  func.func @transform_1(%arg0: i32) -> (i32, i32, i32) {
    %c0_i32 = arith.constant 0 : i32
    %c0_i32_0 = arith.constant 0 : i32
    %c0_i32_1 = arith.constant 0 : i32
    return %arg0, %c0_i32, %c0_i32_0 : i32, i32, i32
  }
  func.func @transform_2(%arg0: i32) -> (i32, i32, i32) {
    %c0_i32 = arith.constant 0 : i32
    %c0_i32_0 = arith.constant 0 : i32
    %c0_i32_1 = arith.constant 0 : i32
    return %arg0, %c0_i32, %c0_i32_0 : i32, i32, i32
  }
}

module attributes {stable_mosaic.version = 11 : i64} {
  func.func @_matmul_bias_kernel(%arg0: i32, %arg1: memref<512x64xf32, #tpu.memory_space<vmem>>, %arg2: memref<64x64xf32, #tpu.memory_space<vmem>>, %arg3: memref<1x64xf32, #tpu.memory_space<vmem>>, %arg4: memref<512x64xf32, #tpu.memory_space<vmem>>) attributes {dimension_semantics = [#tpu.dimension_semantics<parallel>], iteration_bounds = array<i64: 1>, scalar_prefetch = 0 : i64, scratch_operands = 0 : i64, tpu.core_type = #tpu.core_type<tc>, window_params = [{transform_indices = @transform_0, window_bounds = array<i64: 512, 64>}, {pipeline_mode = #tpu.pipeline_mode<synchronous>, transform_indices = @transform_1, window_bounds = array<i64: 64, 64>}, {pipeline_mode = #tpu.pipeline_mode<synchronous>, transform_indices = @transform_2, window_bounds = array<i64: 1, 64>}, {transform_indices = @transform_3, window_bounds = array<i64: 512, 64>}]} {
    %c0 = arith.constant 0 : index
    %c0_0 = arith.constant 0 : index
    %0 = vector.load %arg1[%c0, %c0_0] : memref<512x64xf32, #tpu.memory_space<vmem>>, vector<512x64xf32>
    %c0_1 = arith.constant 0 : index
    %c0_2 = arith.constant 0 : index
    %1 = vector.load %arg2[%c0_1, %c0_2] : memref<64x64xf32, #tpu.memory_space<vmem>>, vector<64x64xf32>
    %cst = arith.constant dense<0.000000e+00> : vector<512x64xf32>
    %2 = tpu.matmul %0, %1, %cst {dimension_numbers = #tpu.dot_dimension_numbers<[1], [0], [0], [1], [0, 0, 1, 1], [], []>} : vector<512x64xf32>, vector<64x64xf32>, vector<512x64xf32> -> vector<512x64xf32>
    %c0_3 = arith.constant 0 : index
    %c0_4 = arith.constant 0 : index
    %3 = vector.load %arg3[%c0_3, %c0_4] : memref<1x64xf32, #tpu.memory_space<vmem>>, vector<1x64xf32>
    %4 = vector.broadcast %3 : vector<1x64xf32> to vector<512x64xf32>
    %5 = arith.addf %2, %4 : vector<512x64xf32>
    %c0_5 = arith.constant 0 : index
    %c0_6 = arith.constant 0 : index
    %6 = vector.load %arg4[%c0_5, %c0_6] : memref<512x64xf32, #tpu.memory_space<vmem>>, vector<512x64xf32>
    tpu.vector_store %arg4[%c0_5, %c0_6], %5 {strides = array<i32>} : memref<512x64xf32, #tpu.memory_space<vmem>>, vector<512x64xf32>,
    return
  }
  func.func @transform_0(%arg0: i32) -> (i32, i32) {
    %c0_i32 = arith.constant 0 : i32
    %c0_i32_0 = arith.constant 0 : i32
    return %arg0, %c0_i32 : i32, i32
  }
  func.func @transform_1(%arg0: i32) -> (i32, i32) {
    %c0_i32 = arith.constant 0 : i32
    %c0_i32_0 = arith.constant 0 : i32
    %c0_i32_1 = arith.constant 0 : i32
    return %c0_i32, %c0_i32_0 : i32, i32
  }
  func.func @transform_2(%arg0: i32) -> (i32, i32) {
    %c0_i32 = arith.constant 0 : i32
    %c0_i32_0 = arith.constant 0 : i32
    %c0_i32_1 = arith.constant 0 : i32
    return %c0_i32, %c0_i32_0 : i32, i32
  }
  func.func @transform_3(%arg0: i32) -> (i32, i32) {
    %c0_i32 = arith.constant 0 : i32
    %c0_i32_0 = arith.constant 0 : i32
    return %arg0, %c0_i32 : i32, i32
  }
}

module attributes {stable_mosaic.version = 11 : i64} {
  func.func @_concat_matmul_kernel(%arg0: i32, %arg1: memref<512x64xf32, #tpu.memory_space<vmem>>, %arg2: memref<512x64xf32, #tpu.memory_space<vmem>>, %arg3: memref<512x64xf32, #tpu.memory_space<vmem>>, %arg4: memref<512x64xf32, #tpu.memory_space<vmem>>, %arg5: memref<512x64xf32, #tpu.memory_space<vmem>>, %arg6: memref<320x128xf32, #tpu.memory_space<vmem>>, %arg7: memref<512x128xf32, #tpu.memory_space<vmem>>) attributes {dimension_semantics = [#tpu.dimension_semantics<parallel>], iteration_bounds = array<i64: 1>, scalar_prefetch = 0 : i64, scratch_operands = 0 : i64, tpu.core_type = #tpu.core_type<tc>, window_params = [{transform_indices = @transform_0, window_bounds = array<i64: 512, 64>}, {transform_indices = @transform_1, window_bounds = array<i64: 512, 64>}, {transform_indices = @transform_2, window_bounds = array<i64: 512, 64>}, {transform_indices = @transform_3, window_bounds = array<i64: 512, 64>}, {transform_indices = @transform_4, window_bounds = array<i64: 512, 64>}, {pipeline_mode = #tpu.pipeline_mode<synchronous>, transform_indices = @transform_5, window_bounds = array<i64: 320, 128>}, {transform_indices = @transform_6, window_bounds = array<i64: 512, 128>}]} {
    %cst = arith.constant 0.000000e+00 : f32
    %0 = vector.broadcast %cst : f32 to vector<512x128xf32>
    %c0 = arith.constant 0 : index
    %c0_0 = arith.constant 0 : index
    %1 = vector.load %arg1[%c0, %c0_0] : memref<512x64xf32, #tpu.memory_space<vmem>>, vector<512x64xf32>
    %c0_1 = arith.constant 0 : index
    %c0_2 = arith.constant 0 : index
    %2 = vector.load %arg6[%c0_1, %c0_2] : memref<320x128xf32, #tpu.memory_space<vmem>>, vector<64x128xf32>
    %cst_3 = arith.constant dense<0.000000e+00> : vector<512x128xf32>
    %3 = tpu.matmul %1, %2, %cst_3 {dimension_numbers = #tpu.dot_dimension_numbers<[1], [0], [0], [1], [0, 0, 1, 1], [], []>} : vector<512x64xf32>, vector<64x128xf32>, vector<512x128xf32> -> vector<512x128xf32>
    %4 = arith.addf %0, %3 : vector<512x128xf32>
    %c0_4 = arith.constant 0 : index
    %c0_5 = arith.constant 0 : index
    %5 = vector.load %arg2[%c0_4, %c0_5] : memref<512x64xf32, #tpu.memory_space<vmem>>, vector<512x64xf32>
    %c64 = arith.constant 64 : index
    %c0_6 = arith.constant 0 : index
    %6 = vector.load %arg6[%c64, %c0_6] : memref<320x128xf32, #tpu.memory_space<vmem>>, vector<64x128xf32>
    %cst_7 = arith.constant dense<0.000000e+00> : vector<512x128xf32>
    %7 = tpu.matmul %5, %6, %cst_7 {dimension_numbers = #tpu.dot_dimension_numbers<[1], [0], [0], [1], [0, 0, 1, 1], [], []>} : vector<512x64xf32>, vector<64x128xf32>, vector<512x128xf32> -> vector<512x128xf32>
    %8 = arith.addf %4, %7 : vector<512x128xf32>
    %c0_8 = arith.constant 0 : index
    %c0_9 = arith.constant 0 : index
    %9 = vector.load %arg3[%c0_8, %c0_9] : memref<512x64xf32, #tpu.memory_space<vmem>>, vector<512x64xf32>
    %c128 = arith.constant 128 : index
    %c0_10 = arith.constant 0 : index
    %10 = vector.load %arg6[%c128, %c0_10] : memref<320x128xf32, #tpu.memory_space<vmem>>, vector<64x128xf32>
    %cst_11 = arith.constant dense<0.000000e+00> : vector<512x128xf32>
    %11 = tpu.matmul %9, %10, %cst_11 {dimension_numbers = #tpu.dot_dimension_numbers<[1], [0], [0], [1], [0, 0, 1, 1], [], []>} : vector<512x64xf32>, vector<64x128xf32>, vector<512x128xf32> -> vector<512x128xf32>
    %12 = arith.addf %8, %11 : vector<512x128xf32>
    %c0_12 = arith.constant 0 : index
    %c0_13 = arith.constant 0 : index
    %13 = vector.load %arg4[%c0_12, %c0_13] : memref<512x64xf32, #tpu.memory_space<vmem>>, vector<512x64xf32>
    %c192 = arith.constant 192 : index
    %c0_14 = arith.constant 0 : index
    %14 = vector.load %arg6[%c192, %c0_14] : memref<320x128xf32, #tpu.memory_space<vmem>>, vector<64x128xf32>
    %cst_15 = arith.constant dense<0.000000e+00> : vector<512x128xf32>
    %15 = tpu.matmul %13, %14, %cst_15 {dimension_numbers = #tpu.dot_dimension_numbers<[1], [0], [0], [1], [0, 0, 1, 1], [], []>} : vector<512x64xf32>, vector<64x128xf32>, vector<512x128xf32> -> vector<512x128xf32>
    %16 = arith.addf %12, %15 : vector<512x128xf32>
    %c0_16 = arith.constant 0 : index
    %c0_17 = arith.constant 0 : index
    %17 = vector.load %arg5[%c0_16, %c0_17] : memref<512x64xf32, #tpu.memory_space<vmem>>, vector<512x64xf32>
    %c256 = arith.constant 256 : index
    %c0_18 = arith.constant 0 : index
    %18 = vector.load %arg6[%c256, %c0_18] : memref<320x128xf32, #tpu.memory_space<vmem>>, vector<64x128xf32>
    %cst_19 = arith.constant dense<0.000000e+00> : vector<512x128xf32>
    %19 = tpu.matmul %17, %18, %cst_19 {dimension_numbers = #tpu.dot_dimension_numbers<[1], [0], [0], [1], [0, 0, 1, 1], [], []>} : vector<512x64xf32>, vector<64x128xf32>, vector<512x128xf32> -> vector<512x128xf32>
    %20 = arith.addf %16, %19 : vector<512x128xf32>
    %c0_20 = arith.constant 0 : index
    %c0_21 = arith.constant 0 : index
    %21 = vector.load %arg7[%c0_20, %c0_21] : memref<512x128xf32, #tpu.memory_space<vmem>>, vector<512x128xf32>
    tpu.vector_store %arg7[%c0_20, %c0_21], %20 {strides = array<i32>} : memref<512x128xf32, #tpu.memory_space<vmem>>, vector<512x128xf32>,
    return
  }
  func.func @transform_0(%arg0: i32) -> (i32, i32) {
    %c0_i32 = arith.constant 0 : i32
    %c0_i32_0 = arith.constant 0 : i32
    return %arg0, %c0_i32 : i32, i32
  }
  func.func @transform_1(%arg0: i32) -> (i32, i32) {
    %c0_i32 = arith.constant 0 : i32
    %c0_i32_0 = arith.constant 0 : i32
    return %arg0, %c0_i32 : i32, i32
  }
  func.func @transform_2(%arg0: i32) -> (i32, i32) {
    %c0_i32 = arith.constant 0 : i32
    %c0_i32_0 = arith.constant 0 : i32
    return %arg0, %c0_i32 : i32, i32
  }
  func.func @transform_3(%arg0: i32) -> (i32, i32) {
    %c0_i32 = arith.constant 0 : i32
    %c0_i32_0 = arith.constant 0 : i32
    return %arg0, %c0_i32 : i32, i32
  }
  func.func @transform_4(%arg0: i32) -> (i32, i32) {
    %c0_i32 = arith.constant 0 : i32
    %c0_i32_0 = arith.constant 0 : i32
    return %arg0, %c0_i32 : i32, i32
  }
  func.func @transform_5(%arg0: i32) -> (i32, i32) {
    %c0_i32 = arith.constant 0 : i32
    %c0_i32_0 = arith.constant 0 : i32
    %c0_i32_1 = arith.constant 0 : i32
    return %c0_i32, %c0_i32_0 : i32, i32
  }
  func.func @transform_6(%arg0: i32) -> (i32, i32) {
    %c0_i32 = arith.constant 0 : i32
    %c0_i32_0 = arith.constant 0 : i32
    return %arg0, %c0_i32 : i32, i32
  }
}

module attributes {stable_mosaic.version = 11 : i64} {
  func.func @_matmul_bias_kernel(%arg0: i32, %arg1: memref<512x32xf32, #tpu.memory_space<vmem>>, %arg2: memref<32x64xf32, #tpu.memory_space<vmem>>, %arg3: memref<1x64xf32, #tpu.memory_space<vmem>>, %arg4: memref<512x64xf32, #tpu.memory_space<vmem>>) attributes {dimension_semantics = [#tpu.dimension_semantics<parallel>], iteration_bounds = array<i64: 1>, scalar_prefetch = 0 : i64, scratch_operands = 0 : i64, tpu.core_type = #tpu.core_type<tc>, window_params = [{transform_indices = @transform_0, window_bounds = array<i64: 512, 32>}, {pipeline_mode = #tpu.pipeline_mode<synchronous>, transform_indices = @transform_1, window_bounds = array<i64: 32, 64>}, {pipeline_mode = #tpu.pipeline_mode<synchronous>, transform_indices = @transform_2, window_bounds = array<i64: 1, 64>}, {transform_indices = @transform_3, window_bounds = array<i64: 512, 64>}]} {
    %c0 = arith.constant 0 : index
    %c0_0 = arith.constant 0 : index
    %0 = vector.load %arg1[%c0, %c0_0] : memref<512x32xf32, #tpu.memory_space<vmem>>, vector<512x32xf32>
    %c0_1 = arith.constant 0 : index
    %c0_2 = arith.constant 0 : index
    %1 = vector.load %arg2[%c0_1, %c0_2] : memref<32x64xf32, #tpu.memory_space<vmem>>, vector<32x64xf32>
    %cst = arith.constant dense<0.000000e+00> : vector<512x64xf32>
    %2 = tpu.matmul %0, %1, %cst {dimension_numbers = #tpu.dot_dimension_numbers<[1], [0], [0], [1], [0, 0, 1, 1], [], []>} : vector<512x32xf32>, vector<32x64xf32>, vector<512x64xf32> -> vector<512x64xf32>
    %c0_3 = arith.constant 0 : index
    %c0_4 = arith.constant 0 : index
    %3 = vector.load %arg3[%c0_3, %c0_4] : memref<1x64xf32, #tpu.memory_space<vmem>>, vector<1x64xf32>
    %4 = vector.broadcast %3 : vector<1x64xf32> to vector<512x64xf32>
    %5 = arith.addf %2, %4 : vector<512x64xf32>
    %c0_5 = arith.constant 0 : index
    %c0_6 = arith.constant 0 : index
    %6 = vector.load %arg4[%c0_5, %c0_6] : memref<512x64xf32, #tpu.memory_space<vmem>>, vector<512x64xf32>
    tpu.vector_store %arg4[%c0_5, %c0_6], %5 {strides = array<i32>} : memref<512x64xf32, #tpu.memory_space<vmem>>, vector<512x64xf32>,
    return
  }
  func.func @transform_0(%arg0: i32) -> (i32, i32) {
    %c0_i32 = arith.constant 0 : i32
    %c0_i32_0 = arith.constant 0 : i32
    return %arg0, %c0_i32 : i32, i32
  }
  func.func @transform_1(%arg0: i32) -> (i32, i32) {
    %c0_i32 = arith.constant 0 : i32
    %c0_i32_0 = arith.constant 0 : i32
    %c0_i32_1 = arith.constant 0 : i32
    return %c0_i32, %c0_i32_0 : i32, i32
  }
  func.func @transform_2(%arg0: i32) -> (i32, i32) {
    %c0_i32 = arith.constant 0 : i32
    %c0_i32_0 = arith.constant 0 : i32
    %c0_i32_1 = arith.constant 0 : i32
    return %c0_i32, %c0_i32_0 : i32, i32
  }
  func.func @transform_3(%arg0: i32) -> (i32, i32) {
    %c0_i32 = arith.constant 0 : i32
    %c0_i32_0 = arith.constant 0 : i32
    return %arg0, %c0_i32 : i32, i32
  }
}

module attributes {stable_mosaic.version = 11 : i64} {
  func.func @_stats_kernel(%arg0: i32, %arg1: memref<512x128xf32, #tpu.memory_space<vmem>>, %arg2: memref<2x128xf32, #tpu.memory_space<vmem>>) attributes {dimension_semantics = [#tpu.dimension_semantics<arbitrary>], iteration_bounds = array<i64: 1>, scalar_prefetch = 0 : i64, scratch_operands = 0 : i64, tpu.core_type = #tpu.core_type<tc>, window_params = [{transform_indices = @transform_0, window_bounds = array<i64: 512, 128>}, {pipeline_mode = #tpu.pipeline_mode<synchronous>, transform_indices = @transform_1, window_bounds = array<i64: 2, 128>}]} {
    %c0_i32 = arith.constant 0 : i32
    %0 = arith.cmpi eq, %arg0, %c0_i32 : i32
    %1 = arith.extui %0 : i1 to i32
    %c0_i32_0 = arith.constant 0 : i32
    %2 = arith.cmpi ne, %1, %c0_i32_0 : i32
    scf.if %2 {
      %cst_7 = arith.constant 0.000000e+00 : f32
      %13 = vector.broadcast %cst_7 : f32 to vector<2x128xf32>
      %c0_8 = arith.constant 0 : index
      %c0_9 = arith.constant 0 : index
      %14 = vector.load %arg2[%c0_8, %c0_9] : memref<2x128xf32, #tpu.memory_space<vmem>>, vector<2x128xf32>
      tpu.vector_store %arg2[%c0_8, %c0_9], %13 {strides = array<i32>} : memref<2x128xf32, #tpu.memory_space<vmem>>, vector<2x128xf32>,
    } else {
    }
    %c0 = arith.constant 0 : index
    %c0_1 = arith.constant 0 : index
    %3 = vector.load %arg1[%c0, %c0_1] : memref<512x128xf32, #tpu.memory_space<vmem>>, vector<512x128xf32>
    %c0_2 = arith.constant 0 : index
    %c0_3 = arith.constant 0 : index
    %4 = vector.load %arg2[%c0_2, %c0_3] : memref<2x128xf32, #tpu.memory_space<vmem>>, vector<2x128xf32>
    %cst = arith.constant dense<0.000000e+00> : vector<128xf32>
    %5 = vector.multi_reduction <add>, %3, %cst [0] : vector<512x128xf32> to vector<128xf32>
    %6 = vector.shape_cast %5 : vector<128xf32> to vector<1x128xf32>
    %7 = arith.mulf %3, %3 : vector<512x128xf32>
    %cst_4 = arith.constant dense<0.000000e+00> : vector<128xf32>
    %8 = vector.multi_reduction <add>, %7, %cst_4 [0] : vector<512x128xf32> to vector<128xf32>
    %9 = vector.shape_cast %8 : vector<128xf32> to vector<1x128xf32>
    %10 = tpu.concatenate %6, %9 in 0 : vector<1x128xf32>, vector<1x128xf32> -> vector<2x128xf32>
    %11 = arith.addf %4, %10 : vector<2x128xf32>
    %c0_5 = arith.constant 0 : index
    %c0_6 = arith.constant 0 : index
    %12 = vector.load %arg2[%c0_5, %c0_6] : memref<2x128xf32, #tpu.memory_space<vmem>>, vector<2x128xf32>
    tpu.vector_store %arg2[%c0_5, %c0_6], %11 {strides = array<i32>} : memref<2x128xf32, #tpu.memory_space<vmem>>, vector<2x128xf32>,
    return
  }
  func.func @transform_0(%arg0: i32) -> (i32, i32) {
    %c0_i32 = arith.constant 0 : i32
    %c0_i32_0 = arith.constant 0 : i32
    return %arg0, %c0_i32 : i32, i32
  }
  func.func @transform_1(%arg0: i32) -> (i32, i32) {
    %c0_i32 = arith.constant 0 : i32
    %c0_i32_0 = arith.constant 0 : i32
    %c0_i32_1 = arith.constant 0 : i32
    return %c0_i32, %c0_i32_0 : i32, i32
  }
}

module attributes {stable_mosaic.version = 11 : i64} {
  func.func @_bn_act_kernel(%arg0: i32, %arg1: memref<512x128xf32, #tpu.memory_space<vmem>>, %arg2: memref<1x128xf32, #tpu.memory_space<vmem>>, %arg3: memref<1x128xf32, #tpu.memory_space<vmem>>, %arg4: memref<512x128xf32, #tpu.memory_space<vmem>>) attributes {dimension_semantics = [#tpu.dimension_semantics<parallel>], iteration_bounds = array<i64: 1>, scalar_prefetch = 0 : i64, scratch_operands = 0 : i64, tpu.core_type = #tpu.core_type<tc>, window_params = [{transform_indices = @transform_0, window_bounds = array<i64: 512, 128>}, {pipeline_mode = #tpu.pipeline_mode<synchronous>, transform_indices = @transform_1, window_bounds = array<i64: 1, 128>}, {pipeline_mode = #tpu.pipeline_mode<synchronous>, transform_indices = @transform_2, window_bounds = array<i64: 1, 128>}, {transform_indices = @transform_3, window_bounds = array<i64: 512, 128>}]} {
    %c0 = arith.constant 0 : index
    %c0_0 = arith.constant 0 : index
    %0 = vector.load %arg1[%c0, %c0_0] : memref<512x128xf32, #tpu.memory_space<vmem>>, vector<512x128xf32>
    %c0_1 = arith.constant 0 : index
    %c0_2 = arith.constant 0 : index
    %1 = vector.load %arg2[%c0_1, %c0_2] : memref<1x128xf32, #tpu.memory_space<vmem>>, vector<1x128xf32>
    %2 = vector.broadcast %1 : vector<1x128xf32> to vector<512x128xf32>
    %3 = arith.mulf %0, %2 : vector<512x128xf32>
    %c0_3 = arith.constant 0 : index
    %c0_4 = arith.constant 0 : index
    %4 = vector.load %arg3[%c0_3, %c0_4] : memref<1x128xf32, #tpu.memory_space<vmem>>, vector<1x128xf32>
    %5 = vector.broadcast %4 : vector<1x128xf32> to vector<512x128xf32>
    %6 = arith.addf %3, %5 : vector<512x128xf32>
    %cst = arith.constant 0.00999999977 : f32
    %7 = vector.broadcast %cst : f32 to vector<512x128xf32>
    %8 = arith.mulf %7, %6 : vector<512x128xf32>
    %9 = arith.maximumf %6, %8 : vector<512x128xf32>
    %c0_5 = arith.constant 0 : index
    %c0_6 = arith.constant 0 : index
    %10 = vector.load %arg4[%c0_5, %c0_6] : memref<512x128xf32, #tpu.memory_space<vmem>>, vector<512x128xf32>
    tpu.vector_store %arg4[%c0_5, %c0_6], %9 {strides = array<i32>} : memref<512x128xf32, #tpu.memory_space<vmem>>, vector<512x128xf32>,
    return
  }
  func.func @transform_0(%arg0: i32) -> (i32, i32) {
    %c0_i32 = arith.constant 0 : i32
    %c0_i32_0 = arith.constant 0 : i32
    return %arg0, %c0_i32 : i32, i32
  }
  func.func @transform_1(%arg0: i32) -> (i32, i32) {
    %c0_i32 = arith.constant 0 : i32
    %c0_i32_0 = arith.constant 0 : i32
    %c0_i32_1 = arith.constant 0 : i32
    return %c0_i32, %c0_i32_0 : i32, i32
  }
  func.func @transform_2(%arg0: i32) -> (i32, i32) {
    %c0_i32 = arith.constant 0 : i32
    %c0_i32_0 = arith.constant 0 : i32
    %c0_i32_1 = arith.constant 0 : i32
    return %c0_i32, %c0_i32_0 : i32, i32
  }
  func.func @transform_3(%arg0: i32) -> (i32, i32) {
    %c0_i32 = arith.constant 0 : i32
    %c0_i32_0 = arith.constant 0 : i32
    return %arg0, %c0_i32 : i32, i32
  }
}

</mosaic_0001>

<bundles_post_ra>
// kernel: asp_oc_forward.49
= control target key start
LH: loop header
LB: loop body
LE: loop exit
PB: predicated region body
PF: predicated region fallthrough
CT: control target
= control target key end

     0   :  { %vm12_vm0 = vcmask 517120   ;;  %vm79_vm1 = vcmask 523264   ;;  %v420_v0 = vmov 0.0   ;;  %vm410_vm2 = vcmask 1040384   ;;  %s1294_s0 = inlined_call_operand.vmem [shape: f32[512,64], index: 0, kind: input, shape index: {}]   ;;  %s1295_s1 = inlined_call_operand.vmem [shape: f32[2,64], index: 1, kind: output, shape index: {}]  }
   0x1   :  { %13 = vst.msk [vmem:[%s1295_s1] sm:$0x3] %vm12_vm0, %v420_v0  ;;  %v438_v1 = vld [vmem:[%s1294_s0] sm:$0xff]  ;;  %v443_v2 = vld [vmem:[%s1294_s0 + $0x8] sm:$0xff]  ;;  %v448_v3 = vld [vmem:[%s1294_s0 + $0x10] sm:$0xff] }
   0x2   :  { %v80_v4 = vsel %vm79_vm1, %v438_v1, 0.0  ;;  %v81_v5 = vsel %vm79_vm1, %v443_v2, 0.0  ;;  %v83_v6 = vsel %vm79_vm1, %v448_v3, 0.0  ;;  %v459_v7 = vld [vmem:[%s1294_s0 + $0x18] sm:$0xff]  ;;  %v466_v10 = vld [vmem:[%s1294_s0 + $0x20] sm:$0xff]  ;;  %v473_v13 = vld [vmem:[%s1294_s0 + $0x28] sm:$0xff] }
   0x3   :  { %v82_v8 = vadd.f32 %v81_v5, %v80_v4  ;;  %v85_v9 = vsel %vm79_vm1, %v459_v7, 0.0  ;;  %v87_v12 = vsel %vm79_vm1, %v466_v10, 0.0  ;;  %v89_v15 = vsel %vm79_vm1, %v473_v13, 0.0  ;;  %v480_v16 = vld [vmem:[%s1294_s0 + $0x30] sm:$0xff]  ;;  %v485_v18 = vld [vmem:[%s1294_s0 + $0x38] sm:$0xff]  ;;  %v490_v19 = vld [vmem:[%s1294_s0 + $0x40] sm:$0xff] }
   0x4   :  { %v91_v20 = vsel %vm79_vm1, %v480_v16, 0.0  ;;  %v497_v21 = vld [vmem:[%s1294_s0 + $0x48] sm:$0xff]  ;;  %v502_v22 = vld [vmem:[%s1294_s0 + $0x50] sm:$0xff]  ;;  %v507_v23 = vld [vmem:[%s1294_s0 + $0x58] sm:$0xff]  ;;  %v93_v25 = vsel %vm79_vm1, %v485_v18, 0.0  ;;  %v95_v26 = vsel %vm79_vm1, %v490_v19, 0.0 }
   0x5   :  { %v84_v11 = vadd.f32 %v83_v6, %v82_v8  ;;  %v516_v27 = vld [vmem:[%s1294_s0 + $0x108] sm:$0xff]  ;;  %v521_v28 = vld [vmem:[%s1294_s0 + $0x110] sm:$0xff]  ;;  %v526_v29 = vld [vmem:[%s1294_s0 + $0x118] sm:$0xff]  ;;  %v97_v30 = vsel %vm79_vm1, %v497_v21, 0.0  ;;  %v99_v31 = vsel %vm79_vm1, %v502_v22, 0.0  ;;  %v534_v32 = vsel %vm79_vm1, %v507_v23, 0.0 }
   0x6   :  { %v539_v33 = vld [vmem:[%s1294_s0 + $0x120] sm:$0xff]  ;;  %v544_v34 = vld [vmem:[%s1294_s0 + $0x128] sm:$0xff]  ;;  %v549_v35 = vld [vmem:[%s1294_s0 + $0x130] sm:$0xff]  ;;  %v553_v37 = vsel %vm79_vm1, %v516_v27, 0.0  ;;  %v557_v38 = vsel %vm79_vm1, %v521_v28, 0.0  ;;  %v561_v39 = vsel %vm79_vm1, %v526_v29, 0.0 }
   0x7   :  { %v86_v14 = vadd.f32 %v85_v9, %v84_v11  ;;  %1314 = vst [vmem:[#allocation2_spill] sm:$0xff] %v553_v37  ;;  %1315 = vst [vmem:[#allocation3_spill] sm:$0xff] %v557_v38  ;;  %v566_v40 = vld [vmem:[%s1294_s0 + $0x138] sm:$0xff]  ;;  %v571_v41 = vld [vmem:[%s1294_s0 + $0x140] sm:$0xff]  ;;  %v580_v43 = vsel %vm79_vm1, %v539_v33, 0.0  ;;  %v584_v44 = vsel %vm79_vm1, %v544_v34, 0.0  ;;  %v215_v37 = vmul.f32 %v448_v3, %v448_v3 }
   0x8   :  { %1316 = vst [vmem:[#allocation4_spill] sm:$0xff] %v561_v39  ;;  %v576_v42 = vld [vmem:[%s1294_s0 + $0x148] sm:$0xff]  ;;  %1317 = vst [vmem:[#allocation5_spill] sm:$0xff] %v580_v43  ;;  %v588_v45 = vsel %vm79_vm1, %v549_v35, 0.0  ;;  %v593_v46 = vld [vmem:[%s1294_s0 + $0x150] sm:$0xff]  ;;  %v607_v50 = vsel %vm79_vm1, %v566_v40, 0.0 }
   0x9   :  { %v88_v17 = vadd.f32 %v87_v12, %v86_v14  ;;  %1318 = vst [vmem:[#allocation6_spill] sm:$0xff] %v584_v44  ;;  %1319 = vst [vmem:[#allocation7_spill] sm:$0xff] %v588_v45  ;;  %v598_v47 = vld [vmem:[%s1294_s0 + $0x158] sm:$0xff]  ;;  %v603_v48 = vld [vmem:[%s1294_s0 + $0x160] sm:$0xff]  ;;  %v611_v51 = vsel %vm79_vm1, %v571_v41, 0.0  ;;  %v615_v52 = vsel %vm79_vm1, %v576_v42, 0.0 }
   0xa   :  { %1320 = vst [vmem:[#allocation8_spill] sm:$0xff] %v607_v50  ;;  %1321 = vst [vmem:[#allocation9_spill] sm:$0xff] %v611_v51  ;;  %v620_v53 = vld [vmem:[%s1294_s0 + $0x168] sm:$0xff]  ;;  %v625_v54 = vld [vmem:[%s1294_s0 + $0x170] sm:$0xff]  ;;  %v634_v56 = vsel %vm79_vm1, %v593_v46, 0.0  ;;  %v638_v57 = vsel %vm79_vm1, %v598_v47, 0.0 }
   0xb   :  { %v90_v24 = vadd.f32 %v89_v15, %v88_v17  ;;  %1322 = vst [vmem:[#allocation10_spill] sm:$0xff] %v615_v52  ;;  %v630_v55 = vld [vmem:[%s1294_s0 + $0x178] sm:$0xff]  ;;  %1323 = vst [vmem:[#allocation11_spill] sm:$0xff] %v634_v56  ;;  %v642_v58 = vsel %vm79_vm1, %v603_v48, 0.0  ;;  %v647_v59 = vld [vmem:[%s1294_s0 + $0x180] sm:$0xff]  ;;  %v661_v63 = vsel %vm79_vm1, %v620_v53, 0.0 }
   0xc   :  { %1324 = vst [vmem:[#allocation12_spill] sm:$0xff] %v638_v57  ;;  %1325 = vst [vmem:[#allocation13_spill] sm:$0xff] %v642_v58  ;;  %v652_v60 = vld [vmem:[%s1294_s0 + $0x188] sm:$0xff]  ;;  %v657_v61 = vld [vmem:[%s1294_s0 + $0x190] sm:$0xff]  ;;  %v665_v0 = vsel %vm79_vm1, %v625_v54, 0.0  ;;  %v669_v4 = vsel %vm79_vm1, %v630_v55, 0.0 }
   0xd   :  { %v92_v36 = vadd.f32 %v91_v20, %v90_v24  ;;  %1326 = vst [vmem:[#allocation14_spill] sm:$0xff] %v661_v63  ;;  %1327 = vst [vmem:[#allocation15_spill] sm:$0xff] %v665_v0  ;;  %v674_v5 = vld [vmem:[%s1294_s0 + $0x198] sm:$0xff]  ;;  %v679_v6 = vld [vmem:[%s1294_s0 + $0x1a0] sm:$0xff]  ;;  %v688_v9 = vsel %vm79_vm1, %v647_v59, 0.0  ;;  %v692_v11 = vsel %vm79_vm1, %v652_v60, 0.0 }
   0xe   :  { %1328 = vst [vmem:[#allocation16_spill] sm:$0xff] %v669_v4  ;;  %v684_v8 = vld [vmem:[%s1294_s0 + $0x1a8] sm:$0xff]  ;;  %1329 = vst [vmem:[#allocation17_spill] sm:$0xff] %v688_v9  ;;  %v696_v12 = vsel %vm79_vm1, %v657_v61, 0.0  ;;  %v701_v14 = vld [vmem:[%s1294_s0 + $0x60] sm:$0xff] }
   0xf   :  { %v94_v49 = vadd.f32 %v93_v25, %v92_v36  ;;  %1330 = vst [vmem:[#allocation18_spill] sm:$0xff] %v692_v11  ;;  %1331 = vst [vmem:[#allocation19_spill] sm:$0xff] %v696_v12  ;;  %v706_v15 = vld [vmem:[%s1294_s0 + $0x1b0] sm:$0xff]  ;;  %v711_v17 = vld [vmem:[%s1294_s0 + $0x1b8] sm:$0xff]  ;;  %v720_v25 = vsel %vm79_vm1, %v674_v5, 0.0  ;;  %v728_v36 = vsel %vm79_vm1, %v684_v8, 0.0 }
  0x10   :  { %v716_v20 = vld [vmem:[%s1294_s0 + $0x1c0] sm:$0xff]  ;;  %1332 = vst [vmem:[#allocation20_spill] sm:$0xff] %v720_v25  ;;  %1334 = vst [vmem:[#allocation22_spill] sm:$0xff] %v728_v36  ;;  %v751_v36 = vsel %vm79_vm1, %v711_v17, 0.0  ;;  %v765_v11 = vld [vmem:[%s1294_s0 + $0x1e8] sm:$0xff] }
  0x11   :  { %v96_v62 = vadd.f32 %v95_v26, %v94_v49  ;;  %v724_v26 = vsel %vm79_vm1, %v679_v6, 0.0  ;;  %v733_v49 = vld [vmem:[%s1294_s0 + $0x1c8] sm:$0xff]  ;;  %1336 = vst [vmem:[#allocation24_spill] sm:$0xff] %v751_v36  ;;  %v755_v25 = vsel %vm79_vm1, %v716_v20, 0.0  ;;  %v760_v12 = vld [vmem:[%s1294_s0 + $0x1e0] sm:$0xff]  ;;  %v787_v0 = vld [vmem:[%s1294_s0 + $0x1f8] sm:$0xff] }
  0x12   :  { %1333 = vst [vmem:[#allocation21_spill] sm:$0xff] %v724_v26  ;;  %v747_v26 = vsel %vm79_vm1, %v706_v15, 0.0  ;;  %1337 = vst [vmem:[#allocation25_spill] sm:$0xff] %v755_v25  ;;  %v774_v9 = vsel %vm79_vm1, %v733_v49, 0.0  ;;  %v809_v58 = vsel %vm79_vm1, %v787_v0, 0.0  ;;  %v838_v56 = vld [vmem:[%s1294_s0 + $0x90] sm:$0xff] }
  0x13   :  { %v98_v24 = vadd.f32 %v97_v30, %v96_v62  ;;  %v738_v30 = vld [vmem:[%s1294_s0 + $0x1d0] sm:$0xff]  ;;  %v743_v62 = vld [vmem:[%s1294_s0 + $0x1d8] sm:$0xff]  ;;  %1335 = vst [vmem:[#allocation23_spill] sm:$0xff] %v747_v26  ;;  %1339 = vst [vmem:[#allocation27_spill] sm:$0xff] %v774_v9  ;;  %v797_v9 = vsel %vm79_vm1, %v765_v11, 0.0 }
  0x14   :  { %v770_v26 = vld [vmem:[%s1294_s0 + $0x1f0] sm:$0xff]  ;;  %v778_v25 = vsel %vm79_vm1, %v738_v30, 0.0  ;;  %v782_v4 = vsel %vm79_vm1, %v743_v62, 0.0  ;;  %1342 = vst [vmem:[#allocation30_spill] sm:$0xff] %v787_v0  ;;  %1344 = vst [vmem:[#allocation32_spill] sm:$0xff] %v797_v9  ;;  %v843_v52 = vld [vmem:[%s1294_s0 + $0x98] sm:$0xff] }
  0x15   :  { %1338 = vst [vmem:[#allocation26_spill] sm:$0xff] %v770_v26  ;;  %v100_v36 = vadd.f32 %v99_v31, %v98_v24  ;;  %1340 = vst [vmem:[#allocation28_spill] sm:$0xff] %v778_v25  ;;  %v103_v31 = vsel %vm79_vm1, %v701_v14, 0.0  ;;  %v793_v24 = vsel %vm79_vm1, %v760_v12, 0.0  ;;  %v801_v25 = vsel %vm79_vm1, %v770_v26, 0.0  ;;  %v28_v9 = vld [vmem:[%s1294_s0 + $0x70] sm:$0xff] }
  0x16   :  { %1341 = vst [vmem:[#allocation29_spill] sm:$0xff] %v782_v4  ;;  %1343 = vst [vmem:[#allocation31_spill] sm:$0xff] %v793_v24  ;;  %v27_v4 = vld [vmem:[%s1294_s0 + $0x68] sm:$0xff]  ;;  %v848_v51 = vld [vmem:[%s1294_s0 + $0xa0] sm:$0xff]  ;;  %v117_v39 = vsel %vm79_vm1, %v843_v52, 0.0 }
  0x17   :  { %1345 = vst [vmem:[#allocation33_spill] sm:$0xff] %v801_v25  ;;  %v102_v63 = vadd.f32 %v534_v32, %v100_v36  ;;  %1346 = vst [vmem:[#allocation34_spill] sm:$0xff] %v809_v58  ;;  %v105_v24 = vsel %vm79_vm1, %v27_v4, 0.0  ;;  %v818_v25 = vld [vmem:[%s1294_s0 + $0x78] sm:$0xff]  ;;  %v823_v32 = vld [vmem:[%s1294_s0 + $0x80] sm:$0xff]  ;;  %v107_v58 = vsel %vm79_vm1, %v28_v9, 0.0 }
  0x18   :  { %1347 = vst [vmem:[#allocation35_spill] sm:$0xff] %v818_v25  ;;  %1348 = vst [vmem:[#allocation36_spill] sm:$0xff] %v823_v32  ;;  %v828_v36 = vld [vmem:[%s1294_s0 + $0x88] sm:$0xff]  ;;  %v864_v43 = vld [vmem:[%s1294_s0 + $0xb0] sm:$0xff]  ;;  %v119_v38 = vsel %vm79_vm1, %v848_v51, 0.0 }
  0x19   :  { %v104_v57 = vadd.f32 %v103_v31, %v102_v63  ;;  %1349 = vst [vmem:[#allocation37_spill] sm:$0xff] %v828_v36  ;;  %v213_v63 = vmul.f32 %v438_v1, %v438_v1  ;;  %v214_v31 = vmul.f32 %v443_v2, %v443_v2  ;;  %1350 = vst [vmem:[#allocation38_spill] sm:$0xff] %v838_v56  ;;  %v109_v1 = vsel %vm79_vm1, %v818_v25, 0.0  ;;  %v859_v44 = vld [vmem:[%s1294_s0 + $0xa8] sm:$0xff]  ;;  %v905_v0 = vld [vmem:[%s1294_s0 + $0xd8] sm:$0xff] }
  0x1a   :  { %1351 = vst [vmem:[#allocation39_spill] sm:$0xff] %v843_v52  ;;  %1352 = vst [vmem:[#allocation40_spill] sm:$0xff] %v848_v51  ;;  %v111_v2 = vsel %vm79_vm1, %v823_v32, 0.0  ;;  %v113_v45 = vsel %vm79_vm1, %v828_v36, 0.0  ;;  %v882_v36 = vld [vmem:[%s1294_s0 + $0xc0] sm:$0xff]  ;;  %v887_v32 = vld [vmem:[%s1294_s0 + $0xc8] sm:$0xff]  ;;  %v216_v25 = vmul.f32 %v459_v7, %v459_v7 }
  0x1b   :  { %v106_v50 = vadd.f32 %v105_v24, %v104_v57  ;;  %1353 = vst [vmem:[#allocation41_spill] sm:$0xff] %v859_v44  ;;  %1354 = vst [vmem:[#allocation42_spill] sm:$0xff] %v864_v43  ;;  %v869_v57 = vld [vmem:[%s1294_s0 + $0xb8] sm:$0xff]  ;;  %v115_v24 = vsel %vm79_vm1, %v838_v56, 0.0  ;;  %v892_v52 = vld [vmem:[%s1294_s0 + $0xd0] sm:$0xff]  ;;  %v121_v51 = vsel %vm79_vm1, %v859_v44, 0.0 }
  0x1c   :  { %1355 = vst [vmem:[#allocation43_spill] sm:$0xff] %v869_v57  ;;  %1356 = vst [vmem:[#allocation44_spill] sm:$0xff] %v882_v36  ;;  %v898_v3 = vsel %vm79_vm1, %v864_v43, 0.0  ;;  %v910_v26 = vld [vmem:[%s1294_s0 + $0xe0] sm:$0xff]  ;;  %v922_v7 = vsel %vm79_vm1, %v887_v32, 0.0  ;;  %v926_v43 = vsel %vm79_vm1, %v892_v52, 0.0 }
  0x1d   :  { %1357 = vst [vmem:[#allocation45_spill] sm:$0xff] %v887_v32  ;;  %1358 = vst [vmem:[#allocation46_spill] sm:$0xff] %v892_v52  ;;  %v108_v56 = vadd.f32 %v107_v58, %v106_v50  ;;  %v914_v50 = vsel %vm79_vm1, %v869_v57, 0.0  ;;  %v918_v58 = vsel %vm79_vm1, %v882_v36, 0.0  ;;  %v931_v44 = vld [vmem:[%s1294_s0 + $0xe8] sm:$0xff]  ;;  %v936_v57 = vld [vmem:[%s1294_s0 + $0xf0] sm:$0xff]  ;;  %v217_v52 = vmul.f32 %v466_v10, %v466_v10 }
  0x1e   :  { %1359 = vst [vmem:[#allocation47_spill] sm:$0xff] %v905_v0  ;;  %1360 = vst [vmem:[#allocation48_spill] sm:$0xff] %v910_v26  ;;  %v944_v32 = vsel %vm79_vm1, %v910_v26, 0.0  ;;  %v220_v26 = vmul.f32 %v485_v18, %v485_v18  ;;  %v221_v10 = vmul.f32 %v490_v19, %v490_v19  ;;  %v246_v18 = vmul.f32 %v516_v27, %v516_v27 }
  0x1f   :  { %1361 = vst [vmem:[#allocation49_spill] sm:$0xff] %v918_v58  ;;  %1362 = vst [vmem:[#allocation50_spill] sm:$0xff] %v922_v7  ;;  %v110_v36 = vadd.f32 %v109_v1, %v108_v56  ;;  %v940_v58 = vsel %vm79_vm1, %v905_v0, 0.0  ;;  %v954_v7 = vsel %vm79_vm1, %v936_v57, 0.0  ;;  %v218_v56 = vmul.f32 %v473_v13, %v473_v13 }
  0x20   :  { %1363 = vst [vmem:[#allocation51_spill] sm:$0xff] %v926_v43  ;;  %1364 = vst [vmem:[#allocation52_spill] sm:$0xff] %v931_v44  ;;  %v950_v43 = vsel %vm79_vm1, %v931_v44, 0.0  ;;  %v219_v1 = vmul.f32 %v480_v16, %v480_v16  ;;  %v222_v44 = vmul.f32 %v497_v21, %v497_v21  ;;  %v225_v13 = vmul.f32 %v701_v14, %v701_v14 }
  0x21   :  { %1365 = vst [vmem:[#allocation53_spill] sm:$0xff] %v936_v57  ;;  %1366 = vst [vmem:[#allocation54_spill] sm:$0xff] %v954_v7  ;;  %v112_v0 = vadd.f32 %v111_v2, %v110_v36  ;;  %v223_v57 = vmul.f32 %v502_v22, %v502_v22  ;;  %v224_v7 = vmul.f32 %v507_v23, %v507_v23 }
  0x22   :  { %v972_v16 = vmul.f32 %v27_v4, %v27_v4  ;;  %v974_v2 = vmul.f32 %v28_v9, %v28_v9  ;;  %v247_v19 = vmul.f32 %v521_v28, %v521_v28  ;;  %v248_v21 = vmul.f32 %v526_v29, %v526_v29 }
  0x23   :  { %v114_v36 = vadd.f32 %v113_v45, %v112_v0  ;;  %v249_v22 = vmul.f32 %v539_v33, %v539_v33  ;;  %v250_v23 = vmul.f32 %v544_v34, %v544_v34  ;;  %v251_v45 = vmul.f32 %v549_v35, %v549_v35 }
  0x24   :  { %v252_v4 = vmul.f32 %v566_v40, %v566_v40  ;;  %v253_v27 = vmul.f32 %v571_v41, %v571_v41  ;;  %v254_v28 = vmul.f32 %v576_v42, %v576_v42  ;;  %v255_v29 = vmul.f32 %v593_v46, %v593_v46 }
  0x25   :  { %v116_v0 = vadd.f32 %v115_v24, %v114_v36  ;;  %v256_v33 = vmul.f32 %v598_v47, %v598_v47  ;;  %v277_v34 = vsel %vm79_vm1, %v213_v63, 0.0  ;;  %v278_v35 = vsel %vm79_vm1, %v214_v31, 0.0 }
  0x26   :  { %v257_v40 = vmul.f32 %v603_v48, %v603_v48  ;;  %v279_v14 = vadd.f32 %v278_v35, %v277_v34  ;;  %v280_v41 = vsel %vm79_vm1, %v215_v37, 0.0  ;;  %v258_v42 = vmul.f32 %v620_v53, %v620_v53  ;;  %v1368_v34 = vld [vmem:[#allocation30_spill] sm:$0xff] }
  0x27   :  { %v118_v9 = vadd.f32 %v117_v39, %v116_v0  ;;  %v259_v46 = vmul.f32 %v625_v54, %v625_v54  ;;  %v260_v47 = vmul.f32 %v630_v55, %v630_v55  ;;  %v282_v63 = vsel %vm79_vm1, %v216_v25, 0.0  ;;  %v1367_v0 = vld [vmem:[#allocation26_spill] sm:$0xff] }
  0x28   :  { %v261_v39 = vmul.f32 %v647_v59, %v647_v59  ;;  %v262_v48 = vmul.f32 %v652_v60, %v652_v60  ;;  %v281_v31 = vadd.f32 %v280_v41, %v279_v14  ;;  %v263_v37 = vmul.f32 %v657_v61, %v657_v61  ;;  %v1369_v41 = vld [vmem:[#allocation49_spill] sm:$0xff] }
  0x29   :  { %v120_v24 = vadd.f32 %v119_v38, %v118_v9  ;;  %v264_v53 = vmul.f32 %v674_v5, %v674_v5  ;;  %v265_v54 = vmul.f32 %v679_v6, %v679_v6  ;;  %v284_v55 = vsel %vm79_vm1, %v217_v52, 0.0 }
  0x2a   :  { %v266_v38 = vmul.f32 %v684_v8, %v684_v8  ;;  %v267_v59 = vmul.f32 %v706_v15, %v706_v15  ;;  %v283_v60 = vadd.f32 %v282_v63, %v281_v31  ;;  %v268_v36 = vmul.f32 %v711_v17, %v711_v17 }
  0x2b   :  { %v122_v25 = vadd.f32 %v121_v51, %v120_v24  ;;  %v269_v61 = vmul.f32 %v716_v20, %v716_v20  ;;  %v270_v5 = vmul.f32 %v733_v49, %v733_v49  ;;  %v286_v6 = vsel %vm79_vm1, %v218_v56, 0.0 }
  0x2c   :  { %v271_v52 = vmul.f32 %v738_v30, %v738_v30  ;;  %v272_v8 = vmul.f32 %v743_v62, %v743_v62  ;;  %v285_v15 = vadd.f32 %v284_v55, %v283_v60  ;;  %v273_v17 = vmul.f32 %v760_v12, %v760_v12 }
  0x2d   :  { %v124_v51 = vadd.f32 %v898_v3, %v122_v25  ;;  %v274_v20 = vmul.f32 %v765_v11, %v765_v11  ;;  %v275_v49 = vmul.f32 %v1367_v0, %v1367_v0  ;;  %v288_v56 = vsel %vm79_vm1, %v219_v1, 0.0  ;;  %v1371_v25 = vld [vmem:[#allocation51_spill] sm:$0xff] }
  0x2e   :  { %v276_v30 = vmul.f32 %v1368_v34, %v1368_v34  ;;  %v287_v35 = vadd.f32 %v286_v6, %v285_v15  ;;  %v290_v62 = vsel %vm79_vm1, %v220_v26, 0.0  ;;  %v292_v9 = vsel %vm79_vm1, %v221_v10, 0.0  ;;  %v1373_v34 = vld [vmem:[#allocation54_spill] sm:$0xff] }
  0x2f   :  { %v126_v3 = vadd.f32 %v914_v50, %v124_v51  ;;  %v294_v12 = vsel %vm79_vm1, %v222_v44, 0.0  ;;  %v296_v14 = vsel %vm79_vm1, %v223_v57, 0.0  ;;  %v298_v11 = vsel %vm79_vm1, %v224_v7, 0.0  ;;  %v1370_v7 = vld [vmem:[#allocation50_spill] sm:$0xff] }
  0x30   :  { %v289_v24 = vadd.f32 %v288_v56, %v287_v35  ;;  %v300_v1 = vsel %vm79_vm1, %v225_v13, 0.0  ;;  %v1055_v50 = vsel %vm79_vm1, %v246_v18, 0.0  ;;  %v1058_v31 = vsel %vm79_vm1, %v247_v19, 0.0  ;;  %v1372_v56 = vld [vmem:[#allocation35_spill] sm:$0xff] }
  0x31   :  { %v128_v63 = vadd.f32 %v1369_v41, %v126_v3  ;;  %v1061_v26 = vsel %vm79_vm1, %v248_v21, 0.0  ;;  %v1064_v44 = vsel %vm79_vm1, %v249_v22, 0.0  ;;  %v1067_v57 = vsel %vm79_vm1, %v250_v23, 0.0 }
  0x32   :  { %v291_v55 = vadd.f32 %v290_v62, %v289_v24  ;;  %v1071_v13 = vsel %vm79_vm1, %v251_v45, 0.0  ;;  %v1074_v18 = vsel %vm79_vm1, %v252_v4, 0.0  ;;  %v1077_v19 = vsel %vm79_vm1, %v253_v27, 0.0  ;;  %v1374_v62 = vld [vmem:[#allocation36_spill] sm:$0xff] }
  0x33   :  { %v130_v10 = vadd.f32 %v1370_v7, %v128_v63  ;;  %v1080_v21 = vsel %vm79_vm1, %v254_v28, 0.0  ;;  %v1083_v22 = vsel %vm79_vm1, %v255_v29, 0.0  ;;  %v1086_v23 = vsel %vm79_vm1, %v256_v33, 0.0 }
  0x34   :  { %v293_v6 = vadd.f32 %v292_v9, %v291_v55  ;;  %v1090_v45 = vsel %vm79_vm1, %v257_v40, 0.0  ;;  %v1093_v4 = vsel %vm79_vm1, %v258_v42, 0.0  ;;  %v1096_v27 = vsel %vm79_vm1, %v259_v46, 0.0 }
  0x35   :  { %v132_v60 = vadd.f32 %v1371_v25, %v130_v10  ;;  %v1099_v28 = vsel %vm79_vm1, %v260_v47, 0.0  ;;  %v1102_v29 = vsel %vm79_vm1, %v261_v39, 0.0  ;;  %v1105_v33 = vsel %vm79_vm1, %v262_v48, 0.0  ;;  %v1376_v10 = vld [vmem:[#allocation38_spill] sm:$0xff] }
  0x36   :  { %v295_v15 = vadd.f32 %v294_v12, %v293_v6  ;;  %v1109_v40 = vsel %vm79_vm1, %v263_v37, 0.0  ;;  %v1112_v42 = vsel %vm79_vm1, %v264_v53, 0.0  ;;  %v1115_v46 = vsel %vm79_vm1, %v265_v54, 0.0  ;;  %v1377_v25 = vld [vmem:[#allocation2_spill] sm:$0xff] }
  0x37   :  { %v134_v51 = vadd.f32 %v940_v58, %v132_v60  ;;  %v1118_v47 = vsel %vm79_vm1, %v266_v38, 0.0  ;;  %v1121_v39 = vsel %vm79_vm1, %v267_v59, 0.0  ;;  %v1124_v48 = vsel %vm79_vm1, %v268_v36, 0.0 }
  0x38   :  { %v297_v0 = vadd.f32 %v296_v14, %v295_v15  ;;  %v1128_v37 = vsel %vm79_vm1, %v269_v61, 0.0  ;;  %v1131_v53 = vsel %vm79_vm1, %v270_v5, 0.0  ;;  %v1134_v54 = vsel %vm79_vm1, %v271_v52, 0.0 }
  0x39   :  { %v136_v58 = vadd.f32 %v944_v32, %v134_v51  ;;  %v1137_v38 = vsel %vm79_vm1, %v272_v8, 0.0  ;;  %v1140_v59 = vsel %vm79_vm1, %v273_v17, 0.0  ;;  %v1143_v36 = vsel %vm79_vm1, %v274_v20, 0.0  ;;  %v1148_v32 = vld [vmem:[%s1294_s0 + $0xf8] sm:$0xff]  ;;  %v1378_v51 = vld [vmem:[#allocation39_spill] sm:$0xff] }
  0x3a   :  { %v299_v5 = vadd.f32 %v298_v11, %v297_v0  ;;  %v1152_v52 = vsel %vm79_vm1, %v275_v49, 0.0  ;;  %v1155_v8 = vsel %vm79_vm1, %v276_v30, 0.0  ;;  %v141_v17 = vsel %vm79_vm1, %v1148_v32, 0.0 }
  0x3b   :  { %v138_v61 = vadd.f32 %v950_v43, %v136_v58  ;;  %v228_v20 = vmul.f32 %v1372_v56, %v1372_v56  ;;  %v302_v3 = vsel %vm79_vm1, %v972_v16, 0.0  ;;  %v1166_v43 = vld [vmem:[%s1294_s0 + $0x100] sm:$0xff]  ;;  %v229_v9 = vmul.f32 %v1374_v62, %v1374_v62  ;;  %v1375_v16 = vld [vmem:[#allocation37_spill] sm:$0xff]  ;;  %v1379_v58 = vld [vmem:[#allocation3_spill] sm:$0xff] }
  0x3c   :  { %v301_v35 = vadd.f32 %v300_v1, %v299_v5  ;;  %v143_v30 = vsel %vm79_vm1, %v1166_v43, 0.0  ;;  %v304_v12 = vsel %vm79_vm1, %v974_v2, 0.0  ;;  %v230_v41 = vmul.f32 %v1375_v16, %v1375_v16  ;;  %v1380_v5 = vld [vmem:[#allocation40_spill] sm:$0xff]  ;;  %v1383_v62 = vld [vmem:[#allocation5_spill] sm:$0xff] }
  0x3d   :  { %v140_v49 = vadd.f32 %v1373_v34, %v138_v61  ;;  %v306_v63 = vsel %vm79_vm1, %v228_v20, 0.0  ;;  %v231_v1 = vmul.f32 %v1376_v10, %v1376_v10  ;;  %v308_v55 = vsel %vm79_vm1, %v229_v9, 0.0  ;;  %v1381_v20 = vld [vmem:[#allocation4_spill] sm:$0xff] }
  0x3e   :  { %v303_v11 = vadd.f32 %v302_v3, %v301_v35  ;;  %v232_v2 = vmul.f32 %v1378_v51, %v1378_v51  ;;  %v310_v15 = vsel %vm79_vm1, %v230_v41, 0.0  ;;  %v1385_v41 = vld [vmem:[#allocation6_spill] sm:$0xff] }
  0x3f   :  { %v142_v14 = vadd.f32 %v141_v17, %v140_v49  ;;  %v233_v17 = vmul.f32 %v1380_v5, %v1380_v5  ;;  %v312_v56 = vsel %vm79_vm1, %v231_v1, 0.0  ;;  %v1382_v49 = vld [vmem:[#allocation41_spill] sm:$0xff] }
  0x40   :  { %v305_v7 = vadd.f32 %v304_v12, %v303_v11  ;;  %v234_v35 = vmul.f32 %v1382_v49, %v1382_v49 }
  0x41   :  { %v144_v24 = vadd.f32 %v143_v30, %v142_v14  ;;  %v314_v30 = vsel %vm79_vm1, %v232_v2, 0.0  ;;  %v1384_v14 = vld [vmem:[#allocation42_spill] sm:$0xff]  ;;  %v316_v16 = vsel %vm79_vm1, %v233_v17, 0.0 }
  0x42   :  { %v307_v6 = vadd.f32 %v306_v63, %v305_v7  ;;  %v235_v11 = vmul.f32 %v1384_v14, %v1384_v14  ;;  %v1386_v7 = vld [vmem:[#allocation43_spill] sm:$0xff]  ;;  %v318_v1 = vsel %vm79_vm1, %v234_v35, 0.0 }
  0x43   :  { %v146_v60 = vadd.f32 %v1377_v25, %v144_v24  ;;  %v236_v10 = vmul.f32 %v1386_v7, %v1386_v7 }
  0x44   :  { %v309_v61 = vadd.f32 %v308_v55, %v307_v6  ;;  %v1387_v55 = vld [vmem:[#allocation7_spill] sm:$0xff]  ;;  %v1388_v6 = vld [vmem:[#allocation44_spill] sm:$0xff]  ;;  %v320_v2 = vsel %vm79_vm1, %v235_v11, 0.0 }
  0x45   :  { %v148_v0 = vadd.f32 %v1379_v58, %v146_v60  ;;  %v237_v51 = vmul.f32 %v1388_v6, %v1388_v6  ;;  %v322_v17 = vsel %vm79_vm1, %v236_v10, 0.0 }
  0x46   :  { %v311_v34 = vadd.f32 %v310_v15, %v309_v61  ;;  %v1389_v15 = vld [vmem:[#allocation8_spill] sm:$0xff]  ;;  %v1390_v61 = vld [vmem:[#allocation45_spill] sm:$0xff] }
  0x47   :  { %v150_v3 = vadd.f32 %v1381_v20, %v148_v0  ;;  %v238_v5 = vmul.f32 %v1390_v61, %v1390_v61  ;;  %v324_v35 = vsel %vm79_vm1, %v237_v51, 0.0 }
  0x48   :  { %v313_v12 = vadd.f32 %v312_v56, %v311_v34  ;;  %v1391_v56 = vld [vmem:[#allocation9_spill] sm:$0xff]  ;;  %v1392_v34 = vld [vmem:[#allocation46_spill] sm:$0xff] }
  0x49   :  { %v152_v9 = vadd.f32 %v1383_v62, %v150_v3  ;;  %v239_v49 = vmul.f32 %v1392_v34, %v1392_v34  ;;  %v326_v11 = vsel %vm79_vm1, %v238_v5, 0.0 }
  0x4a   :  { %v315_v24 = vadd.f32 %v314_v30, %v313_v12  ;;  %v1393_v30 = vld [vmem:[#allocation10_spill] sm:$0xff]  ;;  %v1394_v12 = vld [vmem:[#allocation47_spill] sm:$0xff] }
  0x4b   :  { %v154_v63 = vadd.f32 %v1385_v41, %v152_v9  ;;  %v240_v14 = vmul.f32 %v1394_v12, %v1394_v12  ;;  %v328_v10 = vsel %vm79_vm1, %v239_v49, 0.0  ;;  %v1402_v49 = vld [vmem:[#allocation15_spill] sm:$0xff]  ;;  %v1403_v12 = vld [vmem:[#allocation16_spill] sm:$0xff] }
  0x4c   :  { %v317_v60 = vadd.f32 %v316_v16, %v315_v24  ;;  %v1395_v16 = vld [vmem:[#allocation11_spill] sm:$0xff]  ;;  %v1396_v24 = vld [vmem:[#allocation48_spill] sm:$0xff] }
  0x4d   :  { %v156_v25 = vadd.f32 %v1387_v55, %v154_v63  ;;  %v241_v7 = vmul.f32 %v1396_v24, %v1396_v24  ;;  %v330_v51 = vsel %vm79_vm1, %v240_v14, 0.0 }
  0x4e   :  { %v319_v0 = vadd.f32 %v318_v1, %v317_v60  ;;  %v1397_v1 = vld [vmem:[#allocation12_spill] sm:$0xff] }
  0x4f   :  { %v158_v58 = vadd.f32 %v1389_v15, %v156_v25  ;;  %v1398_v60 = vld [vmem:[#allocation52_spill] sm:$0xff]  ;;  %v332_v5 = vsel %vm79_vm1, %v241_v7, 0.0  ;;  %v1405_v7 = vld [vmem:[#allocation18_spill] sm:$0xff] }
  0x50   :  { %v321_v3 = vadd.f32 %v320_v2, %v319_v0  ;;  %v242_v6 = vmul.f32 %v1398_v60, %v1398_v60  ;;  %v1399_v2 = vld [vmem:[#allocation13_spill] sm:$0xff] }
  0x51   :  { %v160_v20 = vadd.f32 %v1391_v56, %v158_v58  ;;  %v1400_v0 = vld [vmem:[#allocation53_spill] sm:$0xff] }
  0x52   :  { %v323_v9 = vadd.f32 %v322_v17, %v321_v3  ;;  %v243_v61 = vmul.f32 %v1400_v0, %v1400_v0  ;;  %v1401_v17 = vld [vmem:[#allocation14_spill] sm:$0xff]  ;;  %v244_v3 = vmul.f32 %v1148_v32, %v1148_v32  ;;  %v334_v34 = vsel %vm79_vm1, %v242_v6, 0.0  ;;  %v1407_v6 = vld [vmem:[#allocation20_spill] sm:$0xff] }
  0x53   :  { %v162_v62 = vadd.f32 %v1393_v30, %v160_v20  ;;  %v1409_v0 = vld [vmem:[#allocation22_spill] sm:$0xff] }
  0x54   :  { %v325_v63 = vadd.f32 %v324_v35, %v323_v9  ;;  %v336_v9 = vsel %vm79_vm1, %v243_v61, 0.0 }
  0x55   :  { %v164_v41 = vadd.f32 %v1395_v16, %v162_v62  ;;  %v245_v62 = vmul.f32 %v1166_v43, %v1166_v43  ;;  %v338_v16 = vsel %vm79_vm1, %v244_v3, 0.0  ;;  %v1411_v3 = vld [vmem:[#allocation24_spill] sm:$0xff] }
  0x56   :  { %v327_v25 = vadd.f32 %v326_v11, %v325_v63 }
  0x57   :  { %v166_v55 = vadd.f32 %v1397_v1, %v164_v41  ;;  %v1404_v41 = vld [vmem:[#allocation17_spill] sm:$0xff]  ;;  %v340_v32 = vsel %vm79_vm1, %v245_v62, 0.0  ;;  %v1413_v62 = vld [vmem:[#allocation27_spill] sm:$0xff] }
  0x58   :  { %v329_v58 = vadd.f32 %v328_v10, %v327_v25 }
  0x59   :  { %v168_v15 = vadd.f32 %v1399_v2, %v166_v55  ;;  %v1406_v55 = vld [vmem:[#allocation19_spill] sm:$0xff]  ;;  %v1408_v2 = vld [vmem:[#allocation21_spill] sm:$0xff] }
  0x5a   :  { %v331_v20 = vadd.f32 %v330_v51, %v329_v58 }
  0x5b   :  { %v170_v56 = vadd.f32 %v1401_v17, %v168_v15  ;;  %v1410_v17 = vld [vmem:[#allocation23_spill] sm:$0xff] }
  0x5c   :  { %v333_v30 = vadd.f32 %v332_v5, %v331_v20 }
  0x5d   :  { %v172_v35 = vadd.f32 %v1402_v49, %v170_v56 }
  0x5e   :  { %v335_v11 = vadd.f32 %v334_v34, %v333_v30 }
  0x5f   :  { %v174_v14 = vadd.f32 %v1403_v12, %v172_v35  ;;  %v1412_v35 = vld [vmem:[#allocation25_spill] sm:$0xff]  ;;  %v1414_v12 = vld [vmem:[#allocation28_spill] sm:$0xff] }
  0x60   :  { %v337_v24 = vadd.f32 %v336_v9, %v335_v11  ;;  %v1415_v11 = vld [vmem:[#allocation29_spill] sm:$0xff] }
  0x61   :  { %v176_v63 = vadd.f32 %v1404_v41, %v174_v14  ;;  %v1416_v41 = vld [vmem:[#allocation31_spill] sm:$0xff] }
  0x62   :  { %v339_v1 = vadd.f32 %v338_v16, %v337_v24  ;;  %v1417_v24 = vld [vmem:[#allocation32_spill] sm:$0xff] }
  0x63   :  { %v178_v10 = vadd.f32 %v1405_v7, %v176_v63  ;;  %v1418_v7 = vld [vmem:[#allocation33_spill] sm:$0xff] }
  0x64   :  { %v341_v60 = vadd.f32 %v340_v32, %v339_v1  ;;  %v1419_v1 = vld [vmem:[#allocation34_spill] sm:$0xff] }
  0x65   :  { %v180_v25 = vadd.f32 %v1406_v55, %v178_v10 }
  0x66   :  { %v343_v51 = vadd.f32 %v1055_v50, %v341_v60 }
  0x67   :  { %v182_v43 = vadd.f32 %v1407_v6, %v180_v25 }
  0x68   :  { %v345_v58 = vadd.f32 %v1058_v31, %v343_v51 }
  0x69   :  { %v184_v15 = vadd.f32 %v1408_v2, %v182_v43 }
  0x6a   :  { %v347_v5 = vadd.f32 %v1061_v26, %v345_v58 }
  0x6b   :  { %v186_v61 = vadd.f32 %v1409_v0, %v184_v15 }
  0x6c   :  { %v349_v20 = vadd.f32 %v1064_v44, %v347_v5 }
  0x6d   :  { %v188_v56 = vadd.f32 %v1410_v17, %v186_v61 }
  0x6e   :  { %v351_v49 = vadd.f32 %v1067_v57, %v349_v20 }
  0x6f   :  { %v190_v34 = vadd.f32 %v1411_v3, %v188_v56 }
  0x70   :  { %v353_v50 = vadd.f32 %v1071_v13, %v351_v49 }
  0x71   :  { %v192_v30 = vadd.f32 %v1412_v35, %v190_v34 }
  0x72   :  { %v355_v31 = vadd.f32 %v1074_v18, %v353_v50 }
  0x73   :  { %v194_v9 = vadd.f32 %v1413_v62, %v192_v30 }
  0x74   :  { %v357_v26 = vadd.f32 %v1077_v19, %v355_v31 }
  0x75   :  { %v196_v14 = vadd.f32 %v1414_v12, %v194_v9 }
  0x76   :  { %v359_v44 = vadd.f32 %v1080_v21, %v357_v26 }
  0x77   :  { %v198_v16 = vadd.f32 %v1415_v11, %v196_v14 }
  0x78   :  { %v361_v57 = vadd.f32 %v1083_v22, %v359_v44 }
  0x79   :  { %v200_v63 = vadd.f32 %v1416_v41, %v198_v16 }
  0x7a   :  { %v363_v13 = vadd.f32 %v1086_v23, %v361_v57 }
  0x7b   :  { %v202_v32 = vadd.f32 %v1417_v24, %v200_v63 }
  0x7c   :  { %v365_v18 = vadd.f32 %v1090_v45, %v363_v13 }
  0x7d   :  { %v204_v10 = vadd.f32 %v1418_v7, %v202_v32 }
  0x7e   :  { %v367_v19 = vadd.f32 %v1093_v4, %v365_v18 }
  0x7f   :  { %v206_v55 = vadd.f32 %v1419_v1, %v204_v10 }
  0x80   :  { %v369_v25 = vadd.f32 %v1096_v27, %v367_v19 }
  0x81   :  { %v207_v2 = vrot.slane %v206_v55, 4 }
  0x82   :  { %v371_v21 = vadd.f32 %v1099_v28, %v369_v25 }
  0x84   :  { %v373_v60 = vadd.f32 %v1102_v29, %v371_v21 }
  0x86   :  { %v375_v22 = vadd.f32 %v1105_v33, %v373_v60 }
  0x88   :  { %v377_v6 = vadd.f32 %v1109_v40, %v375_v22  ;;  %v208_v40 = vadd.f32 %v207_v2, %v206_v55 }
  0x8a   :  { %v379_v23 = vadd.f32 %v1112_v42, %v377_v6  ;;  %v209_v15 = vrot.slane %v208_v40, 2 }
  0x8c   :  { %v381_v43 = vadd.f32 %v1115_v46, %v379_v23 }
  0x8e   :  { %v383_v45 = vadd.f32 %v1118_v47, %v381_v43 }
  0x90   :  { %v385_v51 = vadd.f32 %v1121_v39, %v383_v45 }
  0x92   :  { %v387_v4 = vadd.f32 %v1124_v48, %v385_v51  ;;  %v210_v48 = vadd.f32 %v209_v15, %v208_v40 }
  0x94   :  { %v389_v27 = vadd.f32 %v1128_v37, %v387_v4  ;;  %v211_v0 = vrot.slane %v210_v48, 1 }
  0x96   :  { %v391_v28 = vadd.f32 %v1131_v53, %v389_v27  ;;  %v212_v5 = vadd.f32 %v211_v0, %v210_v48 }
  0x98   :  { %v393_v29 = vadd.f32 %v1134_v54, %v391_v28 }
  0x9a   :  { %v395_v33 = vadd.f32 %v1137_v38, %v393_v29  ;;  %v78_v38 = vld [vmem:[%s1295_s1] sm:$0x3] }
  0x9c   :  { %v397_v42 = vadd.f32 %v1140_v59, %v395_v33 }
  0x9e   :  { %v399_v46 = vadd.f32 %v1143_v36, %v397_v42 }
  0xa0   :  { %v401_v47 = vadd.f32 %v1152_v52, %v399_v46 }
  0xa2   :  { %v403_v39 = vadd.f32 %v1155_v8, %v401_v47 }
  0xa4   :  { %v404_v58 = vrot.slane %v403_v39, 4 }
  0xa6   :  { %v405_v37 = vadd.f32 %v404_v58, %v403_v39 }
  0xa8   :  { %v406_v53 = vrot.slane %v405_v37, 2 }
  0xaa   :  { %v407_v61 = vadd.f32 %v406_v53, %v405_v37 }
  0xac   :  { %v408_v54 = vrot.slane %v407_v61, 1 }
  0xae   :  { %v409_v59 = vadd.f32 %v408_v54, %v407_v61 }
  0xb0   :  { %v411_v36 = vsel %vm410_vm2, %v212_v5, %v409_v59 }
  0xb1   :  { %v412_v17 = vadd.f32 %v411_v36, %v78_v38 }
  0xb3   :  { %414 = vst.msk [vmem:[%s1295_s1] sm:$0x3] %vm12_vm0, %v412_v17 }

// kernel: asp_oc_forward.48
= control target key start
LH: loop header
LB: loop body
LE: loop exit
PB: predicated region body
PF: predicated region fallthrough
CT: control target
= control target key end

     0   :  { %v1607_v0 = vmov 0.0|0.0   ;;  %vm249_vm0 = vcmask 261120   ;;  %vm1212_vm1 = vcmask 523264   ;;  %s2850_s1 = inlined_call_operand.vmem [shape: f32[288,64], index: 1, kind: input, shape index: {}]   ;;  %s2851_s0 = inlined_call_operand.vmem [shape: f32[512,288], index: 0, kind: input, shape index: {}]   ;;  %s2852_s2 = inlined_call_operand.vmem [shape: f32[1,64], index: 2, kind: input, shape index: {}]   ;;  %s2853_s3 = inlined_call_operand.vmem [shape: f32[512,64], index: 3, kind: output, shape index: {}]  }
   0x1   :  { %1518 = vmatprep.subr.bf16.mxu0 %v1607_v0  ;;  %1574 = vmatprep.subr.bf16.mxu1 %v1607_v0  ;;  %v206_v1 = vld [vmem:[%s2850_s1] sm:$0xff]  ;;  %v207_v2 = vld [vmem:[%s2850_s1 + $0x8] sm:$0xff]  ;;  %v208_v3 = vld [vmem:[%s2850_s1 + $0x10] sm:$0xff] }
   0x2   :  { %v1519_v4 = vpack.c.bf16 %v207_v2, %v206_v1  ;;  %v209_v5 = vld [vmem:[%s2850_s1 + $0x18] sm:$0xff]  ;;  %v210_v7 = vld [vmem:[%s2850_s1 + $0x20] sm:$0xff]  ;;  %v211_v8 = vld [vmem:[%s2850_s1 + $0x28] sm:$0xff] }
   0x3   :  { %v1522_v6 = vpack.c.bf16 %v209_v5, %v208_v3  ;;  %v1525_v9 = vpack.c.bf16 %v211_v8, %v210_v7  ;;  %v212_v10 = vld [vmem:[%s2850_s1 + $0x30] sm:$0xff]  ;;  %v213_v11 = vld [vmem:[%s2850_s1 + $0x38] sm:$0xff]  ;;  %v15_v12 = vld [vmem:[%s2851_s0 + $0x8] sm:$0xff] }
   0x4   :  { %1520 = vmatpush1.bf16.msra.mxu0 %v1519_v4  ;;  %1590 = vmatpush1.bf16.msra.mxu1 %v1519_v4  ;;  %v1528_v13 = vpack.c.bf16 %v213_v11, %v212_v10  ;;  %v159_v14 = vld [vmem:[%s2851_s0 + $0x488] sm:$0xff]  ;;  %v214_v15 = vld [vmem:[%s2850_s1 + $0x40] sm:$0xff]  ;;  %v216_v18 = vld [vmem:[%s2850_s1 + $0x50] sm:$0xff] }
   0x5   :  { %1521 = vmatprep.subr.bf16.mxu0 %v1607_v0  ;;  %1575 = vmatprep.subr.bf16.mxu1 %v1607_v0  ;;  %v215_v16 = vld [vmem:[%s2850_s1 + $0x48] sm:$0xff]  ;;  %v217_v19 = vld [vmem:[%s2850_s1 + $0x58] sm:$0xff]  ;;  %v218_v21 = vld [vmem:[%s2850_s1 + $0x60] sm:$0xff] }
   0x6   :  { %506 = vmatprep.mubr.f32.mxu0 %v15_v12  ;;  %746 = vmatprep.mubr.f32.mxu1 %v159_v14  ;;  %v1531_v17 = vpack.c.bf16 %v215_v16, %v214_v15  ;;  %v1534_v20 = vpack.c.bf16 %v217_v19, %v216_v18  ;;  %v219_v22 = vld [vmem:[%s2850_s1 + $0x68] sm:$0xff]  ;;  %v220_v24 = vld [vmem:[%s2850_s1 + $0x70] sm:$0xff]  ;;  %v221_v25 = vld [vmem:[%s2850_s1 + $0x78] sm:$0xff] }
   0x7   :  { %v1537_v23 = vpack.c.bf16 %v219_v22, %v218_v21  ;;  %v1540_v26 = vpack.c.bf16 %v221_v25, %v220_v24  ;;  %v222_v27 = vld [vmem:[%s2850_s1 + $0x80] sm:$0xff]  ;;  %v223_v28 = vld [vmem:[%s2850_s1 + $0x88] sm:$0xff]  ;;  %v224_v30 = vld [vmem:[%s2850_s1 + $0x90] sm:$0xff] }
   0x8   :  { %1523 = vmatpush1.bf16.msra.mxu0 %v1522_v6  ;;  %1591 = vmatpush1.bf16.msra.mxu1 %v1522_v6  ;;  %v1543_v29 = vpack.c.bf16 %v223_v28, %v222_v27  ;;  %v225_v31 = vld [vmem:[%s2850_s1 + $0x98] sm:$0xff]  ;;  %v226_v33 = vld [vmem:[%s2850_s1 + $0xa0] sm:$0xff]  ;;  %v227_v34 = vld [vmem:[%s2850_s1 + $0xa8] sm:$0xff] }
   0x9   :  { %1524 = vmatprep.subr.bf16.mxu0 %v1607_v0  ;;  %1576 = vmatprep.subr.bf16.mxu1 %v1607_v0  ;;  %v1546_v32 = vpack.c.bf16 %v225_v31, %v224_v30  ;;  %v1549_v35 = vpack.c.bf16 %v227_v34, %v226_v33  ;;  %v228_v36 = vld [vmem:[%s2850_s1 + $0xb0] sm:$0xff]  ;;  %v229_v37 = vld [vmem:[%s2850_s1 + $0xb8] sm:$0xff]  ;;  %v230_v39 = vld [vmem:[%s2850_s1 + $0xc0] sm:$0xff] }
   0xa   :  { %v1552_v38 = vpack.c.bf16 %v229_v37, %v228_v36  ;;  %v231_v40 = vld [vmem:[%s2850_s1 + $0xc8] sm:$0xff]  ;;  %v232_v42 = vld [vmem:[%s2850_s1 + $0xd0] sm:$0xff]  ;;  %v233_v43 = vld [vmem:[%s2850_s1 + $0xd8] sm:$0xff] }
   0xb   :  { %v1555_v41 = vpack.c.bf16 %v231_v40, %v230_v39  ;;  %v1558_v44 = vpack.c.bf16 %v233_v43, %v232_v42  ;;  %v234_v45 = vld [vmem:[%s2850_s1 + $0xe0] sm:$0xff]  ;;  %v235_v46 = vld [vmem:[%s2850_s1 + $0xe8] sm:$0xff]  ;;  %v236_v48 = vld [vmem:[%s2850_s1 + $0xf0] sm:$0xff] }
   0xc   :  { %1526 = vmatpush1.bf16.msra.mxu0 %v1525_v9  ;;  %1592 = vmatpush1.bf16.msra.mxu1 %v1525_v9  ;;  %v1561_v47 = vpack.c.bf16 %v235_v46, %v234_v45  ;;  %v237_v49 = vld [vmem:[%s2850_s1 + $0xf8] sm:$0xff]  ;;  %v238_v50 = vld [vmem:[%s2850_s1 + $0x100] sm:$0xff]  ;;  %v239_v51 = vld [vmem:[%s2850_s1 + $0x108] sm:$0xff] }
   0xd   :  { %1527 = vmatprep.subr.bf16.mxu0 %v1607_v0  ;;  %1577 = vmatprep.subr.bf16.mxu1 %v1607_v0  ;;  %v1564_v52 = vpack.c.bf16 %v237_v49, %v236_v48  ;;  %v1566_v53 = vpack.c.bf16 %v239_v51, %v238_v50  ;;  %v240_v54 = vld [vmem:[%s2850_s1 + $0x110] sm:$0xff]  ;;  %v241_v55 = vld [vmem:[%s2850_s1 + $0x118] sm:$0xff]  ;;  %v14_v56 = vld [vmem:[%s2851_s0] sm:$0xff] }
   0xe   :  { %v158_v57 = vld [vmem:[%s2851_s0 + $0x480] sm:$0xff]  ;;  %v1570_v59 = vpack.c.bf16 %v241_v55, %v240_v54  ;;  %v17_v61 = vld [vmem:[%s2851_s0 + $0x18] sm:$0xff]  ;;  %v20_v1 = vld [vmem:[%s2851_s0 + $0x30] sm:$0xff] }
   0xf   :  { %v18_v58 = vld [vmem:[%s2851_s0 + $0x20] sm:$0xff]  ;;  %v161_v62 = vld [vmem:[%s2851_s0 + $0x498] sm:$0xff]  ;;  %v164_v2 = vld [vmem:[%s2851_s0 + $0x4b0] sm:$0xff] }
  0x10   :  { %1529 = vmatpush1.bf16.msra.mxu0 %v1528_v13  ;;  %1593 = vmatpush1.bf16.msra.mxu1 %v1528_v13  ;;  %v162_v60 = vld [vmem:[%s2851_s0 + $0x4a0] sm:$0xff]  ;;  %v21_v63 = vld [vmem:[%s2851_s0 + $0x38] sm:$0xff]  ;;  %v24_v3 = vld [vmem:[%s2851_s0 + $0x50] sm:$0xff] }
  0x11   :  { %1530 = vmatprep.subr.bf16.mxu0 %v1607_v0  ;;  %1578 = vmatprep.subr.bf16.mxu1 %v1607_v0  ;;  %v168_v4 = vld [vmem:[%s2851_s0 + $0x4d0] sm:$0xff]  ;;  %v23_v5 = vld [vmem:[%s2851_s0 + $0x48] sm:$0xff]  ;;  %v26_v9 = vld [vmem:[%s2851_s0 + $0x60] sm:$0xff] }
  0x12   :  { %v167_v6 = vld [vmem:[%s2851_s0 + $0x4c8] sm:$0xff]  ;;  %v170_v10 = vld [vmem:[%s2851_s0 + $0x4e0] sm:$0xff]  ;;  %v29_v13 = vld [vmem:[%s2851_s0 + $0x78] sm:$0xff] }
  0x13   :  { %v27_v7 = vld [vmem:[%s2851_s0 + $0x68] sm:$0xff]  ;;  %v30_v11 = vld [vmem:[%s2851_s0 + $0x80] sm:$0xff]  ;;  %v173_v14 = vld [vmem:[%s2851_s0 + $0x4f8] sm:$0xff] }
  0x14   :  { %1532 = vmatpush1.bf16.msra.mxu0 %v1531_v17  ;;  %1594 = vmatpush1.bf16.msra.mxu1 %v1531_v17  ;;  %v171_v8 = vld [vmem:[%s2851_s0 + $0x4e8] sm:$0xff]  ;;  %v174_v12 = vld [vmem:[%s2851_s0 + $0x500] sm:$0xff]  ;;  %v33_v15 = vld [vmem:[%s2851_s0 + $0x98] sm:$0xff] }
  0x15   :  { %1533 = vmatprep.subr.bf16.mxu0 %v1607_v0  ;;  %1579 = vmatprep.subr.bf16.mxu1 %v1607_v0  ;;  %v177_v16 = vld [vmem:[%s2851_s0 + $0x518] sm:$0xff]  ;;  %v32_v17 = vld [vmem:[%s2851_s0 + $0x90] sm:$0xff]  ;;  %v35_v21 = vld [vmem:[%s2851_s0 + $0xa8] sm:$0xff] }
  0x16   :  { %v176_v18 = vld [vmem:[%s2851_s0 + $0x510] sm:$0xff]  ;;  %v179_v22 = vld [vmem:[%s2851_s0 + $0x528] sm:$0xff]  ;;  %v38_v25 = vld [vmem:[%s2851_s0 + $0xc0] sm:$0xff] }
  0x17   :  { %v36_v19 = vld [vmem:[%s2851_s0 + $0xb0] sm:$0xff]  ;;  %v183_v24 = vld [vmem:[%s2851_s0 + $0x548] sm:$0xff]  ;;  %v42_v27 = vld [vmem:[%s2851_s0 + $0xe0] sm:$0xff] }
  0x18   :  { %1535 = vmatpush1.bf16.msra.mxu0 %v1534_v20  ;;  %1595 = vmatpush1.bf16.msra.mxu1 %v1534_v20  ;;  %v180_v20 = vld [vmem:[%s2851_s0 + $0x530] sm:$0xff]  ;;  %v186_v28 = vld [vmem:[%s2851_s0 + $0x560] sm:$0xff]  ;;  %v185_v30 = vld [vmem:[%s2851_s0 + $0x558] sm:$0xff] }
  0x19   :  { %1536 = vmatprep.subr.bf16.mxu0 %v1607_v0  ;;  %1580 = vmatprep.subr.bf16.mxu1 %v1607_v0  ;;  %v45_v31 = vld [vmem:[%s2851_s0 + $0xf8] sm:$0xff]  ;;  %v44_v33 = vld [vmem:[%s2851_s0 + $0xf0] sm:$0xff]  ;;  %v47_v37 = vld [vmem:[%s2851_s0 + $0x108] sm:$0xff] }
  0x1a   :  { %v188_v34 = vld [vmem:[%s2851_s0 + $0x570] sm:$0xff]  ;;  %v51_v39 = vld [vmem:[%s2851_s0 + $0x128] sm:$0xff]  ;;  %v194_v42 = vld [vmem:[%s2851_s0 + $0x5a0] sm:$0xff] }
  0x1b   :  { %v192_v36 = vld [vmem:[%s2851_s0 + $0x590] sm:$0xff]  ;;  %v195_v40 = vld [vmem:[%s2851_s0 + $0x5a8] sm:$0xff]  ;;  %v54_v43 = vld [vmem:[%s2851_s0 + $0x140] sm:$0xff] }
  0x1c   :  { %1538 = vmatpush1.bf16.msra.mxu0 %v1537_v23  ;;  %1596 = vmatpush1.bf16.msra.mxu1 %v1537_v23  ;;  %v39_v23 = vld [vmem:[%s2851_s0 + $0xc8] sm:$0xff]  ;;  %v53_v45 = vld [vmem:[%s2851_s0 + $0x138] sm:$0xff]  ;;  %v56_v49 = vld [vmem:[%s2851_s0 + $0x150] sm:$0xff] }
  0x1d   :  { %1539 = vmatprep.subr.bf16.mxu0 %v1607_v0  ;;  %1581 = vmatprep.subr.bf16.mxu1 %v1607_v0  ;;  %v197_v46 = vld [vmem:[%s2851_s0 + $0x5b8] sm:$0xff]  ;;  %v200_v50 = vld [vmem:[%s2851_s0 + $0x5d0] sm:$0xff]  ;;  %v203_v54 = vld [vmem:[%s2851_s0 + $0x5e8] sm:$0xff] }
  0x1e   :  { %v201_v48 = vld [vmem:[%s2851_s0 + $0x5d8] sm:$0xff]  ;;  %v60_v51 = vld [vmem:[%s2851_s0 + $0x170] sm:$0xff]  ;;  %v63_v55 = vld [vmem:[%s2851_s0 + $0x188] sm:$0xff] }
  0x20   :  { %1541 = vmatpush1.bf16.msra.mxu0 %v1540_v26  ;;  %1597 = vmatpush1.bf16.msra.mxu1 %v1540_v26  ;;  %v182_v26 = vld [vmem:[%s2851_s0 + $0x540] sm:$0xff] }
  0x21   :  { %1542 = vmatprep.subr.bf16.mxu0 %v1607_v0  ;;  %1582 = vmatprep.subr.bf16.mxu1 %v1607_v0 }
  0x24   :  { %1544 = vmatpush1.bf16.msra.mxu0 %v1543_v29  ;;  %1598 = vmatpush1.bf16.msra.mxu1 %v1543_v29  ;;  %v41_v29 = vld [vmem:[%s2851_s0 + $0xd8] sm:$0xff] }
  0x25   :  { %1545 = vmatprep.subr.bf16.mxu0 %v1607_v0  ;;  %1583 = vmatprep.subr.bf16.mxu1 %v1607_v0 }
  0x28   :  { %1547 = vmatpush1.bf16.msra.mxu0 %v1546_v32  ;;  %1599 = vmatpush1.bf16.msra.mxu1 %v1546_v32  ;;  %v189_v32 = vld [vmem:[%s2851_s0 + $0x578] sm:$0xff] }
  0x29   :  { %1548 = vmatprep.subr.bf16.mxu0 %v1607_v0  ;;  %1584 = vmatprep.subr.bf16.mxu1 %v1607_v0 }
  0x2c   :  { %1550 = vmatpush1.bf16.msra.mxu0 %v1549_v35  ;;  %1600 = vmatpush1.bf16.msra.mxu1 %v1549_v35  ;;  %v48_v35 = vld [vmem:[%s2851_s0 + $0x110] sm:$0xff] }
  0x2d   :  { %1551 = vmatprep.subr.bf16.mxu0 %v1607_v0  ;;  %1585 = vmatprep.subr.bf16.mxu1 %v1607_v0 }
  0x30   :  { %1553 = vmatpush1.bf16.msra.mxu0 %v1552_v38  ;;  %1601 = vmatpush1.bf16.msra.mxu1 %v1552_v38  ;;  %v191_v38 = vld [vmem:[%s2851_s0 + $0x588] sm:$0xff] }
  0x31   :  { %1554 = vmatprep.subr.bf16.mxu0 %v1607_v0  ;;  %1586 = vmatprep.subr.bf16.mxu1 %v1607_v0 }
  0x34   :  { %1556 = vmatpush1.bf16.msra.mxu0 %v1555_v41  ;;  %1602 = vmatpush1.bf16.msra.mxu1 %v1555_v41  ;;  %v50_v41 = vld [vmem:[%s2851_s0 + $0x120] sm:$0xff] }
  0x35   :  { %1557 = vmatprep.subr.bf16.mxu0 %v1607_v0  ;;  %1587 = vmatprep.subr.bf16.mxu1 %v1607_v0 }
  0x38   :  { %1559 = vmatpush1.bf16.msra.mxu0 %v1558_v44  ;;  %1603 = vmatpush1.bf16.msra.mxu1 %v1558_v44  ;;  %v198_v44 = vld [vmem:[%s2851_s0 + $0x5c0] sm:$0xff] }
  0x39   :  { %1560 = vmatprep.subr.bf16.mxu0 %v1607_v0  ;;  %1588 = vmatprep.subr.bf16.mxu1 %v1607_v0 }
  0x3c   :  { %1562 = vmatpush1.bf16.msra.mxu0 %v1561_v47  ;;  %1604 = vmatpush1.bf16.msra.mxu1 %v1561_v47  ;;  %v57_v47 = vld [vmem:[%s2851_s0 + $0x158] sm:$0xff] }
  0x3d   :  { %1563 = vmatprep.subr.bf16.mxu0 %v1607_v0  ;;  %1589 = vmatprep.subr.bf16.mxu1 %v1607_v0  ;;  %v165_v0 = vld [vmem:[%s2851_s0 + $0x4b8] sm:$0xff] }
  0x40   :  { %1565 = vmatpush1.bf16.msra.mxu0 %v1564_v52  ;;  %1605 = vmatpush1.bf16.msra.mxu1 %v1564_v52  ;;  %v204_v52 = vld [vmem:[%s2851_s0 + $0x5f0] sm:$0xff] }
  0x41   :  { %1567 = vmatprep.subr.bf16.mxu1 %v1566_v53 }
  0x43   :  { %507 = vmatmul.mubr.f32.vlgmr.msra.gmra.mrb[0].mxu0 %v14_v56  ;;  %747 = vmatmul.mubr.f32.vlgmr.msra.gmra.mrb[0].mxu1 %v158_v57  ;;  %v16_v56 = vld [vmem:[%s2851_s0 + $0x10] sm:$0xff]  ;;  %v62_v57 = vld [vmem:[%s2851_s0 + $0x180] sm:$0xff] }
  0x44   :  { %1569 = vmatpush3.bf16.msra.mxu1 %v1566_v53  ;;  %511 = vmatprep.mubr.f32.mxu0 %v18_v58  ;;  %v59_v53 = vld [vmem:[%s2851_s0 + $0x168] sm:$0xff] }
  0x45   :  { %751 = vmatprep.mubr.f32.mxu1 %v162_v60  ;;  %1571 = vmatprep.subr.bf16.mxu1 %v1570_v59  ;;  %v19_v58 = vld [vmem:[%s2851_s0 + $0x28] sm:$0xff]  ;;  %v22_v60 = vld [vmem:[%s2851_s0 + $0x40] sm:$0xff] }
  0x47   :  { %512 = vmatmul.mubr.f32.gmra.mrb[2].mxu0 %v17_v61  ;;  %752 = vmatmul.mubr.f32.gmra.mrb[2].mxu1 %v161_v62  ;;  %v65_v61 = vld [vmem:[%s2851_s0 + $0x198] sm:$0xff] }
  0x48   :  { %516 = vmatprep.mubr.f32.mxu0 %v21_v63  ;;  %756 = vmatprep.mubr.f32.mxu1 %v165_v0  ;;  %v25_v62 = vld [vmem:[%s2851_s0 + $0x58] sm:$0xff]  ;;  %v28_v0 = vld [vmem:[%s2851_s0 + $0x70] sm:$0xff] }
  0x49   :  { %1573 = vmatpush3.bf16.msra.mxu1 %v1570_v59  ;;  %v66_v59 = vld [vmem:[%s2851_s0 + $0x1a0] sm:$0xff]  ;;  %v69_v63 = vld [vmem:[%s2851_s0 + $0x1b8] sm:$0xff] }
  0x4b   :  { %517 = vmatmul.mubr.f32.gmra.mrb[4].mxu0 %v20_v1  ;;  %757 = vmatmul.mubr.f32.gmra.mrb[4].mxu1 %v164_v2  ;;  %v68_v1 = vld [vmem:[%s2851_s0 + $0x1b0] sm:$0xff]  ;;  %v31_v2 = vld [vmem:[%s2851_s0 + $0x88] sm:$0xff] }
  0x4c   :  { %521 = vmatprep.mubr.f32.mxu0 %v24_v3  ;;  %761 = vmatprep.mubr.f32.mxu1 %v168_v4  ;;  %v72_v3 = vld [vmem:[%s2851_s0 + $0x1d0] sm:$0xff]  ;;  %v34_v4 = vld [vmem:[%s2851_s0 + $0xa0] sm:$0xff] }
  0x4f   :  { %522 = vmatmul.mubr.f32.gmra.mrb[6].mxu0 %v23_v5  ;;  %762 = vmatmul.mubr.f32.gmra.mrb[6].mxu1 %v167_v6  ;;  %v71_v5 = vld [vmem:[%s2851_s0 + $0x1c8] sm:$0xff]  ;;  %v37_v6 = vld [vmem:[%s2851_s0 + $0xb8] sm:$0xff] }
  0x50   :  { %526 = vmatprep.mubr.f32.mxu0 %v27_v7  ;;  %766 = vmatprep.mubr.f32.mxu1 %v171_v8  ;;  %v75_v7 = vld [vmem:[%s2851_s0 + $0x1e8] sm:$0xff]  ;;  %v40_v8 = vld [vmem:[%s2851_s0 + $0xd0] sm:$0xff] }
  0x53   :  { %527 = vmatmul.mubr.f32.gmra.mrb[8].mxu0 %v26_v9  ;;  %767 = vmatmul.mubr.f32.gmra.mrb[8].mxu1 %v170_v10  ;;  %v74_v9 = vld [vmem:[%s2851_s0 + $0x1e0] sm:$0xff]  ;;  %v43_v10 = vld [vmem:[%s2851_s0 + $0xe8] sm:$0xff] }
  0x54   :  { %531 = vmatprep.mubr.f32.mxu0 %v30_v11  ;;  %771 = vmatprep.mubr.f32.mxu1 %v174_v12  ;;  %v78_v11 = vld [vmem:[%s2851_s0 + $0x200] sm:$0xff] }
  0x55   :  { %v46_v12 = vld [vmem:[%s2851_s0 + $0x100] sm:$0xff] }
  0x57   :  { %532 = vmatmul.mubr.f32.gmra.mrb[10].mxu0 %v29_v13  ;;  %772 = vmatmul.mubr.f32.gmra.mrb[10].mxu1 %v173_v14  ;;  %v77_v13 = vld [vmem:[%s2851_s0 + $0x1f8] sm:$0xff] }
  0x58   :  { %536 = vmatprep.mubr.f32.mxu0 %v33_v15  ;;  %776 = vmatprep.mubr.f32.mxu1 %v177_v16  ;;  %v49_v14 = vld [vmem:[%s2851_s0 + $0x118] sm:$0xff]  ;;  %v52_v16 = vld [vmem:[%s2851_s0 + $0x130] sm:$0xff] }
  0x59   :  { %v81_v15 = vld [vmem:[%s2851_s0 + $0x218] sm:$0xff] }
  0x5b   :  { %537 = vmatmul.mubr.f32.gmra.mrb[12].mxu0 %v32_v17  ;;  %777 = vmatmul.mubr.f32.gmra.mrb[12].mxu1 %v176_v18  ;;  %v80_v17 = vld [vmem:[%s2851_s0 + $0x210] sm:$0xff]  ;;  %v55_v18 = vld [vmem:[%s2851_s0 + $0x148] sm:$0xff] }
  0x5c   :  { %541 = vmatprep.mubr.f32.mxu0 %v36_v19  ;;  %781 = vmatprep.mubr.f32.mxu1 %v180_v20  ;;  %v84_v19 = vld [vmem:[%s2851_s0 + $0x230] sm:$0xff]  ;;  %v58_v20 = vld [vmem:[%s2851_s0 + $0x160] sm:$0xff] }
  0x5f   :  { %542 = vmatmul.mubr.f32.gmra.mrb[14].mxu0 %v35_v21  ;;  %782 = vmatmul.mubr.f32.gmra.mrb[14].mxu1 %v179_v22  ;;  %v83_v21 = vld [vmem:[%s2851_s0 + $0x228] sm:$0xff]  ;;  %v61_v22 = vld [vmem:[%s2851_s0 + $0x178] sm:$0xff] }
  0x60   :  { %546 = vmatprep.mubr.f32.mxu0 %v39_v23  ;;  %786 = vmatprep.mubr.f32.mxu1 %v183_v24  ;;  %v87_v23 = vld [vmem:[%s2851_s0 + $0x248] sm:$0xff]  ;;  %v64_v24 = vld [vmem:[%s2851_s0 + $0x190] sm:$0xff] }
  0x63   :  { %547 = vmatmul.mubr.f32.gmra.mrb[16].mxu0 %v38_v25  ;;  %787 = vmatmul.mubr.f32.gmra.mrb[16].mxu1 %v182_v26  ;;  %v86_v25 = vld [vmem:[%s2851_s0 + $0x240] sm:$0xff]  ;;  %v67_v26 = vld [vmem:[%s2851_s0 + $0x1a8] sm:$0xff] }
  0x64   :  { %551 = vmatprep.mubr.f32.mxu0 %v42_v27  ;;  %791 = vmatprep.mubr.f32.mxu1 %v186_v28  ;;  %v90_v27 = vld [vmem:[%s2851_s0 + $0x260] sm:$0xff] }
  0x65   :  { %v70_v28 = vld [vmem:[%s2851_s0 + $0x1c0] sm:$0xff] }
  0x67   :  { %552 = vmatmul.mubr.f32.gmra.mrb[18].mxu0 %v41_v29  ;;  %792 = vmatmul.mubr.f32.gmra.mrb[18].mxu1 %v185_v30  ;;  %v89_v29 = vld [vmem:[%s2851_s0 + $0x258] sm:$0xff] }
  0x68   :  { %556 = vmatprep.mubr.f32.mxu0 %v45_v31  ;;  %796 = vmatprep.mubr.f32.mxu1 %v189_v32  ;;  %v73_v30 = vld [vmem:[%s2851_s0 + $0x1d8] sm:$0xff]  ;;  %v76_v32 = vld [vmem:[%s2851_s0 + $0x1f0] sm:$0xff] }
  0x69   :  { %v93_v31 = vld [vmem:[%s2851_s0 + $0x278] sm:$0xff] }
  0x6b   :  { %557 = vmatmul.mubr.f32.gmra.mrb[20].mxu0 %v44_v33  ;;  %797 = vmatmul.mubr.f32.gmra.mrb[20].mxu1 %v188_v34  ;;  %v92_v33 = vld [vmem:[%s2851_s0 + $0x270] sm:$0xff]  ;;  %v79_v34 = vld [vmem:[%s2851_s0 + $0x208] sm:$0xff] }
  0x6c   :  { %561 = vmatprep.mubr.f32.mxu0 %v48_v35  ;;  %801 = vmatprep.mubr.f32.mxu1 %v192_v36  ;;  %v96_v35 = vld [vmem:[%s2851_s0 + $0x290] sm:$0xff]  ;;  %v82_v36 = vld [vmem:[%s2851_s0 + $0x220] sm:$0xff] }
  0x6f   :  { %562 = vmatmul.mubr.f32.gmra.mrb[22].mxu0 %v47_v37  ;;  %802 = vmatmul.mubr.f32.gmra.mrb[22].mxu1 %v191_v38  ;;  %v95_v37 = vld [vmem:[%s2851_s0 + $0x288] sm:$0xff]  ;;  %v85_v38 = vld [vmem:[%s2851_s0 + $0x238] sm:$0xff] }
  0x70   :  { %566 = vmatprep.mubr.f32.mxu0 %v51_v39  ;;  %806 = vmatprep.mubr.f32.mxu1 %v195_v40  ;;  %v99_v39 = vld [vmem:[%s2851_s0 + $0x2a8] sm:$0xff]  ;;  %v88_v40 = vld [vmem:[%s2851_s0 + $0x250] sm:$0xff] }
  0x73   :  { %567 = vmatmul.mubr.f32.gmra.mrb[24].mxu0 %v50_v41  ;;  %807 = vmatmul.mubr.f32.gmra.mrb[24].mxu1 %v194_v42  ;;  %v98_v41 = vld [vmem:[%s2851_s0 + $0x2a0] sm:$0xff]  ;;  %v91_v42 = vld [vmem:[%s2851_s0 + $0x268] sm:$0xff] }
  0x74   :  { %571 = vmatprep.mubr.f32.mxu0 %v54_v43  ;;  %811 = vmatprep.mubr.f32.mxu1 %v198_v44  ;;  %v102_v43 = vld [vmem:[%s2851_s0 + $0x2c0] sm:$0xff] }
  0x75   :  { %v94_v44 = vld [vmem:[%s2851_s0 + $0x280] sm:$0xff] }
  0x77   :  { %572 = vmatmul.mubr.f32.gmra.mrb[26].mxu0 %v53_v45  ;;  %812 = vmatmul.mubr.f32.gmra.mrb[26].mxu1 %v197_v46  ;;  %v101_v45 = vld [vmem:[%s2851_s0 + $0x2b8] sm:$0xff] }
  0x78   :  { %576 = vmatprep.mubr.f32.mxu0 %v57_v47  ;;  %816 = vmatprep.mubr.f32.mxu1 %v201_v48  ;;  %v97_v46 = vld [vmem:[%s2851_s0 + $0x298] sm:$0xff]  ;;  %v100_v48 = vld [vmem:[%s2851_s0 + $0x2b0] sm:$0xff] }
  0x79   :  { %v105_v47 = vld [vmem:[%s2851_s0 + $0x2d8] sm:$0xff] }
  0x7b   :  { %577 = vmatmul.mubr.f32.gmra.mrb[28].mxu0 %v56_v49  ;;  %817 = vmatmul.mubr.f32.gmra.mrb[28].mxu1 %v200_v50  ;;  %v104_v49 = vld [vmem:[%s2851_s0 + $0x2d0] sm:$0xff]  ;;  %v103_v50 = vld [vmem:[%s2851_s0 + $0x2c8] sm:$0xff] }
  0x7c   :  { %581 = vmatprep.mubr.f32.mxu0 %v60_v51  ;;  %821 = vmatprep.mubr.f32.mxu1 %v204_v52  ;;  %v108_v51 = vld [vmem:[%s2851_s0 + $0x2f0] sm:$0xff]  ;;  %v106_v52 = vld [vmem:[%s2851_s0 + $0x2e0] sm:$0xff] }
  0x7f   :  { %582 = vmatmul.mubr.f32.gmra.mrb[30].mxu0 %v59_v53  ;;  %822 = vmatmul.mubr.f32.gmra.mrb[30].mxu1 %v203_v54  ;;  %v107_v53 = vld [vmem:[%s2851_s0 + $0x2e8] sm:$0xff]  ;;  %v109_v54 = vld [vmem:[%s2851_s0 + $0x2f8] sm:$0xff] }
  0x80   :  { %586 = vmatprep.mubr.f32.mxu0 %v63_v55  ;;  %1422 = vmatprep.mubr.msk.f32.mxu1 %vm249_vm0, %v16_v56  ;;  %v111_v55 = vld [vmem:[%s2851_s0 + $0x308] sm:$0xff]  ;;  %v112_v56 = vld [vmem:[%s2851_s0 + $0x310] sm:$0xff] }
  0x83   :  { %587 = vmatmul.mubr.f32.gmra.mrb[32].mxu0 %v62_v57  ;;  %1423 = vmatmul.mubr.msk.f32.vlgmr.msra.gmra.mrb[32].mxu1 %vm249_vm0, %v19_v58  ;;  %v110_v57 = vld [vmem:[%s2851_s0 + $0x300] sm:$0xff]  ;;  %v115_v58 = vld [vmem:[%s2851_s0 + $0x328] sm:$0xff] }
  0x84   :  { %591 = vmatprep.mubr.f32.mxu0 %v66_v59  ;;  %1425 = vmatprep.mubr.msk.f32.mxu1 %vm249_vm0, %v22_v60  ;;  %v114_v59 = vld [vmem:[%s2851_s0 + $0x320] sm:$0xff] }
  0x85   :  { %v118_v60 = vld [vmem:[%s2851_s0 + $0x340] sm:$0xff] }
  0x87   :  { %592 = vmatmul.mubr.f32.gmra.mrb[34].mxu0 %v65_v61  ;;  %1426 = vmatmul.mubr.msk.f32.gmra.mrb[34].mxu1 %vm249_vm0, %v25_v62  ;;  %v113_v61 = vld [vmem:[%s2851_s0 + $0x318] sm:$0xff] }
  0x88   :  { %596 = vmatprep.mubr.f32.mxu0 %v69_v63  ;;  %1428 = vmatprep.mubr.msk.f32.mxu1 %vm249_vm0, %v28_v0  ;;  %v121_v62 = vld [vmem:[%s2851_s0 + $0x358] sm:$0xff]  ;;  %v124_v0 = vld [vmem:[%s2851_s0 + $0x370] sm:$0xff] }
  0x89   :  { %v117_v63 = vld [vmem:[%s2851_s0 + $0x338] sm:$0xff] }
  0x8b   :  { %597 = vmatmul.mubr.f32.gmra.mrb[36].mxu0 %v68_v1  ;;  %1429 = vmatmul.mubr.msk.f32.gmra.mrb[36].mxu1 %vm249_vm0, %v31_v2  ;;  %v116_v1 = vld [vmem:[%s2851_s0 + $0x330] sm:$0xff]  ;;  %v127_v2 = vld [vmem:[%s2851_s0 + $0x388] sm:$0xff] }
  0x8c   :  { %601 = vmatprep.mubr.f32.mxu0 %v72_v3  ;;  %1431 = vmatprep.mubr.msk.f32.mxu1 %vm249_vm0, %v34_v4  ;;  %v120_v3 = vld [vmem:[%s2851_s0 + $0x350] sm:$0xff]  ;;  %v130_v4 = vld [vmem:[%s2851_s0 + $0x3a0] sm:$0xff] }
  0x8f   :  { %602 = vmatmul.mubr.f32.gmra.mrb[38].mxu0 %v71_v5  ;;  %1432 = vmatmul.mubr.msk.f32.gmra.mrb[38].mxu1 %vm249_vm0, %v37_v6  ;;  %v119_v5 = vld [vmem:[%s2851_s0 + $0x348] sm:$0xff]  ;;  %v133_v6 = vld [vmem:[%s2851_s0 + $0x3b8] sm:$0xff] }
  0x90   :  { %606 = vmatprep.mubr.f32.mxu0 %v75_v7  ;;  %1434 = vmatprep.mubr.msk.f32.mxu1 %vm249_vm0, %v40_v8  ;;  %v123_v7 = vld [vmem:[%s2851_s0 + $0x368] sm:$0xff]  ;;  %v136_v8 = vld [vmem:[%s2851_s0 + $0x3d0] sm:$0xff] }
  0x93   :  { %607 = vmatmul.mubr.f32.gmra.mrb[40].mxu0 %v74_v9  ;;  %1435 = vmatmul.mubr.msk.f32.gmra.mrb[40].mxu1 %vm249_vm0, %v43_v10  ;;  %v122_v9 = vld [vmem:[%s2851_s0 + $0x360] sm:$0xff]  ;;  %v139_v10 = vld [vmem:[%s2851_s0 + $0x3e8] sm:$0xff] }
  0x94   :  { %611 = vmatprep.mubr.f32.mxu0 %v78_v11  ;;  %1437 = vmatprep.mubr.msk.f32.mxu1 %vm249_vm0, %v46_v12  ;;  %v126_v11 = vld [vmem:[%s2851_s0 + $0x380] sm:$0xff] }
  0x95   :  { %v142_v12 = vld [vmem:[%s2851_s0 + $0x400] sm:$0xff] }
  0x97   :  { %612 = vmatmul.mubr.f32.gmra.mrb[42].mxu0 %v77_v13  ;;  %1438 = vmatmul.mubr.msk.f32.gmra.mrb[42].mxu1 %vm249_vm0, %v49_v14  ;;  %v125_v13 = vld [vmem:[%s2851_s0 + $0x378] sm:$0xff] }
  0x98   :  { %616 = vmatprep.mubr.f32.mxu0 %v81_v15  ;;  %1440 = vmatprep.mubr.msk.f32.mxu1 %vm249_vm0, %v52_v16  ;;  %v145_v14 = vld [vmem:[%s2851_s0 + $0x418] sm:$0xff]  ;;  %v148_v16 = vld [vmem:[%s2851_s0 + $0x430] sm:$0xff] }
  0x99   :  { %v129_v15 = vld [vmem:[%s2851_s0 + $0x398] sm:$0xff] }
  0x9b   :  { %617 = vmatmul.mubr.f32.gmra.mrb[44].mxu0 %v80_v17  ;;  %1441 = vmatmul.mubr.msk.f32.gmra.mrb[44].mxu1 %vm249_vm0, %v55_v18  ;;  %v128_v17 = vld [vmem:[%s2851_s0 + $0x390] sm:$0xff]  ;;  %v151_v18 = vld [vmem:[%s2851_s0 + $0x448] sm:$0xff] }
  0x9c   :  { %621 = vmatprep.mubr.f32.mxu0 %v84_v19  ;;  %1443 = vmatprep.mubr.msk.f32.mxu1 %vm249_vm0, %v58_v20  ;;  %v132_v19 = vld [vmem:[%s2851_s0 + $0x3b0] sm:$0xff]  ;;  %v154_v20 = vld [vmem:[%s2851_s0 + $0x460] sm:$0xff] }
  0x9f   :  { %622 = vmatmul.mubr.f32.gmra.mrb[46].mxu0 %v83_v21  ;;  %1444 = vmatmul.mubr.msk.f32.gmra.mrb[46].mxu1 %vm249_vm0, %v61_v22  ;;  %v131_v21 = vld [vmem:[%s2851_s0 + $0x3a8] sm:$0xff]  ;;  %v157_v22 = vld [vmem:[%s2851_s0 + $0x478] sm:$0xff] }
  0xa0   :  { %626 = vmatprep.mubr.f32.mxu0 %v87_v23  ;;  %1446 = vmatprep.mubr.msk.f32.mxu1 %vm249_vm0, %v64_v24  ;;  %v135_v23 = vld [vmem:[%s2851_s0 + $0x3c8] sm:$0xff]  ;;  %v160_v24 = vld [vmem:[%s2851_s0 + $0x490] sm:$0xff] }
  0xa3   :  { %627 = vmatmul.mubr.f32.gmra.mrb[48].mxu0 %v86_v25  ;;  %1447 = vmatmul.mubr.msk.f32.gmra.mrb[48].mxu1 %vm249_vm0, %v67_v26  ;;  %v134_v25 = vld [vmem:[%s2851_s0 + $0x3c0] sm:$0xff]  ;;  %v163_v26 = vld [vmem:[%s2851_s0 + $0x4a8] sm:$0xff] }
  0xa4   :  { %631 = vmatprep.mubr.f32.mxu0 %v90_v27  ;;  %1449 = vmatprep.mubr.msk.f32.mxu1 %vm249_vm0, %v70_v28  ;;  %v138_v27 = vld [vmem:[%s2851_s0 + $0x3e0] sm:$0xff] }
  0xa5   :  { %v166_v28 = vld [vmem:[%s2851_s0 + $0x4c0] sm:$0xff] }
  0xa7   :  { %632 = vmatmul.mubr.f32.gmra.mrb[50].mxu0 %v89_v29  ;;  %1450 = vmatmul.mubr.msk.f32.gmra.mrb[50].mxu1 %vm249_vm0, %v73_v30  ;;  %v137_v29 = vld [vmem:[%s2851_s0 + $0x3d8] sm:$0xff] }
  0xa8   :  { %636 = vmatprep.mubr.f32.mxu0 %v93_v31  ;;  %1452 = vmatprep.mubr.msk.f32.mxu1 %vm249_vm0, %v76_v32  ;;  %v169_v30 = vld [vmem:[%s2851_s0 + $0x4d8] sm:$0xff]  ;;  %v172_v32 = vld [vmem:[%s2851_s0 + $0x4f0] sm:$0xff] }
  0xa9   :  { %v141_v31 = vld [vmem:[%s2851_s0 + $0x3f8] sm:$0xff] }
  0xab   :  { %637 = vmatmul.mubr.f32.gmra.mrb[52].mxu0 %v92_v33  ;;  %1453 = vmatmul.mubr.msk.f32.gmra.mrb[52].mxu1 %vm249_vm0, %v79_v34  ;;  %v140_v33 = vld [vmem:[%s2851_s0 + $0x3f0] sm:$0xff]  ;;  %v175_v34 = vld [vmem:[%s2851_s0 + $0x508] sm:$0xff] }
  0xac   :  { %641 = vmatprep.mubr.f32.mxu0 %v96_v35  ;;  %1455 = vmatprep.mubr.msk.f32.mxu1 %vm249_vm0, %v82_v36  ;;  %v144_v35 = vld [vmem:[%s2851_s0 + $0x410] sm:$0xff]  ;;  %v178_v36 = vld [vmem:[%s2851_s0 + $0x520] sm:$0xff] }
  0xaf   :  { %642 = vmatmul.mubr.f32.gmra.mrb[54].mxu0 %v95_v37  ;;  %1456 = vmatmul.mubr.msk.f32.gmra.mrb[54].mxu1 %vm249_vm0, %v85_v38  ;;  %v143_v37 = vld [vmem:[%s2851_s0 + $0x408] sm:$0xff]  ;;  %v181_v38 = vld [vmem:[%s2851_s0 + $0x538] sm:$0xff] }
  0xb0   :  { %646 = vmatprep.mubr.f32.mxu0 %v99_v39  ;;  %1458 = vmatprep.mubr.msk.f32.mxu1 %vm249_vm0, %v88_v40  ;;  %v147_v39 = vld [vmem:[%s2851_s0 + $0x428] sm:$0xff]  ;;  %v184_v40 = vld [vmem:[%s2851_s0 + $0x550] sm:$0xff] }
  0xb3   :  { %647 = vmatmul.mubr.f32.gmra.mrb[56].mxu0 %v98_v41  ;;  %1459 = vmatmul.mubr.msk.f32.gmra.mrb[56].mxu1 %vm249_vm0, %v91_v42  ;;  %v146_v41 = vld [vmem:[%s2851_s0 + $0x420] sm:$0xff]  ;;  %v187_v42 = vld [vmem:[%s2851_s0 + $0x568] sm:$0xff] }
  0xb4   :  { %651 = vmatprep.mubr.f32.mxu0 %v102_v43  ;;  %1461 = vmatprep.mubr.msk.f32.mxu1 %vm249_vm0, %v94_v44  ;;  %v150_v43 = vld [vmem:[%s2851_s0 + $0x440] sm:$0xff] }
  0xb5   :  { %v190_v44 = vld [vmem:[%s2851_s0 + $0x580] sm:$0xff] }
  0xb7   :  { %652 = vmatmul.mubr.f32.gmra.mrb[58].mxu0 %v101_v45  ;;  %1462 = vmatmul.mubr.msk.f32.gmra.mrb[58].mxu1 %vm249_vm0, %v97_v46  ;;  %v149_v45 = vld [vmem:[%s2851_s0 + $0x438] sm:$0xff] }
  0xb8   :  { %656 = vmatprep.mubr.f32.mxu0 %v105_v47  ;;  %1464 = vmatprep.mubr.msk.f32.mxu1 %vm249_vm0, %v100_v48  ;;  %v193_v46 = vld [vmem:[%s2851_s0 + $0x598] sm:$0xff]  ;;  %v196_v48 = vld [vmem:[%s2851_s0 + $0x5b0] sm:$0xff] }
  0xb9   :  { %v153_v47 = vld [vmem:[%s2851_s0 + $0x458] sm:$0xff] }
  0xbb   :  { %657 = vmatmul.mubr.f32.gmra.mrb[60].mxu0 %v104_v49  ;;  %1465 = vmatmul.mubr.msk.f32.gmra.mrb[60].mxu1 %vm249_vm0, %v103_v50  ;;  %v152_v49 = vld [vmem:[%s2851_s0 + $0x450] sm:$0xff]  ;;  %v199_v50 = vld [vmem:[%s2851_s0 + $0x5c8] sm:$0xff] }
  0xbc   :  { %661 = vmatprep.mubr.f32.mxu0 %v108_v51  ;;  %1467 = vmatprep.mubr.msk.f32.mxu1 %vm249_vm0, %v106_v52  ;;  %v156_v51 = vld [vmem:[%s2851_s0 + $0x470] sm:$0xff]  ;;  %v202_v52 = vld [vmem:[%s2851_s0 + $0x5e0] sm:$0xff] }
  0xbf   :  { %662 = vmatmul.mubr.f32.gmra.mrb[62].mxu0 %v107_v53  ;;  %1468 = vmatmul.mubr.msk.f32.gmra.mrb[62].mxu1 %vm249_vm0, %v109_v54  ;;  %v155_v53 = vld [vmem:[%s2851_s0 + $0x468] sm:$0xff]  ;;  %v205_v54 = vld [vmem:[%s2851_s0 + $0x5f8] sm:$0xff] }
  0xc0   :  { %666 = vmatprep.mubr.f32.mxu0 %v111_v55  ;;  %1470 = vmatprep.mubr.msk.f32.mxu1 %vm249_vm0, %v112_v56 }
  0xc3   :  { %667 = vmatmul.mubr.f32.gmra.mrb[64].mxu0 %v110_v57  ;;  %1471 = vmatmul.mubr.msk.f32.gmra.mrb[64].mxu1 %vm249_vm0, %v115_v58 }
  0xc4   :  { %671 = vmatprep.mubr.f32.mxu0 %v114_v59  ;;  %1473 = vmatprep.mubr.msk.f32.mxu1 %vm249_vm0, %v118_v60 }
  0xc7   :  { %672 = vmatmul.mubr.f32.gmra.mrb[66].mxu0 %v113_v61  ;;  %1474 = vmatmul.mubr.msk.f32.gmra.mrb[66].mxu1 %vm249_vm0, %v121_v62 }
  0xc8   :  { %676 = vmatprep.mubr.f32.mxu0 %v117_v63  ;;  %1476 = vmatprep.mubr.msk.f32.mxu1 %vm249_vm0, %v124_v0 }
  0xcb   :  { %677 = vmatmul.mubr.f32.gmra.mrb[68].mxu0 %v116_v1  ;;  %1477 = vmatmul.mubr.msk.f32.gmra.mrb[68].mxu1 %vm249_vm0, %v127_v2 }
  0xcc   :  { %681 = vmatprep.mubr.f32.mxu0 %v120_v3  ;;  %1479 = vmatprep.mubr.msk.f32.mxu1 %vm249_vm0, %v130_v4 }
  0xcf   :  { %682 = vmatmul.mubr.f32.gmra.mrb[70].mxu0 %v119_v5  ;;  %1480 = vmatmul.mubr.msk.f32.gmra.mrb[70].mxu1 %vm249_vm0, %v133_v6 }
  0xd0   :  { %686 = vmatprep.mubr.f32.mxu0 %v123_v7  ;;  %1482 = vmatprep.mubr.msk.f32.mxu1 %vm249_vm0, %v136_v8 }
  0xd3   :  { %687 = vmatmul.mubr.f32.gmra.mrb[72].mxu0 %v122_v9  ;;  %1483 = vmatmul.mubr.msk.f32.gmra.mrb[72].mxu1 %vm249_vm0, %v139_v10 }
  0xd4   :  { %691 = vmatprep.mubr.f32.mxu0 %v126_v11  ;;  %1485 = vmatprep.mubr.msk.f32.mxu1 %vm249_vm0, %v142_v12 }
  0xd7   :  { %692 = vmatmul.mubr.f32.gmra.mrb[74].mxu0 %v125_v13  ;;  %1486 = vmatmul.mubr.msk.f32.gmra.mrb[74].mxu1 %vm249_vm0, %v145_v14 }
  0xd8   :  { %696 = vmatprep.mubr.f32.mxu0 %v129_v15  ;;  %1488 = vmatprep.mubr.msk.f32.mxu1 %vm249_vm0, %v148_v16 }
  0xdb   :  { %697 = vmatmul.mubr.f32.gmra.mrb[76].mxu0 %v128_v17  ;;  %1489 = vmatmul.mubr.msk.f32.gmra.mrb[76].mxu1 %vm249_vm0, %v151_v18 }
  0xdc   :  { %701 = vmatprep.mubr.f32.mxu0 %v132_v19  ;;  %1491 = vmatprep.mubr.msk.f32.mxu1 %vm249_vm0, %v154_v20 }
  0xdf   :  { %702 = vmatmul.mubr.f32.gmra.mrb[78].mxu0 %v131_v21  ;;  %1492 = vmatmul.mubr.msk.f32.gmra.mrb[78].mxu1 %vm249_vm0, %v157_v22 }
  0xe0   :  { %706 = vmatprep.mubr.f32.mxu0 %v135_v23  ;;  %1494 = vmatprep.mubr.msk.f32.mxu1 %vm249_vm0, %v160_v24 }
  0xe3   :  { %707 = vmatmul.mubr.f32.gmra.mrb[80].mxu0 %v134_v25  ;;  %1495 = vmatmul.mubr.msk.f32.gmra.mrb[80].mxu1 %vm249_vm0, %v163_v26 }
  0xe4   :  { %711 = vmatprep.mubr.f32.mxu0 %v138_v27  ;;  %1497 = vmatprep.mubr.msk.f32.mxu1 %vm249_vm0, %v166_v28 }
  0xe7   :  { %712 = vmatmul.mubr.f32.gmra.mrb[82].mxu0 %v137_v29  ;;  %1498 = vmatmul.mubr.msk.f32.gmra.mrb[82].mxu1 %vm249_vm0, %v169_v30 }
  0xe8   :  { %716 = vmatprep.mubr.f32.mxu0 %v141_v31  ;;  %1500 = vmatprep.mubr.msk.f32.mxu1 %vm249_vm0, %v172_v32 }
  0xeb   :  { %717 = vmatmul.mubr.f32.gmra.mrb[84].mxu0 %v140_v33  ;;  %1501 = vmatmul.mubr.msk.f32.gmra.mrb[84].mxu1 %vm249_vm0, %v175_v34 }
  0xec   :  { %721 = vmatprep.mubr.f32.mxu0 %v144_v35  ;;  %1503 = vmatprep.mubr.msk.f32.mxu1 %vm249_vm0, %v178_v36 }
  0xef   :  { %722 = vmatmul.mubr.f32.gmra.mrb[86].mxu0 %v143_v37  ;;  %1504 = vmatmul.mubr.msk.f32.gmra.mrb[86].mxu1 %vm249_vm0, %v181_v38 }
  0xf0   :  { %726 = vmatprep.mubr.f32.mxu0 %v147_v39  ;;  %1506 = vmatprep.mubr.msk.f32.mxu1 %vm249_vm0, %v184_v40 }
  0xf3   :  { %727 = vmatmul.mubr.f32.gmra.mrb[88].mxu0 %v146_v41  ;;  %1507 = vmatmul.mubr.msk.f32.gmra.mrb[88].mxu1 %vm249_vm0, %v187_v42 }
  0xf4   :  { %731 = vmatprep.mubr.f32.mxu0 %v150_v43  ;;  %1509 = vmatprep.mubr.msk.f32.mxu1 %vm249_vm0, %v190_v44 }
  0xf7   :  { %732 = vmatmul.mubr.f32.gmra.mrb[90].mxu0 %v149_v45  ;;  %1510 = vmatmul.mubr.msk.f32.gmra.mrb[90].mxu1 %vm249_vm0, %v193_v46 }
  0xf8   :  { %736 = vmatprep.mubr.f32.mxu0 %v153_v47  ;;  %1512 = vmatprep.mubr.msk.f32.mxu1 %vm249_vm0, %v196_v48 }
  0xfb   :  { %737 = vmatmul.mubr.f32.gmra.mrb[92].mxu0 %v152_v49  ;;  %1513 = vmatmul.mubr.msk.f32.gmra.mrb[92].mxu1 %vm249_vm0, %v199_v50 }
  0xfc   :  { %741 = vmatprep.mubr.f32.mxu0 %v156_v51  ;;  %1515 = vmatprep.mubr.msk.f32.mxu1 %vm249_vm0, %v202_v52 }
  0xff   :  { %742 = vmatmul.mubr.f32.gmra.mrb[94].mxu0 %v155_v53  ;;  %1516 = vmatmul.mubr.msk.f32.gmra.mrb[94].mxu1 %vm249_vm0, %v205_v54  ;;  %v2473_v53 = vld [vmem:[%s2852_s2] ss:$0 sm:$0xff] }
 0x116   :  { %v2408_v55 = vpop.f32.mrb[0].mxu0  ;;  %v2410_v56 = vpop.f32.mrb[0].mxu1 }
 0x117   :  { %v510_v57 = vpop.f32.mrb[1].mxu0  ;;  %v750_v58 = vpop.f32.mrb[1].mxu1 }
 0x11a   :  { %v513_v59 = vpop.f32.mrb[2].mxu0  ;;  %v2412_v60 = vpop.f32.mrb[2].mxu1 }
 0x11b   :  { %v515_v61 = vpop.f32.mrb[3].mxu0  ;;  %v755_v62 = vpop.f32.mrb[3].mxu1  ;;  %v514_v58 = vadd.f32 %v2473_v53, %v513_v59 }
 0x11c   :  { %v509_v61 = vadd.f32 %v2473_v53, %v2408_v55 }
 0x11e   :  { %v2414_v63 = vpop.f32.mrb[4].mxu0  ;;  %v2416_v0 = vpop.f32.mrb[4].mxu1 }
 0x11f   :  { %v520_v1 = vpop.f32.mrb[5].mxu0  ;;  %v760_v2 = vpop.f32.mrb[5].mxu1  ;;  %v519_v59 = vadd.f32 %v2473_v53, %v2414_v63 }
 0x122   :  { %v2418_v3 = vpop.f32.mrb[6].mxu0  ;;  %v2420_v4 = vpop.f32.mrb[6].mxu1 }
 0x123   :  { %v525_v5 = vpop.f32.mrb[7].mxu0  ;;  %v765_v6 = vpop.f32.mrb[7].mxu1 }
 0x126   :  { %v2422_v7 = vpop.f32.mrb[8].mxu0  ;;  %v2424_v8 = vpop.f32.mrb[8].mxu1 }
 0x127   :  { %v530_v9 = vpop.f32.mrb[9].mxu0  ;;  %v770_v10 = vpop.f32.mrb[9].mxu1  ;;  %v529_v63 = vadd.f32 %v2473_v53, %v2422_v7 }
 0x128   :  { %v524_v10 = vadd.f32 %v2473_v53, %v2418_v3 }
 0x12a   :  { %v2426_v11 = vpop.f32.mrb[10].mxu0  ;;  %v2428_v12 = vpop.f32.mrb[10].mxu1 }
 0x12b   :  { %v535_v13 = vpop.f32.mrb[11].mxu0  ;;  %v775_v14 = vpop.f32.mrb[11].mxu1 }
 0x12e   :  { %v2430_v15 = vpop.f32.mrb[12].mxu0  ;;  %v2432_v16 = vpop.f32.mrb[12].mxu1 }
 0x12f   :  { %v540_v17 = vpop.f32.mrb[13].mxu0  ;;  %v780_v18 = vpop.f32.mrb[13].mxu1  ;;  %v539_v7 = vadd.f32 %v2473_v53, %v2430_v15 }
 0x132   :  { %v2434_v19 = vpop.f32.mrb[14].mxu0  ;;  %v2436_v20 = vpop.f32.mrb[14].mxu1 }
 0x133   :  { %v545_v21 = vpop.f32.mrb[15].mxu0  ;;  %v785_v22 = vpop.f32.mrb[15].mxu1 }
 0x134   :  { %v534_v21 = vadd.f32 %v2473_v53, %v2426_v11 }
 0x136   :  { %v2438_v23 = vpop.f32.mrb[16].mxu0  ;;  %v2440_v24 = vpop.f32.mrb[16].mxu1 }
 0x137   :  { %v550_v25 = vpop.f32.mrb[17].mxu0  ;;  %v790_v26 = vpop.f32.mrb[17].mxu1  ;;  %v549_v15 = vadd.f32 %v2473_v53, %v2438_v23 }
 0x13a   :  { %v2442_v27 = vpop.f32.mrb[18].mxu0  ;;  %v2444_v28 = vpop.f32.mrb[18].mxu1 }
 0x13b   :  { %v555_v29 = vpop.f32.mrb[19].mxu0  ;;  %v795_v30 = vpop.f32.mrb[19].mxu1 }
 0x13e   :  { %v2446_v31 = vpop.f32.mrb[20].mxu0  ;;  %v2448_v32 = vpop.f32.mrb[20].mxu1 }
 0x13f   :  { %v560_v33 = vpop.f32.mrb[21].mxu0  ;;  %v800_v34 = vpop.f32.mrb[21].mxu1  ;;  %v559_v23 = vadd.f32 %v2473_v53, %v2446_v31 }
 0x140   :  { %v544_v33 = vadd.f32 %v2473_v53, %v2434_v19  ;;  %v554_v19 = vadd.f32 %v2473_v53, %v2442_v27 }
 0x142   :  { %v2450_v35 = vpop.f32.mrb[22].mxu0  ;;  %v2452_v36 = vpop.f32.mrb[22].mxu1 }
 0x143   :  { %v565_v37 = vpop.f32.mrb[23].mxu0  ;;  %v805_v38 = vpop.f32.mrb[23].mxu1  ;;  %v564_v27 = vadd.f32 %v2473_v53, %v2450_v35 }
 0x146   :  { %v2454_v39 = vpop.f32.mrb[24].mxu0  ;;  %v2456_v40 = vpop.f32.mrb[24].mxu1 }
 0x147   :  { %v570_v41 = vpop.f32.mrb[25].mxu0  ;;  %v810_v42 = vpop.f32.mrb[25].mxu1  ;;  %v569_v31 = vadd.f32 %v2473_v53, %v2454_v39 }
 0x14a   :  { %v2458_v43 = vpop.f32.mrb[26].mxu0  ;;  %v2460_v44 = vpop.f32.mrb[26].mxu1 }
 0x14b   :  { %v575_v45 = vpop.f32.mrb[27].mxu0  ;;  %v815_v46 = vpop.f32.mrb[27].mxu1  ;;  %v574_v35 = vadd.f32 %v2473_v53, %v2458_v43 }
 0x14e   :  { %v2462_v47 = vpop.f32.mrb[28].mxu0  ;;  %v2464_v48 = vpop.f32.mrb[28].mxu1 }
 0x14f   :  { %v580_v49 = vpop.f32.mrb[29].mxu0  ;;  %v820_v50 = vpop.f32.mrb[29].mxu1  ;;  %v579_v39 = vadd.f32 %v2473_v53, %v2462_v47 }
 0x152   :  { %v2466_v51 = vpop.f32.mrb[30].mxu0  ;;  %v2468_v52 = vpop.f32.mrb[30].mxu1 }
 0x153   :  { %v585_v54 = vpop.f32.mrb[31].mxu0  ;;  %v825_v57 = vpop.f32.mrb[31].mxu1  ;;  %v584_v43 = vadd.f32 %v2473_v53, %v2466_v51 }
 0x156   :  { %v2478_v62 = vpop.f32.mrb[32].mxu0  ;;  %v1424_v1 = vpop.f32.mrb[32].mxu1 }
 0x157   :  { %v899_v2 = vadd.f32 %v1424_v1, %v514_v58  ;;  %v590_v5 = vpop.f32.mrb[33].mxu0  ;;  %v893_v6 = vpop.f32.mrb[33].mxu1  ;;  %v589_v47 = vadd.f32 %v2473_v53, %v2478_v62 }
 0x158   :  { %v894_v9 = vadd.f32 %v893_v6, %v509_v61 }
 0x159   :  { %1214 = vst.msk [vmem:[%s2853_s3 + $0x8] sm:$0xff] %vm1212_vm1, %v899_v2 }
 0x15a   :  { %1213 = vst.msk [vmem:[%s2853_s3] sm:$0xff] %vm1212_vm1, %v894_v9  ;;  %v2492_v55 = vpop.f32.mrb[34].mxu0  ;;  %v1427_v13 = vpop.f32.mrb[34].mxu1 }
 0x15b   :  { %v909_v14 = vadd.f32 %v1427_v13, %v524_v10  ;;  %v595_v17 = vpop.f32.mrb[35].mxu0  ;;  %v903_v18 = vpop.f32.mrb[35].mxu1  ;;  %v594_v51 = vadd.f32 %v2473_v53, %v2492_v55 }
 0x15c   :  { %v904_v3 = vadd.f32 %v903_v18, %v519_v59 }
 0x15d   :  { %1216 = vst.msk [vmem:[%s2853_s3 + $0x18] sm:$0xff] %vm1212_vm1, %v909_v14 }
 0x15e   :  { %1215 = vst.msk [vmem:[%s2853_s3 + $0x10] sm:$0xff] %vm1212_vm1, %v904_v3  ;;  %v2506_v22 = vpop.f32.mrb[36].mxu0  ;;  %v1430_v25 = vpop.f32.mrb[36].mxu1 }
 0x15f   :  { %v919_v26 = vadd.f32 %v1430_v25, %v534_v21  ;;  %v600_v29 = vpop.f32.mrb[37].mxu0  ;;  %v913_v30 = vpop.f32.mrb[37].mxu1  ;;  %v599_v62 = vadd.f32 %v2473_v53, %v2506_v22 }
 0x160   :  { %v914_v11 = vadd.f32 %v913_v30, %v529_v63 }
 0x161   :  { %1218 = vst.msk [vmem:[%s2853_s3 + $0x28] sm:$0xff] %vm1212_vm1, %v919_v26 }
 0x162   :  { %1217 = vst.msk [vmem:[%s2853_s3 + $0x20] sm:$0xff] %vm1212_vm1, %v914_v11  ;;  %v603_v34 = vpop.f32.mrb[38].mxu0  ;;  %v1433_v37 = vpop.f32.mrb[38].mxu1 }
 0x163   :  { %v929_v38 = vadd.f32 %v1433_v37, %v544_v33  ;;  %v605_v41 = vpop.f32.mrb[39].mxu0  ;;  %v923_v42 = vpop.f32.mrb[39].mxu1  ;;  %v604_v55 = vadd.f32 %v2473_v53, %v603_v34 }
 0x164   :  { %v924_v45 = vadd.f32 %v923_v42, %v539_v7 }
 0x165   :  { %1220 = vst.msk [vmem:[%s2853_s3 + $0x38] sm:$0xff] %vm1212_vm1, %v929_v38 }
 0x166   :  { %1219 = vst.msk [vmem:[%s2853_s3 + $0x30] sm:$0xff] %vm1212_vm1, %v924_v45  ;;  %v608_v46 = vpop.f32.mrb[40].mxu0  ;;  %v1436_v49 = vpop.f32.mrb[40].mxu1 }
 0x167   :  { %v939_v50 = vadd.f32 %v1436_v49, %v554_v19  ;;  %v610_v54 = vpop.f32.mrb[41].mxu0  ;;  %v933_v57 = vpop.f32.mrb[41].mxu1  ;;  %v609_v22 = vadd.f32 %v2473_v53, %v608_v46 }
 0x168   :  { %v934_v58 = vadd.f32 %v933_v57, %v549_v15 }
 0x169   :  { %1222 = vst.msk [vmem:[%s2853_s3 + $0x48] sm:$0xff] %vm1212_vm1, %v939_v50 }
 0x16a   :  { %1221 = vst.msk [vmem:[%s2853_s3 + $0x40] sm:$0xff] %vm1212_vm1, %v934_v58  ;;  %v613_v61 = vpop.f32.mrb[42].mxu0  ;;  %v1439_v1 = vpop.f32.mrb[42].mxu1 }
 0x16b   :  { %v949_v2 = vadd.f32 %v1439_v1, %v564_v27  ;;  %v615_v5 = vpop.f32.mrb[43].mxu0  ;;  %v943_v6 = vpop.f32.mrb[43].mxu1  ;;  %v614_v34 = vadd.f32 %v2473_v53, %v613_v61 }
 0x16c   :  { %v944_v9 = vadd.f32 %v943_v6, %v559_v23 }
 0x16d   :  { %1224 = vst.msk [vmem:[%s2853_s3 + $0x58] sm:$0xff] %vm1212_vm1, %v949_v2 }
 0x16e   :  { %1223 = vst.msk [vmem:[%s2853_s3 + $0x50] sm:$0xff] %vm1212_vm1, %v944_v9  ;;  %v618_v10 = vpop.f32.mrb[44].mxu0  ;;  %v1442_v59 = vpop.f32.mrb[44].mxu1 }
 0x16f   :  { %v959_v13 = vadd.f32 %v1442_v59, %v574_v35  ;;  %v620_v14 = vpop.f32.mrb[45].mxu0  ;;  %v953_v17 = vpop.f32.mrb[45].mxu1  ;;  %v619_v46 = vadd.f32 %v2473_v53, %v618_v10 }
 0x170   :  { %v954_v18 = vadd.f32 %v953_v17, %v569_v31 }
 0x171   :  { %1226 = vst.msk [vmem:[%s2853_s3 + $0x68] sm:$0xff] %vm1212_vm1, %v959_v13 }
 0x172   :  { %1225 = vst.msk [vmem:[%s2853_s3 + $0x60] sm:$0xff] %vm1212_vm1, %v954_v18  ;;  %v623_v3 = vpop.f32.mrb[46].mxu0  ;;  %v1445_v21 = vpop.f32.mrb[46].mxu1 }
 0x173   :  { %v969_v63 = vadd.f32 %v1445_v21, %v584_v43  ;;  %v625_v25 = vpop.f32.mrb[47].mxu0  ;;  %v963_v26 = vpop.f32.mrb[47].mxu1  ;;  %v624_v61 = vadd.f32 %v2473_v53, %v623_v3 }
 0x174   :  { %v964_v29 = vadd.f32 %v963_v26, %v579_v39 }
 0x175   :  { %1228 = vst.msk [vmem:[%s2853_s3 + $0x78] sm:$0xff] %vm1212_vm1, %v969_v63 }
 0x176   :  { %1227 = vst.msk [vmem:[%s2853_s3 + $0x70] sm:$0xff] %vm1212_vm1, %v964_v29  ;;  %v628_v30 = vpop.f32.mrb[48].mxu0  ;;  %v1448_v11 = vpop.f32.mrb[48].mxu1 }
 0x177   :  { %v979_v33 = vadd.f32 %v1448_v11, %v594_v51  ;;  %v630_v7 = vpop.f32.mrb[49].mxu0  ;;  %v973_v37 = vpop.f32.mrb[49].mxu1  ;;  %v629_v10 = vadd.f32 %v2473_v53, %v628_v30 }
 0x178   :  { %v974_v38 = vadd.f32 %v973_v37, %v589_v47 }
 0x179   :  { %1230 = vst.msk [vmem:[%s2853_s3 + $0x88] sm:$0xff] %vm1212_vm1, %v979_v33 }
 0x17a   :  { %1229 = vst.msk [vmem:[%s2853_s3 + $0x80] sm:$0xff] %vm1212_vm1, %v974_v38  ;;  %v633_v41 = vpop.f32.mrb[50].mxu0  ;;  %v1451_v42 = vpop.f32.mrb[50].mxu1 }
 0x17b   :  { %v989_v45 = vadd.f32 %v1451_v42, %v604_v55  ;;  %v635_v19 = vpop.f32.mrb[51].mxu0  ;;  %v983_v15 = vpop.f32.mrb[51].mxu1  ;;  %v634_v31 = vadd.f32 %v2473_v53, %v633_v41 }
 0x17c   :  { %v984_v49 = vadd.f32 %v983_v15, %v599_v62 }
 0x17d   :  { %1232 = vst.msk [vmem:[%s2853_s3 + $0x98] sm:$0xff] %vm1212_vm1, %v989_v45 }
 0x17e   :  { %1231 = vst.msk [vmem:[%s2853_s3 + $0x90] sm:$0xff] %vm1212_vm1, %v984_v49  ;;  %v638_v50 = vpop.f32.mrb[52].mxu0  ;;  %v1454_v54 = vpop.f32.mrb[52].mxu1 }
 0x17f   :  { %v999_v57 = vadd.f32 %v1454_v54, %v614_v34  ;;  %v640_v58 = vpop.f32.mrb[53].mxu0  ;;  %v993_v27 = vpop.f32.mrb[53].mxu1  ;;  %v639_v3 = vadd.f32 %v2473_v53, %v638_v50 }
 0x180   :  { %v994_v23 = vadd.f32 %v993_v27, %v609_v22 }
 0x181   :  { %1234 = vst.msk [vmem:[%s2853_s3 + $0xa8] sm:$0xff] %vm1212_vm1, %v999_v57 }
 0x182   :  { %1233 = vst.msk [vmem:[%s2853_s3 + $0xa0] sm:$0xff] %vm1212_vm1, %v994_v23  ;;  %v643_v1 = vpop.f32.mrb[54].mxu0  ;;  %v1457_v2 = vpop.f32.mrb[54].mxu1 }
 0x183   :  { %v1009_v5 = vadd.f32 %v1457_v2, %v624_v61  ;;  %v645_v6 = vpop.f32.mrb[55].mxu0  ;;  %v1003_v9 = vpop.f32.mrb[55].mxu1  ;;  %v644_v39 = vadd.f32 %v2473_v53, %v643_v1 }
 0x184   :  { %v1004_v35 = vadd.f32 %v1003_v9, %v619_v46 }
 0x185   :  { %1236 = vst.msk [vmem:[%s2853_s3 + $0xb8] sm:$0xff] %vm1212_vm1, %v1009_v5 }
 0x186   :  { %1235 = vst.msk [vmem:[%s2853_s3 + $0xb0] sm:$0xff] %vm1212_vm1, %v1004_v35  ;;  %v648_v59 = vpop.f32.mrb[56].mxu0  ;;  %v1460_v13 = vpop.f32.mrb[56].mxu1 }
 0x187   :  { %v1019_v14 = vadd.f32 %v1460_v13, %v634_v31  ;;  %v650_v17 = vpop.f32.mrb[57].mxu0  ;;  %v1013_v18 = vpop.f32.mrb[57].mxu1  ;;  %v649_v30 = vadd.f32 %v2473_v53, %v648_v59 }
 0x188   :  { %v1014_v43 = vadd.f32 %v1013_v18, %v629_v10 }
 0x189   :  { %1238 = vst.msk [vmem:[%s2853_s3 + $0xc8] sm:$0xff] %vm1212_vm1, %v1019_v14 }
 0x18a   :  { %1237 = vst.msk [vmem:[%s2853_s3 + $0xc0] sm:$0xff] %vm1212_vm1, %v1014_v43  ;;  %v653_v21 = vpop.f32.mrb[58].mxu0  ;;  %v1463_v63 = vpop.f32.mrb[58].mxu1 }
 0x18b   :  { %v1029_v25 = vadd.f32 %v1463_v63, %v644_v39  ;;  %v655_v26 = vpop.f32.mrb[59].mxu0  ;;  %v1023_v29 = vpop.f32.mrb[59].mxu1  ;;  %v654_v47 = vadd.f32 %v2473_v53, %v653_v21 }
 0x18c   :  { %v1024_v51 = vadd.f32 %v1023_v29, %v639_v3 }
 0x18d   :  { %1240 = vst.msk [vmem:[%s2853_s3 + $0xd8] sm:$0xff] %vm1212_vm1, %v1029_v25 }
 0x18e   :  { %1239 = vst.msk [vmem:[%s2853_s3 + $0xd0] sm:$0xff] %vm1212_vm1, %v1024_v51  ;;  %v658_v11 = vpop.f32.mrb[60].mxu0  ;;  %v1466_v33 = vpop.f32.mrb[60].mxu1 }
 0x18f   :  { %v1039_v7 = vadd.f32 %v1466_v33, %v654_v47  ;;  %v660_v37 = vpop.f32.mrb[61].mxu0  ;;  %v1033_v38 = vpop.f32.mrb[61].mxu1  ;;  %v659_v62 = vadd.f32 %v2473_v53, %v658_v11 }
 0x190   :  { %v1034_v55 = vadd.f32 %v1033_v38, %v649_v30 }
 0x191   :  { %1242 = vst.msk [vmem:[%s2853_s3 + $0xe8] sm:$0xff] %vm1212_vm1, %v1039_v7 }
 0x192   :  { %1241 = vst.msk [vmem:[%s2853_s3 + $0xe0] sm:$0xff] %vm1212_vm1, %v1034_v55  ;;  %v663_v41 = vpop.f32.mrb[62].mxu0  ;;  %v1469_v42 = vpop.f32.mrb[62].mxu1 }
 0x193   :  { %v664_v45 = vadd.f32 %v2473_v53, %v663_v41  ;;  %v665_v19 = vpop.f32.mrb[63].mxu0  ;;  %v1043_v15 = vpop.f32.mrb[63].mxu1 }
 0x194   :  { %v1044_v49 = vadd.f32 %v1043_v15, %v659_v62 }
 0x195   :  { %v1049_v34 = vadd.f32 %v1469_v42, %v664_v45 }
 0x196   :  { %1243 = vst.msk [vmem:[%s2853_s3 + $0xf0] sm:$0xff] %vm1212_vm1, %v1044_v49  ;;  %v668_v22 = vpop.f32.mrb[64].mxu0  ;;  %v1472_v50 = vpop.f32.mrb[64].mxu1 }
 0x197   :  { %1244 = vst.msk [vmem:[%s2853_s3 + $0xf8] sm:$0xff] %vm1212_vm1, %v1049_v34  ;;  %v669_v54 = vadd.f32 %v2473_v53, %v668_v22  ;;  %v670_v57 = vpop.f32.mrb[65].mxu0  ;;  %v1053_v58 = vpop.f32.mrb[65].mxu1  ;;  %v754_v22 = vadd.f32 %v2473_v53, %v2412_v60  ;;  %v764_v60 = vadd.f32 %v2473_v53, %v2420_v4 }
 0x199   :  { %v1054_v27 = vadd.f32 %v1053_v58, %v669_v54  ;;  %v749_v54 = vadd.f32 %v2473_v53, %v2410_v56  ;;  %v759_v56 = vadd.f32 %v2473_v53, %v2416_v0  ;;  %v774_v0 = vadd.f32 %v2473_v53, %v2428_v12 }
 0x19a   :  { %v673_v23 = vpop.f32.mrb[66].mxu0  ;;  %v1475_v61 = vpop.f32.mrb[66].mxu1 }
 0x19b   :  { %1245 = vst.msk [vmem:[%s2853_s3 + $0x100] sm:$0xff] %vm1212_vm1, %v1054_v27  ;;  %v674_v46 = vadd.f32 %v2473_v53, %v673_v23  ;;  %v675_v1 = vpop.f32.mrb[67].mxu0  ;;  %v1063_v2 = vpop.f32.mrb[67].mxu1 }
 0x19d   :  { %v1059_v5 = vadd.f32 %v1472_v50, %v674_v46 }
 0x19e   :  { %v678_v6 = vpop.f32.mrb[68].mxu0  ;;  %v1478_v9 = vpop.f32.mrb[68].mxu1 }
 0x19f   :  { %1246 = vst.msk [vmem:[%s2853_s3 + $0x108] sm:$0xff] %vm1212_vm1, %v1059_v5  ;;  %v679_v35 = vadd.f32 %v2473_v53, %v678_v6  ;;  %v680_v31 = vpop.f32.mrb[69].mxu0  ;;  %v1073_v10 = vpop.f32.mrb[69].mxu1 }
 0x1a1   :  { %v1064_v59 = vadd.f32 %v1063_v2, %v679_v35 }
 0x1a2   :  { %v683_v13 = vpop.f32.mrb[70].mxu0  ;;  %v1481_v14 = vpop.f32.mrb[70].mxu1 }
 0x1a3   :  { %1247 = vst.msk [vmem:[%s2853_s3 + $0x110] sm:$0xff] %vm1212_vm1, %v1064_v59  ;;  %v684_v17 = vadd.f32 %v2473_v53, %v683_v13  ;;  %v685_v18 = vpop.f32.mrb[71].mxu0  ;;  %v1083_v43 = vpop.f32.mrb[71].mxu1  ;;  %v769_v13 = vadd.f32 %v2473_v53, %v2424_v8  ;;  %v784_v8 = vadd.f32 %v2473_v53, %v2436_v20 }
 0x1a5   :  { %v1069_v39 = vadd.f32 %v1475_v61, %v684_v17 }
 0x1a6   :  { %v688_v3 = vpop.f32.mrb[72].mxu0  ;;  %v1484_v21 = vpop.f32.mrb[72].mxu1 }
 0x1a7   :  { %1248 = vst.msk [vmem:[%s2853_s3 + $0x118] sm:$0xff] %vm1212_vm1, %v1069_v39  ;;  %v689_v63 = vadd.f32 %v2473_v53, %v688_v3  ;;  %v690_v25 = vpop.f32.mrb[73].mxu0  ;;  %v1093_v26 = vpop.f32.mrb[73].mxu1 }
 0x1a9   :  { %v1074_v29 = vadd.f32 %v1073_v10, %v689_v63  ;;  %v779_v63 = vadd.f32 %v2473_v53, %v2432_v16  ;;  %v794_v16 = vadd.f32 %v2473_v53, %v2444_v28 }
 0x1aa   :  { %v693_v51 = vpop.f32.mrb[74].mxu0  ;;  %v2680_v47 = vpop.f32.mrb[74].mxu1 }
 0x1ab   :  { %1249 = vst.msk [vmem:[%s2853_s3 + $0x120] sm:$0xff] %vm1212_vm1, %v1074_v29  ;;  %v694_v30 = vadd.f32 %v2473_v53, %v693_v51  ;;  %v695_v11 = vpop.f32.mrb[75].mxu0  ;;  %v1103_v33 = vpop.f32.mrb[75].mxu1 }
 0x1ad   :  { %v1079_v7 = vadd.f32 %v1478_v9, %v694_v30 }
 0x1ae   :  { %v698_v37 = vpop.f32.mrb[76].mxu0  ;;  %v2687_v38 = vpop.f32.mrb[76].mxu1 }
 0x1af   :  { %1250 = vst.msk [vmem:[%s2853_s3 + $0x128] sm:$0xff] %vm1212_vm1, %v1079_v7  ;;  %v699_v55 = vadd.f32 %v2473_v53, %v698_v37  ;;  %v700_v62 = vpop.f32.mrb[77].mxu0  ;;  %v2694_v41 = vpop.f32.mrb[77].mxu1  ;;  %v789_v7 = vadd.f32 %v2473_v53, %v2440_v24  ;;  %v804_v24 = vadd.f32 %v2473_v53, %v2452_v36 }
 0x1b1   :  { %v1084_v42 = vadd.f32 %v1083_v43, %v699_v55 }
 0x1b2   :  { %v703_v45 = vpop.f32.mrb[78].mxu0  ;;  %v2696_v19 = vpop.f32.mrb[78].mxu1 }
 0x1b3   :  { %1251 = vst.msk [vmem:[%s2853_s3 + $0x130] sm:$0xff] %vm1212_vm1, %v1084_v42  ;;  %v704_v15 = vadd.f32 %v2473_v53, %v703_v45  ;;  %v705_v49 = vpop.f32.mrb[79].mxu0  ;;  %v2703_v34 = vpop.f32.mrb[79].mxu1 }
 0x1b4   :  { %v799_v49 = vadd.f32 %v2473_v53, %v2448_v32  ;;  %v814_v32 = vadd.f32 %v2473_v53, %v2460_v44 }
 0x1b5   :  { %v1089_v50 = vadd.f32 %v1481_v14, %v704_v15 }
 0x1b6   :  { %v708_v57 = vpop.f32.mrb[80].mxu0  ;;  %v1496_v58 = vpop.f32.mrb[80].mxu1 }
 0x1b7   :  { %1252 = vst.msk [vmem:[%s2853_s3 + $0x138] sm:$0xff] %vm1212_vm1, %v1089_v50  ;;  %v709_v27 = vadd.f32 %v2473_v53, %v708_v57  ;;  %v1139_v23 = vadd.f32 %v1496_v58, %v754_v22  ;;  %v710_v61 = vpop.f32.mrb[81].mxu0  ;;  %v1133_v46 = vpop.f32.mrb[81].mxu1 }
 0x1b8   :  { %v1134_v1 = vadd.f32 %v1133_v46, %v749_v54 }
 0x1b9   :  { %v1094_v2 = vadd.f32 %v1093_v26, %v709_v27  ;;  %1262 = vst.msk [vmem:[%s2853_s3 + $0x188] sm:$0xff] %vm1212_vm1, %v1139_v23  ;;  %v809_v23 = vadd.f32 %v2473_v53, %v2456_v40  ;;  %v824_v40 = vadd.f32 %v2473_v53, %v2468_v52 }
 0x1ba   :  { %1261 = vst.msk [vmem:[%s2853_s3 + $0x180] sm:$0xff] %vm1212_vm1, %v1134_v1  ;;  %v713_v5 = vpop.f32.mrb[82].mxu0  ;;  %v1499_v6 = vpop.f32.mrb[82].mxu1 }
 0x1bb   :  { %1253 = vst.msk [vmem:[%s2853_s3 + $0x140] sm:$0xff] %vm1212_vm1, %v1094_v2  ;;  %v714_v4 = vadd.f32 %v2473_v53, %v713_v5  ;;  %v1149_v9 = vadd.f32 %v1499_v6, %v764_v60  ;;  %v715_v35 = vpop.f32.mrb[83].mxu0  ;;  %v1143_v31 = vpop.f32.mrb[83].mxu1  ;;  %v819_v5 = vadd.f32 %v2473_v53, %v2464_v48 }
 0x1bc   :  { %v1144_v10 = vadd.f32 %v1143_v31, %v759_v56 }
 0x1bd   :  { %v1099_v59 = vadd.f32 %v1484_v21, %v714_v4  ;;  %1264 = vst.msk [vmem:[%s2853_s3 + $0x198] sm:$0xff] %vm1212_vm1, %v1149_v9 }
 0x1be   :  { %1263 = vst.msk [vmem:[%s2853_s3 + $0x190] sm:$0xff] %vm1212_vm1, %v1144_v10  ;;  %v718_v14 = vpop.f32.mrb[84].mxu0  ;;  %v1502_v17 = vpop.f32.mrb[84].mxu1 }
 0x1bf   :  { %1254 = vst.msk [vmem:[%s2853_s3 + $0x148] sm:$0xff] %vm1212_vm1, %v1099_v59  ;;  %v719_v12 = vadd.f32 %v2473_v53, %v718_v14  ;;  %v1159_v18 = vadd.f32 %v1502_v17, %v774_v0  ;;  %v720_v43 = vpop.f32.mrb[85].mxu0  ;;  %v1153_v39 = vpop.f32.mrb[85].mxu1 }
 0x1c0   :  { %v1154_v3 = vadd.f32 %v1153_v39, %v769_v13 }
 0x1c1   :  { %v1104_v21 = vadd.f32 %v1103_v33, %v719_v12  ;;  %1266 = vst.msk [vmem:[%s2853_s3 + $0x1a8] sm:$0xff] %vm1212_vm1, %v1159_v18 }
 0x1c2   :  { %1265 = vst.msk [vmem:[%s2853_s3 + $0x1a0] sm:$0xff] %vm1212_vm1, %v1154_v3  ;;  %v723_v25 = vpop.f32.mrb[86].mxu0  ;;  %v1505_v26 = vpop.f32.mrb[86].mxu1 }
 0x1c3   :  { %1255 = vst.msk [vmem:[%s2853_s3 + $0x150] sm:$0xff] %vm1212_vm1, %v1104_v21  ;;  %v724_v20 = vadd.f32 %v2473_v53, %v723_v25  ;;  %v1169_v29 = vadd.f32 %v1505_v26, %v784_v8  ;;  %v725_v51 = vpop.f32.mrb[87].mxu0  ;;  %v1163_v30 = vpop.f32.mrb[87].mxu1 }
 0x1c4   :  { %v1164_v11 = vadd.f32 %v1163_v30, %v779_v63 }
 0x1c5   :  { %v1109_v33 = vadd.f32 %v2680_v47, %v724_v20  ;;  %1268 = vst.msk [vmem:[%s2853_s3 + $0x1b8] sm:$0xff] %vm1212_vm1, %v1169_v29 }
 0x1c6   :  { %1267 = vst.msk [vmem:[%s2853_s3 + $0x1b0] sm:$0xff] %vm1212_vm1, %v1164_v11  ;;  %v728_v37 = vpop.f32.mrb[88].mxu0  ;;  %v1508_v55 = vpop.f32.mrb[88].mxu1 }
 0x1c7   :  { %1256 = vst.msk [vmem:[%s2853_s3 + $0x158] sm:$0xff] %vm1212_vm1, %v1109_v33  ;;  %v729_v28 = vadd.f32 %v2473_v53, %v728_v37  ;;  %v1179_v47 = vadd.f32 %v1508_v55, %v794_v16  ;;  %v730_v62 = vpop.f32.mrb[89].mxu0  ;;  %v1173_v42 = vpop.f32.mrb[89].mxu1 }
 0x1c8   :  { %v1174_v45 = vadd.f32 %v1173_v42, %v789_v7 }
 0x1c9   :  { %v1114_v15 = vadd.f32 %v2694_v41, %v729_v28  ;;  %1270 = vst.msk [vmem:[%s2853_s3 + $0x1c8] sm:$0xff] %vm1212_vm1, %v1179_v47 }
 0x1ca   :  { %1269 = vst.msk [vmem:[%s2853_s3 + $0x1c0] sm:$0xff] %vm1212_vm1, %v1174_v45  ;;  %v733_v22 = vpop.f32.mrb[90].mxu0  ;;  %v1511_v50 = vpop.f32.mrb[90].mxu1 }
 0x1cb   :  { %1257 = vst.msk [vmem:[%s2853_s3 + $0x160] sm:$0xff] %vm1212_vm1, %v1114_v15  ;;  %v734_v36 = vadd.f32 %v2473_v53, %v733_v22  ;;  %v1189_v41 = vadd.f32 %v1511_v50, %v804_v24  ;;  %v735_v54 = vpop.f32.mrb[91].mxu0  ;;  %v1183_v57 = vpop.f32.mrb[91].mxu1 }
 0x1cc   :  { %v1184_v58 = vadd.f32 %v1183_v57, %v799_v49 }
 0x1cd   :  { %v1119_v27 = vadd.f32 %v2687_v38, %v734_v36  ;;  %1272 = vst.msk [vmem:[%s2853_s3 + $0x1d8] sm:$0xff] %vm1212_vm1, %v1189_v41 }
 0x1ce   :  { %1271 = vst.msk [vmem:[%s2853_s3 + $0x1d0] sm:$0xff] %vm1212_vm1, %v1184_v58  ;;  %v738_v61 = vpop.f32.mrb[92].mxu0  ;;  %v1514_v46 = vpop.f32.mrb[92].mxu1 }
 0x1cf   :  { %1258 = vst.msk [vmem:[%s2853_s3 + $0x168] sm:$0xff] %vm1212_vm1, %v1119_v27  ;;  %v739_v44 = vadd.f32 %v2473_v53, %v738_v61  ;;  %v1199_v38 = vadd.f32 %v1514_v46, %v814_v32  ;;  %v740_v1 = vpop.f32.mrb[93].mxu0  ;;  %v1193_v60 = vpop.f32.mrb[93].mxu1 }
 0x1d0   :  { %v1194_v2 = vadd.f32 %v1193_v60, %v809_v23 }
 0x1d1   :  { %v1124_v56 = vadd.f32 %v2703_v34, %v739_v44  ;;  %1274 = vst.msk [vmem:[%s2853_s3 + $0x1e8] sm:$0xff] %vm1212_vm1, %v1199_v38 }
 0x1d2   :  { %1273 = vst.msk [vmem:[%s2853_s3 + $0x1e0] sm:$0xff] %vm1212_vm1, %v1194_v2  ;;  %v743_v6 = vpop.f32.mrb[94].mxu0  ;;  %v1517_v4 = vpop.f32.mrb[94].mxu1 }
 0x1d3   :  { %1259 = vst.msk [vmem:[%s2853_s3 + $0x170] sm:$0xff] %vm1212_vm1, %v1124_v56  ;;  %v744_v52 = vadd.f32 %v2473_v53, %v743_v6  ;;  %v1209_v34 = vadd.f32 %v1517_v4, %v824_v40  ;;  %v745_v9 = vpop.f32.mrb[95].mxu0  ;;  %v1203_v35 = vpop.f32.mrb[95].mxu1 }
 0x1d4   :  { %v1204_v31 = vadd.f32 %v1203_v35, %v819_v5 }
 0x1d5   :  { %v1129_v48 = vadd.f32 %v2696_v19, %v744_v52  ;;  %1276 = vst.msk [vmem:[%s2853_s3 + $0x1f8] sm:$0xff] %vm1212_vm1, %v1209_v34 }
 0x1d6   :  { %1275 = vst.msk [vmem:[%s2853_s3 + $0x1f0] sm:$0xff] %vm1212_vm1, %v1204_v31 }
 0x1d7   :  { %1260 = vst.msk [vmem:[%s2853_s3 + $0x178] sm:$0xff] %vm1212_vm1, %v1129_v48 }

// kernel: asp_oc_forward.50
= control target key start
LH: loop header
LB: loop body
LE: loop exit
PB: predicated region body
PF: predicated region fallthrough
CT: control target
= control target key end

     0   :  { %vm348_vm0 = vcmask 523264   ;;  %s1025_s0 = inlined_call_operand.vmem [shape: f32[512,64], index: 0, kind: input, shape index: {}]   ;;  %s1026_s1 = inlined_call_operand.vmem [shape: f32[1,64], index: 1, kind: input, shape index: {}]   ;;  %s1027_s2 = inlined_call_operand.vmem [shape: f32[1,64], index: 2, kind: input, shape index: {}]   ;;  %s1028_s3 = inlined_call_operand.vmem [shape: f32[512,64], index: 3, kind: output, shape index: {}]  }
   0x1   :  { %v14_v0 = vld [vmem:[%s1025_s0] sm:$0xff]  ;;  %v15_v4 = vld [vmem:[%s1025_s0 + $0x8] sm:$0xff]  ;;  %v16_v5 = vld [vmem:[%s1025_s0 + $0x10] sm:$0xff] }
   0x2   :  { %v445_v1 = vld [vmem:[%s1026_s1] ss:$0 sm:$0xff]  ;;  %v17_v6 = vld [vmem:[%s1025_s0 + $0x18] sm:$0xff]  ;;  %v19_v11 = vld [vmem:[%s1025_s0 + $0x28] sm:$0xff] }
   0x3   :  { %v450_v2 = vld [vmem:[%s1027_s2] ss:$0 sm:$0xff]  ;;  %v85_v3 = vmul.f32 %v445_v1, %v14_v0  ;;  %v86_v7 = vmul.f32 %v445_v1, %v15_v4  ;;  %v87_v8 = vmul.f32 %v445_v1, %v16_v5  ;;  %v88_v9 = vmul.f32 %v445_v1, %v17_v6  ;;  %v20_v12 = vld [vmem:[%s1025_s0 + $0x30] sm:$0xff]  ;;  %v21_v17 = vld [vmem:[%s1025_s0 + $0x38] sm:$0xff] }
   0x4   :  { %v18_v10 = vld [vmem:[%s1025_s0 + $0x20] sm:$0xff]  ;;  %v90_v15 = vmul.f32 %v445_v1, %v19_v11  ;;  %v91_v16 = vmul.f32 %v445_v1, %v20_v12  ;;  %v92_v21 = vmul.f32 %v445_v1, %v21_v17  ;;  %v23_v27 = vld [vmem:[%s1025_s0 + $0x48] sm:$0xff]  ;;  %v24_v28 = vld [vmem:[%s1025_s0 + $0x50] sm:$0xff] }
   0x5   :  { %v156_v13 = vadd.f32 %v450_v2, %v85_v3  ;;  %v89_v14 = vmul.f32 %v445_v1, %v18_v10  ;;  %v157_v18 = vadd.f32 %v450_v2, %v86_v7  ;;  %v158_v19 = vadd.f32 %v450_v2, %v87_v8  ;;  %v22_v22 = vld [vmem:[%s1025_s0 + $0x40] sm:$0xff]  ;;  %v25_v29 = vld [vmem:[%s1025_s0 + $0x58] sm:$0xff]  ;;  %v27_v43 = vld [vmem:[%s1025_s0 + $0x68] sm:$0xff] }
   0x6   :  { %v159_v20 = vadd.f32 %v450_v2, %v88_v9  ;;  %v161_v25 = vadd.f32 %v450_v2, %v90_v15  ;;  %v162_v26 = vadd.f32 %v450_v2, %v91_v16  ;;  %v163_v33 = vadd.f32 %v450_v2, %v92_v21  ;;  %v26_v42 = vld [vmem:[%s1025_s0 + $0x60] sm:$0xff]  ;;  %v28_v44 = vld [vmem:[%s1025_s0 + $0x70] sm:$0xff]  ;;  %v29_v49 = vld [vmem:[%s1025_s0 + $0x78] sm:$0xff] }
   0x7   :  { %v220_v23 = vmul.f32 0.01, %v156_v13  ;;  %v160_v24 = vadd.f32 %v450_v2, %v89_v14  ;;  %v221_v30 = vmul.f32 0.01, %v157_v18  ;;  %v222_v31 = vmul.f32 0.01, %v158_v19 }
   0x8   :  { %v223_v32 = vmul.f32 0.01, %v159_v20  ;;  %v225_v36 = vmul.f32 0.01, %v161_v25  ;;  %v226_v37 = vmul.f32 0.01, %v162_v26  ;;  %v93_v48 = vmul.f32 %v445_v1, %v22_v22 }
   0x9   :  { %v284_v34 = vmax.f32 %v156_v13, %v220_v23  ;;  %v224_v35 = vmul.f32 0.01, %v160_v24  ;;  %v285_v38 = vmax.f32 %v157_v18, %v221_v30  ;;  %v286_v39 = vmax.f32 %v158_v19, %v222_v31  ;;  %v30_v62 = vld [vmem:[%s1025_s0 + $0x80] sm:$0xff]  ;;  %v31_v5 = vld [vmem:[%s1025_s0 + $0x88] sm:$0xff]  ;;  %v32_v6 = vld [vmem:[%s1025_s0 + $0x90] sm:$0xff] }
   0xa   :  { %v287_v40 = vmax.f32 %v159_v20, %v223_v32  ;;  %v227_v41 = vmul.f32 0.01, %v163_v33  ;;  %v289_v46 = vmax.f32 %v161_v25, %v225_v36  ;;  %v290_v47 = vmax.f32 %v162_v26, %v226_v37  ;;  %v33_v7 = vld [vmem:[%s1025_s0 + $0x98] sm:$0xff]  ;;  %v34_v20 = vld [vmem:[%s1025_s0 + $0xa0] sm:$0xff]  ;;  %v35_v21 = vld [vmem:[%s1025_s0 + $0xa8] sm:$0xff] }
   0xb   :  { %349 = vst.msk [vmem:[%s1028_s3] sm:$0xff] %vm348_vm0, %v284_v34  ;;  %v288_v45 = vmax.f32 %v160_v24, %v224_v35  ;;  %350 = vst.msk [vmem:[%s1028_s3 + $0x8] sm:$0xff] %vm348_vm0, %v285_v38  ;;  %v94_v51 = vmul.f32 %v445_v1, %v23_v27  ;;  %v95_v52 = vmul.f32 %v445_v1, %v24_v28  ;;  %v36_v22 = vld [vmem:[%s1025_s0 + $0xb0] sm:$0xff]  ;;  %v37_v27 = vld [vmem:[%s1025_s0 + $0xb8] sm:$0xff] }
   0xc   :  { %351 = vst.msk [vmem:[%s1028_s3 + $0x10] sm:$0xff] %vm348_vm0, %v286_v39  ;;  %352 = vst.msk [vmem:[%s1028_s3 + $0x18] sm:$0xff] %vm348_vm0, %v287_v40  ;;  %v291_v50 = vmax.f32 %v163_v33, %v227_v41  ;;  %v96_v53 = vmul.f32 %v445_v1, %v25_v29  ;;  %v164_v54 = vadd.f32 %v450_v2, %v93_v48  ;;  %v38_v40 = vld [vmem:[%s1025_s0 + $0xc0] sm:$0xff] }
   0xd   :  { %353 = vst.msk [vmem:[%s1028_s3 + $0x20] sm:$0xff] %vm348_vm0, %v288_v45  ;;  %354 = vst.msk [vmem:[%s1028_s3 + $0x28] sm:$0xff] %vm348_vm0, %v289_v46  ;;  %v97_v55 = vmul.f32 %v445_v1, %v26_v42  ;;  %v98_v56 = vmul.f32 %v445_v1, %v27_v43  ;;  %v99_v57 = vmul.f32 %v445_v1, %v28_v44  ;;  %v39_v45 = vld [vmem:[%s1025_s0 + $0xc8] sm:$0xff]  ;;  %v40_v46 = vld [vmem:[%s1025_s0 + $0xd0] sm:$0xff] }
   0xe   :  { %355 = vst.msk [vmem:[%s1028_s3 + $0x30] sm:$0xff] %vm348_vm0, %v290_v47  ;;  %356 = vst.msk [vmem:[%s1028_s3 + $0x38] sm:$0xff] %vm348_vm0, %v291_v50  ;;  %v165_v58 = vadd.f32 %v450_v2, %v94_v51  ;;  %v166_v59 = vadd.f32 %v450_v2, %v95_v52  ;;  %v167_v60 = vadd.f32 %v450_v2, %v96_v53  ;;  %v228_v63 = vmul.f32 0.01, %v164_v54  ;;  %v41_v47 = vld [vmem:[%s1025_s0 + $0xd8] sm:$0xff] }
   0xf   :  { %v100_v61 = vmul.f32 %v445_v1, %v29_v49  ;;  %v168_v0 = vadd.f32 %v450_v2, %v97_v55  ;;  %v169_v3 = vadd.f32 %v450_v2, %v98_v56  ;;  %v170_v4 = vadd.f32 %v450_v2, %v99_v57 }
  0x10   :  { %v229_v8 = vmul.f32 0.01, %v165_v58  ;;  %v230_v9 = vmul.f32 0.01, %v166_v59  ;;  %v231_v10 = vmul.f32 0.01, %v167_v60  ;;  %v292_v12 = vmax.f32 %v164_v54, %v228_v63 }
  0x11   :  { %v171_v11 = vadd.f32 %v450_v2, %v100_v61  ;;  %v232_v13 = vmul.f32 0.01, %v168_v0  ;;  %v233_v14 = vmul.f32 0.01, %v169_v3  ;;  %v234_v15 = vmul.f32 0.01, %v170_v4 }
  0x12   :  { %v293_v16 = vmax.f32 %v165_v58, %v229_v8  ;;  %v294_v17 = vmax.f32 %v166_v59, %v230_v9  ;;  %v295_v18 = vmax.f32 %v167_v60, %v231_v10  ;;  %357 = vst.msk [vmem:[%s1028_s3 + $0x40] sm:$0xff] %vm348_vm0, %v292_v12  ;;  %v101_v26 = vmul.f32 %v445_v1, %v30_v62  ;;  %v42_v60 = vld [vmem:[%s1025_s0 + $0xe0] sm:$0xff]  ;;  %v43_v61 = vld [vmem:[%s1025_s0 + $0xe8] sm:$0xff]  ;;  %v44_v62 = vld [vmem:[%s1025_s0 + $0xf0] sm:$0xff] }
  0x13   :  { %v235_v19 = vmul.f32 0.01, %v171_v11  ;;  %v296_v23 = vmax.f32 %v168_v0, %v232_v13  ;;  %v297_v24 = vmax.f32 %v169_v3, %v233_v14  ;;  %v298_v25 = vmax.f32 %v170_v4, %v234_v15 }
  0x14   :  { %358 = vst.msk [vmem:[%s1028_s3 + $0x48] sm:$0xff] %vm348_vm0, %v293_v16  ;;  %359 = vst.msk [vmem:[%s1028_s3 + $0x50] sm:$0xff] %vm348_vm0, %v294_v17  ;;  %v102_v29 = vmul.f32 %v445_v1, %v31_v5  ;;  %v103_v30 = vmul.f32 %v445_v1, %v32_v6  ;;  %v104_v31 = vmul.f32 %v445_v1, %v33_v7  ;;  %v45_v5 = vld [vmem:[%s1025_s0 + $0xf8] sm:$0xff] }
  0x15   :  { %360 = vst.msk [vmem:[%s1028_s3 + $0x58] sm:$0xff] %vm348_vm0, %v295_v18  ;;  %v299_v28 = vmax.f32 %v171_v11, %v235_v19  ;;  %361 = vst.msk [vmem:[%s1028_s3 + $0x60] sm:$0xff] %vm348_vm0, %v296_v23  ;;  %v172_v32 = vadd.f32 %v450_v2, %v101_v26  ;;  %v105_v33 = vmul.f32 %v445_v1, %v34_v20  ;;  %v46_v18 = vld [vmem:[%s1025_s0 + $0x100] sm:$0xff]  ;;  %v47_v23 = vld [vmem:[%s1025_s0 + $0x108] sm:$0xff] }
  0x16   :  { %362 = vst.msk [vmem:[%s1028_s3 + $0x68] sm:$0xff] %vm348_vm0, %v297_v24  ;;  %363 = vst.msk [vmem:[%s1028_s3 + $0x70] sm:$0xff] %vm348_vm0, %v298_v25  ;;  %v106_v34 = vmul.f32 %v445_v1, %v35_v21  ;;  %v107_v35 = vmul.f32 %v445_v1, %v36_v22  ;;  %v173_v36 = vadd.f32 %v450_v2, %v102_v29  ;;  %v48_v24 = vld [vmem:[%s1025_s0 + $0x110] sm:$0xff]  ;;  %v49_v25 = vld [vmem:[%s1025_s0 + $0x118] sm:$0xff] }
  0x17   :  { %364 = vst.msk [vmem:[%s1028_s3 + $0x78] sm:$0xff] %vm348_vm0, %v299_v28  ;;  %v174_v37 = vadd.f32 %v450_v2, %v103_v30  ;;  %v175_v38 = vadd.f32 %v450_v2, %v104_v31  ;;  %v108_v39 = vmul.f32 %v445_v1, %v37_v27  ;;  %v236_v41 = vmul.f32 0.01, %v172_v32 }
  0x18   :  { %v176_v42 = vadd.f32 %v450_v2, %v105_v33  ;;  %v177_v43 = vadd.f32 %v450_v2, %v106_v34  ;;  %v178_v44 = vadd.f32 %v450_v2, %v107_v35  ;;  %v237_v48 = vmul.f32 0.01, %v173_v36 }
  0x19   :  { %v238_v49 = vmul.f32 0.01, %v174_v37  ;;  %v239_v50 = vmul.f32 0.01, %v175_v38  ;;  %v179_v51 = vadd.f32 %v450_v2, %v108_v39  ;;  %v300_v52 = vmax.f32 %v172_v32, %v236_v41  ;;  %v51_v39 = vld [vmem:[%s1025_s0 + $0x128] sm:$0xff] }
  0x1a   :  { %v240_v53 = vmul.f32 0.01, %v176_v42  ;;  %v241_v54 = vmul.f32 0.01, %v177_v43  ;;  %v242_v55 = vmul.f32 0.01, %v178_v44  ;;  %v301_v56 = vmax.f32 %v173_v36, %v237_v48 }
  0x1b   :  { %v302_v57 = vmax.f32 %v174_v37, %v238_v49  ;;  %v303_v58 = vmax.f32 %v175_v38, %v239_v50  ;;  %v243_v59 = vmul.f32 0.01, %v179_v51  ;;  %365 = vst.msk [vmem:[%s1028_s3 + $0x80] sm:$0xff] %vm348_vm0, %v300_v52  ;;  %v109_v4 = vmul.f32 %v445_v1, %v38_v40  ;;  %v50_v38 = vld [vmem:[%s1025_s0 + $0x120] sm:$0xff]  ;;  %v52_v40 = vld [vmem:[%s1025_s0 + $0x130] sm:$0xff] }
  0x1c   :  { %v304_v63 = vmax.f32 %v176_v42, %v240_v53  ;;  %v305_v0 = vmax.f32 %v177_v43, %v241_v54  ;;  %v306_v3 = vmax.f32 %v178_v44, %v242_v55  ;;  %366 = vst.msk [vmem:[%s1028_s3 + $0x88] sm:$0xff] %vm348_vm0, %v301_v56  ;;  %v110_v7 = vmul.f32 %v445_v1, %v39_v45  ;;  %v53_v45 = vld [vmem:[%s1025_s0 + $0x138] sm:$0xff] }
  0x1d   :  { %367 = vst.msk [vmem:[%s1028_s3 + $0x90] sm:$0xff] %vm348_vm0, %v302_v57  ;;  %368 = vst.msk [vmem:[%s1028_s3 + $0x98] sm:$0xff] %vm348_vm0, %v303_v58  ;;  %v307_v6 = vmax.f32 %v179_v51, %v243_v59  ;;  %v111_v8 = vmul.f32 %v445_v1, %v40_v46  ;;  %v112_v9 = vmul.f32 %v445_v1, %v41_v47  ;;  %v54_v58 = vld [vmem:[%s1025_s0 + $0x140] sm:$0xff] }
  0x1e   :  { %369 = vst.msk [vmem:[%s1028_s3 + $0xa0] sm:$0xff] %vm348_vm0, %v304_v63  ;;  %370 = vst.msk [vmem:[%s1028_s3 + $0xa8] sm:$0xff] %vm348_vm0, %v305_v0  ;;  %v180_v10 = vadd.f32 %v450_v2, %v109_v4  ;;  %v113_v11 = vmul.f32 %v445_v1, %v42_v60  ;;  %v114_v12 = vmul.f32 %v445_v1, %v43_v61  ;;  %v55_v63 = vld [vmem:[%s1025_s0 + $0x148] sm:$0xff]  ;;  %v56_v0 = vld [vmem:[%s1025_s0 + $0x150] sm:$0xff] }
  0x1f   :  { %371 = vst.msk [vmem:[%s1028_s3 + $0xb0] sm:$0xff] %vm348_vm0, %v306_v3  ;;  %v115_v13 = vmul.f32 %v445_v1, %v44_v62  ;;  %372 = vst.msk [vmem:[%s1028_s3 + $0xb8] sm:$0xff] %vm348_vm0, %v307_v6  ;;  %v181_v14 = vadd.f32 %v450_v2, %v110_v7  ;;  %v182_v15 = vadd.f32 %v450_v2, %v111_v8  ;;  %v57_v3 = vld [vmem:[%s1025_s0 + $0x158] sm:$0xff] }
  0x20   :  { %v183_v16 = vadd.f32 %v450_v2, %v112_v9  ;;  %v116_v17 = vmul.f32 %v445_v1, %v45_v5  ;;  %v244_v19 = vmul.f32 0.01, %v180_v10  ;;  %v184_v20 = vadd.f32 %v450_v2, %v113_v11 }
  0x21   :  { %v185_v21 = vadd.f32 %v450_v2, %v114_v12  ;;  %v186_v22 = vadd.f32 %v450_v2, %v115_v13  ;;  %v245_v26 = vmul.f32 0.01, %v181_v14  ;;  %v246_v27 = vmul.f32 0.01, %v182_v15 }
  0x22   :  { %v247_v28 = vmul.f32 0.01, %v183_v16  ;;  %v187_v29 = vadd.f32 %v450_v2, %v116_v17  ;;  %v308_v30 = vmax.f32 %v180_v10, %v244_v19  ;;  %v248_v31 = vmul.f32 0.01, %v184_v20  ;;  %v59_v17 = vld [vmem:[%s1025_s0 + $0x168] sm:$0xff] }
  0x23   :  { %v249_v32 = vmul.f32 0.01, %v185_v21  ;;  %v250_v33 = vmul.f32 0.01, %v186_v22  ;;  %v309_v34 = vmax.f32 %v181_v14, %v245_v26  ;;  %v310_v35 = vmax.f32 %v182_v15, %v246_v27 }
  0x24   :  { %v311_v36 = vmax.f32 %v183_v16, %v247_v28  ;;  %v251_v37 = vmul.f32 0.01, %v187_v29  ;;  %373 = vst.msk [vmem:[%s1028_s3 + $0xc0] sm:$0xff] %vm348_vm0, %v308_v30  ;;  %v312_v41 = vmax.f32 %v184_v20, %v248_v31  ;;  %v117_v44 = vmul.f32 %v445_v1, %v46_v18  ;;  %v58_v16 = vld [vmem:[%s1025_s0 + $0x160] sm:$0xff]  ;;  %v60_v18 = vld [vmem:[%s1025_s0 + $0x170] sm:$0xff] }
  0x25   :  { %v313_v42 = vmax.f32 %v185_v21, %v249_v32  ;;  %v314_v43 = vmax.f32 %v186_v22, %v250_v33  ;;  %374 = vst.msk [vmem:[%s1028_s3 + $0xc8] sm:$0xff] %vm348_vm0, %v309_v34  ;;  %375 = vst.msk [vmem:[%s1028_s3 + $0xd0] sm:$0xff] %vm348_vm0, %v310_v35  ;;  %v118_v47 = vmul.f32 %v445_v1, %v47_v23  ;;  %v61_v23 = vld [vmem:[%s1025_s0 + $0x178] sm:$0xff] }
  0x26   :  { %376 = vst.msk [vmem:[%s1028_s3 + $0xd8] sm:$0xff] %vm348_vm0, %v311_v36  ;;  %v315_v46 = vmax.f32 %v187_v29, %v251_v37  ;;  %v119_v48 = vmul.f32 %v445_v1, %v48_v24  ;;  %v120_v49 = vmul.f32 %v445_v1, %v49_v25  ;;  %377 = vst.msk [vmem:[%s1028_s3 + $0xe0] sm:$0xff] %vm348_vm0, %v312_v41  ;;  %v62_v36 = vld [vmem:[%s1025_s0 + $0x180] sm:$0xff]  ;;  %v63_v41 = vld [vmem:[%s1025_s0 + $0x188] sm:$0xff] }
  0x27   :  { %378 = vst.msk [vmem:[%s1028_s3 + $0xe8] sm:$0xff] %vm348_vm0, %v313_v42  ;;  %379 = vst.msk [vmem:[%s1028_s3 + $0xf0] sm:$0xff] %vm348_vm0, %v314_v43  ;;  %v188_v50 = vadd.f32 %v450_v2, %v117_v44  ;;  %v121_v51 = vmul.f32 %v445_v1, %v50_v38  ;;  %v122_v52 = vmul.f32 %v445_v1, %v51_v39  ;;  %v64_v42 = vld [vmem:[%s1025_s0 + $0x190] sm:$0xff]  ;;  %v65_v43 = vld [vmem:[%s1025_s0 + $0x198] sm:$0xff] }
  0x28   :  { %v123_v53 = vmul.f32 %v445_v1, %v52_v40  ;;  %380 = vst.msk [vmem:[%s1028_s3 + $0xf8] sm:$0xff] %vm348_vm0, %v315_v46  ;;  %v189_v54 = vadd.f32 %v450_v2, %v118_v47  ;;  %v190_v55 = vadd.f32 %v450_v2, %v119_v48  ;;  %v191_v56 = vadd.f32 %v450_v2, %v120_v49 }
  0x29   :  { %v124_v57 = vmul.f32 %v445_v1, %v53_v45  ;;  %v252_v59 = vmul.f32 0.01, %v188_v50  ;;  %v192_v60 = vadd.f32 %v450_v2, %v121_v51  ;;  %v193_v61 = vadd.f32 %v450_v2, %v122_v52 }
  0x2a   :  { %v194_v62 = vadd.f32 %v450_v2, %v123_v53  ;;  %v253_v4 = vmul.f32 0.01, %v189_v54  ;;  %v254_v5 = vmul.f32 0.01, %v190_v55  ;;  %v255_v6 = vmul.f32 0.01, %v191_v56 }
  0x2b   :  { %v195_v7 = vadd.f32 %v450_v2, %v124_v57  ;;  %v316_v8 = vmax.f32 %v188_v50, %v252_v59  ;;  %v256_v9 = vmul.f32 0.01, %v192_v60  ;;  %v257_v10 = vmul.f32 0.01, %v193_v61  ;;  %v67_v57 = vld [vmem:[%s1025_s0 + $0x1a8] sm:$0xff] }
  0x2c   :  { %v258_v11 = vmul.f32 0.01, %v194_v62  ;;  %v317_v12 = vmax.f32 %v189_v54, %v253_v4  ;;  %v318_v13 = vmax.f32 %v190_v55, %v254_v5  ;;  %v319_v14 = vmax.f32 %v191_v56, %v255_v6  ;;  %v66_v56 = vld [vmem:[%s1025_s0 + $0x1a0] sm:$0xff] }
  0x2d   :  { %v259_v15 = vmul.f32 0.01, %v195_v7  ;;  %381 = vst.msk [vmem:[%s1028_s3 + $0x100] sm:$0xff] %vm348_vm0, %v316_v8  ;;  %v320_v19 = vmax.f32 %v192_v60, %v256_v9  ;;  %v321_v20 = vmax.f32 %v193_v61, %v257_v10  ;;  %v125_v22 = vmul.f32 %v445_v1, %v54_v58  ;;  %v68_v58 = vld [vmem:[%s1025_s0 + $0x1b0] sm:$0xff] }
  0x2e   :  { %v322_v21 = vmax.f32 %v194_v62, %v258_v11  ;;  %382 = vst.msk [vmem:[%s1028_s3 + $0x108] sm:$0xff] %vm348_vm0, %v317_v12  ;;  %383 = vst.msk [vmem:[%s1028_s3 + $0x110] sm:$0xff] %vm348_vm0, %v318_v13  ;;  %v126_v25 = vmul.f32 %v445_v1, %v55_v63  ;;  %v127_v26 = vmul.f32 %v445_v1, %v56_v0  ;;  %v69_v63 = vld [vmem:[%s1025_s0 + $0x1b8] sm:$0xff] }
  0x2f   :  { %384 = vst.msk [vmem:[%s1028_s3 + $0x118] sm:$0xff] %vm348_vm0, %v319_v14  ;;  %v323_v24 = vmax.f32 %v195_v7, %v259_v15  ;;  %v128_v27 = vmul.f32 %v445_v1, %v57_v3  ;;  %385 = vst.msk [vmem:[%s1028_s3 + $0x120] sm:$0xff] %vm348_vm0, %v320_v19  ;;  %v196_v28 = vadd.f32 %v450_v2, %v125_v22  ;;  %v70_v14 = vld [vmem:[%s1025_s0 + $0x1c0] sm:$0xff]  ;;  %v71_v19 = vld [vmem:[%s1025_s0 + $0x1c8] sm:$0xff] }
  0x30   :  { %386 = vst.msk [vmem:[%s1028_s3 + $0x128] sm:$0xff] %vm348_vm0, %v321_v20  ;;  %387 = vst.msk [vmem:[%s1028_s3 + $0x130] sm:$0xff] %vm348_vm0, %v322_v21  ;;  %v129_v29 = vmul.f32 %v445_v1, %v58_v16  ;;  %v130_v30 = vmul.f32 %v445_v1, %v59_v17  ;;  %v131_v31 = vmul.f32 %v445_v1, %v60_v18  ;;  %v72_v20 = vld [vmem:[%s1025_s0 + $0x1d0] sm:$0xff]  ;;  %v73_v21 = vld [vmem:[%s1025_s0 + $0x1d8] sm:$0xff] }
  0x31   :  { %388 = vst.msk [vmem:[%s1028_s3 + $0x138] sm:$0xff] %vm348_vm0, %v323_v24  ;;  %v197_v32 = vadd.f32 %v450_v2, %v126_v25  ;;  %v198_v33 = vadd.f32 %v450_v2, %v127_v26  ;;  %v199_v34 = vadd.f32 %v450_v2, %v128_v27  ;;  %v132_v35 = vmul.f32 %v445_v1, %v61_v23 }
  0x32   :  { %v260_v37 = vmul.f32 0.01, %v196_v28  ;;  %v200_v38 = vadd.f32 %v450_v2, %v129_v29  ;;  %v201_v39 = vadd.f32 %v450_v2, %v130_v30  ;;  %v202_v40 = vadd.f32 %v450_v2, %v131_v31 }
  0x33   :  { %v261_v44 = vmul.f32 0.01, %v197_v32  ;;  %v262_v45 = vmul.f32 0.01, %v198_v33  ;;  %v263_v46 = vmul.f32 0.01, %v199_v34  ;;  %v203_v47 = vadd.f32 %v450_v2, %v132_v35 }
  0x34   :  { %v324_v48 = vmax.f32 %v196_v28, %v260_v37  ;;  %v264_v49 = vmul.f32 0.01, %v200_v38  ;;  %v265_v50 = vmul.f32 0.01, %v201_v39  ;;  %v266_v51 = vmul.f32 0.01, %v202_v40 }
  0x35   :  { %v325_v52 = vmax.f32 %v197_v32, %v261_v44  ;;  %v326_v53 = vmax.f32 %v198_v33, %v262_v45  ;;  %v327_v54 = vmax.f32 %v199_v34, %v263_v46  ;;  %v267_v55 = vmul.f32 0.01, %v203_v47  ;;  %v74_v34 = vld [vmem:[%s1025_s0 + $0x1e0] sm:$0xff]  ;;  %v75_v35 = vld [vmem:[%s1025_s0 + $0x1e8] sm:$0xff] }
  0x36   :  { %389 = vst.msk [vmem:[%s1028_s3 + $0x140] sm:$0xff] %vm348_vm0, %v324_v48  ;;  %v328_v59 = vmax.f32 %v200_v38, %v264_v49  ;;  %v329_v60 = vmax.f32 %v201_v39, %v265_v50  ;;  %v330_v61 = vmax.f32 %v202_v40, %v266_v51  ;;  %v133_v62 = vmul.f32 %v445_v1, %v62_v36  ;;  %v76_v36 = vld [vmem:[%s1025_s0 + $0x1f0] sm:$0xff] }
  0x37   :  { %390 = vst.msk [vmem:[%s1028_s3 + $0x148] sm:$0xff] %vm348_vm0, %v325_v52  ;;  %391 = vst.msk [vmem:[%s1028_s3 + $0x150] sm:$0xff] %vm348_vm0, %v326_v53  ;;  %v331_v0 = vmax.f32 %v203_v47, %v267_v55  ;;  %v134_v3 = vmul.f32 %v445_v1, %v63_v41  ;;  %v135_v4 = vmul.f32 %v445_v1, %v64_v42  ;;  %v77_v41 = vld [vmem:[%s1025_s0 + $0x1f8] sm:$0xff] }
  0x38   :  { %392 = vst.msk [vmem:[%s1028_s3 + $0x158] sm:$0xff] %vm348_vm0, %v327_v54  ;;  %v136_v5 = vmul.f32 %v445_v1, %v65_v43  ;;  %393 = vst.msk [vmem:[%s1028_s3 + $0x160] sm:$0xff] %vm348_vm0, %v328_v59  ;;  %v204_v6 = vadd.f32 %v450_v2, %v133_v62  ;;  %v137_v7 = vmul.f32 %v445_v1, %v66_v56 }
  0x39   :  { %394 = vst.msk [vmem:[%s1028_s3 + $0x168] sm:$0xff] %vm348_vm0, %v329_v60  ;;  %395 = vst.msk [vmem:[%s1028_s3 + $0x170] sm:$0xff] %vm348_vm0, %v330_v61  ;;  %v138_v8 = vmul.f32 %v445_v1, %v67_v57  ;;  %v139_v9 = vmul.f32 %v445_v1, %v68_v58  ;;  %v205_v10 = vadd.f32 %v450_v2, %v134_v3 }
  0x3a   :  { %396 = vst.msk [vmem:[%s1028_s3 + $0x178] sm:$0xff] %vm348_vm0, %v331_v0  ;;  %v206_v11 = vadd.f32 %v450_v2, %v135_v4  ;;  %v207_v12 = vadd.f32 %v450_v2, %v136_v5  ;;  %v140_v13 = vmul.f32 %v445_v1, %v69_v63  ;;  %v268_v15 = vmul.f32 0.01, %v204_v6 }
  0x3b   :  { %v208_v16 = vadd.f32 %v450_v2, %v137_v7  ;;  %v209_v17 = vadd.f32 %v450_v2, %v138_v8  ;;  %v210_v18 = vadd.f32 %v450_v2, %v139_v9  ;;  %v269_v22 = vmul.f32 0.01, %v205_v10 }
  0x3c   :  { %v270_v23 = vmul.f32 0.01, %v206_v11  ;;  %v271_v24 = vmul.f32 0.01, %v207_v12  ;;  %v211_v25 = vadd.f32 %v450_v2, %v140_v13  ;;  %v332_v26 = vmax.f32 %v204_v6, %v268_v15 }
  0x3d   :  { %v272_v27 = vmul.f32 0.01, %v208_v16  ;;  %v273_v28 = vmul.f32 0.01, %v209_v17  ;;  %v274_v29 = vmul.f32 0.01, %v210_v18  ;;  %v333_v30 = vmax.f32 %v205_v10, %v269_v22 }
  0x3e   :  { %v334_v31 = vmax.f32 %v206_v11, %v270_v23  ;;  %v335_v32 = vmax.f32 %v207_v12, %v271_v24  ;;  %v275_v33 = vmul.f32 0.01, %v211_v25  ;;  %397 = vst.msk [vmem:[%s1028_s3 + $0x180] sm:$0xff] %vm348_vm0, %v332_v26  ;;  %v141_v40 = vmul.f32 %v445_v1, %v70_v14 }
  0x3f   :  { %v336_v37 = vmax.f32 %v208_v16, %v272_v27  ;;  %v337_v38 = vmax.f32 %v209_v17, %v273_v28  ;;  %v338_v39 = vmax.f32 %v210_v18, %v274_v29  ;;  %398 = vst.msk [vmem:[%s1028_s3 + $0x188] sm:$0xff] %vm348_vm0, %v333_v30  ;;  %v142_v43 = vmul.f32 %v445_v1, %v71_v19 }
  0x40   :  { %399 = vst.msk [vmem:[%s1028_s3 + $0x190] sm:$0xff] %vm348_vm0, %v334_v31  ;;  %400 = vst.msk [vmem:[%s1028_s3 + $0x198] sm:$0xff] %vm348_vm0, %v335_v32  ;;  %v339_v42 = vmax.f32 %v211_v25, %v275_v33  ;;  %v143_v44 = vmul.f32 %v445_v1, %v72_v20  ;;  %v144_v45 = vmul.f32 %v445_v1, %v73_v21 }
  0x41   :  { %401 = vst.msk [vmem:[%s1028_s3 + $0x1a0] sm:$0xff] %vm348_vm0, %v336_v37  ;;  %402 = vst.msk [vmem:[%s1028_s3 + $0x1a8] sm:$0xff] %vm348_vm0, %v337_v38  ;;  %v212_v46 = vadd.f32 %v450_v2, %v141_v40  ;;  %v145_v47 = vmul.f32 %v445_v1, %v74_v34  ;;  %v146_v48 = vmul.f32 %v445_v1, %v75_v35 }
  0x42   :  { %403 = vst.msk [vmem:[%s1028_s3 + $0x1b0] sm:$0xff] %vm348_vm0, %v338_v39  ;;  %v147_v49 = vmul.f32 %v445_v1, %v76_v36  ;;  %404 = vst.msk [vmem:[%s1028_s3 + $0x1b8] sm:$0xff] %vm348_vm0, %v339_v42  ;;  %v213_v50 = vadd.f32 %v450_v2, %v142_v43  ;;  %v214_v51 = vadd.f32 %v450_v2, %v143_v44 }
  0x43   :  { %v215_v52 = vadd.f32 %v450_v2, %v144_v45  ;;  %v148_v53 = vmul.f32 %v445_v1, %v77_v41  ;;  %v276_v54 = vmul.f32 0.01, %v212_v46  ;;  %v216_v55 = vadd.f32 %v450_v2, %v145_v47 }
  0x44   :  { %v217_v56 = vadd.f32 %v450_v2, %v146_v48  ;;  %v218_v57 = vadd.f32 %v450_v2, %v147_v49  ;;  %v277_v58 = vmul.f32 0.01, %v213_v50  ;;  %v278_v59 = vmul.f32 0.01, %v214_v51 }
  0x45   :  { %v279_v60 = vmul.f32 0.01, %v215_v52  ;;  %v219_v61 = vadd.f32 %v450_v2, %v148_v53  ;;  %v340_v62 = vmax.f32 %v212_v46, %v276_v54  ;;  %v280_v63 = vmul.f32 0.01, %v216_v55 }
  0x46   :  { %v281_v0 = vmul.f32 0.01, %v217_v56  ;;  %v282_v3 = vmul.f32 0.01, %v218_v57  ;;  %v341_v4 = vmax.f32 %v213_v50, %v277_v58  ;;  %v342_v5 = vmax.f32 %v214_v51, %v278_v59 }
  0x47   :  { %v343_v6 = vmax.f32 %v215_v52, %v279_v60  ;;  %v283_v1 = vmul.f32 0.01, %v219_v61  ;;  %405 = vst.msk [vmem:[%s1028_s3 + $0x1c0] sm:$0xff] %vm348_vm0, %v340_v62  ;;  %v344_v7 = vmax.f32 %v216_v55, %v280_v63 }
  0x48   :  { %v345_v8 = vmax.f32 %v217_v56, %v281_v0  ;;  %v346_v9 = vmax.f32 %v218_v57, %v282_v3  ;;  %406 = vst.msk [vmem:[%s1028_s3 + $0x1c8] sm:$0xff] %vm348_vm0, %v341_v4  ;;  %407 = vst.msk [vmem:[%s1028_s3 + $0x1d0] sm:$0xff] %vm348_vm0, %v342_v5 }
  0x49   :  { %408 = vst.msk [vmem:[%s1028_s3 + $0x1d8] sm:$0xff] %vm348_vm0, %v343_v6  ;;  %v347_v2 = vmax.f32 %v219_v61, %v283_v1  ;;  %409 = vst.msk [vmem:[%s1028_s3 + $0x1e0] sm:$0xff] %vm348_vm0, %v344_v7 }
  0x4a   :  { %410 = vst.msk [vmem:[%s1028_s3 + $0x1e8] sm:$0xff] %vm348_vm0, %v345_v8  ;;  %411 = vst.msk [vmem:[%s1028_s3 + $0x1f0] sm:$0xff] %vm348_vm0, %v346_v9 }
  0x4b   :  { %412 = vst.msk [vmem:[%s1028_s3 + $0x1f8] sm:$0xff] %vm348_vm0, %v347_v2 }

// kernel: asp_oc_forward.31
= control target key start
LH: loop header
LB: loop body
LE: loop exit
PB: predicated region body
PF: predicated region fallthrough
CT: control target
= control target key end

     0   :  { %vm12_vm0 = vcmask 254976   ;;  %vm31_vm1 = vcmask 261120   ;;  %v132_v0 = vmov 0.0   ;;  %vm122_vm2 = vcmask 1040384   ;;  %s234_s0 = inlined_call_operand.vmem [shape: f32[128,32], index: 0, kind: input, shape index: {}]   ;;  %s235_s1 = inlined_call_operand.vmem [shape: f32[2,32], index: 1, kind: output, shape index: {}]  }
   0x1   :  { %13 = vst.msk [vmem:[%s235_s1] sm:$0x3] %vm12_vm0, %v132_v0  ;;  %v14_v1 = vld [vmem:[%s234_s0] sm:$0xff]  ;;  %v15_v2 = vld [vmem:[%s234_s0 + $0x8] sm:$0xff]  ;;  %v16_v3 = vld [vmem:[%s234_s0 + $0x10] sm:$0xff] }
   0x2   :  { %v32_v4 = vsel %vm31_vm1, %v14_v1, 0.0  ;;  %v33_v5 = vsel %vm31_vm1, %v15_v2, 0.0  ;;  %v35_v6 = vsel %vm31_vm1, %v16_v3, 0.0  ;;  %v17_v7 = vld [vmem:[%s234_s0 + $0x18] sm:$0xff]  ;;  %v18_v10 = vld [vmem:[%s234_s0 + $0x20] sm:$0xff]  ;;  %v19_v13 = vld [vmem:[%s234_s0 + $0x28] sm:$0xff]  ;;  %v69_v15 = vmul.f32 %v14_v1, %v14_v1 }
   0x3   :  { %v34_v8 = vadd.f32 %v33_v5, %v32_v4  ;;  %v37_v9 = vsel %vm31_vm1, %v17_v7, 0.0  ;;  %v39_v12 = vsel %vm31_vm1, %v18_v10, 0.0  ;;  %v70_v16 = vmul.f32 %v15_v2, %v15_v2  ;;  %v20_v19 = vld [vmem:[%s234_s0 + $0x30] sm:$0xff]  ;;  %v21_v24 = vld [vmem:[%s234_s0 + $0x38] sm:$0xff]  ;;  %v22_v31 = vld [vmem:[%s234_s0 + $0x40] sm:$0xff] }
   0x4   :  { %v71_v17 = vmul.f32 %v16_v3, %v16_v3  ;;  %v41_v18 = vsel %vm31_vm1, %v19_v13, 0.0  ;;  %v72_v21 = vmul.f32 %v17_v7, %v17_v7  ;;  %v43_v22 = vsel %vm31_vm1, %v20_v19, 0.0  ;;  %v23_v37 = vld [vmem:[%s234_s0 + $0x48] sm:$0xff]  ;;  %v24_v43 = vld [vmem:[%s234_s0 + $0x50] sm:$0xff]  ;;  %v25_v49 = vld [vmem:[%s234_s0 + $0x58] sm:$0xff] }
   0x5   :  { %v36_v11 = vadd.f32 %v35_v6, %v34_v8  ;;  %v73_v23 = vmul.f32 %v18_v10, %v18_v10  ;;  %v85_v26 = vsel %vm31_vm1, %v69_v15, 0.0  ;;  %v86_v27 = vsel %vm31_vm1, %v70_v16, 0.0  ;;  %v26_v55 = vld [vmem:[%s234_s0 + $0x60] sm:$0xff]  ;;  %v27_v61 = vld [vmem:[%s234_s0 + $0x68] sm:$0xff]  ;;  %v28_v3 = vld [vmem:[%s234_s0 + $0x70] sm:$0xff] }
   0x6   :  { %v88_v28 = vsel %vm31_vm1, %v71_v17, 0.0  ;;  %v45_v29 = vsel %vm31_vm1, %v21_v24, 0.0  ;;  %v87_v30 = vadd.f32 %v86_v27, %v85_v26  ;;  %v74_v33 = vmul.f32 %v19_v13, %v19_v13 }
   0x7   :  { %v38_v14 = vadd.f32 %v37_v9, %v36_v11  ;;  %v90_v34 = vsel %vm31_vm1, %v72_v21, 0.0  ;;  %v47_v35 = vsel %vm31_vm1, %v22_v31, 0.0  ;;  %v75_v39 = vmul.f32 %v20_v19, %v20_v19  ;;  %v29_v9 = vld [vmem:[%s234_s0 + $0x78] sm:$0xff] }
   0x8   :  { %v89_v36 = vadd.f32 %v88_v28, %v87_v30  ;;  %v92_v40 = vsel %vm31_vm1, %v73_v23, 0.0  ;;  %v49_v41 = vsel %vm31_vm1, %v23_v37, 0.0  ;;  %v76_v45 = vmul.f32 %v21_v24, %v21_v24 }
   0x9   :  { %v40_v20 = vadd.f32 %v39_v12, %v38_v14  ;;  %v94_v46 = vsel %vm31_vm1, %v74_v33, 0.0  ;;  %v51_v47 = vsel %vm31_vm1, %v24_v43, 0.0  ;;  %v77_v51 = vmul.f32 %v22_v31, %v22_v31 }
   0xa   :  { %v91_v42 = vadd.f32 %v90_v34, %v89_v36  ;;  %v96_v52 = vsel %vm31_vm1, %v75_v39, 0.0  ;;  %v53_v53 = vsel %vm31_vm1, %v25_v49, 0.0  ;;  %v78_v57 = vmul.f32 %v23_v37, %v23_v37 }
   0xb   :  { %v42_v25 = vadd.f32 %v41_v18, %v40_v20  ;;  %v98_v58 = vsel %vm31_vm1, %v76_v45, 0.0  ;;  %v55_v59 = vsel %vm31_vm1, %v26_v55, 0.0  ;;  %v79_v63 = vmul.f32 %v24_v43, %v24_v43 }
   0xc   :  { %v93_v48 = vadd.f32 %v92_v40, %v91_v42  ;;  %v100_v0 = vsel %vm31_vm1, %v77_v51, 0.0  ;;  %v57_v1 = vsel %vm31_vm1, %v27_v61, 0.0  ;;  %v80_v5 = vmul.f32 %v25_v49, %v25_v49  ;;  %v30_v42 = vld [vmem:[%s235_s1] sm:$0x3] }
   0xd   :  { %v44_v32 = vadd.f32 %v43_v22, %v42_v25  ;;  %v102_v6 = vsel %vm31_vm1, %v78_v57, 0.0  ;;  %v59_v7 = vsel %vm31_vm1, %v28_v3, 0.0  ;;  %v81_v11 = vmul.f32 %v26_v55, %v26_v55 }
   0xe   :  { %v95_v54 = vadd.f32 %v94_v46, %v93_v48  ;;  %v104_v12 = vsel %vm31_vm1, %v79_v63, 0.0  ;;  %v61_v13 = vsel %vm31_vm1, %v29_v9, 0.0  ;;  %v82_v16 = vmul.f32 %v27_v61, %v27_v61 }
   0xf   :  { %v46_v38 = vadd.f32 %v45_v29, %v44_v32  ;;  %v106_v17 = vsel %vm31_vm1, %v80_v5, 0.0  ;;  %v83_v20 = vmul.f32 %v28_v3, %v28_v3  ;;  %v108_v21 = vsel %vm31_vm1, %v81_v11, 0.0 }
  0x10   :  { %v97_v60 = vadd.f32 %v96_v52, %v95_v54  ;;  %v84_v24 = vmul.f32 %v29_v9, %v29_v9  ;;  %v110_v25 = vsel %vm31_vm1, %v82_v16, 0.0 }
  0x11   :  { %v48_v44 = vadd.f32 %v47_v35, %v46_v38  ;;  %v112_v28 = vsel %vm31_vm1, %v83_v20, 0.0 }
  0x12   :  { %v99_v2 = vadd.f32 %v98_v58, %v97_v60  ;;  %v114_v30 = vsel %vm31_vm1, %v84_v24, 0.0 }
  0x13   :  { %v50_v50 = vadd.f32 %v49_v41, %v48_v44 }
  0x14   :  { %v101_v8 = vadd.f32 %v100_v0, %v99_v2 }
  0x15   :  { %v52_v56 = vadd.f32 %v51_v47, %v50_v50 }
  0x16   :  { %v103_v14 = vadd.f32 %v102_v6, %v101_v8 }
  0x17   :  { %v54_v62 = vadd.f32 %v53_v53, %v52_v56 }
  0x18   :  { %v105_v18 = vadd.f32 %v104_v12, %v103_v14 }
  0x19   :  { %v56_v4 = vadd.f32 %v55_v59, %v54_v62 }
  0x1a   :  { %v107_v22 = vadd.f32 %v106_v17, %v105_v18 }
  0x1b   :  { %v58_v10 = vadd.f32 %v57_v1, %v56_v4 }
  0x1c   :  { %v109_v26 = vadd.f32 %v108_v21, %v107_v22 }
  0x1d   :  { %v60_v15 = vadd.f32 %v59_v7, %v58_v10 }
  0x1e   :  { %v111_v29 = vadd.f32 %v110_v25, %v109_v26 }
  0x1f   :  { %v62_v19 = vadd.f32 %v61_v13, %v60_v15 }
  0x20   :  { %v113_v32 = vadd.f32 %v112_v28, %v111_v29 }
  0x21   :  { %v63_v23 = vrot.slane %v62_v19, 4 }
  0x22   :  { %v115_v33 = vadd.f32 %v114_v30, %v113_v32 }
  0x23   :  { %v64_v27 = vadd.f32 %v63_v23, %v62_v19 }
  0x24   :  { %v116_v35 = vrot.slane %v115_v33, 4 }
  0x25   :  { %v65_v31 = vrot.slane %v64_v27, 2 }
  0x26   :  { %v117_v36 = vadd.f32 %v116_v35, %v115_v33 }
  0x27   :  { %v66_v34 = vadd.f32 %v65_v31, %v64_v27 }
  0x28   :  { %v118_v38 = vrot.slane %v117_v36, 2 }
  0x29   :  { %v67_v37 = vrot.slane %v66_v34, 1 }
  0x2a   :  { %v119_v39 = vadd.f32 %v118_v38, %v117_v36 }
  0x2b   :  { %v68_v40 = vadd.f32 %v67_v37, %v66_v34 }
  0x2c   :  { %v120_v41 = vrot.slane %v119_v39, 1 }
  0x2e   :  { %v121_v43 = vadd.f32 %v120_v41, %v119_v39 }
  0x30   :  { %v123_v44 = vsel %vm122_vm2, %v68_v40, %v121_v43 }
  0x31   :  { %v124_v45 = vadd.f32 %v123_v44, %v30_v42 }
  0x33   :  { %126 = vst.msk [vmem:[%s235_s1] sm:$0x3] %vm12_vm0, %v124_v45 }

// kernel: asp_oc_forward.30
= control target key start
LH: loop header
LB: loop body
LE: loop exit
PB: predicated region body
PF: predicated region fallthrough
CT: control target
= control target key end

     0   :  { %vm45_vm0 = vcmask 523264   ;;  %vm239_vm1 = vcmask 261120   ;;  %s540_s1 = inlined_call_operand.vmem [shape: f32[64,32], index: 1, kind: input, shape index: {}]   ;;  %s541_s0 = inlined_call_operand.vmem [shape: f32[128,64], index: 0, kind: input, shape index: {}]   ;;  %s542_s2 = inlined_call_operand.vmem [shape: f32[1,32], index: 2, kind: input, shape index: {}]   ;;  %s543_s3 = inlined_call_operand.vmem [shape: f32[128,32], index: 3, kind: output, shape index: {}]  }
   0x1   :  { %v30_v0 = vld [vmem:[%s540_s1] sm:$0xff]  ;;  %v31_v1 = vld [vmem:[%s540_s1 + $0x8] sm:$0xff]  ;;  %v32_v2 = vld [vmem:[%s540_s1 + $0x10] sm:$0xff] }
   0x2   :  { %v341_v3 = vpack.c.bf16 %v31_v1, %v30_v0  ;;  %v33_v4 = vld [vmem:[%s540_s1 + $0x18] sm:$0xff]  ;;  %v34_v6 = vld [vmem:[%s540_s1 + $0x20] sm:$0xff]  ;;  %v35_v7 = vld [vmem:[%s540_s1 + $0x28] sm:$0xff] }
   0x3   :  { %v345_v5 = vpack.c.bf16 %v33_v4, %v32_v2  ;;  %v14_v8 = vld [vmem:[%s541_s0] sm:$0xff]  ;;  %v349_v10 = vpack.c.bf16 %v35_v7, %v34_v6  ;;  %v36_v11 = vld [vmem:[%s540_s1 + $0x30] sm:$0xff]  ;;  %v37_v12 = vld [vmem:[%s540_s1 + $0x38] sm:$0xff] }
   0x4   :  { %342 = vmatprep.subr.bf16.mxu0 %v341_v3  ;;  %357 = vmatprep.subr.bf16.mxu1 %v341_v3  ;;  %v22_v9 = vld [vmem:[%s541_s0 + $0x40] sm:$0xff]  ;;  %v353_v13 = vpack.c.bf16 %v37_v12, %v36_v11  ;;  %v15_v14 = vld [vmem:[%s541_s0 + $0x8] sm:$0xff]  ;;  %v16_v16 = vld [vmem:[%s541_s0 + $0x10] sm:$0xff] }
   0x5   :  { %344 = vmatpush3.bf16.msra.mxu0 %v341_v3  ;;  %361 = vmatpush3.bf16.msra.mxu1 %v341_v3  ;;  %v23_v15 = vld [vmem:[%s541_s0 + $0x48] sm:$0xff]  ;;  %v24_v17 = vld [vmem:[%s541_s0 + $0x50] sm:$0xff]  ;;  %v17_v18 = vld [vmem:[%s541_s0 + $0x18] sm:$0xff] }
   0x6   :  { %346 = vmatprep.subr.bf16.mxu0 %v345_v5  ;;  %358 = vmatprep.subr.bf16.mxu1 %v345_v5  ;;  %v25_v19 = vld [vmem:[%s541_s0 + $0x58] sm:$0xff]  ;;  %v18_v20 = vld [vmem:[%s541_s0 + $0x20] sm:$0xff]  ;;  %v19_v22 = vld [vmem:[%s541_s0 + $0x28] sm:$0xff] }
   0x7   :  { %317 = vmatprep.mubr.msk.f32.mxu0 %vm45_vm0, %v14_v8  ;;  %329 = vmatprep.mubr.msk.f32.mxu1 %vm45_vm0, %v22_v9  ;;  %v26_v21 = vld [vmem:[%s541_s0 + $0x60] sm:$0xff]  ;;  %v27_v23 = vld [vmem:[%s541_s0 + $0x68] sm:$0xff]  ;;  %v20_v24 = vld [vmem:[%s541_s0 + $0x30] sm:$0xff] }
   0x8   :  { %v28_v25 = vld [vmem:[%s541_s0 + $0x70] sm:$0xff]  ;;  %v21_v26 = vld [vmem:[%s541_s0 + $0x38] sm:$0xff]  ;;  %v260_v28 = vld [vmem:[%s542_s2] ss:$0 sm:$0xff] }
   0x9   :  { %348 = vmatpush3.bf16.msra.mxu0 %v345_v5  ;;  %362 = vmatpush3.bf16.msra.mxu1 %v345_v5  ;;  %v29_v27 = vld [vmem:[%s541_s0 + $0x78] sm:$0xff] }
   0xa   :  { %350 = vmatprep.subr.bf16.mxu0 %v349_v10  ;;  %359 = vmatprep.subr.bf16.mxu1 %v349_v10 }
   0xd   :  { %352 = vmatpush3.bf16.msra.mxu0 %v349_v10  ;;  %363 = vmatpush3.bf16.msra.mxu1 %v349_v10 }
   0xe   :  { %354 = vmatprep.subr.bf16.mxu0 %v353_v13  ;;  %360 = vmatprep.subr.bf16.mxu1 %v353_v13 }
  0x11   :  { %356 = vmatpush3.bf16.msra.mxu0 %v353_v13  ;;  %364 = vmatpush3.bf16.msra.mxu1 %v353_v13 }
  0x14   :  { %318 = vmatmul.mubr.msk.f32.vlgmr.msra.gmra.mrb[0].mxu0 %vm45_vm0, %v15_v14  ;;  %330 = vmatmul.mubr.msk.f32.vlgmr.msra.gmra.mrb[0].mxu1 %vm45_vm0, %v23_v15 }
  0x15   :  { %320 = vmatprep.mubr.msk.f32.mxu0 %vm45_vm0, %v16_v16  ;;  %332 = vmatprep.mubr.msk.f32.mxu1 %vm45_vm0, %v24_v17 }
  0x18   :  { %321 = vmatmul.mubr.msk.f32.gmra.mrb[2].mxu0 %vm45_vm0, %v17_v18  ;;  %333 = vmatmul.mubr.msk.f32.gmra.mrb[2].mxu1 %vm45_vm0, %v25_v19 }
  0x19   :  { %323 = vmatprep.mubr.msk.f32.mxu0 %vm45_vm0, %v18_v20  ;;  %335 = vmatprep.mubr.msk.f32.mxu1 %vm45_vm0, %v26_v21 }
  0x1c   :  { %324 = vmatmul.mubr.msk.f32.gmra.mrb[4].mxu0 %vm45_vm0, %v19_v22  ;;  %336 = vmatmul.mubr.msk.f32.gmra.mrb[4].mxu1 %vm45_vm0, %v27_v23 }
  0x1d   :  { %326 = vmatprep.mubr.msk.f32.mxu0 %vm45_vm0, %v20_v24  ;;  %338 = vmatprep.mubr.msk.f32.mxu1 %vm45_vm0, %v28_v25 }
  0x20   :  { %327 = vmatmul.mubr.msk.f32.gmra.mrb[6].mxu0 %vm45_vm0, %v21_v26  ;;  %339 = vmatmul.mubr.msk.f32.gmra.mrb[6].mxu1 %vm45_vm0, %v29_v27 }
  0xe7   :  { %v319_v29 = vpop.f32.mrb[0].mxu0  ;;  %v331_v30 = vpop.f32.mrb[0].mxu1 }
  0xe8   :  { %v166_v31 = vadd.f32 %v319_v29, %v260_v28  ;;  %v206_v32 = vadd.f32 %v331_v30, %v260_v28  ;;  %v160_v33 = vpop.f32.mrb[1].mxu0  ;;  %v200_v34 = vpop.f32.mrb[1].mxu1 }
  0xe9   :  { %v161_v35 = vadd.f32 %v260_v28, %v160_v33  ;;  %v201_v36 = vadd.f32 %v260_v28, %v200_v34 }
  0xea   :  { %241 = vst.msk [vmem:[%s543_s3 + $0x8] sm:$0xff] %vm239_vm1, %v166_v31  ;;  %249 = vst.msk [vmem:[%s543_s3 + $0x48] sm:$0xff] %vm239_vm1, %v206_v32 }
  0xeb   :  { %240 = vst.msk [vmem:[%s543_s3] sm:$0xff] %vm239_vm1, %v161_v35  ;;  %248 = vst.msk [vmem:[%s543_s3 + $0x40] sm:$0xff] %vm239_vm1, %v201_v36  ;;  %v322_v37 = vpop.f32.mrb[2].mxu0  ;;  %v334_v38 = vpop.f32.mrb[2].mxu1 }
  0xec   :  { %v176_v39 = vadd.f32 %v322_v37, %v260_v28  ;;  %v216_v40 = vadd.f32 %v334_v38, %v260_v28  ;;  %v170_v41 = vpop.f32.mrb[3].mxu0  ;;  %v210_v42 = vpop.f32.mrb[3].mxu1 }
  0xed   :  { %v171_v43 = vadd.f32 %v260_v28, %v170_v41  ;;  %v211_v44 = vadd.f32 %v260_v28, %v210_v42 }
  0xee   :  { %243 = vst.msk [vmem:[%s543_s3 + $0x18] sm:$0xff] %vm239_vm1, %v176_v39  ;;  %251 = vst.msk [vmem:[%s543_s3 + $0x58] sm:$0xff] %vm239_vm1, %v216_v40 }
  0xef   :  { %242 = vst.msk [vmem:[%s543_s3 + $0x10] sm:$0xff] %vm239_vm1, %v171_v43  ;;  %250 = vst.msk [vmem:[%s543_s3 + $0x50] sm:$0xff] %vm239_vm1, %v211_v44  ;;  %v325_v45 = vpop.f32.mrb[4].mxu0  ;;  %v337_v46 = vpop.f32.mrb[4].mxu1 }
  0xf0   :  { %v186_v47 = vadd.f32 %v325_v45, %v260_v28  ;;  %v226_v48 = vadd.f32 %v337_v46, %v260_v28  ;;  %v180_v49 = vpop.f32.mrb[5].mxu0  ;;  %v220_v50 = vpop.f32.mrb[5].mxu1 }
  0xf1   :  { %v181_v51 = vadd.f32 %v260_v28, %v180_v49  ;;  %v221_v52 = vadd.f32 %v260_v28, %v220_v50 }
  0xf2   :  { %245 = vst.msk [vmem:[%s543_s3 + $0x28] sm:$0xff] %vm239_vm1, %v186_v47  ;;  %253 = vst.msk [vmem:[%s543_s3 + $0x68] sm:$0xff] %vm239_vm1, %v226_v48 }
  0xf3   :  { %244 = vst.msk [vmem:[%s543_s3 + $0x20] sm:$0xff] %vm239_vm1, %v181_v51  ;;  %252 = vst.msk [vmem:[%s543_s3 + $0x60] sm:$0xff] %vm239_vm1, %v221_v52  ;;  %v328_v53 = vpop.f32.mrb[6].mxu0  ;;  %v340_v54 = vpop.f32.mrb[6].mxu1 }
  0xf4   :  { %v196_v55 = vadd.f32 %v328_v53, %v260_v28  ;;  %v236_v56 = vadd.f32 %v340_v54, %v260_v28  ;;  %v190_v57 = vpop.f32.mrb[7].mxu0  ;;  %v230_v58 = vpop.f32.mrb[7].mxu1 }
  0xf5   :  { %v191_v59 = vadd.f32 %v260_v28, %v190_v57  ;;  %v231_v60 = vadd.f32 %v260_v28, %v230_v58 }
  0xf6   :  { %247 = vst.msk [vmem:[%s543_s3 + $0x38] sm:$0xff] %vm239_vm1, %v196_v55  ;;  %255 = vst.msk [vmem:[%s543_s3 + $0x78] sm:$0xff] %vm239_vm1, %v236_v56 }
  0xf7   :  { %246 = vst.msk [vmem:[%s543_s3 + $0x30] sm:$0xff] %vm239_vm1, %v191_v59  ;;  %254 = vst.msk [vmem:[%s543_s3 + $0x70] sm:$0xff] %vm239_vm1, %v231_v60 }

// kernel: asp_oc_forward.32
= control target key start
LH: loop header
LB: loop body
LE: loop exit
PB: predicated region body
PF: predicated region fallthrough
CT: control target
= control target key end

     0   :  { %vm108_vm0 = vcmask 261120   ;;  %s305_s0 = inlined_call_operand.vmem [shape: f32[128,32], index: 0, kind: input, shape index: {}]   ;;  %s306_s1 = inlined_call_operand.vmem [shape: f32[1,32], index: 1, kind: input, shape index: {}]   ;;  %s307_s2 = inlined_call_operand.vmem [shape: f32[1,32], index: 2, kind: input, shape index: {}]   ;;  %s308_s3 = inlined_call_operand.vmem [shape: f32[128,32], index: 3, kind: output, shape index: {}]  }
   0x1   :  { %v14_v0 = vld [vmem:[%s305_s0] sm:$0xff]  ;;  %v15_v4 = vld [vmem:[%s305_s0 + $0x8] sm:$0xff]  ;;  %v16_v5 = vld [vmem:[%s305_s0 + $0x10] sm:$0xff] }
   0x2   :  { %v157_v1 = vld [vmem:[%s306_s1] ss:$0 sm:$0xff]  ;;  %v17_v6 = vld [vmem:[%s305_s0 + $0x18] sm:$0xff]  ;;  %v19_v11 = vld [vmem:[%s305_s0 + $0x28] sm:$0xff] }
   0x3   :  { %v162_v2 = vld [vmem:[%s307_s2] ss:$0 sm:$0xff]  ;;  %v37_v3 = vmul.f32 %v157_v1, %v14_v0  ;;  %v38_v7 = vmul.f32 %v157_v1, %v15_v4  ;;  %v39_v8 = vmul.f32 %v157_v1, %v16_v5  ;;  %v40_v9 = vmul.f32 %v157_v1, %v17_v6  ;;  %v20_v12 = vld [vmem:[%s305_s0 + $0x30] sm:$0xff]  ;;  %v21_v17 = vld [vmem:[%s305_s0 + $0x38] sm:$0xff] }
   0x4   :  { %v18_v10 = vld [vmem:[%s305_s0 + $0x20] sm:$0xff]  ;;  %v42_v15 = vmul.f32 %v157_v1, %v19_v11  ;;  %v43_v16 = vmul.f32 %v157_v1, %v20_v12  ;;  %v44_v21 = vmul.f32 %v157_v1, %v21_v17  ;;  %v23_v27 = vld [vmem:[%s305_s0 + $0x48] sm:$0xff]  ;;  %v24_v28 = vld [vmem:[%s305_s0 + $0x50] sm:$0xff] }
   0x5   :  { %v60_v13 = vadd.f32 %v162_v2, %v37_v3  ;;  %v41_v14 = vmul.f32 %v157_v1, %v18_v10  ;;  %v61_v18 = vadd.f32 %v162_v2, %v38_v7  ;;  %v62_v19 = vadd.f32 %v162_v2, %v39_v8  ;;  %v22_v22 = vld [vmem:[%s305_s0 + $0x40] sm:$0xff]  ;;  %v25_v29 = vld [vmem:[%s305_s0 + $0x58] sm:$0xff]  ;;  %v27_v43 = vld [vmem:[%s305_s0 + $0x68] sm:$0xff] }
   0x6   :  { %v63_v20 = vadd.f32 %v162_v2, %v40_v9  ;;  %v65_v25 = vadd.f32 %v162_v2, %v42_v15  ;;  %v66_v26 = vadd.f32 %v162_v2, %v43_v16  ;;  %v67_v33 = vadd.f32 %v162_v2, %v44_v21  ;;  %v26_v42 = vld [vmem:[%s305_s0 + $0x60] sm:$0xff]  ;;  %v28_v44 = vld [vmem:[%s305_s0 + $0x70] sm:$0xff]  ;;  %v29_v49 = vld [vmem:[%s305_s0 + $0x78] sm:$0xff] }
   0x7   :  { %v76_v23 = vmul.f32 0.01, %v60_v13  ;;  %v64_v24 = vadd.f32 %v162_v2, %v41_v14  ;;  %v77_v30 = vmul.f32 0.01, %v61_v18  ;;  %v78_v31 = vmul.f32 0.01, %v62_v19 }
   0x8   :  { %v79_v32 = vmul.f32 0.01, %v63_v20  ;;  %v81_v36 = vmul.f32 0.01, %v65_v25  ;;  %v82_v37 = vmul.f32 0.01, %v66_v26  ;;  %v45_v48 = vmul.f32 %v157_v1, %v22_v22 }
   0x9   :  { %v92_v34 = vmax.f32 %v60_v13, %v76_v23  ;;  %v80_v35 = vmul.f32 0.01, %v64_v24  ;;  %v93_v38 = vmax.f32 %v61_v18, %v77_v30  ;;  %v94_v39 = vmax.f32 %v62_v19, %v78_v31 }
   0xa   :  { %v95_v40 = vmax.f32 %v63_v20, %v79_v32  ;;  %v83_v41 = vmul.f32 0.01, %v67_v33  ;;  %v97_v46 = vmax.f32 %v65_v25, %v81_v36  ;;  %v98_v47 = vmax.f32 %v66_v26, %v82_v37 }
   0xb   :  { %109 = vst.msk [vmem:[%s308_s3] sm:$0xff] %vm108_vm0, %v92_v34  ;;  %v96_v45 = vmax.f32 %v64_v24, %v80_v35  ;;  %110 = vst.msk [vmem:[%s308_s3 + $0x8] sm:$0xff] %vm108_vm0, %v93_v38  ;;  %v46_v51 = vmul.f32 %v157_v1, %v23_v27  ;;  %v47_v52 = vmul.f32 %v157_v1, %v24_v28 }
   0xc   :  { %111 = vst.msk [vmem:[%s308_s3 + $0x10] sm:$0xff] %vm108_vm0, %v94_v39  ;;  %112 = vst.msk [vmem:[%s308_s3 + $0x18] sm:$0xff] %vm108_vm0, %v95_v40  ;;  %v99_v50 = vmax.f32 %v67_v33, %v83_v41  ;;  %v48_v53 = vmul.f32 %v157_v1, %v25_v29  ;;  %v68_v54 = vadd.f32 %v162_v2, %v45_v48 }
   0xd   :  { %113 = vst.msk [vmem:[%s308_s3 + $0x20] sm:$0xff] %vm108_vm0, %v96_v45  ;;  %114 = vst.msk [vmem:[%s308_s3 + $0x28] sm:$0xff] %vm108_vm0, %v97_v46  ;;  %v49_v55 = vmul.f32 %v157_v1, %v26_v42  ;;  %v50_v56 = vmul.f32 %v157_v1, %v27_v43  ;;  %v51_v57 = vmul.f32 %v157_v1, %v28_v44 }
   0xe   :  { %115 = vst.msk [vmem:[%s308_s3 + $0x30] sm:$0xff] %vm108_vm0, %v98_v47  ;;  %116 = vst.msk [vmem:[%s308_s3 + $0x38] sm:$0xff] %vm108_vm0, %v99_v50  ;;  %v69_v58 = vadd.f32 %v162_v2, %v46_v51  ;;  %v70_v59 = vadd.f32 %v162_v2, %v47_v52  ;;  %v71_v60 = vadd.f32 %v162_v2, %v48_v53  ;;  %v84_v62 = vmul.f32 0.01, %v68_v54 }
   0xf   :  { %v52_v61 = vmul.f32 %v157_v1, %v29_v49  ;;  %v72_v63 = vadd.f32 %v162_v2, %v49_v55  ;;  %v73_v0 = vadd.f32 %v162_v2, %v50_v56  ;;  %v74_v3 = vadd.f32 %v162_v2, %v51_v57 }
  0x10   :  { %v85_v4 = vmul.f32 0.01, %v69_v58  ;;  %v86_v5 = vmul.f32 0.01, %v70_v59  ;;  %v87_v6 = vmul.f32 0.01, %v71_v60  ;;  %v100_v8 = vmax.f32 %v68_v54, %v84_v62 }
  0x11   :  { %v75_v7 = vadd.f32 %v162_v2, %v52_v61  ;;  %v88_v9 = vmul.f32 0.01, %v72_v63  ;;  %v89_v10 = vmul.f32 0.01, %v73_v0  ;;  %v90_v11 = vmul.f32 0.01, %v74_v3 }
  0x12   :  { %v101_v12 = vmax.f32 %v69_v58, %v85_v4  ;;  %v102_v13 = vmax.f32 %v70_v59, %v86_v5  ;;  %v103_v14 = vmax.f32 %v71_v60, %v87_v6  ;;  %117 = vst.msk [vmem:[%s308_s3 + $0x40] sm:$0xff] %vm108_vm0, %v100_v8 }
  0x13   :  { %v91_v1 = vmul.f32 0.01, %v75_v7  ;;  %v104_v15 = vmax.f32 %v72_v63, %v88_v9  ;;  %v105_v16 = vmax.f32 %v73_v0, %v89_v10  ;;  %v106_v17 = vmax.f32 %v74_v3, %v90_v11 }
  0x14   :  { %118 = vst.msk [vmem:[%s308_s3 + $0x48] sm:$0xff] %vm108_vm0, %v101_v12  ;;  %119 = vst.msk [vmem:[%s308_s3 + $0x50] sm:$0xff] %vm108_vm0, %v102_v13 }
  0x15   :  { %120 = vst.msk [vmem:[%s308_s3 + $0x58] sm:$0xff] %vm108_vm0, %v103_v14  ;;  %v107_v2 = vmax.f32 %v75_v7, %v91_v1  ;;  %121 = vst.msk [vmem:[%s308_s3 + $0x60] sm:$0xff] %vm108_vm0, %v104_v15 }
  0x16   :  { %122 = vst.msk [vmem:[%s308_s3 + $0x68] sm:$0xff] %vm108_vm0, %v105_v16  ;;  %123 = vst.msk [vmem:[%s308_s3 + $0x70] sm:$0xff] %vm108_vm0, %v106_v17 }
  0x17   :  { %124 = vst.msk [vmem:[%s308_s3 + $0x78] sm:$0xff] %vm108_vm0, %v107_v2 }

// kernel: asp_oc_forward.33
= control target key start
LH: loop header
LB: loop body
LE: loop exit
PB: predicated region body
PF: predicated region fallthrough
CT: control target
= control target key end

     0   :  { %vm45_vm0 = vcmask 523264   ;;  %s539_s1 = inlined_call_operand.vmem [shape: f32[64,64], index: 1, kind: input, shape index: {}]   ;;  %s540_s0 = inlined_call_operand.vmem [shape: f32[128,64], index: 0, kind: input, shape index: {}]   ;;  %s541_s2 = inlined_call_operand.vmem [shape: f32[1,64], index: 2, kind: input, shape index: {}]   ;;  %s542_s3 = inlined_call_operand.vmem [shape: f32[128,64], index: 3, kind: output, shape index: {}]  }
   0x1   :  { %v30_v0 = vld [vmem:[%s539_s1] sm:$0xff]  ;;  %v31_v1 = vld [vmem:[%s539_s1 + $0x8] sm:$0xff]  ;;  %v32_v2 = vld [vmem:[%s539_s1 + $0x10] sm:$0xff] }
   0x2   :  { %v340_v3 = vpack.c.bf16 %v31_v1, %v30_v0  ;;  %v33_v4 = vld [vmem:[%s539_s1 + $0x18] sm:$0xff]  ;;  %v34_v6 = vld [vmem:[%s539_s1 + $0x20] sm:$0xff]  ;;  %v35_v7 = vld [vmem:[%s539_s1 + $0x28] sm:$0xff] }
   0x3   :  { %v344_v5 = vpack.c.bf16 %v33_v4, %v32_v2  ;;  %v14_v8 = vld [vmem:[%s540_s0] sm:$0xff]  ;;  %v348_v10 = vpack.c.bf16 %v35_v7, %v34_v6  ;;  %v36_v11 = vld [vmem:[%s539_s1 + $0x30] sm:$0xff]  ;;  %v37_v12 = vld [vmem:[%s539_s1 + $0x38] sm:$0xff] }
   0x4   :  { %341 = vmatprep.subr.bf16.mxu0 %v340_v3  ;;  %356 = vmatprep.subr.bf16.mxu1 %v340_v3  ;;  %v22_v9 = vld [vmem:[%s540_s0 + $0x40] sm:$0xff]  ;;  %v352_v13 = vpack.c.bf16 %v37_v12, %v36_v11  ;;  %v15_v14 = vld [vmem:[%s540_s0 + $0x8] sm:$0xff]  ;;  %v16_v16 = vld [vmem:[%s540_s0 + $0x10] sm:$0xff] }
   0x5   :  { %343 = vmatpush3.bf16.msra.mxu0 %v340_v3  ;;  %360 = vmatpush3.bf16.msra.mxu1 %v340_v3  ;;  %v23_v15 = vld [vmem:[%s540_s0 + $0x48] sm:$0xff]  ;;  %v24_v17 = vld [vmem:[%s540_s0 + $0x50] sm:$0xff]  ;;  %v17_v18 = vld [vmem:[%s540_s0 + $0x18] sm:$0xff] }
   0x6   :  { %345 = vmatprep.subr.bf16.mxu0 %v344_v5  ;;  %357 = vmatprep.subr.bf16.mxu1 %v344_v5  ;;  %v25_v19 = vld [vmem:[%s540_s0 + $0x58] sm:$0xff]  ;;  %v18_v20 = vld [vmem:[%s540_s0 + $0x20] sm:$0xff]  ;;  %v19_v22 = vld [vmem:[%s540_s0 + $0x28] sm:$0xff] }
   0x7   :  { %316 = vmatprep.mubr.msk.f32.mxu0 %vm45_vm0, %v14_v8  ;;  %328 = vmatprep.mubr.msk.f32.mxu1 %vm45_vm0, %v22_v9  ;;  %v26_v21 = vld [vmem:[%s540_s0 + $0x60] sm:$0xff]  ;;  %v27_v23 = vld [vmem:[%s540_s0 + $0x68] sm:$0xff]  ;;  %v20_v24 = vld [vmem:[%s540_s0 + $0x30] sm:$0xff] }
   0x8   :  { %v28_v25 = vld [vmem:[%s540_s0 + $0x70] sm:$0xff]  ;;  %v21_v26 = vld [vmem:[%s540_s0 + $0x38] sm:$0xff]  ;;  %v259_v28 = vld [vmem:[%s541_s2] ss:$0 sm:$0xff] }
   0x9   :  { %347 = vmatpush3.bf16.msra.mxu0 %v344_v5  ;;  %361 = vmatpush3.bf16.msra.mxu1 %v344_v5  ;;  %v29_v27 = vld [vmem:[%s540_s0 + $0x78] sm:$0xff] }
   0xa   :  { %349 = vmatprep.subr.bf16.mxu0 %v348_v10  ;;  %358 = vmatprep.subr.bf16.mxu1 %v348_v10 }
   0xd   :  { %351 = vmatpush3.bf16.msra.mxu0 %v348_v10  ;;  %362 = vmatpush3.bf16.msra.mxu1 %v348_v10 }
   0xe   :  { %353 = vmatprep.subr.bf16.mxu0 %v352_v13  ;;  %359 = vmatprep.subr.bf16.mxu1 %v352_v13 }
  0x11   :  { %355 = vmatpush3.bf16.msra.mxu0 %v352_v13  ;;  %363 = vmatpush3.bf16.msra.mxu1 %v352_v13 }
  0x14   :  { %317 = vmatmul.mubr.msk.f32.vlgmr.msra.gmra.mrb[0].mxu0 %vm45_vm0, %v15_v14  ;;  %329 = vmatmul.mubr.msk.f32.vlgmr.msra.gmra.mrb[0].mxu1 %vm45_vm0, %v23_v15 }
  0x15   :  { %319 = vmatprep.mubr.msk.f32.mxu0 %vm45_vm0, %v16_v16  ;;  %331 = vmatprep.mubr.msk.f32.mxu1 %vm45_vm0, %v24_v17 }
  0x18   :  { %320 = vmatmul.mubr.msk.f32.gmra.mrb[2].mxu0 %vm45_vm0, %v17_v18  ;;  %332 = vmatmul.mubr.msk.f32.gmra.mrb[2].mxu1 %vm45_vm0, %v25_v19 }
  0x19   :  { %322 = vmatprep.mubr.msk.f32.mxu0 %vm45_vm0, %v18_v20  ;;  %334 = vmatprep.mubr.msk.f32.mxu1 %vm45_vm0, %v26_v21 }
  0x1c   :  { %323 = vmatmul.mubr.msk.f32.gmra.mrb[4].mxu0 %vm45_vm0, %v19_v22  ;;  %335 = vmatmul.mubr.msk.f32.gmra.mrb[4].mxu1 %vm45_vm0, %v27_v23 }
  0x1d   :  { %325 = vmatprep.mubr.msk.f32.mxu0 %vm45_vm0, %v20_v24  ;;  %337 = vmatprep.mubr.msk.f32.mxu1 %vm45_vm0, %v28_v25 }
  0x20   :  { %326 = vmatmul.mubr.msk.f32.gmra.mrb[6].mxu0 %vm45_vm0, %v21_v26  ;;  %338 = vmatmul.mubr.msk.f32.gmra.mrb[6].mxu1 %vm45_vm0, %v29_v27 }
  0xe7   :  { %v318_v29 = vpop.f32.mrb[0].mxu0  ;;  %v330_v30 = vpop.f32.mrb[0].mxu1 }
  0xe8   :  { %v166_v31 = vadd.f32 %v318_v29, %v259_v28  ;;  %v206_v32 = vadd.f32 %v330_v30, %v259_v28  ;;  %v160_v33 = vpop.f32.mrb[1].mxu0  ;;  %v200_v34 = vpop.f32.mrb[1].mxu1 }
  0xe9   :  { %v161_v35 = vadd.f32 %v259_v28, %v160_v33  ;;  %v201_v36 = vadd.f32 %v259_v28, %v200_v34 }
  0xea   :  { %240 = vst.msk [vmem:[%s542_s3 + $0x8] sm:$0xff] %vm45_vm0, %v166_v31  ;;  %248 = vst.msk [vmem:[%s542_s3 + $0x48] sm:$0xff] %vm45_vm0, %v206_v32 }
  0xeb   :  { %239 = vst.msk [vmem:[%s542_s3] sm:$0xff] %vm45_vm0, %v161_v35  ;;  %247 = vst.msk [vmem:[%s542_s3 + $0x40] sm:$0xff] %vm45_vm0, %v201_v36  ;;  %v321_v37 = vpop.f32.mrb[2].mxu0  ;;  %v333_v38 = vpop.f32.mrb[2].mxu1 }
  0xec   :  { %v176_v39 = vadd.f32 %v321_v37, %v259_v28  ;;  %v216_v40 = vadd.f32 %v333_v38, %v259_v28  ;;  %v170_v41 = vpop.f32.mrb[3].mxu0  ;;  %v210_v42 = vpop.f32.mrb[3].mxu1 }
  0xed   :  { %v171_v43 = vadd.f32 %v259_v28, %v170_v41  ;;  %v211_v44 = vadd.f32 %v259_v28, %v210_v42 }
  0xee   :  { %242 = vst.msk [vmem:[%s542_s3 + $0x18] sm:$0xff] %vm45_vm0, %v176_v39  ;;  %250 = vst.msk [vmem:[%s542_s3 + $0x58] sm:$0xff] %vm45_vm0, %v216_v40 }
  0xef   :  { %241 = vst.msk [vmem:[%s542_s3 + $0x10] sm:$0xff] %vm45_vm0, %v171_v43  ;;  %249 = vst.msk [vmem:[%s542_s3 + $0x50] sm:$0xff] %vm45_vm0, %v211_v44  ;;  %v324_v45 = vpop.f32.mrb[4].mxu0  ;;  %v336_v46 = vpop.f32.mrb[4].mxu1 }
  0xf0   :  { %v186_v47 = vadd.f32 %v324_v45, %v259_v28  ;;  %v226_v48 = vadd.f32 %v336_v46, %v259_v28  ;;  %v180_v49 = vpop.f32.mrb[5].mxu0  ;;  %v220_v50 = vpop.f32.mrb[5].mxu1 }
  0xf1   :  { %v181_v51 = vadd.f32 %v259_v28, %v180_v49  ;;  %v221_v52 = vadd.f32 %v259_v28, %v220_v50 }
  0xf2   :  { %244 = vst.msk [vmem:[%s542_s3 + $0x28] sm:$0xff] %vm45_vm0, %v186_v47  ;;  %252 = vst.msk [vmem:[%s542_s3 + $0x68] sm:$0xff] %vm45_vm0, %v226_v48 }
  0xf3   :  { %243 = vst.msk [vmem:[%s542_s3 + $0x20] sm:$0xff] %vm45_vm0, %v181_v51  ;;  %251 = vst.msk [vmem:[%s542_s3 + $0x60] sm:$0xff] %vm45_vm0, %v221_v52  ;;  %v327_v53 = vpop.f32.mrb[6].mxu0  ;;  %v339_v54 = vpop.f32.mrb[6].mxu1 }
  0xf4   :  { %v196_v55 = vadd.f32 %v327_v53, %v259_v28  ;;  %v236_v56 = vadd.f32 %v339_v54, %v259_v28  ;;  %v190_v57 = vpop.f32.mrb[7].mxu0  ;;  %v230_v58 = vpop.f32.mrb[7].mxu1 }
  0xf5   :  { %v191_v59 = vadd.f32 %v259_v28, %v190_v57  ;;  %v231_v60 = vadd.f32 %v259_v28, %v230_v58 }
  0xf6   :  { %246 = vst.msk [vmem:[%s542_s3 + $0x38] sm:$0xff] %vm45_vm0, %v196_v55  ;;  %254 = vst.msk [vmem:[%s542_s3 + $0x78] sm:$0xff] %vm45_vm0, %v236_v56 }
  0xf7   :  { %245 = vst.msk [vmem:[%s542_s3 + $0x30] sm:$0xff] %vm45_vm0, %v191_v59  ;;  %253 = vst.msk [vmem:[%s542_s3 + $0x70] sm:$0xff] %vm45_vm0, %v231_v60 }

// kernel: asp_oc_forward.34
= control target key start
LH: loop header
LB: loop body
LE: loop exit
PB: predicated region body
PF: predicated region fallthrough
CT: control target
= control target key end

     0   :  { %s842_s9 = smov 0   ;;  %s957_s0 = inlined_call_operand.vmem [shape: f32[2,64,32], index: 0, kind: input, shape index: {}]   ;;  %s958_s1 = inlined_call_operand.vmem [shape: f32[2,64,64], index: 1, kind: input, shape index: {}]   ;;  %s959_s2 = inlined_call_operand.vmem [shape: f32[2,64,64], index: 2, kind: output, shape index: {}]  }
   0x1 LB: > { %s611_s10 = sadd.s32 4294967295, %s825_s9   ;;  %p615_p0 = scmp.ge.s32.totalorder %s825_s9, 1  ;;  %s825_s9 = sphi %s842_s9, %s12_s9  }
   0x2   : > { %p122_p1 = scmp.lt.s32.totalorder %s825_s9, 3 }
   0x4   : > { %p123_p2 = pnand %p615_p0, %p122_p1 }
   0x5   : > { %p149_p3 = scmp.lt.s32.totalorder (!%p123_p2), %s611_s10, 1  ;;  %vm172_vm0 = vcmask (!%p123_p2), 261120   ;;  %vm310_vm2 = vcmask (!%p123_p2), 523264  }
   0x6   : > { %126 = sbr.rel (%p123_p2) target bundleno = 810 (0x32a), region = 28  ;;  %vm858_vm1 = vmpackc.low (!%p123_p2), %vm172_vm0, %vm172_vm0 }
   0xd   : > { %s963_s10 = smov (!%p149_p3, %s611_s10), 1 }
   0xe   : > { %s850_s11 = sshll.u32 %s963_s10, 6 }
   0xf   : > { %s153_s14 = scalar_lea.vmem %s957_s0, %s850_s11  ;;  %s158_s17 = scalar_lea.vmem %s958_s1, %s850_s11 }
  0x10   : > { %v164_v1 = vld [vmem:[%s153_s14] sm:$0xff]  ;;  %v165_v2 = vld [vmem:[%s153_s14 + $0x8] sm:$0xff]  ;;  %v166_v3 = vld [vmem:[%s153_s14 + $0x10] sm:$0xff]  ;;  %s163_s20 = scalar_lea.vmem %s959_s2, %s850_s11 }
  0x11   : > { %v739_v4 = vpack.c.bf16 %v165_v2, %v164_v1  ;;  %v167_v5 = vld [vmem:[%s153_s14 + $0x18] sm:$0xff]  ;;  %699 = vmatprep.mubr.msk.f32.mxu0 %vm172_vm0, %v164_v1  ;;  %v168_v7 = vld [vmem:[%s153_s14 + $0x20] sm:$0xff]  ;;  %v169_v8 = vld [vmem:[%s153_s14 + $0x28] sm:$0xff] }
  0x12   : > { %v745_v6 = vpack.c.bf16 %v167_v5, %v166_v3  ;;  %v751_v9 = vpack.c.bf16 %v169_v8, %v168_v7  ;;  %v170_v10 = vld [vmem:[%s153_s14 + $0x30] sm:$0xff]  ;;  %v171_v11 = vld [vmem:[%s153_s14 + $0x38] sm:$0xff] }
  0x13   : > { %741 = vmatprep.subr.msk.bf16.mxu0 %vm858_vm1, %v739_v4  ;;  %v757_v12 = vpack.c.bf16 %v171_v11, %v170_v10 }
  0x14   : > { %744 = vmatpush3.bf16.xpose.msk.msra.mxu0 %vm858_vm1, %v739_v4 }
  0x15   : > { %747 = vmatprep.subr.msk.bf16.mxu0 %vm858_vm1, %v745_v6 }
  0x1c   : > { %750 = vmatpush3.bf16.xpose.msk.msra.mxu0 %vm858_vm1, %v745_v6 }
  0x1d   : > { %753 = vmatprep.subr.msk.bf16.mxu0 %vm858_vm1, %v751_v9 }
  0x24   : > { %756 = vmatpush3.bf16.xpose.msk.msra.mxu0 %vm858_vm1, %v751_v9 }
  0x25   : > { %759 = vmatprep.subr.msk.bf16.mxu0 %vm858_vm1, %v757_v12 }
  0x2c   : > { %762 = vmatpush3.bf16.xpose.msk.msra.mxu0 %vm858_vm1, %v757_v12  ;;  %v400_v12 = vld [vmem:[%s158_s17 + $0x8] sm:$0xff] }
  0x33   : > { %700 = vmatmul.mubr.msk.f32.vlgmr.msra.gmra.mrb[0].mxu0 %vm172_vm0, %v165_v2 }
  0x34   : > { %702 = vmatprep.mubr.msk.f32.mxu0 %vm172_vm0, %v166_v3 }
  0x37   : > { %703 = vmatmul.mubr.msk.f32.gmra.mrb[2].mxu0 %vm172_vm0, %v167_v5 }
  0x38   : > { %705 = vmatprep.mubr.msk.f32.mxu0 %vm172_vm0, %v168_v7 }
  0x3b   : > { %706 = vmatmul.mubr.msk.f32.gmra.mrb[4].mxu0 %vm172_vm0, %v169_v8 }
  0x3c   : > { %708 = vmatprep.mubr.msk.f32.mxu0 %vm172_vm0, %v170_v10 }
  0x3f   : > { %709 = vmatmul.mubr.msk.f32.gmra.mrb[6].mxu0 %vm172_vm0, %v171_v11  ;;  %v399_v11 = vld [vmem:[%s158_s17] sm:$0xff] }
 0x106   : > { %v701_v13 = vpop.f32.mrb[0].mxu0 }
 0x107   : > { %v263_v14 = vpop.f32.mrb[1].mxu0  ;;  %v303_v16 = vmul.f32 0.17677669, %v701_v13 }
 0x108   : > { %v302_v15 = vmul.f32 0.17677669, %v263_v14  ;;  %v763_v14 = vpack.c.bf16 %v400_v12, %v399_v11 }
 0x109   : > { %v314_v23 = vsel %vm310_vm2, %v303_v16, -inf }
 0x10a   : > { %v704_v17 = vpop.f32.mrb[2].mxu0  ;;  %v311_v18 = vsel %vm310_vm2, %v302_v15, -inf  ;;  %764 = vmatprep.subr.bf16.mxu1 %v763_v14 }
 0x10b   : > { %312 = vmax.xlane.f32.xlu0 %v311_v18  ;;  %v273_v19 = vpop.f32.mrb[3].mxu0  ;;  %v305_v21 = vmul.f32 0.17677669, %v704_v17  ;;  %766 = vmatpush3.bf16.msra.mxu1 %v763_v14  ;;  %v402_v17 = vld [vmem:[%s158_s17 + $0x18] sm:$0xff] }
 0x10c   : > { %v304_v20 = vmul.f32 0.17677669, %v273_v19  ;;  %v403_v19 = vld [vmem:[%s158_s17 + $0x20] sm:$0xff] }
 0x10d   : > { %v320_v29 = vsel %vm310_vm2, %v305_v21, -inf }
 0x10e   : > { %v707_v22 = vpop.f32.mrb[4].mxu0  ;;  %v317_v24 = vsel %vm310_vm2, %v304_v20, -inf }
 0x10f   : > { %315 = vmax.xlane.f32.xlu0 %v314_v23  ;;  %318 = vmax.xlane.f32.xlu1 %v317_v24  ;;  %v283_v25 = vpop.f32.mrb[5].mxu0  ;;  %v307_v27 = vmul.f32 0.17677669, %v707_v22  ;;  %v405_v22 = vld [vmem:[%s158_s17 + $0x30] sm:$0xff]  ;;  %v406_v23 = vld [vmem:[%s158_s17 + $0x38] sm:$0xff] }
 0x110   : > { %v306_v26 = vmul.f32 0.17677669, %v283_v25  ;;  %v775_v24 = vpack.c.bf16 %v406_v23, %v405_v22 }
 0x111   : > { %v326_v34 = vsel %vm310_vm2, %v307_v27, -inf }
 0x112   : > { %v710_v28 = vpop.f32.mrb[6].mxu0  ;;  %v323_v30 = vsel %vm310_vm2, %v306_v26, -inf }
 0x113   : > { %321 = vmax.xlane.f32.xlu1 %v320_v29  ;;  %324 = vmax.xlane.f32.xlu0 %v323_v30  ;;  %v293_v31 = vpop.f32.mrb[7].mxu0  ;;  %v309_v33 = vmul.f32 0.17677669, %v710_v28 }
 0x114   : > { %v308_v32 = vmul.f32 0.17677669, %v293_v31 }
 0x115   : > { %v332_v36 = vsel %vm310_vm2, %v309_v33, -inf }
 0x116   : > { %v329_v35 = vsel %vm310_vm2, %v308_v32, -inf }
 0x117   : > { %327 = vmax.xlane.f32.xlu1 %v326_v34  ;;  %330 = vmax.xlane.f32.xlu0 %v329_v35 }
 0x11b   : > { %333 = vmax.xlane.f32.xlu1 %v332_v36 }
 0x198   : > { %v313_v37 = vpop.xlane.xlu0 %312 }
 0x199   : > { %v335_v38 = vsub.f32 %v302_v15, %v313_v37 }
 0x19b   : > { %v343_v39 = vmul.f32 1.442695, %v335_v38 }
 0x19c   : > { %v316_v40 = vpop.xlane.xlu0 %315  ;;  %v319_v41 = vpop.xlane.xlu1 %318 }
 0x19d   : > { %787 = vpow2.f32 %v343_v39  ;;  %v336_v42 = vsub.f32 %v303_v16, %v316_v40  ;;  %v337_v43 = vsub.f32 %v304_v20, %v319_v41  ;;  %v401_v16 = vld [vmem:[%s158_s17 + $0x10] sm:$0xff]  ;;  %v404_v20 = vld [vmem:[%s158_s17 + $0x28] sm:$0xff] }
 0x19e   : > { %v767_v18 = vpack.c.bf16 %v402_v17, %v401_v16 }
 0x19f   : > { %v345_v44 = vmul.f32 1.442695, %v336_v42  ;;  %v347_v45 = vmul.f32 1.442695, %v337_v43 }
 0x1a0   : > { %v322_v46 = vpop.xlane.xlu1 %321  ;;  %v325_v47 = vpop.xlane.xlu0 %324  ;;  %768 = vmatprep.subr.bf16.mxu1 %v767_v18 }
 0x1a1   : > { %789 = vpow2.f32 %v345_v44  ;;  %v338_v48 = vsub.f32 %v305_v21, %v322_v46  ;;  %v339_v49 = vsub.f32 %v306_v26, %v325_v47  ;;  %770 = vmatpush3.bf16.msra.mxu1 %v767_v18  ;;  %v771_v21 = vpack.c.bf16 %v404_v20, %v403_v19 }
 0x1a2   : > { %791 = vpow2.f32 %v347_v45 }
 0x1a3   : > { %v349_v50 = vmul.f32 1.442695, %v338_v48  ;;  %v351_v51 = vmul.f32 1.442695, %v339_v49  ;;  %772 = vmatprep.subr.bf16.mxu1 %v771_v21 }
 0x1a4   : > { %v328_v52 = vpop.xlane.xlu1 %327  ;;  %v331_v53 = vpop.xlane.xlu0 %330 }
 0x1a5   : > { %793 = vpow2.f32 %v349_v50  ;;  %v340_v54 = vsub.f32 %v307_v27, %v328_v52  ;;  %v341_v55 = vsub.f32 %v308_v32, %v331_v53  ;;  %774 = vmatpush3.bf16.msra.mxu1 %v771_v21 }
 0x1a6   : > { %795 = vpow2.f32 %v351_v51  ;;  %776 = vmatprep.subr.bf16.mxu1 %v775_v24 }
 0x1a7   : > { %v894_v56 = vpop.eup %787  ;;  %v353_v57 = vmul.f32 1.442695, %v340_v54  ;;  %v355_v58 = vmul.f32 1.442695, %v341_v55 }
 0x1a8   : > { %v334_v59 = vpop.xlane.xlu1 %333  ;;  %v359_v60 = vsel %vm310_vm2, %v894_v56, 0.0 }
 0x1a9   : > { %797 = vpow2.f32 %v353_v57  ;;  %v342_v61 = vsub.f32 %v309_v33, %v334_v59  ;;  %360 = vadd.xlane.f32.xlu0 %v359_v60  ;;  %778 = vmatpush3.bf16.msra.mxu1 %v775_v24 }
 0x1aa   : > { %799 = vpow2.f32 %v355_v58 }
 0x1ab   : > { %v898_v62 = vpop.eup %789  ;;  %v357_v63 = vmul.f32 1.442695, %v342_v61 }
 0x1ac   : > { %v900_v0 = vpop.eup %791  ;;  %v362_v1 = vsel %vm310_vm2, %v898_v62, 0.0 }
 0x1ad   : > { %801 = vpow2.f32 %v357_v63  ;;  %363 = vadd.xlane.f32.xlu1 %v362_v1  ;;  %v365_v2 = vsel %vm310_vm2, %v900_v0, 0.0 }
 0x1ae   : > { %366 = vadd.xlane.f32.xlu0 %v365_v2 }
 0x1af   : > { %v906_v3 = vpop.eup %793 }
 0x1b0   : > { %v908_v4 = vpop.eup %795  ;;  %v368_v5 = vsel %vm310_vm2, %v906_v3, 0.0 }
 0x1b1   : > { %369 = vadd.xlane.f32.xlu1 %v368_v5  ;;  %v371_v6 = vsel %vm310_vm2, %v908_v4, 0.0 }
 0x1b2   : > { %372 = vadd.xlane.f32.xlu0 %v371_v6 }
 0x1b3   : > { %v914_v7 = vpop.eup %797 }
 0x1b4   : > { %v916_v8 = vpop.eup %799  ;;  %v374_v9 = vsel %vm310_vm2, %v914_v7, 0.0 }
 0x1b5   : > { %375 = vadd.xlane.f32.xlu1 %v374_v9  ;;  %v377_v10 = vsel %vm310_vm2, %v916_v8, 0.0 }
 0x1b6   : > { %378 = vadd.xlane.f32.xlu0 %v377_v10 }
 0x1b7   : > { %v802_v13 = vpop.eup %801 }
 0x1b8   : > { %v380_v15 = vsel %vm310_vm2, %v802_v13, 0.0 }
 0x1b9   : > { %381 = vadd.xlane.f32.xlu1 %v380_v15 }
 0x236   : > { %v361_v25 = vpop.xlane.xlu0 %360 }
 0x237   : > { %803 = vrcp.f32 %v361_v25 }
 0x23a   : > { %v364_v26 = vpop.xlane.xlu1 %363 }
 0x23b   : > { %805 = vrcp.f32 %v364_v26  ;;  %v367_v27 = vpop.xlane.xlu0 %366 }
 0x23c   : > { %807 = vrcp.f32 %v367_v27 }
 0x23e   : > { %v370_v28 = vpop.xlane.xlu1 %369 }
 0x23f   : > { %809 = vrcp.f32 %v370_v28  ;;  %v373_v29 = vpop.xlane.xlu0 %372 }
 0x240   : > { %811 = vrcp.f32 %v373_v29 }
 0x241   : > { %v804_v30 = vpop.eup %803 }
 0x242   : > { %v376_v31 = vpop.xlane.xlu1 %375  ;;  %v384_v32 = vmul.f32 %v804_v30, %v894_v56 }
 0x243   : > { %813 = vrcp.f32 %v376_v31  ;;  %v379_v33 = vpop.xlane.xlu0 %378 }
 0x244   : > { %815 = vrcp.f32 %v379_v33  ;;  %727 = vmatprep.mubr.msk.f32.mxu1 %vm310_vm2, %v384_v32 }
 0x245   : > { %v806_v34 = vpop.eup %805 }
 0x246   : > { %v808_v35 = vpop.eup %807  ;;  %v382_v36 = vpop.xlane.xlu1 %381  ;;  %v386_v37 = vmul.f32 %v806_v34, %v898_v62 }
 0x247   : > { %817 = vrcp.f32 %v382_v36  ;;  %v388_v38 = vmul.f32 %v808_v35, %v900_v0 }
 0x248   : > { %728 = vmatmul.mubr.msk.f32.vlgmr.msra.gmra.mrb[0].mxu1 %vm310_vm2, %v386_v37 }
 0x249   : > { %v810_v39 = vpop.eup %809  ;;  %730 = vmatprep.mubr.msk.f32.mxu1 %vm310_vm2, %v388_v38 }
 0x24a   : > { %v812_v40 = vpop.eup %811  ;;  %v390_v41 = vmul.f32 %v810_v39, %v906_v3 }
 0x24b   : > { %v392_v42 = vmul.f32 %v812_v40, %v908_v4 }
 0x24c   : > { %731 = vmatmul.mubr.msk.f32.gmra.mrb[2].mxu1 %vm310_vm2, %v390_v41 }
 0x24d   : > { %v814_v43 = vpop.eup %813  ;;  %733 = vmatprep.mubr.msk.f32.mxu1 %vm310_vm2, %v392_v42 }
 0x24e   : > { %v816_v44 = vpop.eup %815  ;;  %v394_v45 = vmul.f32 %v814_v43, %v914_v7 }
 0x24f   : > { %v396_v46 = vmul.f32 %v816_v44, %v916_v8 }
 0x250   : > { %734 = vmatmul.mubr.msk.f32.gmra.mrb[4].mxu1 %vm310_vm2, %v394_v45 }
 0x251   : > { %v818_v47 = vpop.eup %817  ;;  %736 = vmatprep.mubr.msk.f32.mxu1 %vm310_vm2, %v396_v46 }
 0x252   : > { %v398_v48 = vmul.f32 %v818_v47, %v802_v13 }
 0x254   : > { %737 = vmatmul.mubr.msk.f32.gmra.mrb[6].mxu1 %vm310_vm2, %v398_v48 }
 0x31b   : > { %v729_v49 = vpop.f32.mrb[0].mxu1 }
 0x31c   : > { %537 = vst.msk [vmem:[%s163_s20 + $0x8] sm:$0xff] %vm310_vm2, %v729_v49  ;;  %v497_v50 = vpop.f32.mrb[1].mxu1 }
 0x31d   : > { %536 = vst.msk [vmem:[%s163_s20] sm:$0xff] %vm310_vm2, %v497_v50 }
 0x31f   : > { %v732_v51 = vpop.f32.mrb[2].mxu1 }
 0x320   : > { %539 = vst.msk [vmem:[%s163_s20 + $0x18] sm:$0xff] %vm310_vm2, %v732_v51  ;;  %v507_v52 = vpop.f32.mrb[3].mxu1 }
 0x321   : > { %538 = vst.msk [vmem:[%s163_s20 + $0x10] sm:$0xff] %vm310_vm2, %v507_v52 }
 0x323   : > { %v735_v53 = vpop.f32.mrb[4].mxu1 }
 0x324   : > { %541 = vst.msk [vmem:[%s163_s20 + $0x28] sm:$0xff] %vm310_vm2, %v735_v53  ;;  %v517_v54 = vpop.f32.mrb[5].mxu1 }
 0x325   : > { %540 = vst.msk [vmem:[%s163_s20 + $0x20] sm:$0xff] %vm310_vm2, %v517_v54 }
 0x327   : > { %v738_v55 = vpop.f32.mrb[6].mxu1 }
 0x328   : > { %543 = vst.msk [vmem:[%s163_s20 + $0x38] sm:$0xff] %vm310_vm2, %v738_v55  ;;  %v527_v56 = vpop.f32.mrb[7].mxu1 }
 0x329   : > { %542 = vst.msk [vmem:[%s163_s20 + $0x30] sm:$0xff] %vm310_vm2, %v527_v56 }
 0x32a PF: > { %s12_s9 = sadd.s32 1, %s825_s9  }
 0x32b   : > { %p9_p4 = scmp.ge.s32.totalorder %s12_s9, 4  }
 0x32d   :  { %11 = sbr.rel (!%p9_p4) target bundleno = 1 (0x1), region = 61 }

// kernel: asp_oc_forward.36
= control target key start
LH: loop header
LB: loop body
LE: loop exit
PB: predicated region body
PF: predicated region fallthrough
CT: control target
= control target key end

     0   :  { %vm93_vm0 = vcmask 523264   ;;  %s1637_s1 = inlined_call_operand.vmem [shape: f32[64,64], index: 1, kind: input, shape index: {}]   ;;  %s1638_s0 = inlined_call_operand.vmem [shape: f32[512,64], index: 0, kind: input, shape index: {}]   ;;  %s1639_s2 = inlined_call_operand.vmem [shape: f32[1,64], index: 2, kind: input, shape index: {}]   ;;  %s1640_s3 = inlined_call_operand.vmem [shape: f32[512,64], index: 3, kind: output, shape index: {}]  }
   0x1   :  { %v78_v0 = vld [vmem:[%s1637_s1] sm:$0xff]  ;;  %v79_v1 = vld [vmem:[%s1637_s1 + $0x8] sm:$0xff]  ;;  %v80_v2 = vld [vmem:[%s1637_s1 + $0x10] sm:$0xff] }
   0x2   :  { %v988_v3 = vpack.c.bf16 %v79_v1, %v78_v0  ;;  %v81_v4 = vld [vmem:[%s1637_s1 + $0x18] sm:$0xff]  ;;  %v82_v6 = vld [vmem:[%s1637_s1 + $0x20] sm:$0xff]  ;;  %v83_v7 = vld [vmem:[%s1637_s1 + $0x28] sm:$0xff] }
   0x3   :  { %v992_v5 = vpack.c.bf16 %v81_v4, %v80_v2  ;;  %v14_v8 = vld [vmem:[%s1638_s0] sm:$0xff]  ;;  %v996_v10 = vpack.c.bf16 %v83_v7, %v82_v6  ;;  %v84_v11 = vld [vmem:[%s1637_s1 + $0x30] sm:$0xff]  ;;  %v85_v12 = vld [vmem:[%s1637_s1 + $0x38] sm:$0xff] }
   0x4   :  { %989 = vmatprep.subr.bf16.mxu0 %v988_v3  ;;  %1004 = vmatprep.subr.bf16.mxu1 %v988_v3  ;;  %v46_v9 = vld [vmem:[%s1638_s0 + $0x100] sm:$0xff]  ;;  %v1000_v13 = vpack.c.bf16 %v85_v12, %v84_v11  ;;  %v15_v14 = vld [vmem:[%s1638_s0 + $0x8] sm:$0xff]  ;;  %v16_v16 = vld [vmem:[%s1638_s0 + $0x10] sm:$0xff] }
   0x5   :  { %991 = vmatpush3.bf16.msra.mxu0 %v988_v3  ;;  %1008 = vmatpush3.bf16.msra.mxu1 %v988_v3  ;;  %v47_v15 = vld [vmem:[%s1638_s0 + $0x108] sm:$0xff]  ;;  %v48_v17 = vld [vmem:[%s1638_s0 + $0x110] sm:$0xff]  ;;  %v17_v18 = vld [vmem:[%s1638_s0 + $0x18] sm:$0xff] }
   0x6   :  { %993 = vmatprep.subr.bf16.mxu0 %v992_v5  ;;  %1005 = vmatprep.subr.bf16.mxu1 %v992_v5  ;;  %v49_v19 = vld [vmem:[%s1638_s0 + $0x118] sm:$0xff]  ;;  %v18_v20 = vld [vmem:[%s1638_s0 + $0x20] sm:$0xff]  ;;  %v19_v22 = vld [vmem:[%s1638_s0 + $0x28] sm:$0xff] }
   0x7   :  { %892 = vmatprep.mubr.msk.f32.mxu0 %vm93_vm0, %v14_v8  ;;  %940 = vmatprep.mubr.msk.f32.mxu1 %vm93_vm0, %v46_v9  ;;  %v50_v21 = vld [vmem:[%s1638_s0 + $0x120] sm:$0xff]  ;;  %v51_v23 = vld [vmem:[%s1638_s0 + $0x128] sm:$0xff]  ;;  %v20_v24 = vld [vmem:[%s1638_s0 + $0x30] sm:$0xff] }
   0x8   :  { %v52_v25 = vld [vmem:[%s1638_s0 + $0x130] sm:$0xff]  ;;  %v21_v26 = vld [vmem:[%s1638_s0 + $0x38] sm:$0xff]  ;;  %v22_v28 = vld [vmem:[%s1638_s0 + $0x40] sm:$0xff] }
   0x9   :  { %995 = vmatpush3.bf16.msra.mxu0 %v992_v5  ;;  %1009 = vmatpush3.bf16.msra.mxu1 %v992_v5  ;;  %v53_v27 = vld [vmem:[%s1638_s0 + $0x138] sm:$0xff]  ;;  %v54_v29 = vld [vmem:[%s1638_s0 + $0x140] sm:$0xff]  ;;  %v23_v30 = vld [vmem:[%s1638_s0 + $0x48] sm:$0xff] }
   0xa   :  { %997 = vmatprep.subr.bf16.mxu0 %v996_v10  ;;  %1006 = vmatprep.subr.bf16.mxu1 %v996_v10  ;;  %v55_v31 = vld [vmem:[%s1638_s0 + $0x148] sm:$0xff]  ;;  %v24_v32 = vld [vmem:[%s1638_s0 + $0x50] sm:$0xff]  ;;  %v25_v34 = vld [vmem:[%s1638_s0 + $0x58] sm:$0xff] }
   0xb   :  { %v56_v33 = vld [vmem:[%s1638_s0 + $0x150] sm:$0xff]  ;;  %v57_v35 = vld [vmem:[%s1638_s0 + $0x158] sm:$0xff]  ;;  %v26_v36 = vld [vmem:[%s1638_s0 + $0x60] sm:$0xff] }
   0xc   :  { %v58_v37 = vld [vmem:[%s1638_s0 + $0x160] sm:$0xff]  ;;  %v27_v38 = vld [vmem:[%s1638_s0 + $0x68] sm:$0xff]  ;;  %v28_v40 = vld [vmem:[%s1638_s0 + $0x70] sm:$0xff] }
   0xd   :  { %999 = vmatpush3.bf16.msra.mxu0 %v996_v10  ;;  %1010 = vmatpush3.bf16.msra.mxu1 %v996_v10  ;;  %v59_v39 = vld [vmem:[%s1638_s0 + $0x168] sm:$0xff]  ;;  %v60_v41 = vld [vmem:[%s1638_s0 + $0x170] sm:$0xff]  ;;  %v29_v42 = vld [vmem:[%s1638_s0 + $0x78] sm:$0xff] }
   0xe   :  { %1001 = vmatprep.subr.bf16.mxu0 %v1000_v13  ;;  %1007 = vmatprep.subr.bf16.mxu1 %v1000_v13  ;;  %v61_v43 = vld [vmem:[%s1638_s0 + $0x178] sm:$0xff]  ;;  %v30_v44 = vld [vmem:[%s1638_s0 + $0x80] sm:$0xff]  ;;  %v31_v46 = vld [vmem:[%s1638_s0 + $0x88] sm:$0xff] }
   0xf   :  { %v62_v45 = vld [vmem:[%s1638_s0 + $0x180] sm:$0xff]  ;;  %v63_v47 = vld [vmem:[%s1638_s0 + $0x188] sm:$0xff]  ;;  %v32_v48 = vld [vmem:[%s1638_s0 + $0x90] sm:$0xff] }
  0x10   :  { %v64_v49 = vld [vmem:[%s1638_s0 + $0x190] sm:$0xff]  ;;  %v33_v50 = vld [vmem:[%s1638_s0 + $0x98] sm:$0xff]  ;;  %v34_v52 = vld [vmem:[%s1638_s0 + $0xa0] sm:$0xff] }
  0x11   :  { %1003 = vmatpush3.bf16.msra.mxu0 %v1000_v13  ;;  %1011 = vmatpush3.bf16.msra.mxu1 %v1000_v13  ;;  %v65_v51 = vld [vmem:[%s1638_s0 + $0x198] sm:$0xff]  ;;  %v66_v53 = vld [vmem:[%s1638_s0 + $0x1a0] sm:$0xff]  ;;  %v35_v54 = vld [vmem:[%s1638_s0 + $0xa8] sm:$0xff] }
  0x12   :  { %v67_v55 = vld [vmem:[%s1638_s0 + $0x1a8] sm:$0xff]  ;;  %v36_v56 = vld [vmem:[%s1638_s0 + $0xb0] sm:$0xff]  ;;  %v37_v58 = vld [vmem:[%s1638_s0 + $0xb8] sm:$0xff] }
  0x13   :  { %v68_v57 = vld [vmem:[%s1638_s0 + $0x1b0] sm:$0xff]  ;;  %v69_v59 = vld [vmem:[%s1638_s0 + $0x1b8] sm:$0xff]  ;;  %v38_v60 = vld [vmem:[%s1638_s0 + $0xc0] sm:$0xff] }
  0x14   :  { %893 = vmatmul.mubr.msk.f32.vlgmr.msra.gmra.mrb[0].mxu0 %vm93_vm0, %v15_v14  ;;  %941 = vmatmul.mubr.msk.f32.vlgmr.msra.gmra.mrb[0].mxu1 %vm93_vm0, %v47_v15  ;;  %v70_v61 = vld [vmem:[%s1638_s0 + $0x1c0] sm:$0xff]  ;;  %v39_v62 = vld [vmem:[%s1638_s0 + $0xc8] sm:$0xff]  ;;  %v40_v0 = vld [vmem:[%s1638_s0 + $0xd0] sm:$0xff] }
  0x15   :  { %895 = vmatprep.mubr.msk.f32.mxu0 %vm93_vm0, %v16_v16  ;;  %943 = vmatprep.mubr.msk.f32.mxu1 %vm93_vm0, %v48_v17  ;;  %v71_v63 = vld [vmem:[%s1638_s0 + $0x1c8] sm:$0xff]  ;;  %v72_v1 = vld [vmem:[%s1638_s0 + $0x1d0] sm:$0xff]  ;;  %v41_v2 = vld [vmem:[%s1638_s0 + $0xd8] sm:$0xff] }
  0x16   :  { %v73_v3 = vld [vmem:[%s1638_s0 + $0x1d8] sm:$0xff]  ;;  %v42_v4 = vld [vmem:[%s1638_s0 + $0xe0] sm:$0xff]  ;;  %v43_v6 = vld [vmem:[%s1638_s0 + $0xe8] sm:$0xff] }
  0x17   :  { %v74_v5 = vld [vmem:[%s1638_s0 + $0x1e0] sm:$0xff]  ;;  %v75_v7 = vld [vmem:[%s1638_s0 + $0x1e8] sm:$0xff]  ;;  %v44_v8 = vld [vmem:[%s1638_s0 + $0xf0] sm:$0xff] }
  0x18   :  { %896 = vmatmul.mubr.msk.f32.gmra.mrb[2].mxu0 %vm93_vm0, %v17_v18  ;;  %944 = vmatmul.mubr.msk.f32.gmra.mrb[2].mxu1 %vm93_vm0, %v49_v19  ;;  %v76_v9 = vld [vmem:[%s1638_s0 + $0x1f0] sm:$0xff]  ;;  %v45_v10 = vld [vmem:[%s1638_s0 + $0xf8] sm:$0xff]  ;;  %v1315_v12 = vld [vmem:[%s1639_s2] ss:$0 sm:$0xff] }
  0x19   :  { %898 = vmatprep.mubr.msk.f32.mxu0 %vm93_vm0, %v18_v20  ;;  %946 = vmatprep.mubr.msk.f32.mxu1 %vm93_vm0, %v50_v21  ;;  %v77_v11 = vld [vmem:[%s1638_s0 + $0x1f8] sm:$0xff] }
  0x1c   :  { %899 = vmatmul.mubr.msk.f32.gmra.mrb[4].mxu0 %vm93_vm0, %v19_v22  ;;  %947 = vmatmul.mubr.msk.f32.gmra.mrb[4].mxu1 %vm93_vm0, %v51_v23 }
  0x1d   :  { %901 = vmatprep.mubr.msk.f32.mxu0 %vm93_vm0, %v20_v24  ;;  %949 = vmatprep.mubr.msk.f32.mxu1 %vm93_vm0, %v52_v25 }
  0x20   :  { %902 = vmatmul.mubr.msk.f32.gmra.mrb[6].mxu0 %vm93_vm0, %v21_v26  ;;  %950 = vmatmul.mubr.msk.f32.gmra.mrb[6].mxu1 %vm93_vm0, %v53_v27 }
  0x21   :  { %904 = vmatprep.mubr.msk.f32.mxu0 %vm93_vm0, %v22_v28  ;;  %952 = vmatprep.mubr.msk.f32.mxu1 %vm93_vm0, %v54_v29 }
  0x24   :  { %905 = vmatmul.mubr.msk.f32.gmra.mrb[8].mxu0 %vm93_vm0, %v23_v30  ;;  %953 = vmatmul.mubr.msk.f32.gmra.mrb[8].mxu1 %vm93_vm0, %v55_v31 }
  0x25   :  { %907 = vmatprep.mubr.msk.f32.mxu0 %vm93_vm0, %v24_v32  ;;  %955 = vmatprep.mubr.msk.f32.mxu1 %vm93_vm0, %v56_v33 }
  0x28   :  { %908 = vmatmul.mubr.msk.f32.gmra.mrb[10].mxu0 %vm93_vm0, %v25_v34  ;;  %956 = vmatmul.mubr.msk.f32.gmra.mrb[10].mxu1 %vm93_vm0, %v57_v35 }
  0x29   :  { %910 = vmatprep.mubr.msk.f32.mxu0 %vm93_vm0, %v26_v36  ;;  %958 = vmatprep.mubr.msk.f32.mxu1 %vm93_vm0, %v58_v37 }
  0x2c   :  { %911 = vmatmul.mubr.msk.f32.gmra.mrb[12].mxu0 %vm93_vm0, %v27_v38  ;;  %959 = vmatmul.mubr.msk.f32.gmra.mrb[12].mxu1 %vm93_vm0, %v59_v39 }
  0x2d   :  { %913 = vmatprep.mubr.msk.f32.mxu0 %vm93_vm0, %v28_v40  ;;  %961 = vmatprep.mubr.msk.f32.mxu1 %vm93_vm0, %v60_v41 }
  0x30   :  { %914 = vmatmul.mubr.msk.f32.gmra.mrb[14].mxu0 %vm93_vm0, %v29_v42  ;;  %962 = vmatmul.mubr.msk.f32.gmra.mrb[14].mxu1 %vm93_vm0, %v61_v43 }
  0x31   :  { %916 = vmatprep.mubr.msk.f32.mxu0 %vm93_vm0, %v30_v44  ;;  %964 = vmatprep.mubr.msk.f32.mxu1 %vm93_vm0, %v62_v45 }
  0x34   :  { %917 = vmatmul.mubr.msk.f32.gmra.mrb[16].mxu0 %vm93_vm0, %v31_v46  ;;  %965 = vmatmul.mubr.msk.f32.gmra.mrb[16].mxu1 %vm93_vm0, %v63_v47 }
  0x35   :  { %919 = vmatprep.mubr.msk.f32.mxu0 %vm93_vm0, %v32_v48  ;;  %967 = vmatprep.mubr.msk.f32.mxu1 %vm93_vm0, %v64_v49 }
  0x38   :  { %920 = vmatmul.mubr.msk.f32.gmra.mrb[18].mxu0 %vm93_vm0, %v33_v50  ;;  %968 = vmatmul.mubr.msk.f32.gmra.mrb[18].mxu1 %vm93_vm0, %v65_v51 }
  0x39   :  { %922 = vmatprep.mubr.msk.f32.mxu0 %vm93_vm0, %v34_v52  ;;  %970 = vmatprep.mubr.msk.f32.mxu1 %vm93_vm0, %v66_v53 }
  0x3c   :  { %923 = vmatmul.mubr.msk.f32.gmra.mrb[20].mxu0 %vm93_vm0, %v35_v54  ;;  %971 = vmatmul.mubr.msk.f32.gmra.mrb[20].mxu1 %vm93_vm0, %v67_v55 }
  0x3d   :  { %925 = vmatprep.mubr.msk.f32.mxu0 %vm93_vm0, %v36_v56  ;;  %973 = vmatprep.mubr.msk.f32.mxu1 %vm93_vm0, %v68_v57 }
  0x40   :  { %926 = vmatmul.mubr.msk.f32.gmra.mrb[22].mxu0 %vm93_vm0, %v37_v58  ;;  %974 = vmatmul.mubr.msk.f32.gmra.mrb[22].mxu1 %vm93_vm0, %v69_v59 }
  0x41   :  { %928 = vmatprep.mubr.msk.f32.mxu0 %vm93_vm0, %v38_v60  ;;  %976 = vmatprep.mubr.msk.f32.mxu1 %vm93_vm0, %v70_v61 }
  0x44   :  { %929 = vmatmul.mubr.msk.f32.gmra.mrb[24].mxu0 %vm93_vm0, %v39_v62  ;;  %977 = vmatmul.mubr.msk.f32.gmra.mrb[24].mxu1 %vm93_vm0, %v71_v63 }
  0x45   :  { %931 = vmatprep.mubr.msk.f32.mxu0 %vm93_vm0, %v40_v0  ;;  %979 = vmatprep.mubr.msk.f32.mxu1 %vm93_vm0, %v72_v1 }
  0x48   :  { %932 = vmatmul.mubr.msk.f32.gmra.mrb[26].mxu0 %vm93_vm0, %v41_v2  ;;  %980 = vmatmul.mubr.msk.f32.gmra.mrb[26].mxu1 %vm93_vm0, %v73_v3 }
  0x49   :  { %934 = vmatprep.mubr.msk.f32.mxu0 %vm93_vm0, %v42_v4  ;;  %982 = vmatprep.mubr.msk.f32.mxu1 %vm93_vm0, %v74_v5 }
  0x4c   :  { %935 = vmatmul.mubr.msk.f32.gmra.mrb[28].mxu0 %vm93_vm0, %v43_v6  ;;  %983 = vmatmul.mubr.msk.f32.gmra.mrb[28].mxu1 %vm93_vm0, %v75_v7 }
  0x4d   :  { %937 = vmatprep.mubr.msk.f32.mxu0 %vm93_vm0, %v44_v8  ;;  %985 = vmatprep.mubr.msk.f32.mxu1 %vm93_vm0, %v76_v9 }
  0x50   :  { %938 = vmatmul.mubr.msk.f32.gmra.mrb[30].mxu0 %vm93_vm0, %v45_v10  ;;  %986 = vmatmul.mubr.msk.f32.gmra.mrb[30].mxu1 %vm93_vm0, %v77_v11 }
  0xe7   :  { %v894_v13 = vpop.f32.mrb[0].mxu0  ;;  %v942_v14 = vpop.f32.mrb[0].mxu1 }
  0xe8   :  { %v358_v15 = vadd.f32 %v894_v13, %v1315_v12  ;;  %v518_v16 = vadd.f32 %v942_v14, %v1315_v12  ;;  %v352_v17 = vpop.f32.mrb[1].mxu0  ;;  %v512_v18 = vpop.f32.mrb[1].mxu1 }
  0xe9   :  { %v353_v19 = vadd.f32 %v1315_v12, %v352_v17  ;;  %v513_v20 = vadd.f32 %v1315_v12, %v512_v18 }
  0xea   :  { %672 = vst.msk [vmem:[%s1640_s3 + $0x8] sm:$0xff] %vm93_vm0, %v358_v15  ;;  %704 = vst.msk [vmem:[%s1640_s3 + $0x108] sm:$0xff] %vm93_vm0, %v518_v16 }
  0xeb   :  { %671 = vst.msk [vmem:[%s1640_s3] sm:$0xff] %vm93_vm0, %v353_v19  ;;  %703 = vst.msk [vmem:[%s1640_s3 + $0x100] sm:$0xff] %vm93_vm0, %v513_v20  ;;  %v897_v21 = vpop.f32.mrb[2].mxu0  ;;  %v945_v22 = vpop.f32.mrb[2].mxu1 }
  0xec   :  { %v368_v23 = vadd.f32 %v897_v21, %v1315_v12  ;;  %v528_v24 = vadd.f32 %v945_v22, %v1315_v12  ;;  %v362_v25 = vpop.f32.mrb[3].mxu0  ;;  %v522_v26 = vpop.f32.mrb[3].mxu1 }
  0xed   :  { %v363_v27 = vadd.f32 %v1315_v12, %v362_v25  ;;  %v523_v28 = vadd.f32 %v1315_v12, %v522_v26 }
  0xee   :  { %674 = vst.msk [vmem:[%s1640_s3 + $0x18] sm:$0xff] %vm93_vm0, %v368_v23  ;;  %706 = vst.msk [vmem:[%s1640_s3 + $0x118] sm:$0xff] %vm93_vm0, %v528_v24 }
  0xef   :  { %673 = vst.msk [vmem:[%s1640_s3 + $0x10] sm:$0xff] %vm93_vm0, %v363_v27  ;;  %705 = vst.msk [vmem:[%s1640_s3 + $0x110] sm:$0xff] %vm93_vm0, %v523_v28  ;;  %v900_v29 = vpop.f32.mrb[4].mxu0  ;;  %v948_v30 = vpop.f32.mrb[4].mxu1 }
  0xf0   :  { %v378_v31 = vadd.f32 %v900_v29, %v1315_v12  ;;  %v538_v32 = vadd.f32 %v948_v30, %v1315_v12  ;;  %v372_v33 = vpop.f32.mrb[5].mxu0  ;;  %v532_v34 = vpop.f32.mrb[5].mxu1 }
  0xf1   :  { %v373_v35 = vadd.f32 %v1315_v12, %v372_v33  ;;  %v533_v36 = vadd.f32 %v1315_v12, %v532_v34 }
  0xf2   :  { %676 = vst.msk [vmem:[%s1640_s3 + $0x28] sm:$0xff] %vm93_vm0, %v378_v31  ;;  %708 = vst.msk [vmem:[%s1640_s3 + $0x128] sm:$0xff] %vm93_vm0, %v538_v32 }
  0xf3   :  { %675 = vst.msk [vmem:[%s1640_s3 + $0x20] sm:$0xff] %vm93_vm0, %v373_v35  ;;  %707 = vst.msk [vmem:[%s1640_s3 + $0x120] sm:$0xff] %vm93_vm0, %v533_v36  ;;  %v903_v37 = vpop.f32.mrb[6].mxu0  ;;  %v951_v38 = vpop.f32.mrb[6].mxu1 }
  0xf4   :  { %v388_v39 = vadd.f32 %v903_v37, %v1315_v12  ;;  %v548_v40 = vadd.f32 %v951_v38, %v1315_v12  ;;  %v382_v41 = vpop.f32.mrb[7].mxu0  ;;  %v542_v42 = vpop.f32.mrb[7].mxu1 }
  0xf5   :  { %v383_v43 = vadd.f32 %v1315_v12, %v382_v41  ;;  %v543_v44 = vadd.f32 %v1315_v12, %v542_v42 }
  0xf6   :  { %678 = vst.msk [vmem:[%s1640_s3 + $0x38] sm:$0xff] %vm93_vm0, %v388_v39  ;;  %710 = vst.msk [vmem:[%s1640_s3 + $0x138] sm:$0xff] %vm93_vm0, %v548_v40 }
  0xf7   :  { %677 = vst.msk [vmem:[%s1640_s3 + $0x30] sm:$0xff] %vm93_vm0, %v383_v43  ;;  %709 = vst.msk [vmem:[%s1640_s3 + $0x130] sm:$0xff] %vm93_vm0, %v543_v44  ;;  %v906_v45 = vpop.f32.mrb[8].mxu0  ;;  %v954_v46 = vpop.f32.mrb[8].mxu1 }
  0xf8   :  { %v398_v47 = vadd.f32 %v906_v45, %v1315_v12  ;;  %v558_v48 = vadd.f32 %v954_v46, %v1315_v12  ;;  %v392_v49 = vpop.f32.mrb[9].mxu0  ;;  %v552_v50 = vpop.f32.mrb[9].mxu1 }
  0xf9   :  { %v393_v51 = vadd.f32 %v1315_v12, %v392_v49  ;;  %v553_v52 = vadd.f32 %v1315_v12, %v552_v50 }
  0xfa   :  { %680 = vst.msk [vmem:[%s1640_s3 + $0x48] sm:$0xff] %vm93_vm0, %v398_v47  ;;  %712 = vst.msk [vmem:[%s1640_s3 + $0x148] sm:$0xff] %vm93_vm0, %v558_v48 }
  0xfb   :  { %679 = vst.msk [vmem:[%s1640_s3 + $0x40] sm:$0xff] %vm93_vm0, %v393_v51  ;;  %711 = vst.msk [vmem:[%s1640_s3 + $0x140] sm:$0xff] %vm93_vm0, %v553_v52  ;;  %v909_v53 = vpop.f32.mrb[10].mxu0  ;;  %v957_v54 = vpop.f32.mrb[10].mxu1 }
  0xfc   :  { %v408_v55 = vadd.f32 %v909_v53, %v1315_v12  ;;  %v568_v56 = vadd.f32 %v957_v54, %v1315_v12  ;;  %v402_v57 = vpop.f32.mrb[11].mxu0  ;;  %v562_v58 = vpop.f32.mrb[11].mxu1 }
  0xfd   :  { %v403_v59 = vadd.f32 %v1315_v12, %v402_v57  ;;  %v563_v60 = vadd.f32 %v1315_v12, %v562_v58 }
  0xfe   :  { %682 = vst.msk [vmem:[%s1640_s3 + $0x58] sm:$0xff] %vm93_vm0, %v408_v55  ;;  %714 = vst.msk [vmem:[%s1640_s3 + $0x158] sm:$0xff] %vm93_vm0, %v568_v56 }
  0xff   :  { %681 = vst.msk [vmem:[%s1640_s3 + $0x50] sm:$0xff] %vm93_vm0, %v403_v59  ;;  %713 = vst.msk [vmem:[%s1640_s3 + $0x150] sm:$0xff] %vm93_vm0, %v563_v60  ;;  %v912_v61 = vpop.f32.mrb[12].mxu0  ;;  %v960_v62 = vpop.f32.mrb[12].mxu1 }
 0x100   :  { %v418_v63 = vadd.f32 %v912_v61, %v1315_v12  ;;  %v578_v0 = vadd.f32 %v960_v62, %v1315_v12  ;;  %v412_v1 = vpop.f32.mrb[13].mxu0  ;;  %v572_v2 = vpop.f32.mrb[13].mxu1 }
 0x101   :  { %v413_v3 = vadd.f32 %v1315_v12, %v412_v1  ;;  %v573_v4 = vadd.f32 %v1315_v12, %v572_v2 }
 0x102   :  { %684 = vst.msk [vmem:[%s1640_s3 + $0x68] sm:$0xff] %vm93_vm0, %v418_v63  ;;  %716 = vst.msk [vmem:[%s1640_s3 + $0x168] sm:$0xff] %vm93_vm0, %v578_v0 }
 0x103   :  { %683 = vst.msk [vmem:[%s1640_s3 + $0x60] sm:$0xff] %vm93_vm0, %v413_v3  ;;  %715 = vst.msk [vmem:[%s1640_s3 + $0x160] sm:$0xff] %vm93_vm0, %v573_v4  ;;  %v915_v5 = vpop.f32.mrb[14].mxu0  ;;  %v963_v6 = vpop.f32.mrb[14].mxu1 }
 0x104   :  { %v428_v7 = vadd.f32 %v915_v5, %v1315_v12  ;;  %v588_v8 = vadd.f32 %v963_v6, %v1315_v12  ;;  %v422_v9 = vpop.f32.mrb[15].mxu0  ;;  %v582_v10 = vpop.f32.mrb[15].mxu1 }
 0x105   :  { %v423_v11 = vadd.f32 %v1315_v12, %v422_v9  ;;  %v583_v13 = vadd.f32 %v1315_v12, %v582_v10 }
 0x106   :  { %686 = vst.msk [vmem:[%s1640_s3 + $0x78] sm:$0xff] %vm93_vm0, %v428_v7  ;;  %718 = vst.msk [vmem:[%s1640_s3 + $0x178] sm:$0xff] %vm93_vm0, %v588_v8 }
 0x107   :  { %685 = vst.msk [vmem:[%s1640_s3 + $0x70] sm:$0xff] %vm93_vm0, %v423_v11  ;;  %717 = vst.msk [vmem:[%s1640_s3 + $0x170] sm:$0xff] %vm93_vm0, %v583_v13  ;;  %v918_v14 = vpop.f32.mrb[16].mxu0  ;;  %v966_v15 = vpop.f32.mrb[16].mxu1 }
 0x108   :  { %v438_v16 = vadd.f32 %v918_v14, %v1315_v12  ;;  %v598_v17 = vadd.f32 %v966_v15, %v1315_v12  ;;  %v432_v18 = vpop.f32.mrb[17].mxu0  ;;  %v592_v19 = vpop.f32.mrb[17].mxu1 }
 0x109   :  { %v433_v20 = vadd.f32 %v1315_v12, %v432_v18  ;;  %v593_v21 = vadd.f32 %v1315_v12, %v592_v19 }
 0x10a   :  { %688 = vst.msk [vmem:[%s1640_s3 + $0x88] sm:$0xff] %vm93_vm0, %v438_v16  ;;  %720 = vst.msk [vmem:[%s1640_s3 + $0x188] sm:$0xff] %vm93_vm0, %v598_v17 }
 0x10b   :  { %687 = vst.msk [vmem:[%s1640_s3 + $0x80] sm:$0xff] %vm93_vm0, %v433_v20  ;;  %719 = vst.msk [vmem:[%s1640_s3 + $0x180] sm:$0xff] %vm93_vm0, %v593_v21  ;;  %v921_v22 = vpop.f32.mrb[18].mxu0  ;;  %v969_v23 = vpop.f32.mrb[18].mxu1 }
 0x10c   :  { %v448_v24 = vadd.f32 %v921_v22, %v1315_v12  ;;  %v608_v25 = vadd.f32 %v969_v23, %v1315_v12  ;;  %v442_v26 = vpop.f32.mrb[19].mxu0  ;;  %v602_v27 = vpop.f32.mrb[19].mxu1 }
 0x10d   :  { %v443_v28 = vadd.f32 %v1315_v12, %v442_v26  ;;  %v603_v29 = vadd.f32 %v1315_v12, %v602_v27 }
 0x10e   :  { %690 = vst.msk [vmem:[%s1640_s3 + $0x98] sm:$0xff] %vm93_vm0, %v448_v24  ;;  %722 = vst.msk [vmem:[%s1640_s3 + $0x198] sm:$0xff] %vm93_vm0, %v608_v25 }
 0x10f   :  { %689 = vst.msk [vmem:[%s1640_s3 + $0x90] sm:$0xff] %vm93_vm0, %v443_v28  ;;  %721 = vst.msk [vmem:[%s1640_s3 + $0x190] sm:$0xff] %vm93_vm0, %v603_v29  ;;  %v924_v30 = vpop.f32.mrb[20].mxu0  ;;  %v972_v31 = vpop.f32.mrb[20].mxu1 }
 0x110   :  { %v458_v32 = vadd.f32 %v924_v30, %v1315_v12  ;;  %v618_v33 = vadd.f32 %v972_v31, %v1315_v12  ;;  %v452_v34 = vpop.f32.mrb[21].mxu0  ;;  %v612_v35 = vpop.f32.mrb[21].mxu1 }
 0x111   :  { %v453_v36 = vadd.f32 %v1315_v12, %v452_v34  ;;  %v613_v37 = vadd.f32 %v1315_v12, %v612_v35 }
 0x112   :  { %692 = vst.msk [vmem:[%s1640_s3 + $0xa8] sm:$0xff] %vm93_vm0, %v458_v32  ;;  %724 = vst.msk [vmem:[%s1640_s3 + $0x1a8] sm:$0xff] %vm93_vm0, %v618_v33 }
 0x113   :  { %691 = vst.msk [vmem:[%s1640_s3 + $0xa0] sm:$0xff] %vm93_vm0, %v453_v36  ;;  %723 = vst.msk [vmem:[%s1640_s3 + $0x1a0] sm:$0xff] %vm93_vm0, %v613_v37  ;;  %v927_v38 = vpop.f32.mrb[22].mxu0  ;;  %v975_v39 = vpop.f32.mrb[22].mxu1 }
 0x114   :  { %v468_v40 = vadd.f32 %v927_v38, %v1315_v12  ;;  %v628_v41 = vadd.f32 %v975_v39, %v1315_v12  ;;  %v462_v42 = vpop.f32.mrb[23].mxu0  ;;  %v622_v43 = vpop.f32.mrb[23].mxu1 }
 0x115   :  { %v463_v44 = vadd.f32 %v1315_v12, %v462_v42  ;;  %v623_v45 = vadd.f32 %v1315_v12, %v622_v43 }
 0x116   :  { %694 = vst.msk [vmem:[%s1640_s3 + $0xb8] sm:$0xff] %vm93_vm0, %v468_v40  ;;  %726 = vst.msk [vmem:[%s1640_s3 + $0x1b8] sm:$0xff] %vm93_vm0, %v628_v41 }
 0x117   :  { %693 = vst.msk [vmem:[%s1640_s3 + $0xb0] sm:$0xff] %vm93_vm0, %v463_v44  ;;  %725 = vst.msk [vmem:[%s1640_s3 + $0x1b0] sm:$0xff] %vm93_vm0, %v623_v45  ;;  %v930_v46 = vpop.f32.mrb[24].mxu0  ;;  %v978_v47 = vpop.f32.mrb[24].mxu1 }
 0x118   :  { %v478_v48 = vadd.f32 %v930_v46, %v1315_v12  ;;  %v638_v49 = vadd.f32 %v978_v47, %v1315_v12  ;;  %v472_v50 = vpop.f32.mrb[25].mxu0  ;;  %v632_v51 = vpop.f32.mrb[25].mxu1 }
 0x119   :  { %v473_v52 = vadd.f32 %v1315_v12, %v472_v50  ;;  %v633_v53 = vadd.f32 %v1315_v12, %v632_v51 }
 0x11a   :  { %696 = vst.msk [vmem:[%s1640_s3 + $0xc8] sm:$0xff] %vm93_vm0, %v478_v48  ;;  %728 = vst.msk [vmem:[%s1640_s3 + $0x1c8] sm:$0xff] %vm93_vm0, %v638_v49 }
 0x11b   :  { %695 = vst.msk [vmem:[%s1640_s3 + $0xc0] sm:$0xff] %vm93_vm0, %v473_v52  ;;  %727 = vst.msk [vmem:[%s1640_s3 + $0x1c0] sm:$0xff] %vm93_vm0, %v633_v53  ;;  %v933_v54 = vpop.f32.mrb[26].mxu0  ;;  %v981_v55 = vpop.f32.mrb[26].mxu1 }
 0x11c   :  { %v488_v56 = vadd.f32 %v933_v54, %v1315_v12  ;;  %v648_v57 = vadd.f32 %v981_v55, %v1315_v12  ;;  %v482_v58 = vpop.f32.mrb[27].mxu0  ;;  %v642_v59 = vpop.f32.mrb[27].mxu1 }
 0x11d   :  { %v483_v60 = vadd.f32 %v1315_v12, %v482_v58  ;;  %v643_v61 = vadd.f32 %v1315_v12, %v642_v59 }
 0x11e   :  { %698 = vst.msk [vmem:[%s1640_s3 + $0xd8] sm:$0xff] %vm93_vm0, %v488_v56  ;;  %730 = vst.msk [vmem:[%s1640_s3 + $0x1d8] sm:$0xff] %vm93_vm0, %v648_v57 }
 0x11f   :  { %697 = vst.msk [vmem:[%s1640_s3 + $0xd0] sm:$0xff] %vm93_vm0, %v483_v60  ;;  %729 = vst.msk [vmem:[%s1640_s3 + $0x1d0] sm:$0xff] %vm93_vm0, %v643_v61  ;;  %v936_v62 = vpop.f32.mrb[28].mxu0  ;;  %v984_v63 = vpop.f32.mrb[28].mxu1 }
 0x120   :  { %v498_v0 = vadd.f32 %v936_v62, %v1315_v12  ;;  %v658_v1 = vadd.f32 %v984_v63, %v1315_v12  ;;  %v492_v2 = vpop.f32.mrb[29].mxu0  ;;  %v652_v3 = vpop.f32.mrb[29].mxu1 }
 0x121   :  { %v493_v4 = vadd.f32 %v1315_v12, %v492_v2  ;;  %v653_v5 = vadd.f32 %v1315_v12, %v652_v3 }
 0x122   :  { %700 = vst.msk [vmem:[%s1640_s3 + $0xe8] sm:$0xff] %vm93_vm0, %v498_v0  ;;  %732 = vst.msk [vmem:[%s1640_s3 + $0x1e8] sm:$0xff] %vm93_vm0, %v658_v1 }
 0x123   :  { %699 = vst.msk [vmem:[%s1640_s3 + $0xe0] sm:$0xff] %vm93_vm0, %v493_v4  ;;  %731 = vst.msk [vmem:[%s1640_s3 + $0x1e0] sm:$0xff] %vm93_vm0, %v653_v5  ;;  %v939_v6 = vpop.f32.mrb[30].mxu0  ;;  %v987_v7 = vpop.f32.mrb[30].mxu1 }
 0x124   :  { %v508_v8 = vadd.f32 %v939_v6, %v1315_v12  ;;  %v668_v9 = vadd.f32 %v987_v7, %v1315_v12  ;;  %v502_v10 = vpop.f32.mrb[31].mxu0  ;;  %v662_v11 = vpop.f32.mrb[31].mxu1 }
 0x125   :  { %v503_v13 = vadd.f32 %v1315_v12, %v502_v10  ;;  %v663_v14 = vadd.f32 %v1315_v12, %v662_v11 }
 0x126   :  { %702 = vst.msk [vmem:[%s1640_s3 + $0xf8] sm:$0xff] %vm93_vm0, %v508_v8  ;;  %734 = vst.msk [vmem:[%s1640_s3 + $0x1f8] sm:$0xff] %vm93_vm0, %v668_v9 }
 0x127   :  { %701 = vst.msk [vmem:[%s1640_s3 + $0xf0] sm:$0xff] %vm93_vm0, %v503_v13  ;;  %733 = vst.msk [vmem:[%s1640_s3 + $0x1f0] sm:$0xff] %vm93_vm0, %v663_v14 }

// kernel: asp_oc_forward.39
= control target key start
LH: loop header
LB: loop body
LE: loop exit
PB: predicated region body
PF: predicated region fallthrough
CT: control target
= control target key end

     0   :  { %vm89_vm0 = vcmask 261120   ;;  %vm667_vm1 = vcmask 523264   ;;  %s1598_s1 = inlined_call_operand.vmem [shape: f32[32,64], index: 1, kind: input, shape index: {}]   ;;  %s1599_s0 = inlined_call_operand.vmem [shape: f32[512,32], index: 0, kind: input, shape index: {}]   ;;  %s1600_s2 = inlined_call_operand.vmem [shape: f32[1,64], index: 2, kind: input, shape index: {}]   ;;  %s1601_s3 = inlined_call_operand.vmem [shape: f32[512,64], index: 3, kind: output, shape index: {}]  }
   0x1   :  { %v78_v0 = vld [vmem:[%s1598_s1] sm:$0xff]  ;;  %v79_v1 = vld [vmem:[%s1598_s1 + $0x8] sm:$0xff]  ;;  %v80_v2 = vld [vmem:[%s1598_s1 + $0x10] sm:$0xff] }
   0x2   :  { %v973_v3 = vpack.c.bf16 %v79_v1, %v78_v0  ;;  %v81_v4 = vld [vmem:[%s1598_s1 + $0x18] sm:$0xff]  ;;  %v14_v5 = vld [vmem:[%s1599_s0] sm:$0xff]  ;;  %v15_v8 = vld [vmem:[%s1599_s0 + $0x8] sm:$0xff] }
   0x3   :  { %v46_v6 = vld [vmem:[%s1599_s0 + $0x100] sm:$0xff]  ;;  %v977_v7 = vpack.c.bf16 %v81_v4, %v80_v2  ;;  %877 = vmatprep.mubr.msk.f32.mxu0 %vm89_vm0, %v14_v5  ;;  %v47_v9 = vld [vmem:[%s1599_s0 + $0x108] sm:$0xff]  ;;  %v16_v10 = vld [vmem:[%s1599_s0 + $0x10] sm:$0xff] }
   0x4   :  { %925 = vmatprep.mubr.msk.f32.mxu1 %vm89_vm0, %v46_v6  ;;  %974 = vmatprep.subr.bf16.mxu0 %v973_v3  ;;  %v48_v11 = vld [vmem:[%s1599_s0 + $0x110] sm:$0xff]  ;;  %v17_v12 = vld [vmem:[%s1599_s0 + $0x18] sm:$0xff]  ;;  %v18_v14 = vld [vmem:[%s1599_s0 + $0x20] sm:$0xff] }
   0x5   :  { %981 = vmatprep.subr.bf16.mxu1 %v973_v3  ;;  %976 = vmatpush3.bf16.msra.mxu0 %v973_v3  ;;  %v49_v13 = vld [vmem:[%s1599_s0 + $0x118] sm:$0xff]  ;;  %v50_v15 = vld [vmem:[%s1599_s0 + $0x120] sm:$0xff]  ;;  %v19_v16 = vld [vmem:[%s1599_s0 + $0x28] sm:$0xff] }
   0x6   :  { %983 = vmatpush3.bf16.msra.mxu1 %v973_v3  ;;  %978 = vmatprep.subr.bf16.mxu0 %v977_v7  ;;  %v51_v17 = vld [vmem:[%s1599_s0 + $0x128] sm:$0xff]  ;;  %v20_v18 = vld [vmem:[%s1599_s0 + $0x30] sm:$0xff]  ;;  %v21_v20 = vld [vmem:[%s1599_s0 + $0x38] sm:$0xff] }
   0x7   :  { %982 = vmatprep.subr.bf16.mxu1 %v977_v7  ;;  %v52_v19 = vld [vmem:[%s1599_s0 + $0x130] sm:$0xff]  ;;  %v53_v21 = vld [vmem:[%s1599_s0 + $0x138] sm:$0xff]  ;;  %v22_v22 = vld [vmem:[%s1599_s0 + $0x40] sm:$0xff] }
   0x8   :  { %v54_v23 = vld [vmem:[%s1599_s0 + $0x140] sm:$0xff]  ;;  %v23_v24 = vld [vmem:[%s1599_s0 + $0x48] sm:$0xff]  ;;  %v24_v26 = vld [vmem:[%s1599_s0 + $0x50] sm:$0xff] }
   0x9   :  { %980 = vmatpush3.bf16.msra.mxu0 %v977_v7  ;;  %v55_v25 = vld [vmem:[%s1599_s0 + $0x148] sm:$0xff]  ;;  %v56_v27 = vld [vmem:[%s1599_s0 + $0x150] sm:$0xff]  ;;  %v25_v28 = vld [vmem:[%s1599_s0 + $0x58] sm:$0xff] }
   0xa   :  { %984 = vmatpush3.bf16.msra.mxu1 %v977_v7  ;;  %v57_v29 = vld [vmem:[%s1599_s0 + $0x158] sm:$0xff]  ;;  %v26_v30 = vld [vmem:[%s1599_s0 + $0x60] sm:$0xff]  ;;  %v27_v32 = vld [vmem:[%s1599_s0 + $0x68] sm:$0xff] }
   0xb   :  { %v58_v31 = vld [vmem:[%s1599_s0 + $0x160] sm:$0xff]  ;;  %v59_v33 = vld [vmem:[%s1599_s0 + $0x168] sm:$0xff]  ;;  %v28_v34 = vld [vmem:[%s1599_s0 + $0x70] sm:$0xff] }
   0xc   :  { %878 = vmatmul.mubr.msk.f32.vlgmr.msra.gmra.mrb[0].mxu0 %vm89_vm0, %v15_v8  ;;  %v60_v35 = vld [vmem:[%s1599_s0 + $0x170] sm:$0xff]  ;;  %v29_v36 = vld [vmem:[%s1599_s0 + $0x78] sm:$0xff]  ;;  %v30_v38 = vld [vmem:[%s1599_s0 + $0x80] sm:$0xff] }
   0xd   :  { %926 = vmatmul.mubr.msk.f32.vlgmr.msra.gmra.mrb[0].mxu1 %vm89_vm0, %v47_v9  ;;  %880 = vmatprep.mubr.msk.f32.mxu0 %vm89_vm0, %v16_v10  ;;  %v61_v37 = vld [vmem:[%s1599_s0 + $0x178] sm:$0xff]  ;;  %v62_v39 = vld [vmem:[%s1599_s0 + $0x180] sm:$0xff]  ;;  %v31_v40 = vld [vmem:[%s1599_s0 + $0x88] sm:$0xff] }
   0xe   :  { %928 = vmatprep.mubr.msk.f32.mxu1 %vm89_vm0, %v48_v11  ;;  %v63_v41 = vld [vmem:[%s1599_s0 + $0x188] sm:$0xff]  ;;  %v32_v42 = vld [vmem:[%s1599_s0 + $0x90] sm:$0xff]  ;;  %v33_v44 = vld [vmem:[%s1599_s0 + $0x98] sm:$0xff] }
   0xf   :  { %v64_v43 = vld [vmem:[%s1599_s0 + $0x190] sm:$0xff]  ;;  %v65_v45 = vld [vmem:[%s1599_s0 + $0x198] sm:$0xff]  ;;  %v34_v46 = vld [vmem:[%s1599_s0 + $0xa0] sm:$0xff] }
  0x10   :  { %881 = vmatmul.mubr.msk.f32.gmra.mrb[2].mxu0 %vm89_vm0, %v17_v12  ;;  %v66_v47 = vld [vmem:[%s1599_s0 + $0x1a0] sm:$0xff]  ;;  %v35_v48 = vld [vmem:[%s1599_s0 + $0xa8] sm:$0xff]  ;;  %v36_v50 = vld [vmem:[%s1599_s0 + $0xb0] sm:$0xff] }
  0x11   :  { %929 = vmatmul.mubr.msk.f32.gmra.mrb[2].mxu1 %vm89_vm0, %v49_v13  ;;  %883 = vmatprep.mubr.msk.f32.mxu0 %vm89_vm0, %v18_v14  ;;  %v67_v49 = vld [vmem:[%s1599_s0 + $0x1a8] sm:$0xff]  ;;  %v68_v51 = vld [vmem:[%s1599_s0 + $0x1b0] sm:$0xff]  ;;  %v37_v52 = vld [vmem:[%s1599_s0 + $0xb8] sm:$0xff] }
  0x12   :  { %931 = vmatprep.mubr.msk.f32.mxu1 %vm89_vm0, %v50_v15  ;;  %v69_v53 = vld [vmem:[%s1599_s0 + $0x1b8] sm:$0xff]  ;;  %v38_v54 = vld [vmem:[%s1599_s0 + $0xc0] sm:$0xff]  ;;  %v39_v56 = vld [vmem:[%s1599_s0 + $0xc8] sm:$0xff] }
  0x13   :  { %v70_v55 = vld [vmem:[%s1599_s0 + $0x1c0] sm:$0xff]  ;;  %v71_v57 = vld [vmem:[%s1599_s0 + $0x1c8] sm:$0xff]  ;;  %v40_v58 = vld [vmem:[%s1599_s0 + $0xd0] sm:$0xff] }
  0x14   :  { %884 = vmatmul.mubr.msk.f32.gmra.mrb[4].mxu0 %vm89_vm0, %v19_v16  ;;  %v72_v59 = vld [vmem:[%s1599_s0 + $0x1d0] sm:$0xff]  ;;  %v41_v60 = vld [vmem:[%s1599_s0 + $0xd8] sm:$0xff]  ;;  %v42_v62 = vld [vmem:[%s1599_s0 + $0xe0] sm:$0xff] }
  0x15   :  { %932 = vmatmul.mubr.msk.f32.gmra.mrb[4].mxu1 %vm89_vm0, %v51_v17  ;;  %886 = vmatprep.mubr.msk.f32.mxu0 %vm89_vm0, %v20_v18  ;;  %v73_v61 = vld [vmem:[%s1599_s0 + $0x1d8] sm:$0xff]  ;;  %v74_v63 = vld [vmem:[%s1599_s0 + $0x1e0] sm:$0xff]  ;;  %v43_v0 = vld [vmem:[%s1599_s0 + $0xe8] sm:$0xff] }
  0x16   :  { %934 = vmatprep.mubr.msk.f32.mxu1 %vm89_vm0, %v52_v19  ;;  %v75_v1 = vld [vmem:[%s1599_s0 + $0x1e8] sm:$0xff]  ;;  %v44_v2 = vld [vmem:[%s1599_s0 + $0xf0] sm:$0xff]  ;;  %v45_v4 = vld [vmem:[%s1599_s0 + $0xf8] sm:$0xff] }
  0x17   :  { %v76_v3 = vld [vmem:[%s1599_s0 + $0x1f0] sm:$0xff]  ;;  %v77_v5 = vld [vmem:[%s1599_s0 + $0x1f8] sm:$0xff]  ;;  %v1276_v6 = vld [vmem:[%s1600_s2] ss:$0 sm:$0xff] }
  0x18   :  { %887 = vmatmul.mubr.msk.f32.gmra.mrb[6].mxu0 %vm89_vm0, %v21_v20 }
  0x19   :  { %935 = vmatmul.mubr.msk.f32.gmra.mrb[6].mxu1 %vm89_vm0, %v53_v21  ;;  %889 = vmatprep.mubr.msk.f32.mxu0 %vm89_vm0, %v22_v22 }
  0x1a   :  { %937 = vmatprep.mubr.msk.f32.mxu1 %vm89_vm0, %v54_v23 }
  0x1c   :  { %890 = vmatmul.mubr.msk.f32.gmra.mrb[8].mxu0 %vm89_vm0, %v23_v24 }
  0x1d   :  { %938 = vmatmul.mubr.msk.f32.gmra.mrb[8].mxu1 %vm89_vm0, %v55_v25  ;;  %892 = vmatprep.mubr.msk.f32.mxu0 %vm89_vm0, %v24_v26 }
  0x1e   :  { %940 = vmatprep.mubr.msk.f32.mxu1 %vm89_vm0, %v56_v27 }
  0x20   :  { %893 = vmatmul.mubr.msk.f32.gmra.mrb[10].mxu0 %vm89_vm0, %v25_v28 }
  0x21   :  { %941 = vmatmul.mubr.msk.f32.gmra.mrb[10].mxu1 %vm89_vm0, %v57_v29  ;;  %895 = vmatprep.mubr.msk.f32.mxu0 %vm89_vm0, %v26_v30 }
  0x22   :  { %943 = vmatprep.mubr.msk.f32.mxu1 %vm89_vm0, %v58_v31 }
  0x24   :  { %896 = vmatmul.mubr.msk.f32.gmra.mrb[12].mxu0 %vm89_vm0, %v27_v32 }
  0x25   :  { %944 = vmatmul.mubr.msk.f32.gmra.mrb[12].mxu1 %vm89_vm0, %v59_v33  ;;  %898 = vmatprep.mubr.msk.f32.mxu0 %vm89_vm0, %v28_v34 }
  0x26   :  { %946 = vmatprep.mubr.msk.f32.mxu1 %vm89_vm0, %v60_v35 }
  0x28   :  { %899 = vmatmul.mubr.msk.f32.gmra.mrb[14].mxu0 %vm89_vm0, %v29_v36 }
  0x29   :  { %947 = vmatmul.mubr.msk.f32.gmra.mrb[14].mxu1 %vm89_vm0, %v61_v37  ;;  %901 = vmatprep.mubr.msk.f32.mxu0 %vm89_vm0, %v30_v38 }
  0x2a   :  { %949 = vmatprep.mubr.msk.f32.mxu1 %vm89_vm0, %v62_v39 }
  0x2c   :  { %902 = vmatmul.mubr.msk.f32.gmra.mrb[16].mxu0 %vm89_vm0, %v31_v40 }
  0x2d   :  { %950 = vmatmul.mubr.msk.f32.gmra.mrb[16].mxu1 %vm89_vm0, %v63_v41  ;;  %904 = vmatprep.mubr.msk.f32.mxu0 %vm89_vm0, %v32_v42 }
  0x2e   :  { %952 = vmatprep.mubr.msk.f32.mxu1 %vm89_vm0, %v64_v43 }
  0x30   :  { %905 = vmatmul.mubr.msk.f32.gmra.mrb[18].mxu0 %vm89_vm0, %v33_v44 }
  0x31   :  { %953 = vmatmul.mubr.msk.f32.gmra.mrb[18].mxu1 %vm89_vm0, %v65_v45  ;;  %907 = vmatprep.mubr.msk.f32.mxu0 %vm89_vm0, %v34_v46 }
  0x32   :  { %955 = vmatprep.mubr.msk.f32.mxu1 %vm89_vm0, %v66_v47 }
  0x34   :  { %908 = vmatmul.mubr.msk.f32.gmra.mrb[20].mxu0 %vm89_vm0, %v35_v48 }
  0x35   :  { %956 = vmatmul.mubr.msk.f32.gmra.mrb[20].mxu1 %vm89_vm0, %v67_v49  ;;  %910 = vmatprep.mubr.msk.f32.mxu0 %vm89_vm0, %v36_v50 }
  0x36   :  { %958 = vmatprep.mubr.msk.f32.mxu1 %vm89_vm0, %v68_v51 }
  0x38   :  { %911 = vmatmul.mubr.msk.f32.gmra.mrb[22].mxu0 %vm89_vm0, %v37_v52 }
  0x39   :  { %959 = vmatmul.mubr.msk.f32.gmra.mrb[22].mxu1 %vm89_vm0, %v69_v53  ;;  %913 = vmatprep.mubr.msk.f32.mxu0 %vm89_vm0, %v38_v54 }
  0x3a   :  { %961 = vmatprep.mubr.msk.f32.mxu1 %vm89_vm0, %v70_v55 }
  0x3c   :  { %914 = vmatmul.mubr.msk.f32.gmra.mrb[24].mxu0 %vm89_vm0, %v39_v56 }
  0x3d   :  { %962 = vmatmul.mubr.msk.f32.gmra.mrb[24].mxu1 %vm89_vm0, %v71_v57  ;;  %916 = vmatprep.mubr.msk.f32.mxu0 %vm89_vm0, %v40_v58 }
  0x3e   :  { %964 = vmatprep.mubr.msk.f32.mxu1 %vm89_vm0, %v72_v59 }
  0x40   :  { %917 = vmatmul.mubr.msk.f32.gmra.mrb[26].mxu0 %vm89_vm0, %v41_v60 }
  0x41   :  { %965 = vmatmul.mubr.msk.f32.gmra.mrb[26].mxu1 %vm89_vm0, %v73_v61  ;;  %919 = vmatprep.mubr.msk.f32.mxu0 %vm89_vm0, %v42_v62 }
  0x42   :  { %967 = vmatprep.mubr.msk.f32.mxu1 %vm89_vm0, %v74_v63 }
  0x44   :  { %920 = vmatmul.mubr.msk.f32.gmra.mrb[28].mxu0 %vm89_vm0, %v43_v0 }
  0x45   :  { %968 = vmatmul.mubr.msk.f32.gmra.mrb[28].mxu1 %vm89_vm0, %v75_v1  ;;  %922 = vmatprep.mubr.msk.f32.mxu0 %vm89_vm0, %v44_v2 }
  0x46   :  { %970 = vmatprep.mubr.msk.f32.mxu1 %vm89_vm0, %v76_v3 }
  0x48   :  { %923 = vmatmul.mubr.msk.f32.gmra.mrb[30].mxu0 %vm89_vm0, %v45_v4 }
  0x49   :  { %971 = vmatmul.mubr.msk.f32.gmra.mrb[30].mxu1 %vm89_vm0, %v77_v5 }
  0xdf   :  { %v879_v7 = vpop.f32.mrb[0].mxu0 }
  0xe0   :  { %v927_v8 = vpop.f32.mrb[0].mxu1  ;;  %v354_v9 = vadd.f32 %v879_v7, %v1276_v6  ;;  %v348_v11 = vpop.f32.mrb[1].mxu0 }
  0xe1   :  { %v514_v10 = vadd.f32 %v927_v8, %v1276_v6  ;;  %v508_v12 = vpop.f32.mrb[1].mxu1  ;;  %v349_v13 = vadd.f32 %v1276_v6, %v348_v11 }
  0xe2   :  { %v509_v14 = vadd.f32 %v1276_v6, %v508_v12  ;;  %669 = vst.msk [vmem:[%s1601_s3 + $0x8] sm:$0xff] %vm667_vm1, %v354_v9 }
  0xe3   :  { %701 = vst.msk [vmem:[%s1601_s3 + $0x108] sm:$0xff] %vm667_vm1, %v514_v10  ;;  %668 = vst.msk [vmem:[%s1601_s3] sm:$0xff] %vm667_vm1, %v349_v13  ;;  %v882_v15 = vpop.f32.mrb[2].mxu0 }
  0xe4   :  { %700 = vst.msk [vmem:[%s1601_s3 + $0x100] sm:$0xff] %vm667_vm1, %v509_v14  ;;  %v930_v16 = vpop.f32.mrb[2].mxu1  ;;  %v364_v17 = vadd.f32 %v882_v15, %v1276_v6  ;;  %v358_v19 = vpop.f32.mrb[3].mxu0 }
  0xe5   :  { %v524_v18 = vadd.f32 %v930_v16, %v1276_v6  ;;  %v518_v20 = vpop.f32.mrb[3].mxu1  ;;  %v359_v21 = vadd.f32 %v1276_v6, %v358_v19 }
  0xe6   :  { %v519_v22 = vadd.f32 %v1276_v6, %v518_v20  ;;  %671 = vst.msk [vmem:[%s1601_s3 + $0x18] sm:$0xff] %vm667_vm1, %v364_v17 }
  0xe7   :  { %703 = vst.msk [vmem:[%s1601_s3 + $0x118] sm:$0xff] %vm667_vm1, %v524_v18  ;;  %670 = vst.msk [vmem:[%s1601_s3 + $0x10] sm:$0xff] %vm667_vm1, %v359_v21  ;;  %v885_v23 = vpop.f32.mrb[4].mxu0 }
  0xe8   :  { %702 = vst.msk [vmem:[%s1601_s3 + $0x110] sm:$0xff] %vm667_vm1, %v519_v22  ;;  %v933_v24 = vpop.f32.mrb[4].mxu1  ;;  %v374_v25 = vadd.f32 %v885_v23, %v1276_v6  ;;  %v368_v27 = vpop.f32.mrb[5].mxu0 }
  0xe9   :  { %v534_v26 = vadd.f32 %v933_v24, %v1276_v6  ;;  %v528_v28 = vpop.f32.mrb[5].mxu1  ;;  %v369_v29 = vadd.f32 %v1276_v6, %v368_v27 }
  0xea   :  { %v529_v30 = vadd.f32 %v1276_v6, %v528_v28  ;;  %673 = vst.msk [vmem:[%s1601_s3 + $0x28] sm:$0xff] %vm667_vm1, %v374_v25 }
  0xeb   :  { %705 = vst.msk [vmem:[%s1601_s3 + $0x128] sm:$0xff] %vm667_vm1, %v534_v26  ;;  %672 = vst.msk [vmem:[%s1601_s3 + $0x20] sm:$0xff] %vm667_vm1, %v369_v29  ;;  %v888_v31 = vpop.f32.mrb[6].mxu0 }
  0xec   :  { %704 = vst.msk [vmem:[%s1601_s3 + $0x120] sm:$0xff] %vm667_vm1, %v529_v30  ;;  %v936_v32 = vpop.f32.mrb[6].mxu1  ;;  %v384_v33 = vadd.f32 %v888_v31, %v1276_v6  ;;  %v378_v35 = vpop.f32.mrb[7].mxu0 }
  0xed   :  { %v544_v34 = vadd.f32 %v936_v32, %v1276_v6  ;;  %v538_v36 = vpop.f32.mrb[7].mxu1  ;;  %v379_v37 = vadd.f32 %v1276_v6, %v378_v35 }
  0xee   :  { %v539_v38 = vadd.f32 %v1276_v6, %v538_v36  ;;  %675 = vst.msk [vmem:[%s1601_s3 + $0x38] sm:$0xff] %vm667_vm1, %v384_v33 }
  0xef   :  { %707 = vst.msk [vmem:[%s1601_s3 + $0x138] sm:$0xff] %vm667_vm1, %v544_v34  ;;  %674 = vst.msk [vmem:[%s1601_s3 + $0x30] sm:$0xff] %vm667_vm1, %v379_v37  ;;  %v891_v39 = vpop.f32.mrb[8].mxu0 }
  0xf0   :  { %706 = vst.msk [vmem:[%s1601_s3 + $0x130] sm:$0xff] %vm667_vm1, %v539_v38  ;;  %v939_v40 = vpop.f32.mrb[8].mxu1  ;;  %v394_v41 = vadd.f32 %v891_v39, %v1276_v6  ;;  %v388_v43 = vpop.f32.mrb[9].mxu0 }
  0xf1   :  { %v554_v42 = vadd.f32 %v939_v40, %v1276_v6  ;;  %v548_v44 = vpop.f32.mrb[9].mxu1  ;;  %v389_v45 = vadd.f32 %v1276_v6, %v388_v43 }
  0xf2   :  { %v549_v46 = vadd.f32 %v1276_v6, %v548_v44  ;;  %677 = vst.msk [vmem:[%s1601_s3 + $0x48] sm:$0xff] %vm667_vm1, %v394_v41 }
  0xf3   :  { %709 = vst.msk [vmem:[%s1601_s3 + $0x148] sm:$0xff] %vm667_vm1, %v554_v42  ;;  %676 = vst.msk [vmem:[%s1601_s3 + $0x40] sm:$0xff] %vm667_vm1, %v389_v45  ;;  %v894_v47 = vpop.f32.mrb[10].mxu0 }
  0xf4   :  { %708 = vst.msk [vmem:[%s1601_s3 + $0x140] sm:$0xff] %vm667_vm1, %v549_v46  ;;  %v942_v48 = vpop.f32.mrb[10].mxu1  ;;  %v404_v49 = vadd.f32 %v894_v47, %v1276_v6  ;;  %v398_v51 = vpop.f32.mrb[11].mxu0 }
  0xf5   :  { %v564_v50 = vadd.f32 %v942_v48, %v1276_v6  ;;  %v558_v52 = vpop.f32.mrb[11].mxu1  ;;  %v399_v53 = vadd.f32 %v1276_v6, %v398_v51 }
  0xf6   :  { %v559_v54 = vadd.f32 %v1276_v6, %v558_v52  ;;  %679 = vst.msk [vmem:[%s1601_s3 + $0x58] sm:$0xff] %vm667_vm1, %v404_v49 }
  0xf7   :  { %711 = vst.msk [vmem:[%s1601_s3 + $0x158] sm:$0xff] %vm667_vm1, %v564_v50  ;;  %678 = vst.msk [vmem:[%s1601_s3 + $0x50] sm:$0xff] %vm667_vm1, %v399_v53  ;;  %v897_v55 = vpop.f32.mrb[12].mxu0 }
  0xf8   :  { %710 = vst.msk [vmem:[%s1601_s3 + $0x150] sm:$0xff] %vm667_vm1, %v559_v54  ;;  %v945_v56 = vpop.f32.mrb[12].mxu1  ;;  %v414_v57 = vadd.f32 %v897_v55, %v1276_v6  ;;  %v408_v59 = vpop.f32.mrb[13].mxu0 }
  0xf9   :  { %v574_v58 = vadd.f32 %v945_v56, %v1276_v6  ;;  %v568_v60 = vpop.f32.mrb[13].mxu1  ;;  %v409_v61 = vadd.f32 %v1276_v6, %v408_v59 }
  0xfa   :  { %v569_v62 = vadd.f32 %v1276_v6, %v568_v60  ;;  %681 = vst.msk [vmem:[%s1601_s3 + $0x68] sm:$0xff] %vm667_vm1, %v414_v57 }
  0xfb   :  { %713 = vst.msk [vmem:[%s1601_s3 + $0x168] sm:$0xff] %vm667_vm1, %v574_v58  ;;  %680 = vst.msk [vmem:[%s1601_s3 + $0x60] sm:$0xff] %vm667_vm1, %v409_v61  ;;  %v900_v63 = vpop.f32.mrb[14].mxu0 }
  0xfc   :  { %712 = vst.msk [vmem:[%s1601_s3 + $0x160] sm:$0xff] %vm667_vm1, %v569_v62  ;;  %v948_v0 = vpop.f32.mrb[14].mxu1  ;;  %v424_v1 = vadd.f32 %v900_v63, %v1276_v6  ;;  %v418_v3 = vpop.f32.mrb[15].mxu0 }
  0xfd   :  { %v584_v2 = vadd.f32 %v948_v0, %v1276_v6  ;;  %v578_v4 = vpop.f32.mrb[15].mxu1  ;;  %v419_v5 = vadd.f32 %v1276_v6, %v418_v3 }
  0xfe   :  { %v579_v7 = vadd.f32 %v1276_v6, %v578_v4  ;;  %683 = vst.msk [vmem:[%s1601_s3 + $0x78] sm:$0xff] %vm667_vm1, %v424_v1 }
  0xff   :  { %715 = vst.msk [vmem:[%s1601_s3 + $0x178] sm:$0xff] %vm667_vm1, %v584_v2  ;;  %682 = vst.msk [vmem:[%s1601_s3 + $0x70] sm:$0xff] %vm667_vm1, %v419_v5  ;;  %v903_v8 = vpop.f32.mrb[16].mxu0 }
 0x100   :  { %714 = vst.msk [vmem:[%s1601_s3 + $0x170] sm:$0xff] %vm667_vm1, %v579_v7  ;;  %v951_v9 = vpop.f32.mrb[16].mxu1  ;;  %v434_v10 = vadd.f32 %v903_v8, %v1276_v6  ;;  %v428_v12 = vpop.f32.mrb[17].mxu0 }
 0x101   :  { %v594_v11 = vadd.f32 %v951_v9, %v1276_v6  ;;  %v588_v13 = vpop.f32.mrb[17].mxu1  ;;  %v429_v14 = vadd.f32 %v1276_v6, %v428_v12 }
 0x102   :  { %v589_v15 = vadd.f32 %v1276_v6, %v588_v13  ;;  %685 = vst.msk [vmem:[%s1601_s3 + $0x88] sm:$0xff] %vm667_vm1, %v434_v10 }
 0x103   :  { %717 = vst.msk [vmem:[%s1601_s3 + $0x188] sm:$0xff] %vm667_vm1, %v594_v11  ;;  %684 = vst.msk [vmem:[%s1601_s3 + $0x80] sm:$0xff] %vm667_vm1, %v429_v14  ;;  %v906_v16 = vpop.f32.mrb[18].mxu0 }
 0x104   :  { %716 = vst.msk [vmem:[%s1601_s3 + $0x180] sm:$0xff] %vm667_vm1, %v589_v15  ;;  %v954_v17 = vpop.f32.mrb[18].mxu1  ;;  %v444_v18 = vadd.f32 %v906_v16, %v1276_v6  ;;  %v438_v20 = vpop.f32.mrb[19].mxu0 }
 0x105   :  { %v604_v19 = vadd.f32 %v954_v17, %v1276_v6  ;;  %v598_v21 = vpop.f32.mrb[19].mxu1  ;;  %v439_v22 = vadd.f32 %v1276_v6, %v438_v20 }
 0x106   :  { %v599_v23 = vadd.f32 %v1276_v6, %v598_v21  ;;  %687 = vst.msk [vmem:[%s1601_s3 + $0x98] sm:$0xff] %vm667_vm1, %v444_v18 }
 0x107   :  { %719 = vst.msk [vmem:[%s1601_s3 + $0x198] sm:$0xff] %vm667_vm1, %v604_v19  ;;  %686 = vst.msk [vmem:[%s1601_s3 + $0x90] sm:$0xff] %vm667_vm1, %v439_v22  ;;  %v909_v24 = vpop.f32.mrb[20].mxu0 }
 0x108   :  { %718 = vst.msk [vmem:[%s1601_s3 + $0x190] sm:$0xff] %vm667_vm1, %v599_v23  ;;  %v957_v25 = vpop.f32.mrb[20].mxu1  ;;  %v454_v26 = vadd.f32 %v909_v24, %v1276_v6  ;;  %v448_v28 = vpop.f32.mrb[21].mxu0 }
 0x109   :  { %v614_v27 = vadd.f32 %v957_v25, %v1276_v6  ;;  %v608_v29 = vpop.f32.mrb[21].mxu1  ;;  %v449_v30 = vadd.f32 %v1276_v6, %v448_v28 }
 0x10a   :  { %v609_v31 = vadd.f32 %v1276_v6, %v608_v29  ;;  %689 = vst.msk [vmem:[%s1601_s3 + $0xa8] sm:$0xff] %vm667_vm1, %v454_v26 }
 0x10b   :  { %721 = vst.msk [vmem:[%s1601_s3 + $0x1a8] sm:$0xff] %vm667_vm1, %v614_v27  ;;  %688 = vst.msk [vmem:[%s1601_s3 + $0xa0] sm:$0xff] %vm667_vm1, %v449_v30  ;;  %v912_v32 = vpop.f32.mrb[22].mxu0 }
 0x10c   :  { %720 = vst.msk [vmem:[%s1601_s3 + $0x1a0] sm:$0xff] %vm667_vm1, %v609_v31  ;;  %v960_v33 = vpop.f32.mrb[22].mxu1  ;;  %v464_v34 = vadd.f32 %v912_v32, %v1276_v6  ;;  %v458_v36 = vpop.f32.mrb[23].mxu0 }
 0x10d   :  { %v624_v35 = vadd.f32 %v960_v33, %v1276_v6  ;;  %v618_v37 = vpop.f32.mrb[23].mxu1  ;;  %v459_v38 = vadd.f32 %v1276_v6, %v458_v36 }
 0x10e   :  { %v619_v39 = vadd.f32 %v1276_v6, %v618_v37  ;;  %691 = vst.msk [vmem:[%s1601_s3 + $0xb8] sm:$0xff] %vm667_vm1, %v464_v34 }
 0x10f   :  { %723 = vst.msk [vmem:[%s1601_s3 + $0x1b8] sm:$0xff] %vm667_vm1, %v624_v35  ;;  %690 = vst.msk [vmem:[%s1601_s3 + $0xb0] sm:$0xff] %vm667_vm1, %v459_v38  ;;  %v915_v40 = vpop.f32.mrb[24].mxu0 }
 0x110   :  { %722 = vst.msk [vmem:[%s1601_s3 + $0x1b0] sm:$0xff] %vm667_vm1, %v619_v39  ;;  %v963_v41 = vpop.f32.mrb[24].mxu1  ;;  %v474_v42 = vadd.f32 %v915_v40, %v1276_v6  ;;  %v468_v44 = vpop.f32.mrb[25].mxu0 }
 0x111   :  { %v634_v43 = vadd.f32 %v963_v41, %v1276_v6  ;;  %v628_v45 = vpop.f32.mrb[25].mxu1  ;;  %v469_v46 = vadd.f32 %v1276_v6, %v468_v44 }
 0x112   :  { %v629_v47 = vadd.f32 %v1276_v6, %v628_v45  ;;  %693 = vst.msk [vmem:[%s1601_s3 + $0xc8] sm:$0xff] %vm667_vm1, %v474_v42 }
 0x113   :  { %725 = vst.msk [vmem:[%s1601_s3 + $0x1c8] sm:$0xff] %vm667_vm1, %v634_v43  ;;  %692 = vst.msk [vmem:[%s1601_s3 + $0xc0] sm:$0xff] %vm667_vm1, %v469_v46  ;;  %v918_v48 = vpop.f32.mrb[26].mxu0 }
 0x114   :  { %724 = vst.msk [vmem:[%s1601_s3 + $0x1c0] sm:$0xff] %vm667_vm1, %v629_v47  ;;  %v966_v49 = vpop.f32.mrb[26].mxu1  ;;  %v484_v50 = vadd.f32 %v918_v48, %v1276_v6  ;;  %v478_v52 = vpop.f32.mrb[27].mxu0 }
 0x115   :  { %v644_v51 = vadd.f32 %v966_v49, %v1276_v6  ;;  %v638_v53 = vpop.f32.mrb[27].mxu1  ;;  %v479_v54 = vadd.f32 %v1276_v6, %v478_v52 }
 0x116   :  { %v639_v55 = vadd.f32 %v1276_v6, %v638_v53  ;;  %695 = vst.msk [vmem:[%s1601_s3 + $0xd8] sm:$0xff] %vm667_vm1, %v484_v50 }
 0x117   :  { %727 = vst.msk [vmem:[%s1601_s3 + $0x1d8] sm:$0xff] %vm667_vm1, %v644_v51  ;;  %694 = vst.msk [vmem:[%s1601_s3 + $0xd0] sm:$0xff] %vm667_vm1, %v479_v54  ;;  %v921_v56 = vpop.f32.mrb[28].mxu0 }
 0x118   :  { %726 = vst.msk [vmem:[%s1601_s3 + $0x1d0] sm:$0xff] %vm667_vm1, %v639_v55  ;;  %v969_v57 = vpop.f32.mrb[28].mxu1  ;;  %v494_v58 = vadd.f32 %v921_v56, %v1276_v6  ;;  %v488_v60 = vpop.f32.mrb[29].mxu0 }
 0x119   :  { %v654_v59 = vadd.f32 %v969_v57, %v1276_v6  ;;  %v648_v61 = vpop.f32.mrb[29].mxu1  ;;  %v489_v62 = vadd.f32 %v1276_v6, %v488_v60 }
 0x11a   :  { %v649_v63 = vadd.f32 %v1276_v6, %v648_v61  ;;  %697 = vst.msk [vmem:[%s1601_s3 + $0xe8] sm:$0xff] %vm667_vm1, %v494_v58 }
 0x11b   :  { %729 = vst.msk [vmem:[%s1601_s3 + $0x1e8] sm:$0xff] %vm667_vm1, %v654_v59  ;;  %696 = vst.msk [vmem:[%s1601_s3 + $0xe0] sm:$0xff] %vm667_vm1, %v489_v62  ;;  %v924_v0 = vpop.f32.mrb[30].mxu0 }
 0x11c   :  { %728 = vst.msk [vmem:[%s1601_s3 + $0x1e0] sm:$0xff] %vm667_vm1, %v649_v63  ;;  %v972_v1 = vpop.f32.mrb[30].mxu1  ;;  %v504_v2 = vadd.f32 %v924_v0, %v1276_v6  ;;  %v498_v4 = vpop.f32.mrb[31].mxu0 }
 0x11d   :  { %v664_v3 = vadd.f32 %v972_v1, %v1276_v6  ;;  %v658_v5 = vpop.f32.mrb[31].mxu1  ;;  %v499_v7 = vadd.f32 %v1276_v6, %v498_v4 }
 0x11e   :  { %v659_v8 = vadd.f32 %v1276_v6, %v658_v5  ;;  %699 = vst.msk [vmem:[%s1601_s3 + $0xf8] sm:$0xff] %vm667_vm1, %v504_v2 }
 0x11f   :  { %731 = vst.msk [vmem:[%s1601_s3 + $0x1f8] sm:$0xff] %vm667_vm1, %v664_v3  ;;  %698 = vst.msk [vmem:[%s1601_s3 + $0xf0] sm:$0xff] %vm667_vm1, %v499_v7 }
 0x120   :  { %730 = vst.msk [vmem:[%s1601_s3 + $0x1f0] sm:$0xff] %vm667_vm1, %v659_v8 }

// kernel: asp_oc_forward.52
= control target key start
LH: loop header
LB: loop body
LE: loop exit
PB: predicated region body
PF: predicated region fallthrough
CT: control target
= control target key end

     0   :  { %v289_v0 = vmov 0.0   ;;  %vm280_vm0 = vcmask 1040384   ;;  %s501_s0 = inlined_call_operand.vmem [shape: f32[512,128], index: 0, kind: input, shape index: {}]   ;;  %s502_s1 = inlined_call_operand.vmem [shape: f32[2,128], index: 1, kind: output, shape index: {}]  }
   0x1   :  { %12 = vst [vmem:[%s502_s1] sm:$0x3] %v289_v0  ;;  %v13_v1 = vld [vmem:[%s501_s0] sm:$0xff]  ;;  %v14_v2 = vld [vmem:[%s501_s0 + $0x8] sm:$0xff]  ;;  %v15_v3 = vld [vmem:[%s501_s0 + $0x10] sm:$0xff] }
   0x2   :  { %v16_v4 = vld [vmem:[%s501_s0 + $0x18] sm:$0xff]  ;;  %v78_v5 = vadd.f32 %v14_v2, %v13_v1  ;;  %v147_v6 = vmul.f32 %v13_v1, %v13_v1  ;;  %v148_v7 = vmul.f32 %v14_v2, %v14_v2  ;;  %v149_v8 = vmul.f32 %v15_v3, %v15_v3  ;;  %v17_v9 = vld [vmem:[%s501_s0 + $0x20] sm:$0xff]  ;;  %v18_v13 = vld [vmem:[%s501_s0 + $0x28] sm:$0xff] }
   0x3   :  { %v150_v11 = vmul.f32 %v16_v4, %v16_v4  ;;  %v151_v15 = vmul.f32 %v17_v9, %v17_v9  ;;  %v19_v17 = vld [vmem:[%s501_s0 + $0x30] sm:$0xff]  ;;  %v152_v19 = vmul.f32 %v18_v13, %v18_v13  ;;  %v20_v21 = vld [vmem:[%s501_s0 + $0x38] sm:$0xff]  ;;  %v21_v25 = vld [vmem:[%s501_s0 + $0x40] sm:$0xff] }
   0x4   :  { %v79_v10 = vadd.f32 %v78_v5, %v15_v3  ;;  %v211_v12 = vadd.f32 %v148_v7, %v147_v6  ;;  %v153_v23 = vmul.f32 %v19_v17, %v19_v17  ;;  %v154_v27 = vmul.f32 %v20_v21, %v20_v21  ;;  %v22_v29 = vld [vmem:[%s501_s0 + $0x48] sm:$0xff]  ;;  %v23_v33 = vld [vmem:[%s501_s0 + $0x50] sm:$0xff]  ;;  %v24_v37 = vld [vmem:[%s501_s0 + $0x58] sm:$0xff] }
   0x5   :  { %v155_v31 = vmul.f32 %v21_v25, %v21_v25  ;;  %v156_v35 = vmul.f32 %v22_v29, %v22_v29  ;;  %v157_v39 = vmul.f32 %v23_v33, %v23_v33  ;;  %v25_v41 = vld [vmem:[%s501_s0 + $0x60] sm:$0xff]  ;;  %v158_v43 = vmul.f32 %v24_v37, %v24_v37  ;;  %v26_v45 = vld [vmem:[%s501_s0 + $0x68] sm:$0xff]  ;;  %v27_v49 = vld [vmem:[%s501_s0 + $0x70] sm:$0xff] }
   0x6   :  { %v80_v14 = vadd.f32 %v79_v10, %v16_v4  ;;  %v212_v16 = vadd.f32 %v211_v12, %v149_v8  ;;  %v159_v47 = vmul.f32 %v25_v41, %v25_v41  ;;  %v160_v51 = vmul.f32 %v26_v45, %v26_v45  ;;  %v28_v53 = vld [vmem:[%s501_s0 + $0x78] sm:$0xff]  ;;  %v29_v57 = vld [vmem:[%s501_s0 + $0x80] sm:$0xff]  ;;  %v30_v61 = vld [vmem:[%s501_s0 + $0x88] sm:$0xff] }
   0x7   :  { %v161_v55 = vmul.f32 %v27_v49, %v27_v49  ;;  %v162_v59 = vmul.f32 %v28_v53, %v28_v53  ;;  %v163_v63 = vmul.f32 %v29_v57, %v29_v57  ;;  %v31_v1 = vld [vmem:[%s501_s0 + $0x90] sm:$0xff]  ;;  %v164_v3 = vmul.f32 %v30_v61, %v30_v61  ;;  %v32_v5 = vld [vmem:[%s501_s0 + $0x98] sm:$0xff] }
   0x8   :  { %v81_v18 = vadd.f32 %v80_v14, %v17_v9  ;;  %v213_v20 = vadd.f32 %v212_v16, %v150_v11  ;;  %v165_v7 = vmul.f32 %v31_v1, %v31_v1  ;;  %v33_v9 = vld [vmem:[%s501_s0 + $0xa0] sm:$0xff]  ;;  %v166_v11 = vmul.f32 %v32_v5, %v32_v5 }
   0xa   :  { %v82_v22 = vadd.f32 %v81_v18, %v18_v13  ;;  %v214_v24 = vadd.f32 %v213_v20, %v151_v15  ;;  %v34_v13 = vld [vmem:[%s501_s0 + $0xa8] sm:$0xff]  ;;  %v167_v15 = vmul.f32 %v33_v9, %v33_v9 }
   0xc   :  { %v83_v26 = vadd.f32 %v82_v22, %v19_v17  ;;  %v215_v28 = vadd.f32 %v214_v24, %v152_v19  ;;  %v35_v17 = vld [vmem:[%s501_s0 + $0xb0] sm:$0xff]  ;;  %v168_v19 = vmul.f32 %v34_v13, %v34_v13 }
   0xe   :  { %v84_v30 = vadd.f32 %v83_v26, %v20_v21  ;;  %v216_v32 = vadd.f32 %v215_v28, %v153_v23  ;;  %v36_v21 = vld [vmem:[%s501_s0 + $0xb8] sm:$0xff]  ;;  %v169_v23 = vmul.f32 %v35_v17, %v35_v17 }
  0x10   :  { %v85_v34 = vadd.f32 %v84_v30, %v21_v25  ;;  %v217_v36 = vadd.f32 %v216_v32, %v154_v27  ;;  %v37_v25 = vld [vmem:[%s501_s0 + $0xc0] sm:$0xff]  ;;  %v170_v27 = vmul.f32 %v36_v21, %v36_v21 }
  0x12   :  { %v86_v38 = vadd.f32 %v85_v34, %v22_v29  ;;  %v218_v40 = vadd.f32 %v217_v36, %v155_v31  ;;  %v38_v29 = vld [vmem:[%s501_s0 + $0xc8] sm:$0xff]  ;;  %v171_v31 = vmul.f32 %v37_v25, %v37_v25 }
  0x14   :  { %v87_v42 = vadd.f32 %v86_v38, %v23_v33  ;;  %v219_v44 = vadd.f32 %v218_v40, %v156_v35  ;;  %v39_v33 = vld [vmem:[%s501_s0 + $0xd0] sm:$0xff]  ;;  %v172_v35 = vmul.f32 %v38_v29, %v38_v29 }
  0x16   :  { %v88_v46 = vadd.f32 %v87_v42, %v24_v37  ;;  %v220_v48 = vadd.f32 %v219_v44, %v157_v39  ;;  %v40_v37 = vld [vmem:[%s501_s0 + $0xd8] sm:$0xff]  ;;  %v173_v39 = vmul.f32 %v39_v33, %v39_v33 }
  0x18   :  { %v89_v50 = vadd.f32 %v88_v46, %v25_v41  ;;  %v221_v52 = vadd.f32 %v220_v48, %v158_v43  ;;  %v41_v41 = vld [vmem:[%s501_s0 + $0xe0] sm:$0xff]  ;;  %v174_v43 = vmul.f32 %v40_v37, %v40_v37 }
  0x1a   :  { %v90_v54 = vadd.f32 %v89_v50, %v26_v45  ;;  %v222_v56 = vadd.f32 %v221_v52, %v159_v47  ;;  %v42_v45 = vld [vmem:[%s501_s0 + $0xe8] sm:$0xff]  ;;  %v175_v47 = vmul.f32 %v41_v41, %v41_v41 }
  0x1c   :  { %v91_v58 = vadd.f32 %v90_v54, %v27_v49  ;;  %v223_v60 = vadd.f32 %v222_v56, %v160_v51  ;;  %v43_v49 = vld [vmem:[%s501_s0 + $0xf0] sm:$0xff]  ;;  %v176_v51 = vmul.f32 %v42_v45, %v42_v45 }
  0x1e   :  { %v92_v62 = vadd.f32 %v91_v58, %v28_v53  ;;  %v224_v0 = vadd.f32 %v223_v60, %v161_v55  ;;  %v44_v53 = vld [vmem:[%s501_s0 + $0xf8] sm:$0xff]  ;;  %v177_v55 = vmul.f32 %v43_v49, %v43_v49 }
  0x20   :  { %v93_v2 = vadd.f32 %v92_v62, %v29_v57  ;;  %v225_v4 = vadd.f32 %v224_v0, %v162_v59  ;;  %v45_v57 = vld [vmem:[%s501_s0 + $0x100] sm:$0xff]  ;;  %v178_v59 = vmul.f32 %v44_v53, %v44_v53 }
  0x22   :  { %v94_v6 = vadd.f32 %v93_v2, %v30_v61  ;;  %v226_v8 = vadd.f32 %v225_v4, %v163_v63  ;;  %v46_v61 = vld [vmem:[%s501_s0 + $0x108] sm:$0xff]  ;;  %v179_v63 = vmul.f32 %v45_v57, %v45_v57 }
  0x24   :  { %v95_v10 = vadd.f32 %v94_v6, %v31_v1  ;;  %v227_v12 = vadd.f32 %v226_v8, %v164_v3  ;;  %v47_v1 = vld [vmem:[%s501_s0 + $0x110] sm:$0xff]  ;;  %v180_v3 = vmul.f32 %v46_v61, %v46_v61 }
  0x26   :  { %v96_v14 = vadd.f32 %v95_v10, %v32_v5  ;;  %v228_v16 = vadd.f32 %v227_v12, %v165_v7  ;;  %v48_v5 = vld [vmem:[%s501_s0 + $0x118] sm:$0xff]  ;;  %v181_v7 = vmul.f32 %v47_v1, %v47_v1 }
  0x28   :  { %v97_v18 = vadd.f32 %v96_v14, %v33_v9  ;;  %v229_v20 = vadd.f32 %v228_v16, %v166_v11  ;;  %v49_v9 = vld [vmem:[%s501_s0 + $0x120] sm:$0xff]  ;;  %v182_v11 = vmul.f32 %v48_v5, %v48_v5 }
  0x2a   :  { %v98_v22 = vadd.f32 %v97_v18, %v34_v13  ;;  %v230_v24 = vadd.f32 %v229_v20, %v167_v15  ;;  %v50_v13 = vld [vmem:[%s501_s0 + $0x128] sm:$0xff]  ;;  %v183_v15 = vmul.f32 %v49_v9, %v49_v9 }
  0x2c   :  { %v99_v26 = vadd.f32 %v98_v22, %v35_v17  ;;  %v231_v28 = vadd.f32 %v230_v24, %v168_v19  ;;  %v51_v17 = vld [vmem:[%s501_s0 + $0x130] sm:$0xff]  ;;  %v184_v19 = vmul.f32 %v50_v13, %v50_v13 }
  0x2e   :  { %v100_v30 = vadd.f32 %v99_v26, %v36_v21  ;;  %v232_v32 = vadd.f32 %v231_v28, %v169_v23  ;;  %v52_v21 = vld [vmem:[%s501_s0 + $0x138] sm:$0xff]  ;;  %v185_v23 = vmul.f32 %v51_v17, %v51_v17 }
  0x30   :  { %v101_v34 = vadd.f32 %v100_v30, %v37_v25  ;;  %v233_v36 = vadd.f32 %v232_v32, %v170_v27  ;;  %v53_v25 = vld [vmem:[%s501_s0 + $0x140] sm:$0xff]  ;;  %v186_v27 = vmul.f32 %v52_v21, %v52_v21 }
  0x32   :  { %v102_v38 = vadd.f32 %v101_v34, %v38_v29  ;;  %v234_v40 = vadd.f32 %v233_v36, %v171_v31  ;;  %v54_v29 = vld [vmem:[%s501_s0 + $0x148] sm:$0xff]  ;;  %v187_v31 = vmul.f32 %v53_v25, %v53_v25 }
  0x34   :  { %v103_v42 = vadd.f32 %v102_v38, %v39_v33  ;;  %v235_v44 = vadd.f32 %v234_v40, %v172_v35  ;;  %v55_v33 = vld [vmem:[%s501_s0 + $0x150] sm:$0xff]  ;;  %v188_v35 = vmul.f32 %v54_v29, %v54_v29 }
  0x36   :  { %v104_v46 = vadd.f32 %v103_v42, %v40_v37  ;;  %v236_v48 = vadd.f32 %v235_v44, %v173_v39  ;;  %v56_v37 = vld [vmem:[%s501_s0 + $0x158] sm:$0xff]  ;;  %v189_v39 = vmul.f32 %v55_v33, %v55_v33 }
  0x38   :  { %v105_v50 = vadd.f32 %v104_v46, %v41_v41  ;;  %v237_v52 = vadd.f32 %v236_v48, %v174_v43  ;;  %v57_v41 = vld [vmem:[%s501_s0 + $0x160] sm:$0xff]  ;;  %v190_v43 = vmul.f32 %v56_v37, %v56_v37 }
  0x3a   :  { %v106_v54 = vadd.f32 %v105_v50, %v42_v45  ;;  %v238_v56 = vadd.f32 %v237_v52, %v175_v47  ;;  %v58_v45 = vld [vmem:[%s501_s0 + $0x168] sm:$0xff]  ;;  %v191_v47 = vmul.f32 %v57_v41, %v57_v41 }
  0x3c   :  { %v107_v58 = vadd.f32 %v106_v54, %v43_v49  ;;  %v239_v60 = vadd.f32 %v238_v56, %v176_v51  ;;  %v59_v49 = vld [vmem:[%s501_s0 + $0x170] sm:$0xff]  ;;  %v192_v51 = vmul.f32 %v58_v45, %v58_v45 }
  0x3e   :  { %v108_v62 = vadd.f32 %v107_v58, %v44_v53  ;;  %v240_v0 = vadd.f32 %v239_v60, %v177_v55  ;;  %v60_v53 = vld [vmem:[%s501_s0 + $0x178] sm:$0xff]  ;;  %v193_v55 = vmul.f32 %v59_v49, %v59_v49 }
  0x40   :  { %v109_v2 = vadd.f32 %v108_v62, %v45_v57  ;;  %v241_v4 = vadd.f32 %v240_v0, %v178_v59  ;;  %v61_v57 = vld [vmem:[%s501_s0 + $0x180] sm:$0xff]  ;;  %v194_v59 = vmul.f32 %v60_v53, %v60_v53 }
  0x42   :  { %v110_v6 = vadd.f32 %v109_v2, %v46_v61  ;;  %v242_v8 = vadd.f32 %v241_v4, %v179_v63  ;;  %v62_v61 = vld [vmem:[%s501_s0 + $0x188] sm:$0xff]  ;;  %v195_v63 = vmul.f32 %v61_v57, %v61_v57 }
  0x44   :  { %v111_v10 = vadd.f32 %v110_v6, %v47_v1  ;;  %v243_v12 = vadd.f32 %v242_v8, %v180_v3  ;;  %v63_v1 = vld [vmem:[%s501_s0 + $0x190] sm:$0xff]  ;;  %v196_v3 = vmul.f32 %v62_v61, %v62_v61 }
  0x46   :  { %v112_v14 = vadd.f32 %v111_v10, %v48_v5  ;;  %v244_v16 = vadd.f32 %v243_v12, %v181_v7  ;;  %v64_v5 = vld [vmem:[%s501_s0 + $0x198] sm:$0xff]  ;;  %v197_v7 = vmul.f32 %v63_v1, %v63_v1 }
  0x48   :  { %v113_v18 = vadd.f32 %v112_v14, %v49_v9  ;;  %v245_v20 = vadd.f32 %v244_v16, %v182_v11  ;;  %v65_v9 = vld [vmem:[%s501_s0 + $0x1a0] sm:$0xff]  ;;  %v198_v11 = vmul.f32 %v64_v5, %v64_v5 }
  0x4a   :  { %v114_v22 = vadd.f32 %v113_v18, %v50_v13  ;;  %v246_v24 = vadd.f32 %v245_v20, %v183_v15  ;;  %v66_v13 = vld [vmem:[%s501_s0 + $0x1a8] sm:$0xff]  ;;  %v199_v15 = vmul.f32 %v65_v9, %v65_v9 }
  0x4c   :  { %v115_v26 = vadd.f32 %v114_v22, %v51_v17  ;;  %v247_v28 = vadd.f32 %v246_v24, %v184_v19  ;;  %v67_v17 = vld [vmem:[%s501_s0 + $0x1b0] sm:$0xff]  ;;  %v200_v19 = vmul.f32 %v66_v13, %v66_v13 }
  0x4e   :  { %v116_v30 = vadd.f32 %v115_v26, %v52_v21  ;;  %v248_v32 = vadd.f32 %v247_v28, %v185_v23  ;;  %v68_v21 = vld [vmem:[%s501_s0 + $0x1b8] sm:$0xff]  ;;  %v201_v23 = vmul.f32 %v67_v17, %v67_v17 }
  0x50   :  { %v117_v34 = vadd.f32 %v116_v30, %v53_v25  ;;  %v249_v36 = vadd.f32 %v248_v32, %v186_v27  ;;  %v69_v25 = vld [vmem:[%s501_s0 + $0x1c0] sm:$0xff]  ;;  %v202_v27 = vmul.f32 %v68_v21, %v68_v21 }
  0x52   :  { %v118_v38 = vadd.f32 %v117_v34, %v54_v29  ;;  %v250_v40 = vadd.f32 %v249_v36, %v187_v31  ;;  %v70_v29 = vld [vmem:[%s501_s0 + $0x1c8] sm:$0xff]  ;;  %v203_v31 = vmul.f32 %v69_v25, %v69_v25 }
  0x54   :  { %v119_v42 = vadd.f32 %v118_v38, %v55_v33  ;;  %v251_v44 = vadd.f32 %v250_v40, %v188_v35  ;;  %v71_v33 = vld [vmem:[%s501_s0 + $0x1d0] sm:$0xff]  ;;  %v204_v35 = vmul.f32 %v70_v29, %v70_v29 }
  0x56   :  { %v120_v46 = vadd.f32 %v119_v42, %v56_v37  ;;  %v252_v48 = vadd.f32 %v251_v44, %v189_v39  ;;  %v72_v37 = vld [vmem:[%s501_s0 + $0x1d8] sm:$0xff]  ;;  %v205_v39 = vmul.f32 %v71_v33, %v71_v33 }
  0x58   :  { %v121_v50 = vadd.f32 %v120_v46, %v57_v41  ;;  %v253_v52 = vadd.f32 %v252_v48, %v190_v43  ;;  %v73_v41 = vld [vmem:[%s501_s0 + $0x1e0] sm:$0xff]  ;;  %v206_v43 = vmul.f32 %v72_v37, %v72_v37 }
  0x5a   :  { %v122_v54 = vadd.f32 %v121_v50, %v58_v45  ;;  %v254_v56 = vadd.f32 %v253_v52, %v191_v47  ;;  %v74_v45 = vld [vmem:[%s501_s0 + $0x1e8] sm:$0xff]  ;;  %v207_v47 = vmul.f32 %v73_v41, %v73_v41 }
  0x5c   :  { %v123_v58 = vadd.f32 %v122_v54, %v59_v49  ;;  %v255_v60 = vadd.f32 %v254_v56, %v192_v51  ;;  %v75_v49 = vld [vmem:[%s501_s0 + $0x1f0] sm:$0xff]  ;;  %v208_v51 = vmul.f32 %v74_v45, %v74_v45 }
  0x5e   :  { %v124_v62 = vadd.f32 %v123_v58, %v60_v53  ;;  %v256_v0 = vadd.f32 %v255_v60, %v193_v55  ;;  %v76_v53 = vld [vmem:[%s501_s0 + $0x1f8] sm:$0xff]  ;;  %v209_v55 = vmul.f32 %v75_v49, %v75_v49 }
  0x5f   :  { %v210_v58 = vmul.f32 %v76_v53, %v76_v53 }
  0x60   :  { %v125_v2 = vadd.f32 %v124_v62, %v61_v57  ;;  %v257_v4 = vadd.f32 %v256_v0, %v194_v59 }
  0x62   :  { %v126_v6 = vadd.f32 %v125_v2, %v62_v61  ;;  %v258_v8 = vadd.f32 %v257_v4, %v195_v63 }
  0x64   :  { %v127_v10 = vadd.f32 %v126_v6, %v63_v1  ;;  %v259_v12 = vadd.f32 %v258_v8, %v196_v3 }
  0x66   :  { %v128_v14 = vadd.f32 %v127_v10, %v64_v5  ;;  %v260_v16 = vadd.f32 %v259_v12, %v197_v7  ;;  %v77_v10 = vld [vmem:[%s502_s1] sm:$0x3] }
  0x68   :  { %v129_v18 = vadd.f32 %v128_v14, %v65_v9  ;;  %v261_v20 = vadd.f32 %v260_v16, %v198_v11 }
  0x6a   :  { %v130_v22 = vadd.f32 %v129_v18, %v66_v13  ;;  %v262_v24 = vadd.f32 %v261_v20, %v199_v15 }
  0x6c   :  { %v131_v26 = vadd.f32 %v130_v22, %v67_v17  ;;  %v263_v28 = vadd.f32 %v262_v24, %v200_v19 }
  0x6e   :  { %v132_v30 = vadd.f32 %v131_v26, %v68_v21  ;;  %v264_v32 = vadd.f32 %v263_v28, %v201_v23 }
  0x70   :  { %v133_v34 = vadd.f32 %v132_v30, %v69_v25  ;;  %v265_v36 = vadd.f32 %v264_v32, %v202_v27 }
  0x72   :  { %v134_v38 = vadd.f32 %v133_v34, %v70_v29  ;;  %v266_v40 = vadd.f32 %v265_v36, %v203_v31 }
  0x74   :  { %v135_v42 = vadd.f32 %v134_v38, %v71_v33  ;;  %v267_v44 = vadd.f32 %v266_v40, %v204_v35 }
  0x76   :  { %v136_v46 = vadd.f32 %v135_v42, %v72_v37  ;;  %v268_v48 = vadd.f32 %v267_v44, %v205_v39 }
  0x78   :  { %v137_v50 = vadd.f32 %v136_v46, %v73_v41  ;;  %v269_v52 = vadd.f32 %v268_v48, %v206_v43 }
  0x7a   :  { %v138_v54 = vadd.f32 %v137_v50, %v74_v45  ;;  %v270_v56 = vadd.f32 %v269_v52, %v207_v47 }
  0x7c   :  { %v139_v57 = vadd.f32 %v138_v54, %v75_v49  ;;  %v271_v59 = vadd.f32 %v270_v56, %v208_v51 }
  0x7e   :  { %v140_v60 = vadd.f32 %v139_v57, %v76_v53  ;;  %v272_v61 = vadd.f32 %v271_v59, %v209_v55 }
  0x80   :  { %v141_v62 = vrot.slane %v140_v60, 4  ;;  %v273_v63 = vadd.f32 %v272_v61, %v210_v58 }
  0x82   :  { %v142_v0 = vadd.f32 %v141_v62, %v140_v60  ;;  %v274_v1 = vrot.slane %v273_v63, 4 }
  0x84   :  { %v143_v2 = vrot.slane %v142_v0, 2  ;;  %v275_v3 = vadd.f32 %v274_v1, %v273_v63 }
  0x86   :  { %v144_v4 = vadd.f32 %v143_v2, %v142_v0  ;;  %v276_v5 = vrot.slane %v275_v3, 2 }
  0x88   :  { %v145_v6 = vrot.slane %v144_v4, 1  ;;  %v277_v7 = vadd.f32 %v276_v5, %v275_v3 }
  0x8a   :  { %v146_v8 = vadd.f32 %v145_v6, %v144_v4  ;;  %v278_v9 = vrot.slane %v277_v7, 1 }
  0x8c   :  { %v279_v11 = vadd.f32 %v278_v9, %v277_v7 }
  0x8e   :  { %v281_v12 = vsel %vm280_vm0, %v146_v8, %v279_v11 }
  0x8f   :  { %v282_v13 = vadd.f32 %v281_v12, %v77_v10 }
  0x91   :  { %283 = vst [vmem:[%s502_s1] sm:$0x3] %v282_v13 }

// kernel: asp_oc_forward.51
= control target key start
LH: loop header
LB: loop body
LE: loop exit
PB: predicated region body
PF: predicated region fallthrough
CT: control target
= control target key end

     0   :  { %vm167_vm0 = vcmask 523264   ;;  %s6819_s5 = inlined_call_operand.vmem [shape: f32[320,128], index: 5, kind: input, shape index: {}]   ;;  %s6820_s1 = inlined_call_operand.vmem [shape: f32[512,64], index: 1, kind: input, shape index: {}]   ;;  %s6821_s2 = inlined_call_operand.vmem [shape: f32[512,64], index: 2, kind: input, shape index: {}]   ;;  %s6822_s3 = inlined_call_operand.vmem [shape: f32[512,64], index: 3, kind: input, shape index: {}]   ;;  %s6823_s0 = inlined_call_operand.vmem [shape: f32[512,64], index: 0, kind: input, shape index: {}]   ;;  %s6824_s4 = inlined_call_operand.vmem [shape: f32[512,64], index: 4, kind: input, shape index: {}]   ;;  %s6825_s6 = inlined_call_operand.vmem [shape: f32[512,128], index: 6, kind: output, shape index: {}]  }
   0x1   :  { %v159_v0 = vld [vmem:[%s6819_s5 + $0x40] sm:$0xff]  ;;  %v160_v1 = vld [vmem:[%s6819_s5 + $0x48] sm:$0xff]  ;;  %v161_v5 = vld [vmem:[%s6819_s5 + $0x50] sm:$0xff] }
   0x2   :  { %v1386_v2 = vld [vmem:[%s6819_s5 + $0x80] sm:$0xff]  ;;  %v4769_v3 = vpack.c.bf16 %v160_v1, %v159_v0  ;;  %v1387_v4 = vld [vmem:[%s6819_s5 + $0x88] sm:$0xff]  ;;  %v162_v6 = vld [vmem:[%s6819_s5 + $0x58] sm:$0xff] }
   0x3   :  { %v5166_v7 = vpack.c.bf16 %v1387_v4, %v1386_v2  ;;  %v4773_v8 = vpack.c.bf16 %v162_v6, %v161_v5  ;;  %v1388_v9 = vld [vmem:[%s6819_s5 + $0x90] sm:$0xff]  ;;  %v1389_v10 = vld [vmem:[%s6819_s5 + $0x98] sm:$0xff]  ;;  %v163_v11 = vld [vmem:[%s6819_s5 + $0x60] sm:$0xff] }
   0x4   :  { %4770 = vmatprep.subr.bf16.mxu1 %v4769_v3  ;;  %v5177_v12 = vpack.c.bf16 %v1389_v10, %v1388_v9  ;;  %v164_v13 = vld [vmem:[%s6819_s5 + $0x68] sm:$0xff]  ;;  %v1390_v14 = vld [vmem:[%s6819_s5 + $0xa0] sm:$0xff]  ;;  %v165_v20 = vld [vmem:[%s6819_s5 + $0x70] sm:$0xff] }
   0x5   :  { %v1391_v15 = vld [vmem:[%s6819_s5 + $0xa8] sm:$0xff]  ;;  %4802 = vmatprep.subr.bf16.mxu0 %v5166_v7  ;;  %4772 = vmatpush3.bf16.msra.mxu1 %v4769_v3  ;;  %v4777_v16 = vpack.c.bf16 %v164_v13, %v163_v11  ;;  %v95_v17 = vld [vmem:[%s6820_s1] sm:$0xff]  ;;  %v166_v21 = vld [vmem:[%s6819_s5 + $0x78] sm:$0xff] }
   0x6   :  { %4804 = vmatpush3.bf16.msra.mxu0 %v5166_v7  ;;  %4774 = vmatprep.subr.bf16.mxu1 %v4773_v8  ;;  %v1322_v18 = vld [vmem:[%s6821_s2] sm:$0xff]  ;;  %v5197_v19 = vpack.c.bf16 %v1391_v15, %v1390_v14  ;;  %v1392_v22 = vld [vmem:[%s6819_s5 + $0xb0] sm:$0xff]  ;;  %v1393_v23 = vld [vmem:[%s6819_s5 + $0xb8] sm:$0xff]  ;;  %v4781_v24 = vpack.c.bf16 %v166_v21, %v165_v20 }
   0x7   :  { %4806 = vmatprep.subr.bf16.mxu0 %v5177_v12  ;;  %4225 = vmatprep.mubr.msk.f32.mxu1 %vm167_vm0, %v95_v17  ;;  %v5215_v25 = vpack.c.bf16 %v1393_v23, %v1392_v22  ;;  %v87_v26 = vld [vmem:[%s6819_s5] sm:$0xff]  ;;  %v88_v27 = vld [vmem:[%s6819_s5 + $0x8] sm:$0xff]  ;;  %v2101_v32 = vld [vmem:[%s6819_s5 + $0xd0] sm:$0xff] }
   0x8   :  { %4449 = vmatprep.mubr.msk.f32.mxu0 %vm167_vm0, %v1322_v18  ;;  %v2099_v28 = vld [vmem:[%s6819_s5 + $0xc0] sm:$0xff]  ;;  %v2100_v29 = vld [vmem:[%s6819_s5 + $0xc8] sm:$0xff]  ;;  %v4785_v30 = vpack.c.bf16 %v88_v27, %v87_v26  ;;  %v2102_v33 = vld [vmem:[%s6819_s5 + $0xd8] sm:$0xff] }
   0x9   :  { %4776 = vmatpush3.bf16.msra.mxu1 %v4773_v8  ;;  %v4817_v31 = vpack.c.bf16 %v2100_v29, %v2099_v28  ;;  %v96_v34 = vld [vmem:[%s6820_s1 + $0x8] sm:$0xff]  ;;  %v97_v36 = vld [vmem:[%s6820_s1 + $0x10] sm:$0xff]  ;;  %v4821_v37 = vpack.c.bf16 %v2102_v33, %v2101_v32  ;;  %v90_v40 = vld [vmem:[%s6819_s5 + $0x18] sm:$0xff] }
   0xa   :  { %4808 = vmatpush3.bf16.msra.mxu0 %v5177_v12  ;;  %4778 = vmatprep.subr.bf16.mxu1 %v4777_v16  ;;  %v1323_v35 = vld [vmem:[%s6821_s2 + $0x8] sm:$0xff]  ;;  %v1324_v38 = vld [vmem:[%s6821_s2 + $0x10] sm:$0xff]  ;;  %v98_v41 = vld [vmem:[%s6820_s1 + $0x18] sm:$0xff] }
   0xb   :  { %4810 = vmatprep.subr.bf16.mxu0 %v5197_v19  ;;  %v89_v39 = vld [vmem:[%s6819_s5 + $0x10] sm:$0xff]  ;;  %v2103_v43 = vld [vmem:[%s6819_s5 + $0xe0] sm:$0xff]  ;;  %v2104_v44 = vld [vmem:[%s6819_s5 + $0xe8] sm:$0xff] }
   0xc   :  { %v4789_v42 = vpack.c.bf16 %v90_v40, %v89_v39  ;;  %v1325_v45 = vld [vmem:[%s6821_s2 + $0x18] sm:$0xff]  ;;  %v99_v46 = vld [vmem:[%s6820_s1 + $0x20] sm:$0xff]  ;;  %v4825_v48 = vpack.c.bf16 %v2104_v44, %v2103_v43  ;;  %v100_v49 = vld [vmem:[%s6820_s1 + $0x28] sm:$0xff] }
   0xd   :  { %4780 = vmatpush3.bf16.msra.mxu1 %v4777_v16  ;;  %v1326_v47 = vld [vmem:[%s6821_s2 + $0x20] sm:$0xff]  ;;  %v1327_v50 = vld [vmem:[%s6821_s2 + $0x28] sm:$0xff]  ;;  %v101_v51 = vld [vmem:[%s6820_s1 + $0x30] sm:$0xff] }
   0xe   :  { %4812 = vmatpush3.bf16.msra.mxu0 %v5197_v19  ;;  %4782 = vmatprep.subr.bf16.mxu1 %v4781_v24  ;;  %v1328_v52 = vld [vmem:[%s6821_s2 + $0x30] sm:$0xff]  ;;  %v2106_v54 = vld [vmem:[%s6819_s5 + $0xf8] sm:$0xff]  ;;  %v103_v58 = vld [vmem:[%s6820_s1 + $0x40] sm:$0xff] }
   0xf   :  { %4814 = vmatprep.subr.bf16.mxu0 %v5215_v25  ;;  %v2105_v53 = vld [vmem:[%s6819_s5 + $0xf0] sm:$0xff]  ;;  %v102_v56 = vld [vmem:[%s6820_s1 + $0x38] sm:$0xff]  ;;  %v1330_v59 = vld [vmem:[%s6821_s2 + $0x40] sm:$0xff] }
  0x10   :  { %v4829_v55 = vpack.c.bf16 %v2106_v54, %v2105_v53  ;;  %v1329_v57 = vld [vmem:[%s6821_s2 + $0x38] sm:$0xff]  ;;  %v91_v60 = vld [vmem:[%s6819_s5 + $0x20] sm:$0xff]  ;;  %v104_v61 = vld [vmem:[%s6820_s1 + $0x48] sm:$0xff] }
  0x11   :  { %4784 = vmatpush3.bf16.msra.mxu1 %v4781_v24  ;;  %v92_v62 = vld [vmem:[%s6819_s5 + $0x28] sm:$0xff]  ;;  %v2812_v63 = vld [vmem:[%s6819_s5 + $0x100] sm:$0xff]  ;;  %v105_v1 = vld [vmem:[%s6820_s1 + $0x50] sm:$0xff] }
  0x12   :  { %4816 = vmatpush3.bf16.msra.mxu0 %v5215_v25  ;;  %4786 = vmatprep.subr.bf16.mxu1 %v4785_v30  ;;  %v1331_v0 = vld [vmem:[%s6821_s2 + $0x48] sm:$0xff]  ;;  %v4793_v2 = vpack.c.bf16 %v92_v62, %v91_v60  ;;  %v1332_v4 = vld [vmem:[%s6821_s2 + $0x50] sm:$0xff]  ;;  %v106_v6 = vld [vmem:[%s6820_s1 + $0x58] sm:$0xff] }
  0x13   :  { %4818 = vmatprep.subr.bf16.mxu0 %v4817_v31  ;;  %v2813_v3 = vld [vmem:[%s6819_s5 + $0x108] sm:$0xff]  ;;  %v1333_v8 = vld [vmem:[%s6821_s2 + $0x58] sm:$0xff]  ;;  %v107_v9 = vld [vmem:[%s6820_s1 + $0x60] sm:$0xff] }
  0x14   :  { %4226 = vmatmul.mubr.msk.f32.vlgmr.msra.gmra.mrb[0].mxu1 %vm167_vm0, %v96_v34  ;;  %v5344_v5 = vpack.c.bf16 %v2813_v3, %v2812_v63  ;;  %v1334_v10 = vld [vmem:[%s6821_s2 + $0x60] sm:$0xff]  ;;  %v108_v11 = vld [vmem:[%s6820_s1 + $0x68] sm:$0xff]  ;;  %v109_v14 = vld [vmem:[%s6820_s1 + $0x70] sm:$0xff] }
  0x15   :  { %4450 = vmatmul.mubr.msk.f32.vlgmr.msra.gmra.mrb[0].mxu0 %vm167_vm0, %v1323_v35  ;;  %4788 = vmatpush3.bf16.msra.mxu1 %v4785_v30  ;;  %v1335_v13 = vld [vmem:[%s6821_s2 + $0x68] sm:$0xff]  ;;  %v1336_v15 = vld [vmem:[%s6821_s2 + $0x70] sm:$0xff]  ;;  %v110_v17 = vld [vmem:[%s6820_s1 + $0x78] sm:$0xff] }
  0x16   :  { %4820 = vmatpush3.bf16.msra.mxu0 %v4817_v31  ;;  %4228 = vmatprep.mubr.msk.f32.mxu1 %vm167_vm0, %v97_v36  ;;  %v93_v16 = vld [vmem:[%s6819_s5 + $0x30] sm:$0xff]  ;;  %v94_v18 = vld [vmem:[%s6819_s5 + $0x38] sm:$0xff]  ;;  %v111_v21 = vld [vmem:[%s6820_s1 + $0x80] sm:$0xff] }
  0x17   :  { %4452 = vmatprep.mubr.msk.f32.mxu0 %vm167_vm0, %v1324_v38  ;;  %4822 = vmatprep.subr.bf16.mxu0 %v4821_v37  ;;  %v1337_v20 = vld [vmem:[%s6821_s2 + $0x78] sm:$0xff]  ;;  %v4797_v22 = vpack.c.bf16 %v94_v18, %v93_v16  ;;  %v1338_v23 = vld [vmem:[%s6821_s2 + $0x80] sm:$0xff]  ;;  %v112_v24 = vld [vmem:[%s6820_s1 + $0x88] sm:$0xff] }
  0x18   :  { %4229 = vmatmul.mubr.msk.f32.gmra.mrb[2].mxu1 %vm167_vm0, %v98_v41  ;;  %4790 = vmatprep.subr.bf16.mxu1 %v4789_v42  ;;  %v1339_v26 = vld [vmem:[%s6821_s2 + $0x88] sm:$0xff]  ;;  %v113_v27 = vld [vmem:[%s6820_s1 + $0x90] sm:$0xff]  ;;  %v114_v29 = vld [vmem:[%s6820_s1 + $0x98] sm:$0xff] }
  0x19   :  { %4453 = vmatmul.mubr.msk.f32.gmra.mrb[2].mxu0 %vm167_vm0, %v1325_v45  ;;  %4231 = vmatprep.mubr.msk.f32.mxu1 %vm167_vm0, %v99_v46  ;;  %v1340_v28 = vld [vmem:[%s6821_s2 + $0x90] sm:$0xff]  ;;  %v1341_v30 = vld [vmem:[%s6821_s2 + $0x98] sm:$0xff]  ;;  %v115_v31 = vld [vmem:[%s6820_s1 + $0xa0] sm:$0xff] }
  0x1a   :  { %4455 = vmatprep.mubr.msk.f32.mxu0 %vm167_vm0, %v1326_v47  ;;  %4824 = vmatpush3.bf16.msra.mxu0 %v4821_v37  ;;  %v1342_v32 = vld [vmem:[%s6821_s2 + $0xa0] sm:$0xff]  ;;  %v116_v33 = vld [vmem:[%s6820_s1 + $0xa8] sm:$0xff]  ;;  %v117_v35 = vld [vmem:[%s6820_s1 + $0xb0] sm:$0xff] }
  0x1b   :  { %4826 = vmatprep.subr.bf16.mxu0 %v4825_v48  ;;  %4792 = vmatpush3.bf16.msra.mxu1 %v4789_v42  ;;  %v1343_v34 = vld [vmem:[%s6821_s2 + $0xa8] sm:$0xff]  ;;  %v1344_v36 = vld [vmem:[%s6821_s2 + $0xb0] sm:$0xff]  ;;  %v118_v37 = vld [vmem:[%s6820_s1 + $0xb8] sm:$0xff] }
  0x1c   :  { %4232 = vmatmul.mubr.msk.f32.gmra.mrb[4].mxu1 %vm167_vm0, %v100_v49  ;;  %4794 = vmatprep.subr.bf16.mxu1 %v4793_v2  ;;  %v1345_v38 = vld [vmem:[%s6821_s2 + $0xb8] sm:$0xff]  ;;  %v119_v39 = vld [vmem:[%s6820_s1 + $0xc0] sm:$0xff]  ;;  %v120_v41 = vld [vmem:[%s6820_s1 + $0xc8] sm:$0xff] }
  0x1d   :  { %4456 = vmatmul.mubr.msk.f32.gmra.mrb[4].mxu0 %vm167_vm0, %v1327_v50  ;;  %4234 = vmatprep.mubr.msk.f32.mxu1 %vm167_vm0, %v101_v51  ;;  %v1346_v40 = vld [vmem:[%s6821_s2 + $0xc0] sm:$0xff]  ;;  %v1347_v42 = vld [vmem:[%s6821_s2 + $0xc8] sm:$0xff]  ;;  %v121_v43 = vld [vmem:[%s6820_s1 + $0xd0] sm:$0xff] }
  0x1e   :  { %4458 = vmatprep.mubr.msk.f32.mxu0 %vm167_vm0, %v1328_v52  ;;  %4828 = vmatpush3.bf16.msra.mxu0 %v4825_v48  ;;  %v1348_v44 = vld [vmem:[%s6821_s2 + $0xd0] sm:$0xff]  ;;  %v122_v45 = vld [vmem:[%s6820_s1 + $0xd8] sm:$0xff]  ;;  %v123_v47 = vld [vmem:[%s6820_s1 + $0xe0] sm:$0xff] }
  0x1f   :  { %4830 = vmatprep.subr.bf16.mxu0 %v4829_v55  ;;  %4796 = vmatpush3.bf16.msra.mxu1 %v4793_v2  ;;  %v1349_v46 = vld [vmem:[%s6821_s2 + $0xd8] sm:$0xff]  ;;  %v1350_v48 = vld [vmem:[%s6821_s2 + $0xe0] sm:$0xff]  ;;  %v124_v49 = vld [vmem:[%s6820_s1 + $0xe8] sm:$0xff] }
  0x20   :  { %4235 = vmatmul.mubr.msk.f32.gmra.mrb[6].mxu1 %vm167_vm0, %v102_v56  ;;  %4798 = vmatprep.subr.bf16.mxu1 %v4797_v22  ;;  %v1351_v50 = vld [vmem:[%s6821_s2 + $0xe8] sm:$0xff]  ;;  %v125_v51 = vld [vmem:[%s6820_s1 + $0xf0] sm:$0xff]  ;;  %v126_v53 = vld [vmem:[%s6820_s1 + $0xf8] sm:$0xff] }
  0x21   :  { %4459 = vmatmul.mubr.msk.f32.gmra.mrb[6].mxu0 %vm167_vm0, %v1329_v57  ;;  %4237 = vmatprep.mubr.msk.f32.mxu1 %vm167_vm0, %v103_v58  ;;  %v1352_v52 = vld [vmem:[%s6821_s2 + $0xf0] sm:$0xff]  ;;  %v1353_v54 = vld [vmem:[%s6821_s2 + $0xf8] sm:$0xff]  ;;  %v2035_v56 = vld [vmem:[%s6822_s3] sm:$0xff] }
  0x22   :  { %4461 = vmatprep.mubr.msk.f32.mxu0 %vm167_vm0, %v1330_v59  ;;  %4832 = vmatpush3.bf16.msra.mxu0 %v4829_v55  ;;  %v127_v55 = vld [vmem:[%s6820_s1 + $0x100] sm:$0xff]  ;;  %v2814_v57 = vld [vmem:[%s6819_s5 + $0x110] sm:$0xff]  ;;  %v2815_v58 = vld [vmem:[%s6819_s5 + $0x118] sm:$0xff] }
  0x23   :  { %4834 = vmatprep.subr.bf16.mxu0 %v5344_v5  ;;  %4800 = vmatpush3.bf16.msra.mxu1 %v4797_v22  ;;  %v128_v59 = vld [vmem:[%s6820_s1 + $0x108] sm:$0xff]  ;;  %v2037_v62 = vld [vmem:[%s6822_s3 + $0x10] sm:$0xff]  ;;  %v4837_v63 = vpack.c.bf16 %v2815_v58, %v2814_v57  ;;  %v130_v2 = vld [vmem:[%s6820_s1 + $0x118] sm:$0xff] }
  0x24   :  { %4238 = vmatmul.mubr.msk.f32.gmra.mrb[8].mxu1 %vm167_vm0, %v104_v61  ;;  %4849 = vmatprep.subr.bf16.mxu1 %v5166_v7  ;;  %v2036_v60 = vld [vmem:[%s6822_s3 + $0x8] sm:$0xff]  ;;  %v129_v61 = vld [vmem:[%s6820_s1 + $0x110] sm:$0xff]  ;;  %v2038_v3 = vld [vmem:[%s6822_s3 + $0x18] sm:$0xff] }
  0x25   :  { %4462 = vmatmul.mubr.msk.f32.gmra.mrb[8].mxu0 %vm167_vm0, %v1331_v0  ;;  %4240 = vmatprep.mubr.msk.f32.mxu1 %vm167_vm0, %v105_v1  ;;  %v2816_v0 = vld [vmem:[%s6819_s5 + $0x120] sm:$0xff]  ;;  %v2817_v1 = vld [vmem:[%s6819_s5 + $0x128] sm:$0xff]  ;;  %v134_v16 = vld [vmem:[%s6820_s1 + $0x138] sm:$0xff] }
  0x26   :  { %4464 = vmatprep.mubr.msk.f32.mxu0 %vm167_vm0, %v1332_v4  ;;  %v131_v4 = vld [vmem:[%s6820_s1 + $0x120] sm:$0xff]  ;;  %v2044_v22 = vld [vmem:[%s6822_s3 + $0x48] sm:$0xff]  ;;  %v2061_v57 = vld [vmem:[%s6822_s3 + $0xd0] sm:$0xff] }
  0x27   :  { %v135_v18 = vld [vmem:[%s6820_s1 + $0x140] sm:$0xff]  ;;  %v154_v58 = vld [vmem:[%s6820_s1 + $0x1d8] sm:$0xff] }
  0x28   :  { %4241 = vmatmul.mubr.msk.f32.gmra.mrb[10].mxu1 %vm167_vm0, %v106_v6  ;;  %v2039_v6 = vld [vmem:[%s6822_s3 + $0x20] sm:$0xff] }
  0x29   :  { %4465 = vmatmul.mubr.msk.f32.gmra.mrb[10].mxu0 %vm167_vm0, %v1333_v8  ;;  %4243 = vmatprep.mubr.msk.f32.mxu1 %vm167_vm0, %v107_v9  ;;  %v4841_v8 = vpack.c.bf16 %v2817_v1, %v2816_v0  ;;  %v2819_v9 = vld [vmem:[%s6819_s5 + $0x138] sm:$0xff]  ;;  %v157_v0 = vld [vmem:[%s6820_s1 + $0x1f0] sm:$0xff] }
  0x2a   :  { %4467 = vmatprep.mubr.msk.f32.mxu0 %vm167_vm0, %v1334_v10  ;;  %v132_v10 = vld [vmem:[%s6820_s1 + $0x128] sm:$0xff]  ;;  %v2065_v1 = vld [vmem:[%s6822_s3 + $0xf0] sm:$0xff] }
  0x2c   :  { %4244 = vmatmul.mubr.msk.f32.gmra.mrb[12].mxu1 %vm167_vm0, %v108_v11  ;;  %v2040_v11 = vld [vmem:[%s6822_s3 + $0x28] sm:$0xff] }
  0x2d   :  { %4468 = vmatmul.mubr.msk.f32.gmra.mrb[12].mxu0 %vm167_vm0, %v1335_v13  ;;  %4246 = vmatprep.mubr.msk.f32.mxu1 %vm167_vm0, %v109_v14  ;;  %v133_v13 = vld [vmem:[%s6820_s1 + $0x130] sm:$0xff] }
  0x2e   :  { %4470 = vmatprep.mubr.msk.f32.mxu0 %vm167_vm0, %v1336_v15  ;;  %v2041_v14 = vld [vmem:[%s6822_s3 + $0x30] sm:$0xff] }
  0x30   :  { %4247 = vmatmul.mubr.msk.f32.gmra.mrb[14].mxu1 %vm167_vm0, %v110_v17  ;;  %v2042_v17 = vld [vmem:[%s6822_s3 + $0x38] sm:$0xff] }
  0x31   :  { %4471 = vmatmul.mubr.msk.f32.gmra.mrb[14].mxu0 %vm167_vm0, %v1337_v20  ;;  %4249 = vmatprep.mubr.msk.f32.mxu1 %vm167_vm0, %v111_v21  ;;  %v2043_v20 = vld [vmem:[%s6822_s3 + $0x40] sm:$0xff]  ;;  %v136_v21 = vld [vmem:[%s6820_s1 + $0x148] sm:$0xff] }
  0x32   :  { %4473 = vmatprep.mubr.msk.f32.mxu0 %vm167_vm0, %v1338_v23  ;;  %v137_v23 = vld [vmem:[%s6820_s1 + $0x150] sm:$0xff] }
  0x34   :  { %4250 = vmatmul.mubr.msk.f32.gmra.mrb[16].mxu1 %vm167_vm0, %v112_v24  ;;  %v2045_v24 = vld [vmem:[%s6822_s3 + $0x50] sm:$0xff] }
  0x35   :  { %4474 = vmatmul.mubr.msk.f32.gmra.mrb[16].mxu0 %vm167_vm0, %v1339_v26  ;;  %4252 = vmatprep.mubr.msk.f32.mxu1 %vm167_vm0, %v113_v27  ;;  %v138_v26 = vld [vmem:[%s6820_s1 + $0x158] sm:$0xff] }
  0x36   :  { %4476 = vmatprep.mubr.msk.f32.mxu0 %vm167_vm0, %v1340_v28  ;;  %v2046_v27 = vld [vmem:[%s6822_s3 + $0x58] sm:$0xff]  ;;  %v139_v28 = vld [vmem:[%s6820_s1 + $0x160] sm:$0xff] }
  0x38   :  { %4253 = vmatmul.mubr.msk.f32.gmra.mrb[18].mxu1 %vm167_vm0, %v114_v29  ;;  %v2047_v29 = vld [vmem:[%s6822_s3 + $0x60] sm:$0xff] }
  0x39   :  { %4477 = vmatmul.mubr.msk.f32.gmra.mrb[18].mxu0 %vm167_vm0, %v1341_v30  ;;  %4255 = vmatprep.mubr.msk.f32.mxu1 %vm167_vm0, %v115_v31  ;;  %v140_v30 = vld [vmem:[%s6820_s1 + $0x168] sm:$0xff] }
  0x3a   :  { %4479 = vmatprep.mubr.msk.f32.mxu0 %vm167_vm0, %v1342_v32  ;;  %v2048_v31 = vld [vmem:[%s6822_s3 + $0x68] sm:$0xff]  ;;  %v141_v32 = vld [vmem:[%s6820_s1 + $0x170] sm:$0xff] }
  0x3c   :  { %4256 = vmatmul.mubr.msk.f32.gmra.mrb[20].mxu1 %vm167_vm0, %v116_v33  ;;  %v2049_v33 = vld [vmem:[%s6822_s3 + $0x70] sm:$0xff] }
  0x3d   :  { %4480 = vmatmul.mubr.msk.f32.gmra.mrb[20].mxu0 %vm167_vm0, %v1343_v34  ;;  %4258 = vmatprep.mubr.msk.f32.mxu1 %vm167_vm0, %v117_v35  ;;  %v142_v34 = vld [vmem:[%s6820_s1 + $0x178] sm:$0xff] }
  0x3e   :  { %4482 = vmatprep.mubr.msk.f32.mxu0 %vm167_vm0, %v1344_v36  ;;  %v2050_v35 = vld [vmem:[%s6822_s3 + $0x78] sm:$0xff]  ;;  %v143_v36 = vld [vmem:[%s6820_s1 + $0x180] sm:$0xff] }
  0x40   :  { %4259 = vmatmul.mubr.msk.f32.gmra.mrb[22].mxu1 %vm167_vm0, %v118_v37  ;;  %v2051_v37 = vld [vmem:[%s6822_s3 + $0x80] sm:$0xff] }
  0x41   :  { %4483 = vmatmul.mubr.msk.f32.gmra.mrb[22].mxu0 %vm167_vm0, %v1345_v38  ;;  %4261 = vmatprep.mubr.msk.f32.mxu1 %vm167_vm0, %v119_v39  ;;  %v144_v38 = vld [vmem:[%s6820_s1 + $0x188] sm:$0xff] }
  0x42   :  { %4485 = vmatprep.mubr.msk.f32.mxu0 %vm167_vm0, %v1346_v40  ;;  %v2052_v39 = vld [vmem:[%s6822_s3 + $0x88] sm:$0xff]  ;;  %v145_v40 = vld [vmem:[%s6820_s1 + $0x190] sm:$0xff] }
  0x44   :  { %4262 = vmatmul.mubr.msk.f32.gmra.mrb[24].mxu1 %vm167_vm0, %v120_v41  ;;  %v2053_v41 = vld [vmem:[%s6822_s3 + $0x90] sm:$0xff] }
  0x45   :  { %4486 = vmatmul.mubr.msk.f32.gmra.mrb[24].mxu0 %vm167_vm0, %v1347_v42  ;;  %4264 = vmatprep.mubr.msk.f32.mxu1 %vm167_vm0, %v121_v43  ;;  %v146_v42 = vld [vmem:[%s6820_s1 + $0x198] sm:$0xff] }
  0x46   :  { %4488 = vmatprep.mubr.msk.f32.mxu0 %vm167_vm0, %v1348_v44  ;;  %v2054_v43 = vld [vmem:[%s6822_s3 + $0x98] sm:$0xff]  ;;  %v147_v44 = vld [vmem:[%s6820_s1 + $0x1a0] sm:$0xff] }
  0x48   :  { %4265 = vmatmul.mubr.msk.f32.gmra.mrb[26].mxu1 %vm167_vm0, %v122_v45  ;;  %v2055_v45 = vld [vmem:[%s6822_s3 + $0xa0] sm:$0xff] }
  0x49   :  { %4489 = vmatmul.mubr.msk.f32.gmra.mrb[26].mxu0 %vm167_vm0, %v1349_v46  ;;  %4267 = vmatprep.mubr.msk.f32.mxu1 %vm167_vm0, %v123_v47  ;;  %v148_v46 = vld [vmem:[%s6820_s1 + $0x1a8] sm:$0xff] }
  0x4a   :  { %4491 = vmatprep.mubr.msk.f32.mxu0 %vm167_vm0, %v1350_v48  ;;  %v2056_v47 = vld [vmem:[%s6822_s3 + $0xa8] sm:$0xff]  ;;  %v149_v48 = vld [vmem:[%s6820_s1 + $0x1b0] sm:$0xff] }
  0x4c   :  { %4268 = vmatmul.mubr.msk.f32.gmra.mrb[28].mxu1 %vm167_vm0, %v124_v49  ;;  %v2057_v49 = vld [vmem:[%s6822_s3 + $0xb0] sm:$0xff] }
  0x4d   :  { %4492 = vmatmul.mubr.msk.f32.gmra.mrb[28].mxu0 %vm167_vm0, %v1351_v50  ;;  %4270 = vmatprep.mubr.msk.f32.mxu1 %vm167_vm0, %v125_v51  ;;  %v150_v50 = vld [vmem:[%s6820_s1 + $0x1b8] sm:$0xff] }
  0x4e   :  { %4494 = vmatprep.mubr.msk.f32.mxu0 %vm167_vm0, %v1352_v52  ;;  %v2058_v51 = vld [vmem:[%s6822_s3 + $0xb8] sm:$0xff]  ;;  %v151_v52 = vld [vmem:[%s6820_s1 + $0x1c0] sm:$0xff] }
  0x50   :  { %4271 = vmatmul.mubr.msk.f32.gmra.mrb[30].mxu1 %vm167_vm0, %v126_v53  ;;  %v2059_v53 = vld [vmem:[%s6822_s3 + $0xc0] sm:$0xff] }
  0x51   :  { %4495 = vmatmul.mubr.msk.f32.gmra.mrb[30].mxu0 %vm167_vm0, %v1353_v54  ;;  %4273 = vmatprep.mubr.msk.f32.mxu1 %vm167_vm0, %v127_v55  ;;  %v152_v54 = vld [vmem:[%s6820_s1 + $0x1c8] sm:$0xff] }
  0x52   :  { %4561 = vmatprep.mubr.msk.f32.mxu0 %vm167_vm0, %v2035_v56  ;;  %v2060_v55 = vld [vmem:[%s6822_s3 + $0xc8] sm:$0xff]  ;;  %v153_v56 = vld [vmem:[%s6820_s1 + $0x1d0] sm:$0xff] }
  0x54   :  { %4274 = vmatmul.mubr.msk.f32.gmra.mrb[32].mxu1 %vm167_vm0, %v128_v59  ;;  %v2062_v59 = vld [vmem:[%s6822_s3 + $0xd8] sm:$0xff] }
  0x55   :  { %4562 = vmatmul.mubr.msk.f32.vlgmr.msra.gmra.mrb[0].mxu0 %vm167_vm0, %v2036_v60  ;;  %4276 = vmatprep.mubr.msk.f32.mxu1 %vm167_vm0, %v129_v61  ;;  %v155_v60 = vld [vmem:[%s6820_s1 + $0x1e0] sm:$0xff] }
  0x56   :  { %4836 = vmatpush3.bf16.msra.mxu0 %v5344_v5  ;;  %4564 = vmatprep.mubr.msk.f32.mxu0 %vm167_vm0, %v2037_v62  ;;  %v2818_v5 = vld [vmem:[%s6819_s5 + $0x130] sm:$0xff]  ;;  %v2063_v61 = vld [vmem:[%s6822_s3 + $0xe0] sm:$0xff]  ;;  %v156_v62 = vld [vmem:[%s6820_s1 + $0x1e8] sm:$0xff] }
  0x57   :  { %4838 = vmatprep.subr.bf16.mxu0 %v4837_v63  ;;  %v4845_v15 = vpack.c.bf16 %v2819_v9, %v2818_v5  ;;  %v2068_v5 = vld [vmem:[%s6822_s3 + $0x108] sm:$0xff]  ;;  %v25_v9 = vld [vmem:[%s6823_s0 + $0x10] sm:$0xff] }
  0x58   :  { %4277 = vmatmul.mubr.msk.f32.gmra.mrb[34].mxu1 %vm167_vm0, %v130_v2  ;;  %v158_v2 = vld [vmem:[%s6820_s1 + $0x1f8] sm:$0xff] }
  0x59   :  { %4565 = vmatmul.mubr.msk.f32.gmra.mrb[2].mxu0 %vm167_vm0, %v2038_v3  ;;  %4279 = vmatprep.mubr.msk.f32.mxu1 %vm167_vm0, %v131_v4  ;;  %v2066_v3 = vld [vmem:[%s6822_s3 + $0xf8] sm:$0xff]  ;;  %v23_v4 = vld [vmem:[%s6823_s0] sm:$0xff] }
  0x5a   :  { %4567 = vmatprep.mubr.msk.f32.mxu0 %vm167_vm0, %v2039_v6  ;;  %4840 = vmatpush3.bf16.msra.mxu0 %v4837_v63  ;;  %v2064_v63 = vld [vmem:[%s6822_s3 + $0xe8] sm:$0xff]  ;;  %v2067_v6 = vld [vmem:[%s6822_s3 + $0x100] sm:$0xff] }
  0x5b   :  { %4842 = vmatprep.subr.bf16.mxu0 %v4841_v8 }
  0x5c   :  { %4280 = vmatmul.mubr.msk.f32.gmra.mrb[36].mxu1 %vm167_vm0, %v132_v10  ;;  %v2069_v10 = vld [vmem:[%s6822_s3 + $0x110] sm:$0xff] }
  0x5d   :  { %4568 = vmatmul.mubr.msk.f32.gmra.mrb[4].mxu0 %vm167_vm0, %v2040_v11  ;;  %4282 = vmatprep.mubr.msk.f32.mxu1 %vm167_vm0, %v133_v13  ;;  %v26_v11 = vld [vmem:[%s6823_s0 + $0x18] sm:$0xff] }
  0x5e   :  { %4570 = vmatprep.mubr.msk.f32.mxu0 %vm167_vm0, %v2041_v14  ;;  %4844 = vmatpush3.bf16.msra.mxu0 %v4841_v8  ;;  %v24_v8 = vld [vmem:[%s6823_s0 + $0x8] sm:$0xff]  ;;  %v2070_v13 = vld [vmem:[%s6822_s3 + $0x118] sm:$0xff]  ;;  %v27_v14 = vld [vmem:[%s6823_s0 + $0x20] sm:$0xff] }
  0x5f   :  { %4846 = vmatprep.subr.bf16.mxu0 %v4845_v15 }
  0x60   :  { %4283 = vmatmul.mubr.msk.f32.gmra.mrb[38].mxu1 %vm167_vm0, %v134_v16  ;;  %v2072_v16 = vld [vmem:[%s6822_s3 + $0x128] sm:$0xff] }
  0x61   :  { %4571 = vmatmul.mubr.msk.f32.gmra.mrb[6].mxu0 %vm167_vm0, %v2042_v17  ;;  %4285 = vmatprep.mubr.msk.f32.mxu1 %vm167_vm0, %v135_v18  ;;  %v29_v17 = vld [vmem:[%s6823_s0 + $0x30] sm:$0xff] }
  0x62   :  { %4573 = vmatprep.mubr.msk.f32.mxu0 %vm167_vm0, %v2043_v20  ;;  %4848 = vmatpush3.bf16.msra.mxu0 %v4845_v15  ;;  %v28_v15 = vld [vmem:[%s6823_s0 + $0x28] sm:$0xff]  ;;  %v2073_v18 = vld [vmem:[%s6822_s3 + $0x130] sm:$0xff]  ;;  %v30_v20 = vld [vmem:[%s6823_s0 + $0x38] sm:$0xff] }
  0x64   :  { %4286 = vmatmul.mubr.msk.f32.gmra.mrb[40].mxu1 %vm167_vm0, %v136_v21  ;;  %v31_v21 = vld [vmem:[%s6823_s0 + $0x40] sm:$0xff] }
  0x65   :  { %4574 = vmatmul.mubr.msk.f32.gmra.mrb[8].mxu0 %vm167_vm0, %v2044_v22  ;;  %4288 = vmatprep.mubr.msk.f32.mxu1 %vm167_vm0, %v137_v23  ;;  %v2075_v22 = vld [vmem:[%s6822_s3 + $0x140] sm:$0xff]  ;;  %v32_v23 = vld [vmem:[%s6823_s0 + $0x48] sm:$0xff] }
  0x66   :  { %4576 = vmatprep.mubr.msk.f32.mxu0 %vm167_vm0, %v2045_v24  ;;  %v33_v24 = vld [vmem:[%s6823_s0 + $0x50] sm:$0xff] }
  0x68   :  { %4289 = vmatmul.mubr.msk.f32.gmra.mrb[42].mxu1 %vm167_vm0, %v138_v26  ;;  %v2077_v26 = vld [vmem:[%s6822_s3 + $0x150] sm:$0xff] }
  0x69   :  { %4577 = vmatmul.mubr.msk.f32.gmra.mrb[10].mxu0 %vm167_vm0, %v2046_v27  ;;  %4291 = vmatprep.mubr.msk.f32.mxu1 %vm167_vm0, %v139_v28  ;;  %v34_v27 = vld [vmem:[%s6823_s0 + $0x58] sm:$0xff]  ;;  %v35_v28 = vld [vmem:[%s6823_s0 + $0x60] sm:$0xff] }
  0x6a   :  { %4579 = vmatprep.mubr.msk.f32.mxu0 %vm167_vm0, %v2047_v29  ;;  %v2079_v29 = vld [vmem:[%s6822_s3 + $0x160] sm:$0xff] }
  0x6c   :  { %4292 = vmatmul.mubr.msk.f32.gmra.mrb[44].mxu1 %vm167_vm0, %v140_v30  ;;  %v36_v30 = vld [vmem:[%s6823_s0 + $0x68] sm:$0xff] }
  0x6d   :  { %4580 = vmatmul.mubr.msk.f32.gmra.mrb[12].mxu0 %vm167_vm0, %v2048_v31  ;;  %4294 = vmatprep.mubr.msk.f32.mxu1 %vm167_vm0, %v141_v32  ;;  %v2080_v31 = vld [vmem:[%s6822_s3 + $0x168] sm:$0xff]  ;;  %v37_v32 = vld [vmem:[%s6823_s0 + $0x70] sm:$0xff] }
  0x6e   :  { %4582 = vmatprep.mubr.msk.f32.mxu0 %vm167_vm0, %v2049_v33  ;;  %v2081_v33 = vld [vmem:[%s6822_s3 + $0x170] sm:$0xff] }
  0x70   :  { %4295 = vmatmul.mubr.msk.f32.gmra.mrb[46].mxu1 %vm167_vm0, %v142_v34  ;;  %v38_v34 = vld [vmem:[%s6823_s0 + $0x78] sm:$0xff] }
  0x71   :  { %4583 = vmatmul.mubr.msk.f32.gmra.mrb[14].mxu0 %vm167_vm0, %v2050_v35  ;;  %4297 = vmatprep.mubr.msk.f32.mxu1 %vm167_vm0, %v143_v36  ;;  %v2082_v35 = vld [vmem:[%s6822_s3 + $0x178] sm:$0xff]  ;;  %v39_v36 = vld [vmem:[%s6823_s0 + $0x80] sm:$0xff] }
  0x72   :  { %4585 = vmatprep.mubr.msk.f32.mxu0 %vm167_vm0, %v2051_v37  ;;  %v2083_v37 = vld [vmem:[%s6822_s3 + $0x180] sm:$0xff] }
  0x74   :  { %4298 = vmatmul.mubr.msk.f32.gmra.mrb[48].mxu1 %vm167_vm0, %v144_v38  ;;  %v40_v38 = vld [vmem:[%s6823_s0 + $0x88] sm:$0xff] }
  0x75   :  { %4586 = vmatmul.mubr.msk.f32.gmra.mrb[16].mxu0 %vm167_vm0, %v2052_v39  ;;  %4300 = vmatprep.mubr.msk.f32.mxu1 %vm167_vm0, %v145_v40  ;;  %v2084_v39 = vld [vmem:[%s6822_s3 + $0x188] sm:$0xff]  ;;  %v41_v40 = vld [vmem:[%s6823_s0 + $0x90] sm:$0xff] }
  0x76   :  { %4588 = vmatprep.mubr.msk.f32.mxu0 %vm167_vm0, %v2053_v41  ;;  %v2085_v41 = vld [vmem:[%s6822_s3 + $0x190] sm:$0xff] }
  0x78   :  { %4301 = vmatmul.mubr.msk.f32.gmra.mrb[50].mxu1 %vm167_vm0, %v146_v42  ;;  %v42_v42 = vld [vmem:[%s6823_s0 + $0x98] sm:$0xff] }
  0x79   :  { %4589 = vmatmul.mubr.msk.f32.gmra.mrb[18].mxu0 %vm167_vm0, %v2054_v43  ;;  %4303 = vmatprep.mubr.msk.f32.mxu1 %vm167_vm0, %v147_v44  ;;  %v2086_v43 = vld [vmem:[%s6822_s3 + $0x198] sm:$0xff]  ;;  %v43_v44 = vld [vmem:[%s6823_s0 + $0xa0] sm:$0xff] }
  0x7a   :  { %4591 = vmatprep.mubr.msk.f32.mxu0 %vm167_vm0, %v2055_v45  ;;  %v2087_v45 = vld [vmem:[%s6822_s3 + $0x1a0] sm:$0xff] }
  0x7c   :  { %4304 = vmatmul.mubr.msk.f32.gmra.mrb[52].mxu1 %vm167_vm0, %v148_v46  ;;  %v44_v46 = vld [vmem:[%s6823_s0 + $0xa8] sm:$0xff] }
  0x7d   :  { %4592 = vmatmul.mubr.msk.f32.gmra.mrb[20].mxu0 %vm167_vm0, %v2056_v47  ;;  %4306 = vmatprep.mubr.msk.f32.mxu1 %vm167_vm0, %v149_v48  ;;  %v2088_v47 = vld [vmem:[%s6822_s3 + $0x1a8] sm:$0xff]  ;;  %v45_v48 = vld [vmem:[%s6823_s0 + $0xb0] sm:$0xff] }
  0x7e   :  { %4594 = vmatprep.mubr.msk.f32.mxu0 %vm167_vm0, %v2057_v49  ;;  %v2089_v49 = vld [vmem:[%s6822_s3 + $0x1b0] sm:$0xff] }
  0x80   :  { %4307 = vmatmul.mubr.msk.f32.gmra.mrb[54].mxu1 %vm167_vm0, %v150_v50  ;;  %v46_v50 = vld [vmem:[%s6823_s0 + $0xb8] sm:$0xff] }
  0x81   :  { %4595 = vmatmul.mubr.msk.f32.gmra.mrb[22].mxu0 %vm167_vm0, %v2058_v51  ;;  %4309 = vmatprep.mubr.msk.f32.mxu1 %vm167_vm0, %v151_v52  ;;  %v2090_v51 = vld [vmem:[%s6822_s3 + $0x1b8] sm:$0xff]  ;;  %v47_v52 = vld [vmem:[%s6823_s0 + $0xc0] sm:$0xff] }
  0x82   :  { %4597 = vmatprep.mubr.msk.f32.mxu0 %vm167_vm0, %v2059_v53  ;;  %v2091_v53 = vld [vmem:[%s6822_s3 + $0x1c0] sm:$0xff] }
  0x84   :  { %4310 = vmatmul.mubr.msk.f32.gmra.mrb[56].mxu1 %vm167_vm0, %v152_v54  ;;  %v48_v54 = vld [vmem:[%s6823_s0 + $0xc8] sm:$0xff] }
  0x85   :  { %4598 = vmatmul.mubr.msk.f32.gmra.mrb[24].mxu0 %vm167_vm0, %v2060_v55  ;;  %4312 = vmatprep.mubr.msk.f32.mxu1 %vm167_vm0, %v153_v56  ;;  %v2092_v55 = vld [vmem:[%s6822_s3 + $0x1c8] sm:$0xff]  ;;  %v49_v56 = vld [vmem:[%s6823_s0 + $0xd0] sm:$0xff] }
  0x86   :  { %4600 = vmatprep.mubr.msk.f32.mxu0 %vm167_vm0, %v2061_v57  ;;  %v2093_v57 = vld [vmem:[%s6822_s3 + $0x1d0] sm:$0xff] }
  0x88   :  { %4313 = vmatmul.mubr.msk.f32.gmra.mrb[58].mxu1 %vm167_vm0, %v154_v58  ;;  %v50_v58 = vld [vmem:[%s6823_s0 + $0xd8] sm:$0xff] }
  0x89   :  { %4601 = vmatmul.mubr.msk.f32.gmra.mrb[26].mxu0 %vm167_vm0, %v2062_v59  ;;  %4315 = vmatprep.mubr.msk.f32.mxu1 %vm167_vm0, %v155_v60  ;;  %v2094_v59 = vld [vmem:[%s6822_s3 + $0x1d8] sm:$0xff]  ;;  %v51_v60 = vld [vmem:[%s6823_s0 + $0xe0] sm:$0xff] }
  0x8a   :  { %4603 = vmatprep.mubr.msk.f32.mxu0 %vm167_vm0, %v2063_v61  ;;  %v2095_v61 = vld [vmem:[%s6822_s3 + $0x1e0] sm:$0xff] }
  0x8c   :  { %4316 = vmatmul.mubr.msk.f32.gmra.mrb[60].mxu1 %vm167_vm0, %v156_v62  ;;  %v52_v62 = vld [vmem:[%s6823_s0 + $0xe8] sm:$0xff] }
  0x8d   :  { %4604 = vmatmul.mubr.msk.f32.gmra.mrb[28].mxu0 %vm167_vm0, %v2064_v63  ;;  %4318 = vmatprep.mubr.msk.f32.mxu1 %vm167_vm0, %v157_v0  ;;  %v2096_v63 = vld [vmem:[%s6822_s3 + $0x1e8] sm:$0xff]  ;;  %v53_v0 = vld [vmem:[%s6823_s0 + $0xf0] sm:$0xff] }
  0x8e   :  { %4606 = vmatprep.mubr.msk.f32.mxu0 %vm167_vm0, %v2065_v1  ;;  %v2097_v1 = vld [vmem:[%s6822_s3 + $0x1f0] sm:$0xff] }
  0x90   :  { %4319 = vmatmul.mubr.msk.f32.gmra.mrb[62].mxu1 %vm167_vm0, %v158_v2  ;;  %v54_v2 = vld [vmem:[%s6823_s0 + $0xf8] sm:$0xff] }
  0x91   :  { %4607 = vmatmul.mubr.msk.f32.gmra.mrb[30].mxu0 %vm167_vm0, %v2066_v3  ;;  %4337 = vmatprep.mubr.msk.f32.mxu1 %vm167_vm0, %v23_v4  ;;  %v2098_v3 = vld [vmem:[%s6822_s3 + $0x1f8] sm:$0xff]  ;;  %v55_v4 = vld [vmem:[%s6823_s0 + $0x100] sm:$0xff] }
  0x92   :  { %4609 = vmatprep.mubr.msk.f32.mxu0 %vm167_vm0, %v2067_v6  ;;  %v2748_v6 = vld [vmem:[%s6824_s4] sm:$0xff] }
  0x94   :  { %4338 = vmatmul.mubr.msk.f32.vlgmr.msra.gmra.mrb[0].mxu1 %vm167_vm0, %v24_v8  ;;  %v56_v8 = vld [vmem:[%s6823_s0 + $0x108] sm:$0xff] }
  0x95   :  { %4610 = vmatmul.mubr.msk.f32.gmra.mrb[32].mxu0 %vm167_vm0, %v2068_v5  ;;  %4853 = vmatpush3.bf16.msra.mxu1 %v5166_v7  ;;  %v2071_v7 = vld [vmem:[%s6822_s3 + $0x120] sm:$0xff]  ;;  %v2749_v5 = vld [vmem:[%s6824_s4 + $0x8] sm:$0xff] }
  0x96   :  { %4340 = vmatprep.mubr.msk.f32.mxu1 %vm167_vm0, %v25_v9  ;;  %4612 = vmatprep.mubr.msk.f32.mxu0 %vm167_vm0, %v2069_v10  ;;  %v57_v9 = vld [vmem:[%s6823_s0 + $0x110] sm:$0xff] }
  0x97   :  { %4850 = vmatprep.subr.bf16.mxu1 %v5177_v12  ;;  %v2750_v10 = vld [vmem:[%s6824_s4 + $0x10] sm:$0xff] }
  0x98   :  { %4341 = vmatmul.mubr.msk.f32.gmra.mrb[2].mxu1 %vm167_vm0, %v26_v11  ;;  %v58_v11 = vld [vmem:[%s6823_s0 + $0x118] sm:$0xff] }
  0x99   :  { %4613 = vmatmul.mubr.msk.f32.gmra.mrb[34].mxu0 %vm167_vm0, %v2070_v13  ;;  %4343 = vmatprep.mubr.msk.f32.mxu1 %vm167_vm0, %v27_v14  ;;  %v2751_v13 = vld [vmem:[%s6824_s4 + $0x18] sm:$0xff]  ;;  %v59_v14 = vld [vmem:[%s6823_s0 + $0x120] sm:$0xff] }
  0x9a   :  { %4615 = vmatprep.mubr.msk.f32.mxu0 %vm167_vm0, %v2071_v7  ;;  %4854 = vmatpush3.bf16.msra.mxu1 %v5177_v12  ;;  %v2074_v12 = vld [vmem:[%s6822_s3 + $0x138] sm:$0xff]  ;;  %v2752_v7 = vld [vmem:[%s6824_s4 + $0x20] sm:$0xff] }
  0x9b   :  { %4851 = vmatprep.subr.bf16.mxu1 %v5197_v19 }
  0x9c   :  { %4344 = vmatmul.mubr.msk.f32.gmra.mrb[4].mxu1 %vm167_vm0, %v28_v15  ;;  %v60_v15 = vld [vmem:[%s6823_s0 + $0x128] sm:$0xff] }
  0x9d   :  { %4616 = vmatmul.mubr.msk.f32.gmra.mrb[36].mxu0 %vm167_vm0, %v2072_v16  ;;  %4346 = vmatprep.mubr.msk.f32.mxu1 %vm167_vm0, %v29_v17  ;;  %v2753_v16 = vld [vmem:[%s6824_s4 + $0x28] sm:$0xff]  ;;  %v61_v17 = vld [vmem:[%s6823_s0 + $0x130] sm:$0xff] }
  0x9e   :  { %4618 = vmatprep.mubr.msk.f32.mxu0 %vm167_vm0, %v2073_v18  ;;  %4855 = vmatpush3.bf16.msra.mxu1 %v5197_v19  ;;  %v2076_v19 = vld [vmem:[%s6822_s3 + $0x148] sm:$0xff]  ;;  %v2754_v18 = vld [vmem:[%s6824_s4 + $0x30] sm:$0xff] }
  0x9f   :  { %4852 = vmatprep.subr.bf16.mxu1 %v5215_v25 }
  0xa0   :  { %4347 = vmatmul.mubr.msk.f32.gmra.mrb[6].mxu1 %vm167_vm0, %v30_v20  ;;  %v62_v20 = vld [vmem:[%s6823_s0 + $0x138] sm:$0xff] }
  0xa1   :  { %4619 = vmatmul.mubr.msk.f32.gmra.mrb[38].mxu0 %vm167_vm0, %v2074_v12  ;;  %4349 = vmatprep.mubr.msk.f32.mxu1 %vm167_vm0, %v31_v21  ;;  %v2755_v12 = vld [vmem:[%s6824_s4 + $0x38] sm:$0xff]  ;;  %v63_v21 = vld [vmem:[%s6823_s0 + $0x140] sm:$0xff] }
  0xa2   :  { %4621 = vmatprep.mubr.msk.f32.mxu0 %vm167_vm0, %v2075_v22  ;;  %4856 = vmatpush3.bf16.msra.mxu1 %v5215_v25  ;;  %v2078_v25 = vld [vmem:[%s6822_s3 + $0x158] sm:$0xff]  ;;  %v2756_v22 = vld [vmem:[%s6824_s4 + $0x40] sm:$0xff] }
  0xa4   :  { %4350 = vmatmul.mubr.msk.f32.gmra.mrb[8].mxu1 %vm167_vm0, %v32_v23  ;;  %v64_v23 = vld [vmem:[%s6823_s0 + $0x148] sm:$0xff] }
  0xa5   :  { %4622 = vmatmul.mubr.msk.f32.gmra.mrb[40].mxu0 %vm167_vm0, %v2076_v19  ;;  %4352 = vmatprep.mubr.msk.f32.mxu1 %vm167_vm0, %v33_v24  ;;  %v2757_v19 = vld [vmem:[%s6824_s4 + $0x48] sm:$0xff]  ;;  %v65_v24 = vld [vmem:[%s6823_s0 + $0x150] sm:$0xff] }
  0xa6   :  { %4624 = vmatprep.mubr.msk.f32.mxu0 %vm167_vm0, %v2077_v26  ;;  %v2758_v26 = vld [vmem:[%s6824_s4 + $0x50] sm:$0xff] }
  0xa8   :  { %4353 = vmatmul.mubr.msk.f32.gmra.mrb[10].mxu1 %vm167_vm0, %v34_v27  ;;  %v66_v27 = vld [vmem:[%s6823_s0 + $0x158] sm:$0xff] }
  0xa9   :  { %4625 = vmatmul.mubr.msk.f32.gmra.mrb[42].mxu0 %vm167_vm0, %v2078_v25  ;;  %4355 = vmatprep.mubr.msk.f32.mxu1 %vm167_vm0, %v35_v28  ;;  %v2759_v25 = vld [vmem:[%s6824_s4 + $0x58] sm:$0xff]  ;;  %v67_v28 = vld [vmem:[%s6823_s0 + $0x160] sm:$0xff] }
  0xaa   :  { %4627 = vmatprep.mubr.msk.f32.mxu0 %vm167_vm0, %v2079_v29  ;;  %v2760_v29 = vld [vmem:[%s6824_s4 + $0x60] sm:$0xff] }
  0xac   :  { %4356 = vmatmul.mubr.msk.f32.gmra.mrb[12].mxu1 %vm167_vm0, %v36_v30  ;;  %v68_v30 = vld [vmem:[%s6823_s0 + $0x168] sm:$0xff] }
  0xad   :  { %4628 = vmatmul.mubr.msk.f32.gmra.mrb[44].mxu0 %vm167_vm0, %v2080_v31  ;;  %4358 = vmatprep.mubr.msk.f32.mxu1 %vm167_vm0, %v37_v32  ;;  %v2761_v31 = vld [vmem:[%s6824_s4 + $0x68] sm:$0xff]  ;;  %v69_v32 = vld [vmem:[%s6823_s0 + $0x170] sm:$0xff] }
  0xae   :  { %4630 = vmatprep.mubr.msk.f32.mxu0 %vm167_vm0, %v2081_v33  ;;  %v2762_v33 = vld [vmem:[%s6824_s4 + $0x70] sm:$0xff] }
  0xb0   :  { %4359 = vmatmul.mubr.msk.f32.gmra.mrb[14].mxu1 %vm167_vm0, %v38_v34  ;;  %v70_v34 = vld [vmem:[%s6823_s0 + $0x178] sm:$0xff] }
  0xb1   :  { %4631 = vmatmul.mubr.msk.f32.gmra.mrb[46].mxu0 %vm167_vm0, %v2082_v35  ;;  %4361 = vmatprep.mubr.msk.f32.mxu1 %vm167_vm0, %v39_v36  ;;  %v2763_v35 = vld [vmem:[%s6824_s4 + $0x78] sm:$0xff]  ;;  %v71_v36 = vld [vmem:[%s6823_s0 + $0x180] sm:$0xff] }
  0xb2   :  { %4633 = vmatprep.mubr.msk.f32.mxu0 %vm167_vm0, %v2083_v37  ;;  %v2764_v37 = vld [vmem:[%s6824_s4 + $0x80] sm:$0xff] }
  0xb4   :  { %4362 = vmatmul.mubr.msk.f32.gmra.mrb[16].mxu1 %vm167_vm0, %v40_v38  ;;  %v72_v38 = vld [vmem:[%s6823_s0 + $0x188] sm:$0xff] }
  0xb5   :  { %4634 = vmatmul.mubr.msk.f32.gmra.mrb[48].mxu0 %vm167_vm0, %v2084_v39  ;;  %4364 = vmatprep.mubr.msk.f32.mxu1 %vm167_vm0, %v41_v40  ;;  %v2765_v39 = vld [vmem:[%s6824_s4 + $0x88] sm:$0xff]  ;;  %v73_v40 = vld [vmem:[%s6823_s0 + $0x190] sm:$0xff] }
  0xb6   :  { %4636 = vmatprep.mubr.msk.f32.mxu0 %vm167_vm0, %v2085_v41  ;;  %v2766_v41 = vld [vmem:[%s6824_s4 + $0x90] sm:$0xff] }
  0xb8   :  { %4365 = vmatmul.mubr.msk.f32.gmra.mrb[18].mxu1 %vm167_vm0, %v42_v42  ;;  %v74_v42 = vld [vmem:[%s6823_s0 + $0x198] sm:$0xff] }
  0xb9   :  { %4637 = vmatmul.mubr.msk.f32.gmra.mrb[50].mxu0 %vm167_vm0, %v2086_v43  ;;  %4367 = vmatprep.mubr.msk.f32.mxu1 %vm167_vm0, %v43_v44  ;;  %v2767_v43 = vld [vmem:[%s6824_s4 + $0x98] sm:$0xff]  ;;  %v75_v44 = vld [vmem:[%s6823_s0 + $0x1a0] sm:$0xff] }
  0xba   :  { %4639 = vmatprep.mubr.msk.f32.mxu0 %vm167_vm0, %v2087_v45  ;;  %v2768_v45 = vld [vmem:[%s6824_s4 + $0xa0] sm:$0xff] }
  0xbc   :  { %4368 = vmatmul.mubr.msk.f32.gmra.mrb[20].mxu1 %vm167_vm0, %v44_v46  ;;  %v76_v46 = vld [vmem:[%s6823_s0 + $0x1a8] sm:$0xff] }
  0xbd   :  { %4640 = vmatmul.mubr.msk.f32.gmra.mrb[52].mxu0 %vm167_vm0, %v2088_v47  ;;  %4370 = vmatprep.mubr.msk.f32.mxu1 %vm167_vm0, %v45_v48  ;;  %v2769_v47 = vld [vmem:[%s6824_s4 + $0xa8] sm:$0xff]  ;;  %v77_v48 = vld [vmem:[%s6823_s0 + $0x1b0] sm:$0xff] }
  0xbe   :  { %4642 = vmatprep.mubr.msk.f32.mxu0 %vm167_vm0, %v2089_v49  ;;  %v2770_v49 = vld [vmem:[%s6824_s4 + $0xb0] sm:$0xff] }
  0xc0   :  { %4371 = vmatmul.mubr.msk.f32.gmra.mrb[22].mxu1 %vm167_vm0, %v46_v50  ;;  %v78_v50 = vld [vmem:[%s6823_s0 + $0x1b8] sm:$0xff] }
  0xc1   :  { %4643 = vmatmul.mubr.msk.f32.gmra.mrb[54].mxu0 %vm167_vm0, %v2090_v51  ;;  %4373 = vmatprep.mubr.msk.f32.mxu1 %vm167_vm0, %v47_v52  ;;  %v2771_v51 = vld [vmem:[%s6824_s4 + $0xb8] sm:$0xff]  ;;  %v79_v52 = vld [vmem:[%s6823_s0 + $0x1c0] sm:$0xff] }
  0xc2   :  { %4645 = vmatprep.mubr.msk.f32.mxu0 %vm167_vm0, %v2091_v53  ;;  %v2772_v53 = vld [vmem:[%s6824_s4 + $0xc0] sm:$0xff] }
  0xc4   :  { %4374 = vmatmul.mubr.msk.f32.gmra.mrb[24].mxu1 %vm167_vm0, %v48_v54  ;;  %v80_v54 = vld [vmem:[%s6823_s0 + $0x1c8] sm:$0xff] }
  0xc5   :  { %4646 = vmatmul.mubr.msk.f32.gmra.mrb[56].mxu0 %vm167_vm0, %v2092_v55  ;;  %4376 = vmatprep.mubr.msk.f32.mxu1 %vm167_vm0, %v49_v56  ;;  %v2773_v55 = vld [vmem:[%s6824_s4 + $0xc8] sm:$0xff]  ;;  %v81_v56 = vld [vmem:[%s6823_s0 + $0x1d0] sm:$0xff] }
  0xc6   :  { %4648 = vmatprep.mubr.msk.f32.mxu0 %vm167_vm0, %v2093_v57  ;;  %v2774_v57 = vld [vmem:[%s6824_s4 + $0xd0] sm:$0xff] }
  0xc8   :  { %4377 = vmatmul.mubr.msk.f32.gmra.mrb[26].mxu1 %vm167_vm0, %v50_v58  ;;  %v82_v58 = vld [vmem:[%s6823_s0 + $0x1d8] sm:$0xff] }
  0xc9   :  { %4649 = vmatmul.mubr.msk.f32.gmra.mrb[58].mxu0 %vm167_vm0, %v2094_v59  ;;  %4379 = vmatprep.mubr.msk.f32.mxu1 %vm167_vm0, %v51_v60  ;;  %v2775_v59 = vld [vmem:[%s6824_s4 + $0xd8] sm:$0xff]  ;;  %v83_v60 = vld [vmem:[%s6823_s0 + $0x1e0] sm:$0xff] }
  0xca   :  { %4651 = vmatprep.mubr.msk.f32.mxu0 %vm167_vm0, %v2095_v61  ;;  %v2776_v61 = vld [vmem:[%s6824_s4 + $0xe0] sm:$0xff] }
  0xcc   :  { %4380 = vmatmul.mubr.msk.f32.gmra.mrb[28].mxu1 %vm167_vm0, %v52_v62  ;;  %v84_v62 = vld [vmem:[%s6823_s0 + $0x1e8] sm:$0xff] }
  0xcd   :  { %4652 = vmatmul.mubr.msk.f32.gmra.mrb[60].mxu0 %vm167_vm0, %v2096_v63  ;;  %4382 = vmatprep.mubr.msk.f32.mxu1 %vm167_vm0, %v53_v0  ;;  %v2777_v63 = vld [vmem:[%s6824_s4 + $0xe8] sm:$0xff]  ;;  %v85_v0 = vld [vmem:[%s6823_s0 + $0x1f0] sm:$0xff] }
  0xce   :  { %4654 = vmatprep.mubr.msk.f32.mxu0 %vm167_vm0, %v2097_v1  ;;  %v2778_v1 = vld [vmem:[%s6824_s4 + $0xf0] sm:$0xff] }
  0xd0   :  { %4383 = vmatmul.mubr.msk.f32.gmra.mrb[30].mxu1 %vm167_vm0, %v54_v2  ;;  %v86_v2 = vld [vmem:[%s6823_s0 + $0x1f8] sm:$0xff] }
  0xd1   :  { %4655 = vmatmul.mubr.msk.f32.gmra.mrb[62].mxu0 %vm167_vm0, %v2098_v3  ;;  %4385 = vmatprep.mubr.msk.f32.mxu1 %vm167_vm0, %v55_v4  ;;  %v2779_v3 = vld [vmem:[%s6824_s4 + $0xf8] sm:$0xff]  ;;  %v1354_v4 = vld [vmem:[%s6821_s2 + $0x100] sm:$0xff] }
  0xd2   :  { %4673 = vmatprep.mubr.msk.f32.mxu0 %vm167_vm0, %v2748_v6  ;;  %v2780_v6 = vld [vmem:[%s6824_s4 + $0x100] sm:$0xff] }
  0xd4   :  { %4386 = vmatmul.mubr.msk.f32.gmra.mrb[32].mxu1 %vm167_vm0, %v56_v8  ;;  %v1355_v8 = vld [vmem:[%s6821_s2 + $0x108] sm:$0xff] }
  0xd5   :  { %4674 = vmatmul.mubr.msk.f32.vlgmr.msra.gmra.mrb[0].mxu0 %vm167_vm0, %v2749_v5  ;;  %4388 = vmatprep.mubr.msk.f32.mxu1 %vm167_vm0, %v57_v9  ;;  %v2781_v5 = vld [vmem:[%s6824_s4 + $0x108] sm:$0xff]  ;;  %v1356_v9 = vld [vmem:[%s6821_s2 + $0x110] sm:$0xff] }
  0xd6   :  { %4676 = vmatprep.mubr.msk.f32.mxu0 %vm167_vm0, %v2750_v10  ;;  %v2782_v10 = vld [vmem:[%s6824_s4 + $0x110] sm:$0xff] }
  0xd8   :  { %4389 = vmatmul.mubr.msk.f32.gmra.mrb[34].mxu1 %vm167_vm0, %v58_v11  ;;  %v1357_v11 = vld [vmem:[%s6821_s2 + $0x118] sm:$0xff] }
  0xd9   :  { %4677 = vmatmul.mubr.msk.f32.gmra.mrb[2].mxu0 %vm167_vm0, %v2751_v13  ;;  %4391 = vmatprep.mubr.msk.f32.mxu1 %vm167_vm0, %v59_v14  ;;  %v2783_v13 = vld [vmem:[%s6824_s4 + $0x118] sm:$0xff]  ;;  %v1358_v14 = vld [vmem:[%s6821_s2 + $0x120] sm:$0xff] }
  0xda   :  { %4679 = vmatprep.mubr.msk.f32.mxu0 %vm167_vm0, %v2752_v7  ;;  %v2784_v7 = vld [vmem:[%s6824_s4 + $0x120] sm:$0xff] }
  0xdc   :  { %4392 = vmatmul.mubr.msk.f32.gmra.mrb[36].mxu1 %vm167_vm0, %v60_v15  ;;  %v1359_v15 = vld [vmem:[%s6821_s2 + $0x128] sm:$0xff] }
  0xdd   :  { %4680 = vmatmul.mubr.msk.f32.gmra.mrb[4].mxu0 %vm167_vm0, %v2753_v16  ;;  %4394 = vmatprep.mubr.msk.f32.mxu1 %vm167_vm0, %v61_v17  ;;  %v2785_v16 = vld [vmem:[%s6824_s4 + $0x128] sm:$0xff]  ;;  %v1360_v17 = vld [vmem:[%s6821_s2 + $0x130] sm:$0xff] }
  0xde   :  { %4682 = vmatprep.mubr.msk.f32.mxu0 %vm167_vm0, %v2754_v18  ;;  %v2786_v18 = vld [vmem:[%s6824_s4 + $0x130] sm:$0xff] }
  0xe0   :  { %4395 = vmatmul.mubr.msk.f32.gmra.mrb[38].mxu1 %vm167_vm0, %v62_v20  ;;  %v1361_v20 = vld [vmem:[%s6821_s2 + $0x138] sm:$0xff] }
  0xe1   :  { %4683 = vmatmul.mubr.msk.f32.gmra.mrb[6].mxu0 %vm167_vm0, %v2755_v12  ;;  %4397 = vmatprep.mubr.msk.f32.mxu1 %vm167_vm0, %v63_v21  ;;  %v2787_v12 = vld [vmem:[%s6824_s4 + $0x138] sm:$0xff]  ;;  %v1362_v21 = vld [vmem:[%s6821_s2 + $0x140] sm:$0xff] }
  0xe2   :  { %4685 = vmatprep.mubr.msk.f32.mxu0 %vm167_vm0, %v2756_v22  ;;  %v2788_v22 = vld [vmem:[%s6824_s4 + $0x140] sm:$0xff] }
  0xe4   :  { %4398 = vmatmul.mubr.msk.f32.gmra.mrb[40].mxu1 %vm167_vm0, %v64_v23  ;;  %v1363_v23 = vld [vmem:[%s6821_s2 + $0x148] sm:$0xff] }
  0xe5   :  { %4686 = vmatmul.mubr.msk.f32.gmra.mrb[8].mxu0 %vm167_vm0, %v2757_v19  ;;  %4400 = vmatprep.mubr.msk.f32.mxu1 %vm167_vm0, %v65_v24  ;;  %v2789_v19 = vld [vmem:[%s6824_s4 + $0x148] sm:$0xff]  ;;  %v1364_v24 = vld [vmem:[%s6821_s2 + $0x150] sm:$0xff] }
  0xe6   :  { %4688 = vmatprep.mubr.msk.f32.mxu0 %vm167_vm0, %v2758_v26  ;;  %v2790_v26 = vld [vmem:[%s6824_s4 + $0x150] sm:$0xff] }
  0xe8   :  { %4401 = vmatmul.mubr.msk.f32.gmra.mrb[42].mxu1 %vm167_vm0, %v66_v27  ;;  %v1365_v27 = vld [vmem:[%s6821_s2 + $0x158] sm:$0xff] }
  0xe9   :  { %4689 = vmatmul.mubr.msk.f32.gmra.mrb[10].mxu0 %vm167_vm0, %v2759_v25  ;;  %4403 = vmatprep.mubr.msk.f32.mxu1 %vm167_vm0, %v67_v28  ;;  %v2791_v25 = vld [vmem:[%s6824_s4 + $0x158] sm:$0xff]  ;;  %v1366_v28 = vld [vmem:[%s6821_s2 + $0x160] sm:$0xff] }
  0xea   :  { %4691 = vmatprep.mubr.msk.f32.mxu0 %vm167_vm0, %v2760_v29  ;;  %v2792_v29 = vld [vmem:[%s6824_s4 + $0x160] sm:$0xff] }
  0xec   :  { %4404 = vmatmul.mubr.msk.f32.gmra.mrb[44].mxu1 %vm167_vm0, %v68_v30  ;;  %v1367_v30 = vld [vmem:[%s6821_s2 + $0x168] sm:$0xff] }
  0xed   :  { %4692 = vmatmul.mubr.msk.f32.gmra.mrb[12].mxu0 %vm167_vm0, %v2761_v31  ;;  %4406 = vmatprep.mubr.msk.f32.mxu1 %vm167_vm0, %v69_v32  ;;  %v2793_v31 = vld [vmem:[%s6824_s4 + $0x168] sm:$0xff]  ;;  %v1368_v32 = vld [vmem:[%s6821_s2 + $0x170] sm:$0xff] }
  0xee   :  { %4694 = vmatprep.mubr.msk.f32.mxu0 %vm167_vm0, %v2762_v33  ;;  %v2794_v33 = vld [vmem:[%s6824_s4 + $0x170] sm:$0xff] }
  0xf0   :  { %4407 = vmatmul.mubr.msk.f32.gmra.mrb[46].mxu1 %vm167_vm0, %v70_v34  ;;  %v1369_v34 = vld [vmem:[%s6821_s2 + $0x178] sm:$0xff] }
  0xf1   :  { %4695 = vmatmul.mubr.msk.f32.gmra.mrb[14].mxu0 %vm167_vm0, %v2763_v35  ;;  %4409 = vmatprep.mubr.msk.f32.mxu1 %vm167_vm0, %v71_v36  ;;  %v2795_v35 = vld [vmem:[%s6824_s4 + $0x178] sm:$0xff]  ;;  %v1370_v36 = vld [vmem:[%s6821_s2 + $0x180] sm:$0xff] }
  0xf2   :  { %4697 = vmatprep.mubr.msk.f32.mxu0 %vm167_vm0, %v2764_v37  ;;  %v2796_v37 = vld [vmem:[%s6824_s4 + $0x180] sm:$0xff] }
  0xf4   :  { %4410 = vmatmul.mubr.msk.f32.gmra.mrb[48].mxu1 %vm167_vm0, %v72_v38  ;;  %v1371_v38 = vld [vmem:[%s6821_s2 + $0x188] sm:$0xff] }
  0xf5   :  { %4698 = vmatmul.mubr.msk.f32.gmra.mrb[16].mxu0 %vm167_vm0, %v2765_v39  ;;  %4412 = vmatprep.mubr.msk.f32.mxu1 %vm167_vm0, %v73_v40  ;;  %v2797_v39 = vld [vmem:[%s6824_s4 + $0x188] sm:$0xff]  ;;  %v1372_v40 = vld [vmem:[%s6821_s2 + $0x190] sm:$0xff] }
  0xf6   :  { %4700 = vmatprep.mubr.msk.f32.mxu0 %vm167_vm0, %v2766_v41  ;;  %v2798_v41 = vld [vmem:[%s6824_s4 + $0x190] sm:$0xff] }
  0xf8   :  { %4413 = vmatmul.mubr.msk.f32.gmra.mrb[50].mxu1 %vm167_vm0, %v74_v42  ;;  %v1373_v42 = vld [vmem:[%s6821_s2 + $0x198] sm:$0xff] }
  0xf9   :  { %4701 = vmatmul.mubr.msk.f32.gmra.mrb[18].mxu0 %vm167_vm0, %v2767_v43  ;;  %4415 = vmatprep.mubr.msk.f32.mxu1 %vm167_vm0, %v75_v44  ;;  %v2799_v43 = vld [vmem:[%s6824_s4 + $0x198] sm:$0xff]  ;;  %v1374_v44 = vld [vmem:[%s6821_s2 + $0x1a0] sm:$0xff] }
  0xfa   :  { %4703 = vmatprep.mubr.msk.f32.mxu0 %vm167_vm0, %v2768_v45  ;;  %v2800_v45 = vld [vmem:[%s6824_s4 + $0x1a0] sm:$0xff] }
  0xfc   :  { %4416 = vmatmul.mubr.msk.f32.gmra.mrb[52].mxu1 %vm167_vm0, %v76_v46  ;;  %v1375_v46 = vld [vmem:[%s6821_s2 + $0x1a8] sm:$0xff] }
  0xfd   :  { %4704 = vmatmul.mubr.msk.f32.gmra.mrb[20].mxu0 %vm167_vm0, %v2769_v47  ;;  %4418 = vmatprep.mubr.msk.f32.mxu1 %vm167_vm0, %v77_v48  ;;  %v2801_v47 = vld [vmem:[%s6824_s4 + $0x1a8] sm:$0xff]  ;;  %v1376_v48 = vld [vmem:[%s6821_s2 + $0x1b0] sm:$0xff] }
  0xfe   :  { %4706 = vmatprep.mubr.msk.f32.mxu0 %vm167_vm0, %v2770_v49  ;;  %v2802_v49 = vld [vmem:[%s6824_s4 + $0x1b0] sm:$0xff] }
 0x100   :  { %4419 = vmatmul.mubr.msk.f32.gmra.mrb[54].mxu1 %vm167_vm0, %v78_v50  ;;  %v1377_v50 = vld [vmem:[%s6821_s2 + $0x1b8] sm:$0xff] }
 0x101   :  { %4707 = vmatmul.mubr.msk.f32.gmra.mrb[22].mxu0 %vm167_vm0, %v2771_v51  ;;  %4421 = vmatprep.mubr.msk.f32.mxu1 %vm167_vm0, %v79_v52  ;;  %v2803_v51 = vld [vmem:[%s6824_s4 + $0x1b8] sm:$0xff]  ;;  %v1378_v52 = vld [vmem:[%s6821_s2 + $0x1c0] sm:$0xff] }
 0x102   :  { %4709 = vmatprep.mubr.msk.f32.mxu0 %vm167_vm0, %v2772_v53  ;;  %v2804_v53 = vld [vmem:[%s6824_s4 + $0x1c0] sm:$0xff] }
 0x104   :  { %4422 = vmatmul.mubr.msk.f32.gmra.mrb[56].mxu1 %vm167_vm0, %v80_v54  ;;  %v1379_v54 = vld [vmem:[%s6821_s2 + $0x1c8] sm:$0xff] }
 0x105   :  { %4710 = vmatmul.mubr.msk.f32.gmra.mrb[24].mxu0 %vm167_vm0, %v2773_v55  ;;  %4424 = vmatprep.mubr.msk.f32.mxu1 %vm167_vm0, %v81_v56  ;;  %v2805_v55 = vld [vmem:[%s6824_s4 + $0x1c8] sm:$0xff]  ;;  %v1380_v56 = vld [vmem:[%s6821_s2 + $0x1d0] sm:$0xff] }
 0x106   :  { %4712 = vmatprep.mubr.msk.f32.mxu0 %vm167_vm0, %v2774_v57  ;;  %v2806_v57 = vld [vmem:[%s6824_s4 + $0x1d0] sm:$0xff] }
 0x108   :  { %4425 = vmatmul.mubr.msk.f32.gmra.mrb[58].mxu1 %vm167_vm0, %v82_v58  ;;  %v1381_v58 = vld [vmem:[%s6821_s2 + $0x1d8] sm:$0xff] }
 0x109   :  { %4713 = vmatmul.mubr.msk.f32.gmra.mrb[26].mxu0 %vm167_vm0, %v2775_v59  ;;  %4427 = vmatprep.mubr.msk.f32.mxu1 %vm167_vm0, %v83_v60  ;;  %v2807_v59 = vld [vmem:[%s6824_s4 + $0x1d8] sm:$0xff]  ;;  %v1382_v60 = vld [vmem:[%s6821_s2 + $0x1e0] sm:$0xff] }
 0x10a   :  { %4715 = vmatprep.mubr.msk.f32.mxu0 %vm167_vm0, %v2776_v61  ;;  %v2808_v61 = vld [vmem:[%s6824_s4 + $0x1e0] sm:$0xff] }
 0x10c   :  { %4428 = vmatmul.mubr.msk.f32.gmra.mrb[60].mxu1 %vm167_vm0, %v84_v62  ;;  %v1383_v62 = vld [vmem:[%s6821_s2 + $0x1e8] sm:$0xff] }
 0x10d   :  { %4716 = vmatmul.mubr.msk.f32.gmra.mrb[28].mxu0 %vm167_vm0, %v2777_v63  ;;  %4430 = vmatprep.mubr.msk.f32.mxu1 %vm167_vm0, %v85_v0  ;;  %v2809_v63 = vld [vmem:[%s6824_s4 + $0x1e8] sm:$0xff]  ;;  %v1384_v0 = vld [vmem:[%s6821_s2 + $0x1f0] sm:$0xff] }
 0x10e   :  { %4718 = vmatprep.mubr.msk.f32.mxu0 %vm167_vm0, %v2778_v1  ;;  %v2810_v1 = vld [vmem:[%s6824_s4 + $0x1f0] sm:$0xff] }
 0x110   :  { %4431 = vmatmul.mubr.msk.f32.gmra.mrb[62].mxu1 %vm167_vm0, %v86_v2  ;;  %v1385_v2 = vld [vmem:[%s6821_s2 + $0x1f8] sm:$0xff] }
 0x111   :  { %4719 = vmatmul.mubr.msk.f32.gmra.mrb[30].mxu0 %vm167_vm0, %v2779_v3  ;;  %4497 = vmatprep.mubr.msk.f32.mxu1 %vm167_vm0, %v1354_v4  ;;  %v2811_v3 = vld [vmem:[%s6824_s4 + $0x1f8] sm:$0xff] }
 0x112   :  { %4721 = vmatprep.mubr.msk.f32.mxu0 %vm167_vm0, %v2780_v6 }
 0x114   :  { %4498 = vmatmul.mubr.msk.f32.vlgmr.msra.gmra.mrb[32].mxu1 %vm167_vm0, %v1355_v8 }
 0x115   :  { %4722 = vmatmul.mubr.msk.f32.gmra.mrb[32].mxu0 %vm167_vm0, %v2781_v5  ;;  %4500 = vmatprep.mubr.msk.f32.mxu1 %vm167_vm0, %v1356_v9 }
 0x116   :  { %4724 = vmatprep.mubr.msk.f32.mxu0 %vm167_vm0, %v2782_v10 }
 0x118   :  { %4501 = vmatmul.mubr.msk.f32.gmra.mrb[34].mxu1 %vm167_vm0, %v1357_v11 }
 0x119   :  { %4725 = vmatmul.mubr.msk.f32.gmra.mrb[34].mxu0 %vm167_vm0, %v2783_v13  ;;  %4503 = vmatprep.mubr.msk.f32.mxu1 %vm167_vm0, %v1358_v14 }
 0x11a   :  { %4727 = vmatprep.mubr.msk.f32.mxu0 %vm167_vm0, %v2784_v7 }
 0x11c   :  { %4504 = vmatmul.mubr.msk.f32.gmra.mrb[36].mxu1 %vm167_vm0, %v1359_v15 }
 0x11d   :  { %4728 = vmatmul.mubr.msk.f32.gmra.mrb[36].mxu0 %vm167_vm0, %v2785_v16  ;;  %4506 = vmatprep.mubr.msk.f32.mxu1 %vm167_vm0, %v1360_v17 }
 0x11e   :  { %4730 = vmatprep.mubr.msk.f32.mxu0 %vm167_vm0, %v2786_v18 }
 0x120   :  { %4507 = vmatmul.mubr.msk.f32.gmra.mrb[38].mxu1 %vm167_vm0, %v1361_v20 }
 0x121   :  { %4731 = vmatmul.mubr.msk.f32.gmra.mrb[38].mxu0 %vm167_vm0, %v2787_v12  ;;  %4509 = vmatprep.mubr.msk.f32.mxu1 %vm167_vm0, %v1362_v21 }
 0x122   :  { %4733 = vmatprep.mubr.msk.f32.mxu0 %vm167_vm0, %v2788_v22 }
 0x124   :  { %4510 = vmatmul.mubr.msk.f32.gmra.mrb[40].mxu1 %vm167_vm0, %v1363_v23 }
 0x125   :  { %4734 = vmatmul.mubr.msk.f32.gmra.mrb[40].mxu0 %vm167_vm0, %v2789_v19  ;;  %4512 = vmatprep.mubr.msk.f32.mxu1 %vm167_vm0, %v1364_v24 }
 0x126   :  { %4736 = vmatprep.mubr.msk.f32.mxu0 %vm167_vm0, %v2790_v26 }
 0x128   :  { %4513 = vmatmul.mubr.msk.f32.gmra.mrb[42].mxu1 %vm167_vm0, %v1365_v27 }
 0x129   :  { %4737 = vmatmul.mubr.msk.f32.gmra.mrb[42].mxu0 %vm167_vm0, %v2791_v25  ;;  %4515 = vmatprep.mubr.msk.f32.mxu1 %vm167_vm0, %v1366_v28 }
 0x12a   :  { %4739 = vmatprep.mubr.msk.f32.mxu0 %vm167_vm0, %v2792_v29 }
 0x12c   :  { %4516 = vmatmul.mubr.msk.f32.gmra.mrb[44].mxu1 %vm167_vm0, %v1367_v30 }
 0x12d   :  { %4740 = vmatmul.mubr.msk.f32.gmra.mrb[44].mxu0 %vm167_vm0, %v2793_v31  ;;  %4518 = vmatprep.mubr.msk.f32.mxu1 %vm167_vm0, %v1368_v32 }
 0x12e   :  { %4742 = vmatprep.mubr.msk.f32.mxu0 %vm167_vm0, %v2794_v33 }
 0x130   :  { %4519 = vmatmul.mubr.msk.f32.gmra.mrb[46].mxu1 %vm167_vm0, %v1369_v34 }
 0x131   :  { %4743 = vmatmul.mubr.msk.f32.gmra.mrb[46].mxu0 %vm167_vm0, %v2795_v35  ;;  %4521 = vmatprep.mubr.msk.f32.mxu1 %vm167_vm0, %v1370_v36 }
 0x132   :  { %4745 = vmatprep.mubr.msk.f32.mxu0 %vm167_vm0, %v2796_v37 }
 0x134   :  { %4522 = vmatmul.mubr.msk.f32.gmra.mrb[48].mxu1 %vm167_vm0, %v1371_v38 }
 0x135   :  { %4746 = vmatmul.mubr.msk.f32.gmra.mrb[48].mxu0 %vm167_vm0, %v2797_v39  ;;  %4524 = vmatprep.mubr.msk.f32.mxu1 %vm167_vm0, %v1372_v40 }
 0x136   :  { %4748 = vmatprep.mubr.msk.f32.mxu0 %vm167_vm0, %v2798_v41 }
 0x138   :  { %4525 = vmatmul.mubr.msk.f32.gmra.mrb[50].mxu1 %vm167_vm0, %v1373_v42 }
 0x139   :  { %4749 = vmatmul.mubr.msk.f32.gmra.mrb[50].mxu0 %vm167_vm0, %v2799_v43  ;;  %4527 = vmatprep.mubr.msk.f32.mxu1 %vm167_vm0, %v1374_v44 }
 0x13a   :  { %4751 = vmatprep.mubr.msk.f32.mxu0 %vm167_vm0, %v2800_v45 }
 0x13c   :  { %4528 = vmatmul.mubr.msk.f32.gmra.mrb[52].mxu1 %vm167_vm0, %v1375_v46 }
 0x13d   :  { %4752 = vmatmul.mubr.msk.f32.gmra.mrb[52].mxu0 %vm167_vm0, %v2801_v47  ;;  %4530 = vmatprep.mubr.msk.f32.mxu1 %vm167_vm0, %v1376_v48 }
 0x13e   :  { %4754 = vmatprep.mubr.msk.f32.mxu0 %vm167_vm0, %v2802_v49 }
 0x140   :  { %4531 = vmatmul.mubr.msk.f32.gmra.mrb[54].mxu1 %vm167_vm0, %v1377_v50 }
 0x141   :  { %4755 = vmatmul.mubr.msk.f32.gmra.mrb[54].mxu0 %vm167_vm0, %v2803_v51  ;;  %4533 = vmatprep.mubr.msk.f32.mxu1 %vm167_vm0, %v1378_v52 }
 0x142   :  { %4757 = vmatprep.mubr.msk.f32.mxu0 %vm167_vm0, %v2804_v53 }
 0x144   :  { %4534 = vmatmul.mubr.msk.f32.gmra.mrb[56].mxu1 %vm167_vm0, %v1379_v54 }
 0x145   :  { %4758 = vmatmul.mubr.msk.f32.gmra.mrb[56].mxu0 %vm167_vm0, %v2805_v55  ;;  %4536 = vmatprep.mubr.msk.f32.mxu1 %vm167_vm0, %v1380_v56 }
 0x146   :  { %4760 = vmatprep.mubr.msk.f32.mxu0 %vm167_vm0, %v2806_v57 }
 0x148   :  { %4537 = vmatmul.mubr.msk.f32.gmra.mrb[58].mxu1 %vm167_vm0, %v1381_v58 }
 0x149   :  { %4761 = vmatmul.mubr.msk.f32.gmra.mrb[58].mxu0 %vm167_vm0, %v2807_v59  ;;  %4539 = vmatprep.mubr.msk.f32.mxu1 %vm167_vm0, %v1382_v60 }
 0x14a   :  { %4763 = vmatprep.mubr.msk.f32.mxu0 %vm167_vm0, %v2808_v61 }
 0x14c   :  { %4540 = vmatmul.mubr.msk.f32.gmra.mrb[60].mxu1 %vm167_vm0, %v1383_v62 }
 0x14d   :  { %4764 = vmatmul.mubr.msk.f32.gmra.mrb[60].mxu0 %vm167_vm0, %v2809_v63  ;;  %4542 = vmatprep.mubr.msk.f32.mxu1 %vm167_vm0, %v1384_v0 }
 0x14e   :  { %4766 = vmatprep.mubr.msk.f32.mxu0 %vm167_vm0, %v2810_v1 }
 0x150   :  { %4543 = vmatmul.mubr.msk.f32.gmra.mrb[62].mxu1 %vm167_vm0, %v1385_v2 }
 0x151   :  { %4767 = vmatmul.mubr.msk.f32.gmra.mrb[62].mxu0 %vm167_vm0, %v2811_v3 }
 0x167   :  { %v4339_v4 = vpop.f32.mrb[0].mxu1 }
 0x168   :  { %v1003_v6 = vpop.f32.mrb[1].mxu1 }
 0x16b   :  { %v4342_v8 = vpop.f32.mrb[2].mxu1 }
 0x16c   :  { %v1013_v5 = vpop.f32.mrb[3].mxu1 }
 0x16f   :  { %v4345_v9 = vpop.f32.mrb[4].mxu1 }
 0x170   :  { %v1023_v10 = vpop.f32.mrb[5].mxu1 }
 0x173   :  { %v4348_v11 = vpop.f32.mrb[6].mxu1 }
 0x174   :  { %v1033_v13 = vpop.f32.mrb[7].mxu1 }
 0x177   :  { %v4351_v14 = vpop.f32.mrb[8].mxu1 }
 0x178   :  { %v1043_v7 = vpop.f32.mrb[9].mxu1 }
 0x17b   :  { %v4354_v15 = vpop.f32.mrb[10].mxu1 }
 0x17c   :  { %v1053_v16 = vpop.f32.mrb[11].mxu1 }
 0x17f   :  { %v4357_v17 = vpop.f32.mrb[12].mxu1 }
 0x180   :  { %v1063_v18 = vpop.f32.mrb[13].mxu1 }
 0x183   :  { %v4360_v20 = vpop.f32.mrb[14].mxu1 }
 0x184   :  { %v6576_v12 = vpop.f32.mrb[15].mxu1 }
 0x187   :  { %v6578_v21 = vpop.f32.mrb[16].mxu1 }
 0x188   :  { %v6580_v22 = vpop.f32.mrb[17].mxu1 }
 0x18b   :  { %v6582_v23 = vpop.f32.mrb[18].mxu1 }
 0x18c   :  { %v6584_v19 = vpop.f32.mrb[19].mxu1 }
 0x18f   :  { %v6586_v24 = vpop.f32.mrb[20].mxu1 }
 0x190   :  { %v6588_v26 = vpop.f32.mrb[21].mxu1 }
 0x193   :  { %v6590_v27 = vpop.f32.mrb[22].mxu1 }
 0x194   :  { %v6592_v25 = vpop.f32.mrb[23].mxu1 }
 0x197   :  { %v6594_v28 = vpop.f32.mrb[24].mxu1 }
 0x198   :  { %v6596_v29 = vpop.f32.mrb[25].mxu1 }
 0x19b   :  { %v6598_v30 = vpop.f32.mrb[26].mxu1 }
 0x19c   :  { %v6600_v31 = vpop.f32.mrb[27].mxu1 }
 0x19f   :  { %v6602_v32 = vpop.f32.mrb[28].mxu1 }
 0x1a0   :  { %v6604_v33 = vpop.f32.mrb[29].mxu1 }
 0x1a3   :  { %v6606_v34 = vpop.f32.mrb[30].mxu1 }
 0x1a4   :  { %v6608_v35 = vpop.f32.mrb[31].mxu1 }
 0x1a8   :  { %v4675_v36 = vpop.f32.mrb[0].mxu0 }
 0x1a9   :  { %v4857_v37 = vadd.f32 %v4675_v36, %v4339_v4  ;;  %v3078_v38 = vpop.f32.mrb[1].mxu0 }
 0x1aa   :  { %v4858_v39 = vadd.f32 %v3078_v38, %v1003_v6 }
 0x1ab   :  { %3462 = vst [vmem:[%s6825_s6 + $0x8] sm:$0xff] %v4857_v37 }
 0x1ac   :  { %3461 = vst [vmem:[%s6825_s6] sm:$0xff] %v4858_v39  ;;  %v4678_v40 = vpop.f32.mrb[2].mxu0 }
 0x1ad   :  { %v4859_v41 = vadd.f32 %v4678_v40, %v4342_v8  ;;  %v3088_v42 = vpop.f32.mrb[3].mxu0 }
 0x1ae   :  { %v4860_v43 = vadd.f32 %v3088_v42, %v1013_v5 }
 0x1af   :  { %3464 = vst [vmem:[%s6825_s6 + $0x18] sm:$0xff] %v4859_v41 }
 0x1b0   :  { %3463 = vst [vmem:[%s6825_s6 + $0x10] sm:$0xff] %v4860_v43  ;;  %v4681_v44 = vpop.f32.mrb[4].mxu0 }
 0x1b1   :  { %v4861_v45 = vadd.f32 %v4681_v44, %v4345_v9  ;;  %v3098_v46 = vpop.f32.mrb[5].mxu0 }
 0x1b2   :  { %v4862_v47 = vadd.f32 %v3098_v46, %v1023_v10 }
 0x1b3   :  { %3466 = vst [vmem:[%s6825_s6 + $0x28] sm:$0xff] %v4861_v45 }
 0x1b4   :  { %3465 = vst [vmem:[%s6825_s6 + $0x20] sm:$0xff] %v4862_v47  ;;  %v4684_v48 = vpop.f32.mrb[6].mxu0 }
 0x1b5   :  { %v4863_v49 = vadd.f32 %v4684_v48, %v4348_v11  ;;  %v3108_v50 = vpop.f32.mrb[7].mxu0 }
 0x1b6   :  { %v4864_v51 = vadd.f32 %v3108_v50, %v1033_v13 }
 0x1b7   :  { %3468 = vst [vmem:[%s6825_s6 + $0x38] sm:$0xff] %v4863_v49 }
 0x1b8   :  { %3467 = vst [vmem:[%s6825_s6 + $0x30] sm:$0xff] %v4864_v51  ;;  %v4687_v52 = vpop.f32.mrb[8].mxu0 }
 0x1b9   :  { %v4865_v53 = vadd.f32 %v4687_v52, %v4351_v14  ;;  %v3118_v54 = vpop.f32.mrb[9].mxu0 }
 0x1ba   :  { %v4866_v55 = vadd.f32 %v3118_v54, %v1043_v7 }
 0x1bb   :  { %3470 = vst [vmem:[%s6825_s6 + $0x48] sm:$0xff] %v4865_v53 }
 0x1bc   :  { %3469 = vst [vmem:[%s6825_s6 + $0x40] sm:$0xff] %v4866_v55  ;;  %v4690_v56 = vpop.f32.mrb[10].mxu0 }
 0x1bd   :  { %v4867_v57 = vadd.f32 %v4690_v56, %v4354_v15  ;;  %v3128_v58 = vpop.f32.mrb[11].mxu0 }
 0x1be   :  { %v4868_v59 = vadd.f32 %v3128_v58, %v1053_v16 }
 0x1bf   :  { %3472 = vst [vmem:[%s6825_s6 + $0x58] sm:$0xff] %v4867_v57 }
 0x1c0   :  { %3471 = vst [vmem:[%s6825_s6 + $0x50] sm:$0xff] %v4868_v59  ;;  %v4693_v60 = vpop.f32.mrb[12].mxu0 }
 0x1c1   :  { %v4869_v61 = vadd.f32 %v4693_v60, %v4357_v17  ;;  %v3138_v62 = vpop.f32.mrb[13].mxu0 }
 0x1c2   :  { %v4870_v63 = vadd.f32 %v3138_v62, %v1063_v18 }
 0x1c3   :  { %3474 = vst [vmem:[%s6825_s6 + $0x68] sm:$0xff] %v4869_v61 }
 0x1c4   :  { %3473 = vst [vmem:[%s6825_s6 + $0x60] sm:$0xff] %v4870_v63  ;;  %v4696_v0 = vpop.f32.mrb[14].mxu0 }
 0x1c5   :  { %v4871_v1 = vadd.f32 %v4696_v0, %v4360_v20  ;;  %v3148_v2 = vpop.f32.mrb[15].mxu0 }
 0x1c6   :  { %v4872_v3 = vadd.f32 %v3148_v2, %v6576_v12 }
 0x1c7   :  { %3476 = vst [vmem:[%s6825_s6 + $0x78] sm:$0xff] %v4871_v1 }
 0x1c8   :  { %3475 = vst [vmem:[%s6825_s6 + $0x70] sm:$0xff] %v4872_v3  ;;  %v4699_v4 = vpop.f32.mrb[16].mxu0 }
 0x1c9   :  { %v4873_v6 = vadd.f32 %v4699_v4, %v6578_v21  ;;  %v3158_v8 = vpop.f32.mrb[17].mxu0 }
 0x1ca   :  { %v4874_v5 = vadd.f32 %v3158_v8, %v6580_v22 }
 0x1cb   :  { %3478 = vst [vmem:[%s6825_s6 + $0x88] sm:$0xff] %v4873_v6 }
 0x1cc   :  { %3477 = vst [vmem:[%s6825_s6 + $0x80] sm:$0xff] %v4874_v5  ;;  %v4702_v9 = vpop.f32.mrb[18].mxu0 }
 0x1cd   :  { %v4875_v10 = vadd.f32 %v4702_v9, %v6582_v23  ;;  %v3168_v11 = vpop.f32.mrb[19].mxu0 }
 0x1ce   :  { %v4876_v13 = vadd.f32 %v3168_v11, %v6584_v19 }
 0x1cf   :  { %3480 = vst [vmem:[%s6825_s6 + $0x98] sm:$0xff] %v4875_v10 }
 0x1d0   :  { %3479 = vst [vmem:[%s6825_s6 + $0x90] sm:$0xff] %v4876_v13  ;;  %v4705_v14 = vpop.f32.mrb[20].mxu0 }
 0x1d1   :  { %v4877_v7 = vadd.f32 %v4705_v14, %v6586_v24  ;;  %v3178_v15 = vpop.f32.mrb[21].mxu0 }
 0x1d2   :  { %v4878_v16 = vadd.f32 %v3178_v15, %v6588_v26 }
 0x1d3   :  { %3482 = vst [vmem:[%s6825_s6 + $0xa8] sm:$0xff] %v4877_v7 }
 0x1d4   :  { %3481 = vst [vmem:[%s6825_s6 + $0xa0] sm:$0xff] %v4878_v16  ;;  %v4708_v17 = vpop.f32.mrb[22].mxu0 }
 0x1d5   :  { %v4879_v18 = vadd.f32 %v4708_v17, %v6590_v27  ;;  %v3188_v20 = vpop.f32.mrb[23].mxu0 }
 0x1d6   :  { %v4880_v12 = vadd.f32 %v3188_v20, %v6592_v25 }
 0x1d7   :  { %3484 = vst [vmem:[%s6825_s6 + $0xb8] sm:$0xff] %v4879_v18 }
 0x1d8   :  { %3483 = vst [vmem:[%s6825_s6 + $0xb0] sm:$0xff] %v4880_v12  ;;  %v4711_v21 = vpop.f32.mrb[24].mxu0 }
 0x1d9   :  { %v4881_v22 = vadd.f32 %v4711_v21, %v6594_v28  ;;  %v3198_v23 = vpop.f32.mrb[25].mxu0 }
 0x1da   :  { %v4882_v19 = vadd.f32 %v3198_v23, %v6596_v29 }
 0x1db   :  { %3486 = vst [vmem:[%s6825_s6 + $0xc8] sm:$0xff] %v4881_v22 }
 0x1dc   :  { %3485 = vst [vmem:[%s6825_s6 + $0xc0] sm:$0xff] %v4882_v19  ;;  %v4714_v24 = vpop.f32.mrb[26].mxu0 }
 0x1dd   :  { %v4883_v26 = vadd.f32 %v4714_v24, %v6598_v30  ;;  %v3208_v27 = vpop.f32.mrb[27].mxu0 }
 0x1de   :  { %v4884_v25 = vadd.f32 %v3208_v27, %v6600_v31 }
 0x1df   :  { %3488 = vst [vmem:[%s6825_s6 + $0xd8] sm:$0xff] %v4883_v26 }
 0x1e0   :  { %3487 = vst [vmem:[%s6825_s6 + $0xd0] sm:$0xff] %v4884_v25  ;;  %v4717_v28 = vpop.f32.mrb[28].mxu0 }
 0x1e1   :  { %v4885_v29 = vadd.f32 %v4717_v28, %v6602_v32  ;;  %v3218_v36 = vpop.f32.mrb[29].mxu0 }
 0x1e2   :  { %v4886_v37 = vadd.f32 %v3218_v36, %v6604_v33 }
 0x1e3   :  { %3490 = vst [vmem:[%s6825_s6 + $0xe8] sm:$0xff] %v4885_v29 }
 0x1e4   :  { %3489 = vst [vmem:[%s6825_s6 + $0xe0] sm:$0xff] %v4886_v37  ;;  %v4720_v30 = vpop.f32.mrb[30].mxu0 }
 0x1e5   :  { %v4887_v31 = vadd.f32 %v4720_v30, %v6606_v34  ;;  %v3228_v38 = vpop.f32.mrb[31].mxu0 }
 0x1e6   :  { %v4888_v39 = vadd.f32 %v3228_v38, %v6608_v35 }
 0x1e7   :  { %3492 = vst [vmem:[%s6825_s6 + $0xf8] sm:$0xff] %v4887_v31  ;;  %v4499_v32 = vpop.f32.mrb[32].mxu1 }
 0x1e8   :  { %3491 = vst [vmem:[%s6825_s6 + $0xf0] sm:$0xff] %v4888_v39  ;;  %v4723_v33 = vpop.f32.mrb[32].mxu0  ;;  %v1812_v40 = vpop.f32.mrb[33].mxu1 }
 0x1e9   :  { %v4889_v41 = vadd.f32 %v4723_v33, %v4499_v32  ;;  %v3238_v42 = vpop.f32.mrb[33].mxu0 }
 0x1ea   :  { %v4890_v43 = vadd.f32 %v3238_v42, %v1812_v40 }
 0x1eb   :  { %3494 = vst [vmem:[%s6825_s6 + $0x108] sm:$0xff] %v4889_v41  ;;  %v4502_v34 = vpop.f32.mrb[34].mxu1 }
 0x1ec   :  { %3493 = vst [vmem:[%s6825_s6 + $0x100] sm:$0xff] %v4890_v43  ;;  %v4726_v35 = vpop.f32.mrb[34].mxu0  ;;  %v1822_v44 = vpop.f32.mrb[35].mxu1 }
 0x1ed   :  { %v4891_v45 = vadd.f32 %v4726_v35, %v4502_v34  ;;  %v3248_v46 = vpop.f32.mrb[35].mxu0 }
 0x1ee   :  { %v4892_v47 = vadd.f32 %v3248_v46, %v1822_v44 }
 0x1ef   :  { %3496 = vst [vmem:[%s6825_s6 + $0x118] sm:$0xff] %v4891_v45  ;;  %v4505_v48 = vpop.f32.mrb[36].mxu1 }
 0x1f0   :  { %3495 = vst [vmem:[%s6825_s6 + $0x110] sm:$0xff] %v4892_v47  ;;  %v4729_v49 = vpop.f32.mrb[36].mxu0  ;;  %v1832_v50 = vpop.f32.mrb[37].mxu1 }
 0x1f1   :  { %v4893_v51 = vadd.f32 %v4729_v49, %v4505_v48  ;;  %v3258_v52 = vpop.f32.mrb[37].mxu0 }
 0x1f2   :  { %v4894_v53 = vadd.f32 %v3258_v52, %v1832_v50 }
 0x1f3   :  { %3498 = vst [vmem:[%s6825_s6 + $0x128] sm:$0xff] %v4893_v51  ;;  %v4508_v54 = vpop.f32.mrb[38].mxu1 }
 0x1f4   :  { %3497 = vst [vmem:[%s6825_s6 + $0x120] sm:$0xff] %v4894_v53  ;;  %v4732_v55 = vpop.f32.mrb[38].mxu0  ;;  %v1842_v56 = vpop.f32.mrb[39].mxu1 }
 0x1f5   :  { %v4895_v57 = vadd.f32 %v4732_v55, %v4508_v54  ;;  %v3268_v58 = vpop.f32.mrb[39].mxu0 }
 0x1f6   :  { %v4896_v59 = vadd.f32 %v3268_v58, %v1842_v56 }
 0x1f7   :  { %3500 = vst [vmem:[%s6825_s6 + $0x138] sm:$0xff] %v4895_v57  ;;  %v4511_v60 = vpop.f32.mrb[40].mxu1 }
 0x1f8   :  { %3499 = vst [vmem:[%s6825_s6 + $0x130] sm:$0xff] %v4896_v59  ;;  %v4735_v61 = vpop.f32.mrb[40].mxu0  ;;  %v1852_v62 = vpop.f32.mrb[41].mxu1 }
 0x1f9   :  { %v4897_v63 = vadd.f32 %v4735_v61, %v4511_v60  ;;  %v3278_v0 = vpop.f32.mrb[41].mxu0 }
 0x1fa   :  { %v4898_v1 = vadd.f32 %v3278_v0, %v1852_v62 }
 0x1fb   :  { %3502 = vst [vmem:[%s6825_s6 + $0x148] sm:$0xff] %v4897_v63  ;;  %v4514_v2 = vpop.f32.mrb[42].mxu1 }
 0x1fc   :  { %3501 = vst [vmem:[%s6825_s6 + $0x140] sm:$0xff] %v4898_v1  ;;  %v4738_v3 = vpop.f32.mrb[42].mxu0  ;;  %v1862_v4 = vpop.f32.mrb[43].mxu1 }
 0x1fd   :  { %v4899_v6 = vadd.f32 %v4738_v3, %v4514_v2  ;;  %v3288_v8 = vpop.f32.mrb[43].mxu0 }
 0x1fe   :  { %v4900_v5 = vadd.f32 %v3288_v8, %v1862_v4 }
 0x1ff   :  { %3504 = vst [vmem:[%s6825_s6 + $0x158] sm:$0xff] %v4899_v6  ;;  %v4517_v9 = vpop.f32.mrb[44].mxu1 }
 0x200   :  { %3503 = vst [vmem:[%s6825_s6 + $0x150] sm:$0xff] %v4900_v5  ;;  %v4741_v10 = vpop.f32.mrb[44].mxu0  ;;  %v1872_v11 = vpop.f32.mrb[45].mxu1 }
 0x201   :  { %v4901_v13 = vadd.f32 %v4741_v10, %v4517_v9  ;;  %v3298_v14 = vpop.f32.mrb[45].mxu0 }
 0x202   :  { %v4902_v7 = vadd.f32 %v3298_v14, %v1872_v11 }
 0x203   :  { %3506 = vst [vmem:[%s6825_s6 + $0x168] sm:$0xff] %v4901_v13  ;;  %v4520_v15 = vpop.f32.mrb[46].mxu1 }
 0x204   :  { %3505 = vst [vmem:[%s6825_s6 + $0x160] sm:$0xff] %v4902_v7  ;;  %v4744_v16 = vpop.f32.mrb[46].mxu0  ;;  %v1882_v17 = vpop.f32.mrb[47].mxu1 }
 0x205   :  { %v4903_v18 = vadd.f32 %v4744_v16, %v4520_v15  ;;  %v3308_v20 = vpop.f32.mrb[47].mxu0 }
 0x206   :  { %v4904_v12 = vadd.f32 %v3308_v20, %v1882_v17 }
 0x207   :  { %3508 = vst [vmem:[%s6825_s6 + $0x178] sm:$0xff] %v4903_v18  ;;  %v4523_v21 = vpop.f32.mrb[48].mxu1 }
 0x208   :  { %3507 = vst [vmem:[%s6825_s6 + $0x170] sm:$0xff] %v4904_v12  ;;  %v4747_v22 = vpop.f32.mrb[48].mxu0  ;;  %v1892_v23 = vpop.f32.mrb[49].mxu1 }
 0x209   :  { %v4905_v19 = vadd.f32 %v4747_v22, %v4523_v21  ;;  %v3318_v24 = vpop.f32.mrb[49].mxu0 }
 0x20a   :  { %v4906_v26 = vadd.f32 %v3318_v24, %v1892_v23 }
 0x20b   :  { %3510 = vst [vmem:[%s6825_s6 + $0x188] sm:$0xff] %v4905_v19  ;;  %v4526_v27 = vpop.f32.mrb[50].mxu1 }
 0x20c   :  { %3509 = vst [vmem:[%s6825_s6 + $0x180] sm:$0xff] %v4906_v26  ;;  %v4750_v25 = vpop.f32.mrb[50].mxu0  ;;  %v1902_v28 = vpop.f32.mrb[51].mxu1 }
 0x20d   :  { %v4907_v29 = vadd.f32 %v4750_v25, %v4526_v27  ;;  %v3328_v36 = vpop.f32.mrb[51].mxu0 }
 0x20e   :  { %v4908_v37 = vadd.f32 %v3328_v36, %v1902_v28 }
 0x20f   :  { %3512 = vst [vmem:[%s6825_s6 + $0x198] sm:$0xff] %v4907_v29  ;;  %v4529_v30 = vpop.f32.mrb[52].mxu1 }
 0x210   :  { %3511 = vst [vmem:[%s6825_s6 + $0x190] sm:$0xff] %v4908_v37  ;;  %v4753_v31 = vpop.f32.mrb[52].mxu0  ;;  %v1912_v38 = vpop.f32.mrb[53].mxu1 }
 0x211   :  { %v4909_v39 = vadd.f32 %v4753_v31, %v4529_v30  ;;  %v3338_v32 = vpop.f32.mrb[53].mxu0 }
 0x212   :  { %v4910_v33 = vadd.f32 %v3338_v32, %v1912_v38 }
 0x213   :  { %3514 = vst [vmem:[%s6825_s6 + $0x1a8] sm:$0xff] %v4909_v39  ;;  %v4532_v40 = vpop.f32.mrb[54].mxu1 }
 0x214   :  { %3513 = vst [vmem:[%s6825_s6 + $0x1a0] sm:$0xff] %v4910_v33  ;;  %v4756_v41 = vpop.f32.mrb[54].mxu0  ;;  %v1922_v42 = vpop.f32.mrb[55].mxu1 }
 0x215   :  { %v4911_v43 = vadd.f32 %v4756_v41, %v4532_v40  ;;  %v3348_v34 = vpop.f32.mrb[55].mxu0 }
 0x216   :  { %v4912_v35 = vadd.f32 %v3348_v34, %v1922_v42 }
 0x217   :  { %3516 = vst [vmem:[%s6825_s6 + $0x1b8] sm:$0xff] %v4911_v43  ;;  %v4535_v44 = vpop.f32.mrb[56].mxu1 }
 0x218   :  { %3515 = vst [vmem:[%s6825_s6 + $0x1b0] sm:$0xff] %v4912_v35  ;;  %v4759_v45 = vpop.f32.mrb[56].mxu0  ;;  %v1932_v46 = vpop.f32.mrb[57].mxu1 }
 0x219   :  { %v4913_v47 = vadd.f32 %v4759_v45, %v4535_v44  ;;  %v3358_v48 = vpop.f32.mrb[57].mxu0 }
 0x21a   :  { %v4914_v49 = vadd.f32 %v3358_v48, %v1932_v46 }
 0x21b   :  { %3518 = vst [vmem:[%s6825_s6 + $0x1c8] sm:$0xff] %v4913_v47  ;;  %v4538_v50 = vpop.f32.mrb[58].mxu1 }
 0x21c   :  { %3517 = vst [vmem:[%s6825_s6 + $0x1c0] sm:$0xff] %v4914_v49  ;;  %v4762_v51 = vpop.f32.mrb[58].mxu0  ;;  %v1942_v52 = vpop.f32.mrb[59].mxu1 }
 0x21d   :  { %v4915_v53 = vadd.f32 %v4762_v51, %v4538_v50  ;;  %v3368_v54 = vpop.f32.mrb[59].mxu0 }
 0x21e   :  { %v4916_v55 = vadd.f32 %v3368_v54, %v1942_v52 }
 0x21f   :  { %3520 = vst [vmem:[%s6825_s6 + $0x1d8] sm:$0xff] %v4915_v53  ;;  %v4541_v56 = vpop.f32.mrb[60].mxu1 }
 0x220   :  { %3519 = vst [vmem:[%s6825_s6 + $0x1d0] sm:$0xff] %v4916_v55  ;;  %v4765_v57 = vpop.f32.mrb[60].mxu0  ;;  %v1952_v58 = vpop.f32.mrb[61].mxu1 }
 0x221   :  { %v4917_v59 = vadd.f32 %v4765_v57, %v4541_v56  ;;  %v3378_v60 = vpop.f32.mrb[61].mxu0 }
 0x222   :  { %v4918_v61 = vadd.f32 %v3378_v60, %v1952_v58 }
 0x223   :  { %3522 = vst [vmem:[%s6825_s6 + $0x1e8] sm:$0xff] %v4917_v59  ;;  %v4544_v62 = vpop.f32.mrb[62].mxu1 }
 0x224   :  { %3521 = vst [vmem:[%s6825_s6 + $0x1e0] sm:$0xff] %v4918_v61  ;;  %v4768_v63 = vpop.f32.mrb[62].mxu0  ;;  %v1962_v0 = vpop.f32.mrb[63].mxu1 }
 0x225   :  { %v4919_v1 = vadd.f32 %v4768_v63, %v4544_v62  ;;  %v3388_v2 = vpop.f32.mrb[63].mxu0 }
 0x226   :  { %v4920_v3 = vadd.f32 %v3388_v2, %v1962_v0 }
 0x227   :  { %3524 = vst [vmem:[%s6825_s6 + $0x1f8] sm:$0xff] %v4919_v1 }
 0x228   :  { %3523 = vst [vmem:[%s6825_s6 + $0x1f0] sm:$0xff] %v4920_v3 }

// kernel: asp_oc_forward.53
= control target key start
LH: loop header
LB: loop body
LE: loop exit
PB: predicated region body
PF: predicated region fallthrough
CT: control target
= control target key end

     0   :  { %s823_s0 = inlined_call_operand.vmem [shape: f32[512,128], index: 0, kind: input, shape index: {}]   ;;  %s824_s1 = inlined_call_operand.vmem [shape: f32[1,128], index: 1, kind: input, shape index: {}]   ;;  %s825_s2 = inlined_call_operand.vmem [shape: f32[1,128], index: 2, kind: input, shape index: {}]   ;;  %s826_s3 = inlined_call_operand.hbm [shape: f32[512,128], index: 3, kind: output, shape index: {}]  }
   0x1   :  { %v15_v0 = vld [vmem:[%s823_s0] sm:$0xff]  ;;  %v16_v4 = vld [vmem:[%s823_s0 + $0x8] sm:$0xff]  ;;  %v17_v5 = vld [vmem:[%s823_s0 + $0x10] sm:$0xff] }
   0x2   :  { %v487_v1 = vld [vmem:[%s824_s1] ss:$0 sm:$0xff]  ;;  %v18_v6 = vld [vmem:[%s823_s0 + $0x18] sm:$0xff]  ;;  %v20_v11 = vld [vmem:[%s823_s0 + $0x28] sm:$0xff] }
   0x3   :  { %v492_v2 = vld [vmem:[%s825_s2] ss:$0 sm:$0xff]  ;;  %v86_v3 = vmul.f32 %v487_v1, %v15_v0  ;;  %v87_v7 = vmul.f32 %v487_v1, %v16_v4  ;;  %v88_v8 = vmul.f32 %v487_v1, %v17_v5  ;;  %v89_v9 = vmul.f32 %v487_v1, %v18_v6  ;;  %v21_v12 = vld [vmem:[%s823_s0 + $0x30] sm:$0xff]  ;;  %v22_v17 = vld [vmem:[%s823_s0 + $0x38] sm:$0xff] }
   0x4   :  { %v19_v10 = vld [vmem:[%s823_s0 + $0x20] sm:$0xff]  ;;  %v91_v15 = vmul.f32 %v487_v1, %v20_v11  ;;  %v92_v16 = vmul.f32 %v487_v1, %v21_v12  ;;  %v93_v21 = vmul.f32 %v487_v1, %v22_v17  ;;  %v24_v27 = vld [vmem:[%s823_s0 + $0x48] sm:$0xff]  ;;  %v25_v28 = vld [vmem:[%s823_s0 + $0x50] sm:$0xff] }
   0x5   :  { %v157_v13 = vadd.f32 %v492_v2, %v86_v3  ;;  %v90_v14 = vmul.f32 %v487_v1, %v19_v10  ;;  %v158_v18 = vadd.f32 %v492_v2, %v87_v7  ;;  %v159_v19 = vadd.f32 %v492_v2, %v88_v8  ;;  %v23_v22 = vld [vmem:[%s823_s0 + $0x40] sm:$0xff]  ;;  %v26_v29 = vld [vmem:[%s823_s0 + $0x58] sm:$0xff]  ;;  %v28_v43 = vld [vmem:[%s823_s0 + $0x68] sm:$0xff] }
   0x6   :  { %v160_v20 = vadd.f32 %v492_v2, %v89_v9  ;;  %v162_v25 = vadd.f32 %v492_v2, %v91_v15  ;;  %v163_v26 = vadd.f32 %v492_v2, %v92_v16  ;;  %v164_v33 = vadd.f32 %v492_v2, %v93_v21  ;;  %v27_v42 = vld [vmem:[%s823_s0 + $0x60] sm:$0xff]  ;;  %v29_v44 = vld [vmem:[%s823_s0 + $0x70] sm:$0xff]  ;;  %v30_v49 = vld [vmem:[%s823_s0 + $0x78] sm:$0xff] }
   0x7   :  { %v221_v23 = vmul.f32 0.01, %v157_v13  ;;  %v161_v24 = vadd.f32 %v492_v2, %v90_v14  ;;  %v222_v30 = vmul.f32 0.01, %v158_v18  ;;  %v223_v31 = vmul.f32 0.01, %v159_v19 }
   0x8   :  { %v224_v32 = vmul.f32 0.01, %v160_v20  ;;  %v226_v36 = vmul.f32 0.01, %v162_v25  ;;  %v227_v37 = vmul.f32 0.01, %v163_v26  ;;  %v94_v48 = vmul.f32 %v487_v1, %v23_v22 }
   0x9   :  { %v285_v34 = vmax.f32 %v157_v13, %v221_v23  ;;  %v225_v35 = vmul.f32 0.01, %v161_v24  ;;  %v286_v38 = vmax.f32 %v158_v18, %v222_v30  ;;  %v287_v39 = vmax.f32 %v159_v19, %v223_v31  ;;  %v31_v62 = vld [vmem:[%s823_s0 + $0x80] sm:$0xff]  ;;  %v32_v5 = vld [vmem:[%s823_s0 + $0x88] sm:$0xff]  ;;  %v33_v6 = vld [vmem:[%s823_s0 + $0x90] sm:$0xff] }
   0xa   :  { %v288_v40 = vmax.f32 %v160_v20, %v224_v32  ;;  %v228_v41 = vmul.f32 0.01, %v164_v33  ;;  %v290_v46 = vmax.f32 %v162_v25, %v226_v36  ;;  %v291_v47 = vmax.f32 %v163_v26, %v227_v37  ;;  %v34_v7 = vld [vmem:[%s823_s0 + $0x98] sm:$0xff]  ;;  %v35_v20 = vld [vmem:[%s823_s0 + $0xa0] sm:$0xff]  ;;  %v36_v21 = vld [vmem:[%s823_s0 + $0xa8] sm:$0xff] }
   0xb   :  { %349 = vst [vmem:[#allocation2] sm:$0xff] %v285_v34  ;;  %v289_v45 = vmax.f32 %v161_v24, %v225_v35  ;;  %350 = vst [vmem:[#allocation2 + $0x8] sm:$0xff] %v286_v38  ;;  %v95_v51 = vmul.f32 %v487_v1, %v24_v27  ;;  %v96_v52 = vmul.f32 %v487_v1, %v25_v28  ;;  %v37_v22 = vld [vmem:[%s823_s0 + $0xb0] sm:$0xff]  ;;  %v38_v27 = vld [vmem:[%s823_s0 + $0xb8] sm:$0xff] }
   0xc   :  { %351 = vst [vmem:[#allocation2 + $0x10] sm:$0xff] %v287_v39  ;;  %352 = vst [vmem:[#allocation2 + $0x18] sm:$0xff] %v288_v40  ;;  %v292_v50 = vmax.f32 %v164_v33, %v228_v41  ;;  %v97_v53 = vmul.f32 %v487_v1, %v26_v29  ;;  %v165_v54 = vadd.f32 %v492_v2, %v94_v48  ;;  %v39_v40 = vld [vmem:[%s823_s0 + $0xc0] sm:$0xff] }
   0xd   :  { %353 = vst [vmem:[#allocation2 + $0x20] sm:$0xff] %v289_v45  ;;  %354 = vst [vmem:[#allocation2 + $0x28] sm:$0xff] %v290_v46  ;;  %v98_v55 = vmul.f32 %v487_v1, %v27_v42  ;;  %v99_v56 = vmul.f32 %v487_v1, %v28_v43  ;;  %v100_v57 = vmul.f32 %v487_v1, %v29_v44  ;;  %v40_v45 = vld [vmem:[%s823_s0 + $0xc8] sm:$0xff]  ;;  %v41_v46 = vld [vmem:[%s823_s0 + $0xd0] sm:$0xff] }
   0xe   :  { %355 = vst [vmem:[#allocation2 + $0x30] sm:$0xff] %v291_v47  ;;  %356 = vst [vmem:[#allocation2 + $0x38] sm:$0xff] %v292_v50  ;;  %v166_v58 = vadd.f32 %v492_v2, %v95_v51  ;;  %v167_v59 = vadd.f32 %v492_v2, %v96_v52  ;;  %v168_v60 = vadd.f32 %v492_v2, %v97_v53  ;;  %v229_v63 = vmul.f32 0.01, %v165_v54  ;;  %v42_v47 = vld [vmem:[%s823_s0 + $0xd8] sm:$0xff] }
   0xf   :  { %v101_v61 = vmul.f32 %v487_v1, %v30_v49  ;;  %v169_v0 = vadd.f32 %v492_v2, %v98_v55  ;;  %v170_v3 = vadd.f32 %v492_v2, %v99_v56  ;;  %v171_v4 = vadd.f32 %v492_v2, %v100_v57 }
  0x10   :  { %v230_v8 = vmul.f32 0.01, %v166_v58  ;;  %v231_v9 = vmul.f32 0.01, %v167_v59  ;;  %v232_v10 = vmul.f32 0.01, %v168_v60  ;;  %v293_v12 = vmax.f32 %v165_v54, %v229_v63 }
  0x11   :  { %v172_v11 = vadd.f32 %v492_v2, %v101_v61  ;;  %v233_v13 = vmul.f32 0.01, %v169_v0  ;;  %v234_v14 = vmul.f32 0.01, %v170_v3  ;;  %v235_v15 = vmul.f32 0.01, %v171_v4 }
  0x12   :  { %v294_v16 = vmax.f32 %v166_v58, %v230_v8  ;;  %v295_v17 = vmax.f32 %v167_v59, %v231_v9  ;;  %v296_v18 = vmax.f32 %v168_v60, %v232_v10  ;;  %357 = vst [vmem:[#allocation2 + $0x40] sm:$0xff] %v293_v12  ;;  %v102_v26 = vmul.f32 %v487_v1, %v31_v62  ;;  %v43_v60 = vld [vmem:[%s823_s0 + $0xe0] sm:$0xff]  ;;  %v44_v61 = vld [vmem:[%s823_s0 + $0xe8] sm:$0xff]  ;;  %v45_v62 = vld [vmem:[%s823_s0 + $0xf0] sm:$0xff] }
  0x13   :  { %v236_v19 = vmul.f32 0.01, %v172_v11  ;;  %v297_v23 = vmax.f32 %v169_v0, %v233_v13  ;;  %v298_v24 = vmax.f32 %v170_v3, %v234_v14  ;;  %v299_v25 = vmax.f32 %v171_v4, %v235_v15 }
  0x14   :  { %358 = vst [vmem:[#allocation2 + $0x48] sm:$0xff] %v294_v16  ;;  %359 = vst [vmem:[#allocation2 + $0x50] sm:$0xff] %v295_v17  ;;  %v103_v29 = vmul.f32 %v487_v1, %v32_v5  ;;  %v104_v30 = vmul.f32 %v487_v1, %v33_v6  ;;  %v105_v31 = vmul.f32 %v487_v1, %v34_v7  ;;  %v46_v5 = vld [vmem:[%s823_s0 + $0xf8] sm:$0xff] }
  0x15   :  { %360 = vst [vmem:[#allocation2 + $0x58] sm:$0xff] %v296_v18  ;;  %v300_v28 = vmax.f32 %v172_v11, %v236_v19  ;;  %361 = vst [vmem:[#allocation2 + $0x60] sm:$0xff] %v297_v23  ;;  %v173_v32 = vadd.f32 %v492_v2, %v102_v26  ;;  %v106_v33 = vmul.f32 %v487_v1, %v35_v20  ;;  %v47_v18 = vld [vmem:[%s823_s0 + $0x100] sm:$0xff] }
  0x16   :  { %362 = vst [vmem:[#allocation2 + $0x68] sm:$0xff] %v298_v24  ;;  %363 = vst [vmem:[#allocation2 + $0x70] sm:$0xff] %v299_v25  ;;  %v107_v34 = vmul.f32 %v487_v1, %v36_v21  ;;  %v108_v35 = vmul.f32 %v487_v1, %v37_v22  ;;  %v174_v36 = vadd.f32 %v492_v2, %v103_v29 }
  0x17   :  { %364 = vst [vmem:[#allocation2 + $0x78] sm:$0xff] %v300_v28  ;;  %v175_v37 = vadd.f32 %v492_v2, %v104_v30  ;;  %v176_v38 = vadd.f32 %v492_v2, %v105_v31  ;;  %v109_v39 = vmul.f32 %v487_v1, %v38_v27  ;;  %v237_v41 = vmul.f32 0.01, %v173_v32 }
  0x18   :  { %v177_v42 = vadd.f32 %v492_v2, %v106_v33  ;;  %v178_v43 = vadd.f32 %v492_v2, %v107_v34  ;;  %v179_v44 = vadd.f32 %v492_v2, %v108_v35  ;;  %v238_v48 = vmul.f32 0.01, %v174_v36 }
  0x19   :  { %v239_v49 = vmul.f32 0.01, %v175_v37  ;;  %v240_v50 = vmul.f32 0.01, %v176_v38  ;;  %v180_v51 = vadd.f32 %v492_v2, %v109_v39  ;;  %v301_v52 = vmax.f32 %v173_v32, %v237_v41 }
  0x1a   :  { %v241_v53 = vmul.f32 0.01, %v177_v42  ;;  %v242_v54 = vmul.f32 0.01, %v178_v43  ;;  %v243_v55 = vmul.f32 0.01, %v179_v44  ;;  %v302_v56 = vmax.f32 %v174_v36, %v238_v48 }
  0x1b   :  { %v303_v57 = vmax.f32 %v175_v37, %v239_v49  ;;  %v304_v58 = vmax.f32 %v176_v38, %v240_v50  ;;  %v244_v59 = vmul.f32 0.01, %v180_v51  ;;  %365 = vst [vmem:[#allocation2 + $0x80] sm:$0xff] %v301_v52  ;;  %v110_v4 = vmul.f32 %v487_v1, %v39_v40 }
  0x1c   :  { %v305_v63 = vmax.f32 %v177_v42, %v241_v53  ;;  %v306_v0 = vmax.f32 %v178_v43, %v242_v54  ;;  %v307_v3 = vmax.f32 %v179_v44, %v243_v55  ;;  %366 = vst [vmem:[#allocation2 + $0x88] sm:$0xff] %v302_v56  ;;  %v111_v7 = vmul.f32 %v487_v1, %v40_v45 }
  0x1d   :  { %367 = vst [vmem:[#allocation2 + $0x90] sm:$0xff] %v303_v57  ;;  %368 = vst [vmem:[#allocation2 + $0x98] sm:$0xff] %v304_v58  ;;  %v308_v6 = vmax.f32 %v180_v51, %v244_v59  ;;  %v112_v8 = vmul.f32 %v487_v1, %v41_v46  ;;  %v113_v9 = vmul.f32 %v487_v1, %v42_v47 }
  0x1e   :  { %369 = vst [vmem:[#allocation2 + $0xa0] sm:$0xff] %v305_v63  ;;  %370 = vst [vmem:[#allocation2 + $0xa8] sm:$0xff] %v306_v0  ;;  %v181_v10 = vadd.f32 %v492_v2, %v110_v4  ;;  %v114_v11 = vmul.f32 %v487_v1, %v43_v60  ;;  %v115_v12 = vmul.f32 %v487_v1, %v44_v61 }
  0x1f   :  { %371 = vst [vmem:[#allocation2 + $0xb0] sm:$0xff] %v307_v3  ;;  %v116_v13 = vmul.f32 %v487_v1, %v45_v62  ;;  %372 = vst [vmem:[#allocation2 + $0xb8] sm:$0xff] %v308_v6  ;;  %v182_v14 = vadd.f32 %v492_v2, %v111_v7  ;;  %v183_v15 = vadd.f32 %v492_v2, %v112_v8 }
  0x20   :  { %v184_v16 = vadd.f32 %v492_v2, %v113_v9  ;;  %v117_v17 = vmul.f32 %v487_v1, %v46_v5 }
  0x21   :  { %8 = vsyncpa [#allocation3], 0  ;;  %v245_v19 = vmul.f32 0.01, %v181_v10  ;;  %v185_v20 = vadd.f32 %v492_v2, %v114_v11  ;;  %v186_v21 = vadd.f32 %v492_v2, %v115_v12  ;;  %v187_v22 = vadd.f32 %v492_v2, %v116_v13  ;;  %v48_v23 = vld [vmem:[%s823_s0 + $0x108] sm:$0xff]  ;;  %v49_v24 = vld [vmem:[%s823_s0 + $0x110] sm:$0xff] }
  0x22   :  { %v50_v25 = vld [vmem:[%s823_s0 + $0x118] sm:$0xff]  ;;  %v246_v26 = vmul.f32 0.01, %v182_v14  ;;  %v247_v27 = vmul.f32 0.01, %v183_v15  ;;  %v188_v29 = vadd.f32 %v492_v2, %v117_v17  ;;  %v51_v38 = vld [vmem:[%s823_s0 + $0x120] sm:$0xff]  ;;  %v118_v44 = vmul.f32 %v487_v1, %v47_v18 }
  0x23   :  { %v248_v28 = vmul.f32 0.01, %v184_v16  ;;  %v309_v30 = vmax.f32 %v181_v10, %v245_v19  ;;  %v249_v31 = vmul.f32 0.01, %v185_v20  ;;  %v250_v32 = vmul.f32 0.01, %v186_v21 }
  0x24   :  { %v251_v33 = vmul.f32 0.01, %v187_v22  ;;  %v310_v34 = vmax.f32 %v182_v14, %v246_v26  ;;  %v311_v35 = vmax.f32 %v183_v15, %v247_v27  ;;  %v252_v37 = vmul.f32 0.01, %v188_v29  ;;  %v52_v39 = vld [vmem:[%s823_s0 + $0x128] sm:$0xff]  ;;  %v53_v40 = vld [vmem:[%s823_s0 + $0x130] sm:$0xff] }
  0x25   :  { %v312_v36 = vmax.f32 %v184_v16, %v248_v28  ;;  %373 = vst [vmem:[#allocation2 + $0xc0] sm:$0xff] %v309_v30  ;;  %v313_v41 = vmax.f32 %v185_v20, %v249_v31  ;;  %v314_v42 = vmax.f32 %v186_v21, %v250_v32  ;;  %v54_v45 = vld [vmem:[%s823_s0 + $0x138] sm:$0xff]  ;;  %v119_v47 = vmul.f32 %v487_v1, %v48_v23  ;;  %v55_v58 = vld [vmem:[%s823_s0 + $0x140] sm:$0xff]  ;;  %v56_v63 = vld [vmem:[%s823_s0 + $0x148] sm:$0xff] }
  0x26   :  { %v315_v43 = vmax.f32 %v187_v22, %v251_v33  ;;  %374 = vst [vmem:[#allocation2 + $0xc8] sm:$0xff] %v310_v34  ;;  %375 = vst [vmem:[#allocation2 + $0xd0] sm:$0xff] %v311_v35  ;;  %v316_v46 = vmax.f32 %v188_v29, %v252_v37  ;;  %v120_v48 = vmul.f32 %v487_v1, %v49_v24  ;;  %v57_v0 = vld [vmem:[%s823_s0 + $0x150] sm:$0xff]  ;;  %v58_v3 = vld [vmem:[%s823_s0 + $0x158] sm:$0xff] }
  0x27   :  { %376 = vst [vmem:[#allocation2 + $0xd8] sm:$0xff] %v312_v36  ;;  %v121_v49 = vmul.f32 %v487_v1, %v50_v25  ;;  %377 = vst [vmem:[#allocation2 + $0xe0] sm:$0xff] %v313_v41  ;;  %v189_v50 = vadd.f32 %v492_v2, %v118_v44  ;;  %v122_v51 = vmul.f32 %v487_v1, %v51_v38  ;;  %v59_v16 = vld [vmem:[%s823_s0 + $0x160] sm:$0xff]  ;;  %v60_v17 = vld [vmem:[%s823_s0 + $0x168] sm:$0xff] }
  0x28   :  { %378 = vst [vmem:[#allocation2 + $0xe8] sm:$0xff] %v314_v42  ;;  %379 = vst [vmem:[#allocation2 + $0xf0] sm:$0xff] %v315_v43  ;;  %v123_v52 = vmul.f32 %v487_v1, %v52_v39  ;;  %v124_v53 = vmul.f32 %v487_v1, %v53_v40  ;;  %v190_v54 = vadd.f32 %v492_v2, %v119_v47  ;;  %v61_v18 = vld [vmem:[%s823_s0 + $0x170] sm:$0xff]  ;;  %v62_v23 = vld [vmem:[%s823_s0 + $0x178] sm:$0xff] }
  0x29   :  { %380 = vst [vmem:[#allocation2 + $0xf8] sm:$0xff] %v316_v46  ;;  %v191_v55 = vadd.f32 %v492_v2, %v120_v48  ;;  %v192_v56 = vadd.f32 %v492_v2, %v121_v49  ;;  %v125_v57 = vmul.f32 %v487_v1, %v54_v45  ;;  %v253_v59 = vmul.f32 0.01, %v189_v50  ;;  %v63_v36 = vld [vmem:[%s823_s0 + $0x180] sm:$0xff]  ;;  %v64_v41 = vld [vmem:[%s823_s0 + $0x188] sm:$0xff]  ;;  %v65_v42 = vld [vmem:[%s823_s0 + $0x190] sm:$0xff] }
  0x2a   :  { %v193_v60 = vadd.f32 %v492_v2, %v122_v51  ;;  %v194_v61 = vadd.f32 %v492_v2, %v123_v52  ;;  %v195_v62 = vadd.f32 %v492_v2, %v124_v53  ;;  %v254_v4 = vmul.f32 0.01, %v190_v54  ;;  %v66_v43 = vld [vmem:[%s823_s0 + $0x198] sm:$0xff] }
  0x2b   :  { %v255_v5 = vmul.f32 0.01, %v191_v55  ;;  %v256_v6 = vmul.f32 0.01, %v192_v56  ;;  %v196_v7 = vadd.f32 %v492_v2, %v125_v57  ;;  %v317_v8 = vmax.f32 %v189_v50, %v253_v59  ;;  %v68_v57 = vld [vmem:[%s823_s0 + $0x1a8] sm:$0xff] }
  0x2c   :  { %v257_v9 = vmul.f32 0.01, %v193_v60  ;;  %v258_v10 = vmul.f32 0.01, %v194_v61  ;;  %v259_v11 = vmul.f32 0.01, %v195_v62  ;;  %v318_v12 = vmax.f32 %v190_v54, %v254_v4 }
  0x2d   :  { %v319_v13 = vmax.f32 %v191_v55, %v255_v5  ;;  %v320_v14 = vmax.f32 %v192_v56, %v256_v6  ;;  %v260_v15 = vmul.f32 0.01, %v196_v7  ;;  %381 = vst [vmem:[#allocation2 + $0x100] sm:$0xff] %v317_v8  ;;  %v126_v22 = vmul.f32 %v487_v1, %v55_v58  ;;  %v67_v56 = vld [vmem:[%s823_s0 + $0x1a0] sm:$0xff]  ;;  %v69_v58 = vld [vmem:[%s823_s0 + $0x1b0] sm:$0xff] }
  0x2e   :  { %v321_v19 = vmax.f32 %v193_v60, %v257_v9  ;;  %v322_v20 = vmax.f32 %v194_v61, %v258_v10  ;;  %v323_v21 = vmax.f32 %v195_v62, %v259_v11  ;;  %382 = vst [vmem:[#allocation2 + $0x108] sm:$0xff] %v318_v12  ;;  %v127_v25 = vmul.f32 %v487_v1, %v56_v63  ;;  %v70_v63 = vld [vmem:[%s823_s0 + $0x1b8] sm:$0xff] }
  0x2f   :  { %383 = vst [vmem:[#allocation2 + $0x110] sm:$0xff] %v319_v13  ;;  %384 = vst [vmem:[#allocation2 + $0x118] sm:$0xff] %v320_v14  ;;  %v324_v24 = vmax.f32 %v196_v7, %v260_v15  ;;  %v128_v26 = vmul.f32 %v487_v1, %v57_v0  ;;  %v129_v27 = vmul.f32 %v487_v1, %v58_v3  ;;  %v71_v14 = vld [vmem:[%s823_s0 + $0x1c0] sm:$0xff] }
  0x30   :  { %385 = vst [vmem:[#allocation2 + $0x120] sm:$0xff] %v321_v19  ;;  %386 = vst [vmem:[#allocation2 + $0x128] sm:$0xff] %v322_v20  ;;  %v197_v28 = vadd.f32 %v492_v2, %v126_v22  ;;  %v130_v29 = vmul.f32 %v487_v1, %v59_v16  ;;  %v131_v30 = vmul.f32 %v487_v1, %v60_v17  ;;  %v72_v19 = vld [vmem:[%s823_s0 + $0x1c8] sm:$0xff]  ;;  %v73_v20 = vld [vmem:[%s823_s0 + $0x1d0] sm:$0xff] }
  0x31   :  { %387 = vst [vmem:[#allocation2 + $0x130] sm:$0xff] %v323_v21  ;;  %v132_v31 = vmul.f32 %v487_v1, %v61_v18  ;;  %388 = vst [vmem:[#allocation2 + $0x138] sm:$0xff] %v324_v24  ;;  %v198_v32 = vadd.f32 %v492_v2, %v127_v25  ;;  %v199_v33 = vadd.f32 %v492_v2, %v128_v26  ;;  %v74_v21 = vld [vmem:[%s823_s0 + $0x1d8] sm:$0xff] }
  0x32   :  { %v200_v34 = vadd.f32 %v492_v2, %v129_v27  ;;  %v133_v35 = vmul.f32 %v487_v1, %v62_v23  ;;  %v261_v37 = vmul.f32 0.01, %v197_v28  ;;  %v201_v38 = vadd.f32 %v492_v2, %v130_v29 }
  0x33   :  { %v202_v39 = vadd.f32 %v492_v2, %v131_v30  ;;  %v203_v40 = vadd.f32 %v492_v2, %v132_v31  ;;  %v262_v44 = vmul.f32 0.01, %v198_v32  ;;  %v263_v45 = vmul.f32 0.01, %v199_v33 }
  0x34   :  { %v264_v46 = vmul.f32 0.01, %v200_v34  ;;  %v204_v47 = vadd.f32 %v492_v2, %v133_v35  ;;  %v325_v48 = vmax.f32 %v197_v28, %v261_v37  ;;  %v265_v49 = vmul.f32 0.01, %v201_v38  ;;  %v76_v35 = vld [vmem:[%s823_s0 + $0x1e8] sm:$0xff] }
  0x35   :  { %v266_v50 = vmul.f32 0.01, %v202_v39  ;;  %v267_v51 = vmul.f32 0.01, %v203_v40  ;;  %v326_v52 = vmax.f32 %v198_v32, %v262_v44  ;;  %v327_v53 = vmax.f32 %v199_v33, %v263_v45 }
  0x36   :  { %v328_v54 = vmax.f32 %v200_v34, %v264_v46  ;;  %v268_v55 = vmul.f32 0.01, %v204_v47  ;;  %389 = vst [vmem:[#allocation2 + $0x140] sm:$0xff] %v325_v48  ;;  %v329_v59 = vmax.f32 %v201_v38, %v265_v49  ;;  %v134_v62 = vmul.f32 %v487_v1, %v63_v36  ;;  %v75_v34 = vld [vmem:[%s823_s0 + $0x1e0] sm:$0xff]  ;;  %v77_v36 = vld [vmem:[%s823_s0 + $0x1f0] sm:$0xff] }
  0x37   :  { %v330_v60 = vmax.f32 %v202_v39, %v266_v50  ;;  %v331_v61 = vmax.f32 %v203_v40, %v267_v51  ;;  %390 = vst [vmem:[#allocation2 + $0x148] sm:$0xff] %v326_v52  ;;  %391 = vst [vmem:[#allocation2 + $0x150] sm:$0xff] %v327_v53  ;;  %v135_v3 = vmul.f32 %v487_v1, %v64_v41  ;;  %v78_v41 = vld [vmem:[%s823_s0 + $0x1f8] sm:$0xff]  ;;  %s458_s0 = smov [#allocation2]  }
  0x38   :  { %392 = vst [vmem:[#allocation2 + $0x158] sm:$0xff] %v328_v54  ;;  %v332_v0 = vmax.f32 %v204_v47, %v268_v55  ;;  %v136_v4 = vmul.f32 %v487_v1, %v65_v42  ;;  %v137_v5 = vmul.f32 %v487_v1, %v66_v43  ;;  %393 = vst [vmem:[#allocation2 + $0x160] sm:$0xff] %v329_v59  ;;  %s418_s26 = sshll.u32 %s458_s0, 4  ;;  %s419_s26 = int_to_ptr.vmem [resolvable:$true] %s418_s26 }
  0x39   :  { %394 = vst [vmem:[#allocation2 + $0x168] sm:$0xff] %v330_v60  ;;  %395 = vst [vmem:[#allocation2 + $0x170] sm:$0xff] %v331_v61  ;;  %v205_v6 = vadd.f32 %v492_v2, %v134_v62  ;;  %v138_v7 = vmul.f32 %v487_v1, %v67_v56  ;;  %v139_v8 = vmul.f32 %v487_v1, %v68_v57  ;;  %s434_s27 = scalar_lea.vmem %s419_s26, 8192  ;;  %p439_p1 = scmp.lt.s32.totalorder %s419_s26, %s419_s26 }
  0x3a   :  { %v140_v9 = vmul.f32 %v487_v1, %v69_v58  ;;  %396 = vst [vmem:[#allocation2 + $0x178] sm:$0xff] %v332_v0  ;;  %v206_v10 = vadd.f32 %v492_v2, %v135_v3  ;;  %v207_v11 = vadd.f32 %v492_v2, %v136_v4  ;;  %v208_v12 = vadd.f32 %v492_v2, %v137_v5  ;;  %p435_p0 = scmp.ne.s32.totalorder %s419_s26, %s434_s27  ;;  %p440_p2 = scmp.lt.s32.totalorder %s434_s27, %s434_s27 }
  0x3b   :  { %v141_v13 = vmul.f32 %v487_v1, %v70_v63  ;;  %v269_v15 = vmul.f32 0.01, %v205_v6  ;;  %v209_v16 = vadd.f32 %v492_v2, %v138_v7  ;;  %v210_v17 = vadd.f32 %v492_v2, %v139_v8 }
  0x3c   :  { %v211_v18 = vadd.f32 %v492_v2, %v140_v9  ;;  %v270_v22 = vmul.f32 0.01, %v206_v10  ;;  %v271_v23 = vmul.f32 0.01, %v207_v11  ;;  %v272_v24 = vmul.f32 0.01, %v208_v12  ;;  %p441_p3 = por %p440_p2, %p439_p1 }
  0x3d   :  { %v212_v25 = vadd.f32 %v492_v2, %v141_v13  ;;  %v333_v26 = vmax.f32 %v205_v6, %v269_v15  ;;  %v273_v27 = vmul.f32 0.01, %v209_v16  ;;  %v274_v28 = vmul.f32 0.01, %v210_v17 }
  0x3e   :  { %v275_v29 = vmul.f32 0.01, %v211_v18  ;;  %v334_v30 = vmax.f32 %v206_v10, %v270_v22  ;;  %v335_v31 = vmax.f32 %v207_v11, %v271_v23  ;;  %v336_v32 = vmax.f32 %v208_v12, %v272_v24  ;;  %p442_p4 = pnand %p441_p3, %p435_p0 }
  0x3f   :  { %v276_v33 = vmul.f32 0.01, %v212_v25  ;;  %397 = vst [vmem:[#allocation2 + $0x180] sm:$0xff] %v333_v26  ;;  %v337_v37 = vmax.f32 %v209_v16, %v273_v27  ;;  %v338_v38 = vmax.f32 %v210_v17, %v274_v28  ;;  %v142_v40 = vmul.f32 %v487_v1, %v71_v14 }
  0x40   :  { %v339_v39 = vmax.f32 %v211_v18, %v275_v29  ;;  %398 = vst [vmem:[#allocation2 + $0x188] sm:$0xff] %v334_v30  ;;  %399 = vst [vmem:[#allocation2 + $0x190] sm:$0xff] %v335_v31  ;;  %v143_v43 = vmul.f32 %v487_v1, %v72_v19  ;;  %v144_v44 = vmul.f32 %v487_v1, %v73_v20 }
  0x41   :  { %400 = vst [vmem:[#allocation2 + $0x198] sm:$0xff] %v336_v32  ;;  %v340_v42 = vmax.f32 %v212_v25, %v276_v33  ;;  %v145_v45 = vmul.f32 %v487_v1, %v74_v21  ;;  %401 = vst [vmem:[#allocation2 + $0x1a0] sm:$0xff] %v337_v37  ;;  %v213_v46 = vadd.f32 %v492_v2, %v142_v40 }
  0x42   :  { %402 = vst [vmem:[#allocation2 + $0x1a8] sm:$0xff] %v338_v38  ;;  %403 = vst [vmem:[#allocation2 + $0x1b0] sm:$0xff] %v339_v39  ;;  %v146_v47 = vmul.f32 %v487_v1, %v75_v34  ;;  %v147_v48 = vmul.f32 %v487_v1, %v76_v35  ;;  %v148_v49 = vmul.f32 %v487_v1, %v77_v36 }
  0x43   :  { %404 = vst [vmem:[#allocation2 + $0x1b8] sm:$0xff] %v340_v42  ;;  %v214_v50 = vadd.f32 %v492_v2, %v143_v43  ;;  %v215_v51 = vadd.f32 %v492_v2, %v144_v44  ;;  %v216_v52 = vadd.f32 %v492_v2, %v145_v45  ;;  %v149_v53 = vmul.f32 %v487_v1, %v78_v41 }
  0x44   :  { %v277_v54 = vmul.f32 0.01, %v213_v46  ;;  %v217_v55 = vadd.f32 %v492_v2, %v146_v47  ;;  %v218_v56 = vadd.f32 %v492_v2, %v147_v48  ;;  %v219_v57 = vadd.f32 %v492_v2, %v148_v49 }
  0x45   :  { %v278_v58 = vmul.f32 0.01, %v214_v50  ;;  %v279_v59 = vmul.f32 0.01, %v215_v51  ;;  %v280_v60 = vmul.f32 0.01, %v216_v52  ;;  %v220_v61 = vadd.f32 %v492_v2, %v149_v53 }
  0x46   :  { %v341_v62 = vmax.f32 %v213_v46, %v277_v54  ;;  %v281_v63 = vmul.f32 0.01, %v217_v55  ;;  %v282_v0 = vmul.f32 0.01, %v218_v56  ;;  %v283_v3 = vmul.f32 0.01, %v219_v57 }
  0x47   :  { %v342_v4 = vmax.f32 %v214_v50, %v278_v58  ;;  %v343_v1 = vmax.f32 %v215_v51, %v279_v59  ;;  %v344_v5 = vmax.f32 %v216_v52, %v280_v60  ;;  %v284_v6 = vmul.f32 0.01, %v220_v61 }
  0x48   :  { %405 = vst [vmem:[#allocation2 + $0x1c0] sm:$0xff] %v341_v62  ;;  %v345_v7 = vmax.f32 %v217_v55, %v281_v63  ;;  %v346_v8 = vmax.f32 %v218_v56, %v282_v0  ;;  %v347_v9 = vmax.f32 %v219_v57, %v283_v3 }
  0x49   :  { %406 = vst [vmem:[#allocation2 + $0x1c8] sm:$0xff] %v342_v4  ;;  %407 = vst [vmem:[#allocation2 + $0x1d0] sm:$0xff] %v343_v1  ;;  %v348_v10 = vmax.f32 %v220_v61, %v284_v6 }
  0x4a   :  { %408 = vst [vmem:[#allocation2 + $0x1d8] sm:$0xff] %v344_v5  ;;  %409 = vst [vmem:[#allocation2 + $0x1e0] sm:$0xff] %v345_v7 }
  0x4b   :  { %410 = vst [vmem:[#allocation2 + $0x1e8] sm:$0xff] %v346_v8  ;;  %411 = vst [vmem:[#allocation2 + $0x1f0] sm:$0xff] %v347_v9 }
  0x4c   :  { %412 = vst [vmem:[#allocation2 + $0x1f8] sm:$0xff] %v348_v10 }
  0x4d   :  { %445 = shalt.err (!%p442_p4)
}
  0x4e   :  { %s446_s30 = scalar_lea.hbm %s826_s3, 8192 }
  0x4f   :  { %p447_p5 = scmp.ne.s32.totalorder %s826_s3, %s446_s30  ;;  %p450_p6 = scmp.lt.u32.totalorder %s446_s30, %s826_s3 }
  0x51   :  { %p452_p7 = pnand %p450_p6, %p447_p5 }
  0x53   :  { %455 = shalt.err (!%p452_p7)
}
  0x54   :  { %s459_s8 = smov 128   ;;  %s460_s9 = smov 8  }
  0x55   :  { %424 = dma.vmem_to_hbm [thread:$0]  %s419_s26, 8192, %s826_s3, [#allocation3], %s459_s8, %s459_s8, %s460_s9  }
  0x56   :  { %456 = dma.done.wait [#allocation3], 8192  }
  0x57   :  { %457 = vsyncadd [#allocation3], 4294959104 }
  0x58   :  { %428 = vsyncpa [#allocation3], 1 }

</bundles_post_ra>
